<compile_context>
chip_gen: v5e
topology: v5e:2x2
jax: 0.10.0
libtpu: 0.0.40
codegen_flags: <defaults>
</compile_context>

<pallas_src>
import numpy as np
import jax
import jax.numpy as jnp
from jax.experimental import pallas as pl
from jax.experimental.pallas import tpu as pltpu

EPS = 1e-5          # PyTorch BatchNorm2d default eps
C = 9               # conv1/conv2 channels
CP = 16             # channel rows padded to a multiple of 8
H = 8               # input height
W = 250             # input width
WCOL = W + 2        # per-example column block (one zero pad column each side)
H2 = 3              # conv2 output height ((8 - 3)//2 + 1)
C3 = 2              # conv3/conv4 channels
WP = W // 2         # pooled width (125)
R1 = H * CP         # 128 rows of the stage-1 slab (row = h*16 + c)
R2 = H2 * CP        # 48  rows of the stage-2 slab (row = oh*16 + c)
R3 = 8              # conv3 output rows (row = oh*2 + c; 6 used, padded to 8)
NCLS = 40           # linear5 output features
FEAT_BLK = 256      # per-channel block of the folded linear weight


def _round_up(n, m):
    return ((n + m - 1) // m) * m


def _spec(shape):
    n = len(shape)
    return pl.BlockSpec(shape, lambda i, n=n: (0,) * n)


# ---------------------------------------------------------------------------
# Fused kernel
# ---------------------------------------------------------------------------
def _make_kernel(batch, wtot):
    wblk = batch * WCOL                  # live column span (504 for batch=2)
    inv1 = 1.0 / (batch * H * W)         # BN1 per-channel element count
    inv2 = 1.0 / (batch * H2 * W)        # BN2 per-channel element count
    inv3 = 1.0 / (batch * WP)            # BN3/BN4 per-channel element count
    f32 = jnp.float32

    def batchnorm(y, mask, inv_n, grp, gamma, beta):
        # one-pass masked batch statistics (training-mode BN, biased variance)
        s1 = jnp.sum(y * mask, axis=1, keepdims=True)
        s2 = jnp.sum(y * y * mask, axis=1, keepdims=True)
        s = jnp.concatenate([s1, s2], axis=1)
        if grp is not None:              # sum rows belonging to the same channel
            s = jnp.dot(grp, s, preferred_element_type=f32)
        mu = s[:, 0:1] * inv_n
        var = s[:, 1:2] * inv_n - mu * mu
        return (y - mu) * (gamma * jax.lax.rsqrt(var + EPS)) + beta

    def kernel(x_ref, w1_ref, b1_ref, g1_ref, be1_ref, j1_ref,
               w2_ref, b2_ref, g2_ref, be2_ref, j2_ref,
               w3_ref, b3_ref, g3_ref, be3_ref,
               w4_ref, b4_ref, g4_ref, be4_ref,
               w5_ref, b5_ref, mv_ref, mp_ref,
               o_ref, y1s, y2s):
        mv = mv_ref[...]                 # (1, wtot) valid-data column mask
        mp = mp_ref[...]                 # (1, wtot) pooled-position column mask

        # ---- conv1 (1x1) -> tanh -> norm1 ---------------------------------
        y1 = jnp.tanh(jnp.dot(w1_ref[...], x_ref[...],
                              preferred_element_type=f32) + b1_ref[...])
        y1 = batchnorm(y1, mv, inv1, j1_ref[...], g1_ref[...], be1_ref[...])
        y1s[...] = y1 * mv               # zeroed pad columns = conv2 zero padding

        # ---- conv2 (3x3, stride (2,1), pad (0,1)) -> tanh -> norm2 ---------
        acc = b2_ref[...]
        for kw in range(3):              # kw taps = lane-shifted slab slices
            acc = acc + jnp.dot(w2_ref[kw * R2:(kw + 1) * R2, :],
                                y1s[:, kw:kw + wblk],
                                preferred_element_type=f32)
        y2 = jnp.concatenate(
            [jnp.zeros((R2, 1), f32), jnp.tanh(acc),
             jnp.zeros((R2, wtot - 1 - wblk), f32)], axis=1)
        y2 = batchnorm(y2, mv, inv2, j2_ref[...], g2_ref[...], be2_ref[...])
        y2s[...] = y2 * mv               # zeroed pad columns = conv3 zero padding

        # ---- conv3 (2x3, 'same') -> tanh ------------------------------------
        acc = b3_ref[...]
        for kw in range(3):
            acc = acc + jnp.dot(w3_ref[kw * R3:(kw + 1) * R3, :],
                                y2s[:, kw:kw + wblk],
                                preferred_element_type=f32)
        y3 = jnp.tanh(acc)               # (8, wblk), row = oh*2 + c

        # ---- maxpool 2x2 (floor mode: H row 2 dropped) -----------------------
        mrow = jnp.maximum(y3[0:2, :], y3[2:4, :])               # max over oh {0,1}
        md = jnp.maximum(mrow[:, 0:wblk - 1], mrow[:, 1:wblk])   # lane-pair max
        y4 = jnp.concatenate(
            [jnp.zeros((C3, 1), f32), md,
             jnp.zeros((C3, wtot - wblk), f32)], axis=1)         # (2, wtot)

        # ---- norm3 -> conv4 (1x1) -> tanh -> norm4 ---------------------------
        y4 = batchnorm(y4, mp, inv3, None, g3_ref[...], be3_ref[...])
        y4 = jnp.tanh(jnp.dot(w4_ref[...], y4,
                              preferred_element_type=f32) + b4_ref[...])
        y4 = batchnorm(y4, mp, inv3, None, g4_ref[...], be4_ref[...])

        # ---- flatten (channel-major) + linear5 -------------------------------
        # pooled-position gather is folded into w5eff (zeros elsewhere)
        feats = []
        for b in range(batch):
            base = 1 + b * WCOL
            feats.append(jnp.concatenate([y4[0:1, base:base + FEAT_BLK],
                                          y4[1:2, base:base + FEAT_BLK]],
                                         axis=1))
        feats = jnp.concatenate(feats, axis=0)                   # (batch, 512)
        o_ref[...] = jnp.dot(feats, w5_ref[...],
                             preferred_element_type=f32) + b5_ref[...]

    return kernel


# ---------------------------------------------------------------------------
# One-time parameter preprocessing (hoisted out of the hot path)
# ---------------------------------------------------------------------------
def preprocess_params(p, batch):
    P = {k: np.asarray(v, dtype=np.float32) for k, v in p.items()}
    wtot = _round_up(max(2 + batch * WCOL,
                         (batch - 1) * WCOL + 1 + FEAT_BLK), 128)

    def chan_rows(v, reps):              # (9,) -> (reps*16, 1)
        vp = np.zeros((CP,), np.float32)
        vp[:C] = v
        return np.tile(vp, reps).reshape(reps * CP, 1)

    # conv1 (1x1): block diagonal over h (rows/cols = h*16 + c)
    w1 = np.zeros((CP, CP), np.float32)
    w1[:C, :C] = P["w1"].reshape(C, C)
    w1eff = np.kron(np.eye(H, dtype=np.float32), w1)             # (128, 128)

    # channel-group matrices: sum rows of the same channel (BN1 / BN2)
    r = np.arange(R1)
    j1 = (r[:, None] % CP == r[None, :] % CP).astype(np.float32)  # (128, 128)
    r = np.arange(R2)
    j2 = (r[:, None] % CP == r[None, :] % CP).astype(np.float32)  # (48, 48)

    # conv2 (3x3, stride (2,1), pad (0,1)): fold (kh, oh); out rows = oh*16+c
    w2 = P["w2"]                                                  # (9,9,3,3)
    w2eff = np.zeros((3, R2, R1), np.float32)
    for kw in range(3):
        for oh in range(H2):
            for kh in range(3):
                h = 2 * oh + kh
                w2eff[kw, oh * CP:oh * CP + C,
                      h * CP:h * CP + C] = w2[:, :, kh, kw]
    w2eff = w2eff.reshape(3 * R2, R1)

    # conv3 (2x3, 'same' -> H pads (0,1), W pads (1,1)): out rows = oh*2 + c
    w3 = P["w3"]                                                  # (2,9,2,3)
    w3eff = np.zeros((3, R3, R2), np.float32)
    for kw in range(3):
        for oh in range(H2):
            for kh in range(2):
                h = oh + kh
                if h >= H2:              # bottom 'same' pad row contributes zero
                    continue
                w3eff[kw, oh * C3:oh * C3 + C3,
                      h * CP:h * CP + C] = w3[:, :, kh, kw]
    w3eff = w3eff.reshape(3 * R3, R2)

    b3row = np.zeros((R3, 1), np.float32)
    b3row[:H2 * C3, 0] = np.tile(P["b3"], H2)

    # linear5 with the pooled-position gather folded in:
    # pooled feature (c, j) sits at offset 1 + 2*j of the per-example block.
    w5 = P["w5"]                                                  # (40, 250)
    w5eff = np.zeros((C3 * FEAT_BLK, NCLS), np.float32)
    for c in range(C3):
        for j in range(WP):
            w5eff[c * FEAT_BLK + 1 + 2 * j, :] = w5[:, c * WP + j]

    # column masks (column = 1 + b*252 + (w+1))
    mvalid = np.zeros((1, wtot), np.float32)
    mpool = np.zeros((1, wtot), np.float32)
    for b in range(batch):
        base = 1 + b * WCOL
        mvalid[0, base + 1:base + 1 + W] = 1.0
        mpool[0, base + 1:base + 1 + W:2] = 1.0

    kp = dict(
        w1eff=w1eff, b1=chan_rows(P["b1"], H), g1=chan_rows(P["g1"], H),
        be1=chan_rows(P["be1"], H), j1=j1,
        w2eff=w2eff, b2=chan_rows(P["b2"], H2), g2=chan_rows(P["g2"], H2),
        be2=chan_rows(P["be2"], H2), j2=j2,
        w3eff=w3eff, b3=b3row,
        g3=P["g3"].reshape(C3, 1), be3=P["be3"].reshape(C3, 1),
        w4=P["w4"].reshape(C3, C3), b4=P["b4"].reshape(C3, 1),
        g4=P["g4"].reshape(C3, 1), be4=P["be4"].reshape(C3, 1),
        w5eff=w5eff, b5=P["b5"].reshape(1, NCLS),
        mvalid=mvalid, mpool=mpool,
    )
    return {k: jnp.asarray(v) for k, v in kp.items()}


# ---------------------------------------------------------------------------
# Forward pass: one layout transform + one pallas_call
# ---------------------------------------------------------------------------
def forward(x, kp):
    """x: (B, 9, 8, 250) float32; kp: output of preprocess_params(params, B)."""
    batch = x.shape[0]
    wtot = kp["mvalid"].shape[1]

    # Pack x into the slab layout: row = h*16 + c, column = 1 + b*252 + (w+1).
    xs = jnp.transpose(x, (2, 1, 0, 3)).astype(jnp.float32)      # (H, C, B, W)
    xs = jnp.pad(xs, ((0, 0), (0, CP - C), (0, 0), (1, 1)))
    xs = xs.reshape(R1, batch * WCOL)
    xs = jnp.pad(xs, ((0, 0), (1, wtot - 1 - batch * WCOL)))     # (128, wtot)

    order = ("w1eff", "b1", "g1", "be1", "j1",
             "w2eff", "b2", "g2", "be2", "j2",
             "w3eff", "b3", "g3", "be3",
             "w4", "b4", "g4", "be4",
             "w5eff", "b5", "mvalid", "mpool")
    args = (xs,) + tuple(kp[k] for k in order)

    # NOTE(v7x): grid=(1,) keeps one TensorCore busy; at batch=2 this network
    # is far too small to shard, so no core-parallel axis is added.
    return pl.pallas_call(
        _make_kernel(batch, wtot),
        grid=(1,),
        in_specs=[_spec(a.shape) for a in args],
        out_specs=_spec((batch, NCLS)),
        out_shape=jax.ShapeDtypeStruct((batch, NCLS), jnp.float32),
        scratch_shapes=[pltpu.VMEM((R1, wtot), jnp.float32),
                        pltpu.VMEM((R2, wtot), jnp.float32)],
        compiler_params=pltpu.CompilerParams(
            dimension_semantics=("arbitrary",)),
    )(*args)


# ---------------------------------------------------------------------------
# Deterministic parameter init + driver
# ---------------------------------------------------------------------------
def init_params(key):
    ks = jax.random.split(key, 22)
    r = lambda k, s, sc=0.1: sc * jax.random.normal(k, s, dtype=jnp.float32)
    return dict(
        w1=r(ks[0], (9, 9, 1, 1)), b1=r(ks[1], (9,)),
        g1=1.0 + r(ks[2], (9,)), be1=r(ks[3], (9,)),
        w2=r(ks[4], (9, 9, 3, 3)), b2=r(ks[5], (9,)),
        g2=1.0 + r(ks[6], (9,)), be2=r(ks[7], (9,)),
        w3=r(ks[8], (2, 9, 2, 3)), b3=r(ks[9], (2,)),
        g3=1.0 + r(ks[10], (2,)), be3=r(ks[11], (2,)),
        w4=r(ks[12], (2, 2, 1, 1)), b4=r(ks[13], (2,)),
        g4=1.0 + r(ks[14], (2,)), be4=r(ks[15], (2,)),
        w5=r(ks[16], (40, 250)), b5=r(ks[17], (40,)),
    )


if __name__ == "__main__":
    key = jax.random.PRNGKey(0)
    pkey, xkey = jax.random.split(key)
    params = init_params(pkey)
    kparams = preprocess_params(params, batch=2)     # one-time packing
    # Input consistent with Linear(250, 40): (B, 9, 8, 250) -> 2*1*125 = 250.
    x = jax.random.normal(xkey, (2, 9, 8, 250), dtype=jnp.float32)
    out = jax.block_until_ready(jax.jit(forward)(x, kparams))
    assert out.shape == (2, 40) and out.dtype == jnp.float32
    print("KERNEL_OK")
</pallas_src>

<mosaic_0001>
module attributes {stable_mosaic.version = 11 : i64} {
  func.func @kernel(%arg0: i32, %arg1: memref<128x512xf32, #tpu.memory_space<vmem>>, %arg2: memref<128x128xf32, #tpu.memory_space<vmem>>, %arg3: memref<128x1xf32, #tpu.memory_space<vmem>>, %arg4: memref<128x1xf32, #tpu.memory_space<vmem>>, %arg5: memref<128x1xf32, #tpu.memory_space<vmem>>, %arg6: memref<128x128xf32, #tpu.memory_space<vmem>>, %arg7: memref<144x128xf32, #tpu.memory_space<vmem>>, %arg8: memref<48x1xf32, #tpu.memory_space<vmem>>, %arg9: memref<48x1xf32, #tpu.memory_space<vmem>>, %arg10: memref<48x1xf32, #tpu.memory_space<vmem>>, %arg11: memref<48x48xf32, #tpu.memory_space<vmem>>, %arg12: memref<24x48xf32, #tpu.memory_space<vmem>>, %arg13: memref<8x1xf32, #tpu.memory_space<vmem>>, %arg14: memref<2x1xf32, #tpu.memory_space<vmem>>, %arg15: memref<2x1xf32, #tpu.memory_space<vmem>>, %arg16: memref<2x2xf32, #tpu.memory_space<vmem>>, %arg17: memref<2x1xf32, #tpu.memory_space<vmem>>, %arg18: memref<2x1xf32, #tpu.memory_space<vmem>>, %arg19: memref<2x1xf32, #tpu.memory_space<vmem>>, %arg20: memref<512x40xf32, #tpu.memory_space<vmem>>, %arg21: memref<1x40xf32, #tpu.memory_space<vmem>>, %arg22: memref<1x512xf32, #tpu.memory_space<vmem>>, %arg23: memref<1x512xf32, #tpu.memory_space<vmem>>, %arg24: memref<2x40xf32, #tpu.memory_space<vmem>>, %arg25: memref<128x512xf32, #tpu.memory_space<vmem>>, %arg26: memref<48x512xf32, #tpu.memory_space<vmem>>) attributes {dimension_semantics = [#tpu.dimension_semantics<arbitrary>], iteration_bounds = array<i64: 1>, scalar_prefetch = 0 : i64, scratch_operands = 2 : i64, tpu.core_type = #tpu.core_type<tc>, window_params = [{pipeline_mode = #tpu.pipeline_mode<synchronous>, transform_indices = @transform_0, window_bounds = array<i64: 128, 512>}, {pipeline_mode = #tpu.pipeline_mode<synchronous>, transform_indices = @transform_1, window_bounds = array<i64: 128, 128>}, {pipeline_mode = #tpu.pipeline_mode<synchronous>, transform_indices = @transform_2, window_bounds = array<i64: 128, 1>}, {pipeline_mode = #tpu.pipeline_mode<synchronous>, transform_indices = @transform_3, window_bounds = array<i64: 128, 1>}, {pipeline_mode = #tpu.pipeline_mode<synchronous>, transform_indices = @transform_4, window_bounds = array<i64: 128, 1>}, {pipeline_mode = #tpu.pipeline_mode<synchronous>, transform_indices = @transform_5, window_bounds = array<i64: 128, 128>}, {pipeline_mode = #tpu.pipeline_mode<synchronous>, transform_indices = @transform_6, window_bounds = array<i64: 144, 128>}, {pipeline_mode = #tpu.pipeline_mode<synchronous>, transform_indices = @transform_7, window_bounds = array<i64: 48, 1>}, {pipeline_mode = #tpu.pipeline_mode<synchronous>, transform_indices = @transform_8, window_bounds = array<i64: 48, 1>}, {pipeline_mode = #tpu.pipeline_mode<synchronous>, transform_indices = @transform_9, window_bounds = array<i64: 48, 1>}, {pipeline_mode = #tpu.pipeline_mode<synchronous>, transform_indices = @transform_10, window_bounds = array<i64: 48, 48>}, {pipeline_mode = #tpu.pipeline_mode<synchronous>, transform_indices = @transform_11, window_bounds = array<i64: 24, 48>}, {pipeline_mode = #tpu.pipeline_mode<synchronous>, transform_indices = @transform_12, window_bounds = array<i64: 8, 1>}, {pipeline_mode = #tpu.pipeline_mode<synchronous>, transform_indices = @transform_13, window_bounds = array<i64: 2, 1>}, {pipeline_mode = #tpu.pipeline_mode<synchronous>, transform_indices = @transform_14, window_bounds = array<i64: 2, 1>}, {pipeline_mode = #tpu.pipeline_mode<synchronous>, transform_indices = @transform_15, window_bounds = array<i64: 2, 2>}, {pipeline_mode = #tpu.pipeline_mode<synchronous>, transform_indices = @transform_16, window_bounds = array<i64: 2, 1>}, {pipeline_mode = #tpu.pipeline_mode<synchronous>, transform_indices = @transform_17, window_bounds = array<i64: 2, 1>}, {pipeline_mode = #tpu.pipeline_mode<synchronous>, transform_indices = @transform_18, window_bounds = array<i64: 2, 1>}, {pipeline_mode = #tpu.pipeline_mode<synchronous>, transform_indices = @transform_19, window_bounds = array<i64: 512, 40>}, {pipeline_mode = #tpu.pipeline_mode<synchronous>, transform_indices = @transform_20, window_bounds = array<i64: 1, 40>}, {pipeline_mode = #tpu.pipeline_mode<synchronous>, transform_indices = @transform_21, window_bounds = array<i64: 1, 512>}, {pipeline_mode = #tpu.pipeline_mode<synchronous>, transform_indices = @transform_22, window_bounds = array<i64: 1, 512>}, {pipeline_mode = #tpu.pipeline_mode<synchronous>, transform_indices = @transform_23, window_bounds = array<i64: 2, 40>}]} {
    %c0 = arith.constant 0 : index
    %c0_0 = arith.constant 0 : index
    %0 = vector.load %arg22[%c0, %c0_0] : memref<1x512xf32, #tpu.memory_space<vmem>>, vector<1x512xf32>
    %c0_1 = arith.constant 0 : index
    %c0_2 = arith.constant 0 : index
    %1 = vector.load %arg23[%c0_1, %c0_2] : memref<1x512xf32, #tpu.memory_space<vmem>>, vector<1x512xf32>
    %c0_3 = arith.constant 0 : index
    %c0_4 = arith.constant 0 : index
    %2 = vector.load %arg2[%c0_3, %c0_4] : memref<128x128xf32, #tpu.memory_space<vmem>>, vector<128x128xf32>
    %c0_5 = arith.constant 0 : index
    %c0_6 = arith.constant 0 : index
    %3 = vector.load %arg1[%c0_5, %c0_6] : memref<128x512xf32, #tpu.memory_space<vmem>>, vector<128x512xf32>
    %cst = arith.constant dense<0.000000e+00> : vector<128x512xf32>
    %4 = tpu.matmul %2, %3, %cst {dimension_numbers = #tpu.dot_dimension_numbers<[1], [0], [0], [1], [0, 0, 1, 1], [], []>} : vector<128x128xf32>, vector<128x512xf32>, vector<128x512xf32> -> vector<128x512xf32>
    %c0_7 = arith.constant 0 : index
    %c0_8 = arith.constant 0 : index
    %5 = vector.load %arg3[%c0_7, %c0_8] : memref<128x1xf32, #tpu.memory_space<vmem>>, vector<128x1xf32>
    %6 = vector.broadcast %5 : vector<128x1xf32> to vector<128x512xf32>
    %7 = arith.addf %4, %6 : vector<128x512xf32>
    %8 = math.tanh %7 : vector<128x512xf32>
    %c0_9 = arith.constant 0 : index
    %c0_10 = arith.constant 0 : index
    %9 = vector.load %arg6[%c0_9, %c0_10] : memref<128x128xf32, #tpu.memory_space<vmem>>, vector<128x128xf32>
    %c0_11 = arith.constant 0 : index
    %c0_12 = arith.constant 0 : index
    %10 = vector.load %arg4[%c0_11, %c0_12] : memref<128x1xf32, #tpu.memory_space<vmem>>, vector<128x1xf32>
    %c0_13 = arith.constant 0 : index
    %c0_14 = arith.constant 0 : index
    %11 = vector.load %arg5[%c0_13, %c0_14] : memref<128x1xf32, #tpu.memory_space<vmem>>, vector<128x1xf32>
    %12 = vector.broadcast %0 : vector<1x512xf32> to vector<128x512xf32>
    %13 = arith.mulf %8, %12 : vector<128x512xf32>
    %cst_15 = arith.constant dense<0.000000e+00> : vector<128xf32>
    %14 = vector.multi_reduction <add>, %13, %cst_15 [1] : vector<128x512xf32> to vector<128xf32>
    %15 = vector.shape_cast %14 : vector<128xf32> to vector<128x1xf32>
    %16 = arith.mulf %8, %8 : vector<128x512xf32>
    %17 = vector.broadcast %0 : vector<1x512xf32> to vector<128x512xf32>
    %18 = arith.mulf %16, %17 : vector<128x512xf32>
    %cst_16 = arith.constant dense<0.000000e+00> : vector<128xf32>
    %19 = vector.multi_reduction <add>, %18, %cst_16 [1] : vector<128x512xf32> to vector<128xf32>
    %20 = vector.shape_cast %19 : vector<128xf32> to vector<128x1xf32>
    %21 = tpu.concatenate %15, %20 in 1 : vector<128x1xf32>, vector<128x1xf32> -> vector<128x2xf32>
    %cst_17 = arith.constant dense<0.000000e+00> : vector<128x2xf32>
    %22 = tpu.matmul %9, %21, %cst_17 {dimension_numbers = #tpu.dot_dimension_numbers<[1], [0], [0], [1], [0, 0, 1, 1], [], []>} : vector<128x128xf32>, vector<128x2xf32>, vector<128x2xf32> -> vector<128x2xf32>
    %23 = vector.extract_strided_slice %22 {offsets = [0, 0], sizes = [128, 1], strides = [1, 1]} : vector<128x2xf32> to vector<128x1xf32>
    %cst_18 = arith.constant 2.500000e-04 : f32
    %24 = vector.broadcast %cst_18 : f32 to vector<128x1xf32>
    %25 = arith.mulf %23, %24 : vector<128x1xf32>
    %26 = vector.extract_strided_slice %22 {offsets = [0, 1], sizes = [128, 1], strides = [1, 1]} : vector<128x2xf32> to vector<128x1xf32>
    %cst_19 = arith.constant 2.500000e-04 : f32
    %27 = vector.broadcast %cst_19 : f32 to vector<128x1xf32>
    %28 = arith.mulf %26, %27 : vector<128x1xf32>
    %29 = arith.mulf %25, %25 : vector<128x1xf32>
    %30 = arith.subf %28, %29 : vector<128x1xf32>
    %31 = vector.broadcast %25 : vector<128x1xf32> to vector<128x512xf32>
    %32 = arith.subf %8, %31 : vector<128x512xf32>
    %cst_20 = arith.constant 9.99999974E-6 : f32
    %33 = vector.broadcast %cst_20 : f32 to vector<128x1xf32>
    %34 = arith.addf %30, %33 : vector<128x1xf32>
    %35 = math.rsqrt %34 : vector<128x1xf32>
    %36 = arith.mulf %10, %35 : vector<128x1xf32>
    %37 = vector.broadcast %36 : vector<128x1xf32> to vector<128x512xf32>
    %38 = arith.mulf %32, %37 : vector<128x512xf32>
    %39 = vector.broadcast %11 : vector<128x1xf32> to vector<128x512xf32>
    %40 = arith.addf %38, %39 : vector<128x512xf32>
    %41 = vector.broadcast %0 : vector<1x512xf32> to vector<128x512xf32>
    %42 = arith.mulf %40, %41 : vector<128x512xf32>
    %c0_21 = arith.constant 0 : index
    %c0_22 = arith.constant 0 : index
    %43 = vector.load %arg25[%c0_21, %c0_22] : memref<128x512xf32, #tpu.memory_space<vmem>>, vector<128x512xf32>
    tpu.vector_store %arg25[%c0_21, %c0_22], %42 {strides = array<i32>} : memref<128x512xf32, #tpu.memory_space<vmem>>, vector<128x512xf32>,
    %c0_23 = arith.constant 0 : index
    %c0_24 = arith.constant 0 : index
    %44 = vector.load %arg8[%c0_23, %c0_24] : memref<48x1xf32, #tpu.memory_space<vmem>>, vector<48x1xf32>
    %c0_25 = arith.constant 0 : index
    %c0_26 = arith.constant 0 : index
    %45 = vector.load %arg7[%c0_25, %c0_26] : memref<144x128xf32, #tpu.memory_space<vmem>>, vector<48x128xf32>
    %c0_27 = arith.constant 0 : index
    %c0_28 = arith.constant 0 : index
    %46 = vector.load %arg25[%c0_27, %c0_28] : memref<128x512xf32, #tpu.memory_space<vmem>>, vector<128x504xf32>
    %cst_29 = arith.constant dense<0.000000e+00> : vector<48x504xf32>
    %47 = tpu.matmul %45, %46, %cst_29 {dimension_numbers = #tpu.dot_dimension_numbers<[1], [0], [0], [1], [0, 0, 1, 1], [], []>} : vector<48x128xf32>, vector<128x504xf32>, vector<48x504xf32> -> vector<48x504xf32>
    %48 = vector.broadcast %44 : vector<48x1xf32> to vector<48x504xf32>
    %49 = arith.addf %48, %47 : vector<48x504xf32>
    %c48 = arith.constant 48 : index
    %c0_30 = arith.constant 0 : index
    %50 = vector.load %arg7[%c48, %c0_30] : memref<144x128xf32, #tpu.memory_space<vmem>>, vector<48x128xf32>
    %c0_31 = arith.constant 0 : index
    %c1 = arith.constant 1 : index
    %51 = vector.load %arg25[%c0_31, %c1] : memref<128x512xf32, #tpu.memory_space<vmem>>, vector<128x504xf32>
    %cst_32 = arith.constant dense<0.000000e+00> : vector<48x504xf32>
    %52 = tpu.matmul %50, %51, %cst_32 {dimension_numbers = #tpu.dot_dimension_numbers<[1], [0], [0], [1], [0, 0, 1, 1], [], []>} : vector<48x128xf32>, vector<128x504xf32>, vector<48x504xf32> -> vector<48x504xf32>
    %53 = arith.addf %49, %52 : vector<48x504xf32>
    %c96 = arith.constant 96 : index
    %c0_33 = arith.constant 0 : index
    %54 = vector.load %arg7[%c96, %c0_33] : memref<144x128xf32, #tpu.memory_space<vmem>>, vector<48x128xf32>
    %c0_34 = arith.constant 0 : index
    %c2 = arith.constant 2 : index
    %55 = vector.load %arg25[%c0_34, %c2] : memref<128x512xf32, #tpu.memory_space<vmem>>, vector<128x504xf32>
    %cst_35 = arith.constant dense<0.000000e+00> : vector<48x504xf32>
    %56 = tpu.matmul %54, %55, %cst_35 {dimension_numbers = #tpu.dot_dimension_numbers<[1], [0], [0], [1], [0, 0, 1, 1], [], []>} : vector<48x128xf32>, vector<128x504xf32>, vector<48x504xf32> -> vector<48x504xf32>
    %57 = arith.addf %53, %56 : vector<48x504xf32>
    %cst_36 = arith.constant 0.000000e+00 : f32
    %58 = vector.broadcast %cst_36 : f32 to vector<48x1xf32>
    %59 = math.tanh %57 : vector<48x504xf32>
    %cst_37 = arith.constant 0.000000e+00 : f32
    %60 = vector.broadcast %cst_37 : f32 to vector<48x7xf32>
    %61 = tpu.concatenate %58, %59, %60 in 1 : vector<48x1xf32>, vector<48x504xf32>, vector<48x7xf32> -> vector<48x512xf32>
    %c0_38 = arith.constant 0 : index
    %c0_39 = arith.constant 0 : index
    %62 = vector.load %arg11[%c0_38, %c0_39] : memref<48x48xf32, #tpu.memory_space<vmem>>, vector<48x48xf32>
    %c0_40 = arith.constant 0 : index
    %c0_41 = arith.constant 0 : index
    %63 = vector.load %arg9[%c0_40, %c0_41] : memref<48x1xf32, #tpu.memory_space<vmem>>, vector<48x1xf32>
    %c0_42 = arith.constant 0 : index
    %c0_43 = arith.constant 0 : index
    %64 = vector.load %arg10[%c0_42, %c0_43] : memref<48x1xf32, #tpu.memory_space<vmem>>, vector<48x1xf32>
    %65 = vector.broadcast %0 : vector<1x512xf32> to vector<48x512xf32>
    %66 = arith.mulf %61, %65 : vector<48x512xf32>
    %cst_44 = arith.constant dense<0.000000e+00> : vector<48xf32>
    %67 = vector.multi_reduction <add>, %66, %cst_44 [1] : vector<48x512xf32> to vector<48xf32>
    %68 = vector.shape_cast %67 : vector<48xf32> to vector<48x1xf32>
    %69 = arith.mulf %61, %61 : vector<48x512xf32>
    %70 = vector.broadcast %0 : vector<1x512xf32> to vector<48x512xf32>
    %71 = arith.mulf %69, %70 : vector<48x512xf32>
    %cst_45 = arith.constant dense<0.000000e+00> : vector<48xf32>
    %72 = vector.multi_reduction <add>, %71, %cst_45 [1] : vector<48x512xf32> to vector<48xf32>
    %73 = vector.shape_cast %72 : vector<48xf32> to vector<48x1xf32>
    %74 = tpu.concatenate %68, %73 in 1 : vector<48x1xf32>, vector<48x1xf32> -> vector<48x2xf32>
    %cst_46 = arith.constant dense<0.000000e+00> : vector<48x2xf32>
    %75 = tpu.matmul %62, %74, %cst_46 {dimension_numbers = #tpu.dot_dimension_numbers<[1], [0], [0], [1], [0, 0, 1, 1], [], []>} : vector<48x48xf32>, vector<48x2xf32>, vector<48x2xf32> -> vector<48x2xf32>
    %76 = vector.extract_strided_slice %75 {offsets = [0, 0], sizes = [48, 1], strides = [1, 1]} : vector<48x2xf32> to vector<48x1xf32>
    %cst_47 = arith.constant 6.66666659E-4 : f32
    %77 = vector.broadcast %cst_47 : f32 to vector<48x1xf32>
    %78 = arith.mulf %76, %77 : vector<48x1xf32>
    %79 = vector.extract_strided_slice %75 {offsets = [0, 1], sizes = [48, 1], strides = [1, 1]} : vector<48x2xf32> to vector<48x1xf32>
    %cst_48 = arith.constant 6.66666659E-4 : f32
    %80 = vector.broadcast %cst_48 : f32 to vector<48x1xf32>
    %81 = arith.mulf %79, %80 : vector<48x1xf32>
    %82 = arith.mulf %78, %78 : vector<48x1xf32>
    %83 = arith.subf %81, %82 : vector<48x1xf32>
    %84 = vector.broadcast %78 : vector<48x1xf32> to vector<48x512xf32>
    %85 = arith.subf %61, %84 : vector<48x512xf32>
    %cst_49 = arith.constant 9.99999974E-6 : f32
    %86 = vector.broadcast %cst_49 : f32 to vector<48x1xf32>
    %87 = arith.addf %83, %86 : vector<48x1xf32>
    %88 = math.rsqrt %87 : vector<48x1xf32>
    %89 = arith.mulf %63, %88 : vector<48x1xf32>
    %90 = vector.broadcast %89 : vector<48x1xf32> to vector<48x512xf32>
    %91 = arith.mulf %85, %90 : vector<48x512xf32>
    %92 = vector.broadcast %64 : vector<48x1xf32> to vector<48x512xf32>
    %93 = arith.addf %91, %92 : vector<48x512xf32>
    %94 = vector.broadcast %0 : vector<1x512xf32> to vector<48x512xf32>
    %95 = arith.mulf %93, %94 : vector<48x512xf32>
    %c0_50 = arith.constant 0 : index
    %c0_51 = arith.constant 0 : index
    %96 = vector.load %arg26[%c0_50, %c0_51] : memref<48x512xf32, #tpu.memory_space<vmem>>, vector<48x512xf32>
    tpu.vector_store %arg26[%c0_50, %c0_51], %95 {strides = array<i32>} : memref<48x512xf32, #tpu.memory_space<vmem>>, vector<48x512xf32>,
    %c0_52 = arith.constant 0 : index
    %c0_53 = arith.constant 0 : index
    %97 = vector.load %arg13[%c0_52, %c0_53] : memref<8x1xf32, #tpu.memory_space<vmem>>, vector<8x1xf32>
    %c0_54 = arith.constant 0 : index
    %c0_55 = arith.constant 0 : index
    %98 = vector.load %arg12[%c0_54, %c0_55] : memref<24x48xf32, #tpu.memory_space<vmem>>, vector<8x48xf32>
    %c0_56 = arith.constant 0 : index
    %c0_57 = arith.constant 0 : index
    %99 = vector.load %arg26[%c0_56, %c0_57] : memref<48x512xf32, #tpu.memory_space<vmem>>, vector<48x504xf32>
    %cst_58 = arith.constant dense<0.000000e+00> : vector<8x504xf32>
    %100 = tpu.matmul %98, %99, %cst_58 {dimension_numbers = #tpu.dot_dimension_numbers<[1], [0], [0], [1], [0, 0, 1, 1], [], []>} : vector<8x48xf32>, vector<48x504xf32>, vector<8x504xf32> -> vector<8x504xf32>
    %101 = vector.broadcast %97 : vector<8x1xf32> to vector<8x504xf32>
    %102 = arith.addf %101, %100 : vector<8x504xf32>
    %c8 = arith.constant 8 : index
    %c0_59 = arith.constant 0 : index
    %103 = vector.load %arg12[%c8, %c0_59] : memref<24x48xf32, #tpu.memory_space<vmem>>, vector<8x48xf32>
    %c0_60 = arith.constant 0 : index
    %c1_61 = arith.constant 1 : index
    %104 = vector.load %arg26[%c0_60, %c1_61] : memref<48x512xf32, #tpu.memory_space<vmem>>, vector<48x504xf32>
    %cst_62 = arith.constant dense<0.000000e+00> : vector<8x504xf32>
    %105 = tpu.matmul %103, %104, %cst_62 {dimension_numbers = #tpu.dot_dimension_numbers<[1], [0], [0], [1], [0, 0, 1, 1], [], []>} : vector<8x48xf32>, vector<48x504xf32>, vector<8x504xf32> -> vector<8x504xf32>
    %106 = arith.addf %102, %105 : vector<8x504xf32>
    %c16 = arith.constant 16 : index
    %c0_63 = arith.constant 0 : index
    %107 = vector.load %arg12[%c16, %c0_63] : memref<24x48xf32, #tpu.memory_space<vmem>>, vector<8x48xf32>
    %c0_64 = arith.constant 0 : index
    %c2_65 = arith.constant 2 : index
    %108 = vector.load %arg26[%c0_64, %c2_65] : memref<48x512xf32, #tpu.memory_space<vmem>>, vector<48x504xf32>
    %cst_66 = arith.constant dense<0.000000e+00> : vector<8x504xf32>
    %109 = tpu.matmul %107, %108, %cst_66 {dimension_numbers = #tpu.dot_dimension_numbers<[1], [0], [0], [1], [0, 0, 1, 1], [], []>} : vector<8x48xf32>, vector<48x504xf32>, vector<8x504xf32> -> vector<8x504xf32>
    %110 = arith.addf %106, %109 : vector<8x504xf32>
    %111 = math.tanh %110 : vector<8x504xf32>
    %112 = vector.extract_strided_slice %111 {offsets = [0, 0], sizes = [2, 504], strides = [1, 1]} : vector<8x504xf32> to vector<2x504xf32>
    %113 = vector.extract_strided_slice %111 {offsets = [2, 0], sizes = [2, 504], strides = [1, 1]} : vector<8x504xf32> to vector<2x504xf32>
    %114 = arith.maximumf %112, %113 : vector<2x504xf32>
    %115 = vector.extract_strided_slice %114 {offsets = [0, 0], sizes = [2, 503], strides = [1, 1]} : vector<2x504xf32> to vector<2x503xf32>
    %116 = vector.extract_strided_slice %114 {offsets = [0, 1], sizes = [2, 503], strides = [1, 1]} : vector<2x504xf32> to vector<2x503xf32>
    %117 = arith.maximumf %115, %116 : vector<2x503xf32>
    %cst_67 = arith.constant 0.000000e+00 : f32
    %118 = vector.broadcast %cst_67 : f32 to vector<2x1xf32>
    %cst_68 = arith.constant 0.000000e+00 : f32
    %119 = vector.broadcast %cst_68 : f32 to vector<2x8xf32>
    %120 = tpu.concatenate %118, %117, %119 in 1 : vector<2x1xf32>, vector<2x503xf32>, vector<2x8xf32> -> vector<2x512xf32>
    %c0_69 = arith.constant 0 : index
    %c0_70 = arith.constant 0 : index
    %121 = vector.load %arg14[%c0_69, %c0_70] : memref<2x1xf32, #tpu.memory_space<vmem>>, vector<2x1xf32>
    %c0_71 = arith.constant 0 : index
    %c0_72 = arith.constant 0 : index
    %122 = vector.load %arg15[%c0_71, %c0_72] : memref<2x1xf32, #tpu.memory_space<vmem>>, vector<2x1xf32>
    %123 = vector.broadcast %1 : vector<1x512xf32> to vector<2x512xf32>
    %124 = arith.mulf %120, %123 : vector<2x512xf32>
    %cst_73 = arith.constant dense<0.000000e+00> : vector<2xf32>
    %125 = vector.multi_reduction <add>, %124, %cst_73 [1] : vector<2x512xf32> to vector<2xf32>
    %126 = vector.shape_cast %125 : vector<2xf32> to vector<2x1xf32>
    %127 = arith.mulf %120, %120 : vector<2x512xf32>
    %128 = vector.broadcast %1 : vector<1x512xf32> to vector<2x512xf32>
    %129 = arith.mulf %127, %128 : vector<2x512xf32>
    %cst_74 = arith.constant dense<0.000000e+00> : vector<2xf32>
    %130 = vector.multi_reduction <add>, %129, %cst_74 [1] : vector<2x512xf32> to vector<2xf32>
    %131 = vector.shape_cast %130 : vector<2xf32> to vector<2x1xf32>
    %132 = tpu.concatenate %126, %131 in 1 : vector<2x1xf32>, vector<2x1xf32> -> vector<2x2xf32>
    %133 = vector.extract_strided_slice %132 {offsets = [0, 0], sizes = [2, 1], strides = [1, 1]} : vector<2x2xf32> to vector<2x1xf32>
    %cst_75 = arith.constant 4.000000e-03 : f32
    %134 = vector.broadcast %cst_75 : f32 to vector<2x1xf32>
    %135 = arith.mulf %133, %134 : vector<2x1xf32>
    %136 = vector.extract_strided_slice %132 {offsets = [0, 1], sizes = [2, 1], strides = [1, 1]} : vector<2x2xf32> to vector<2x1xf32>
    %cst_76 = arith.constant 4.000000e-03 : f32
    %137 = vector.broadcast %cst_76 : f32 to vector<2x1xf32>
    %138 = arith.mulf %136, %137 : vector<2x1xf32>
    %139 = arith.mulf %135, %135 : vector<2x1xf32>
    %140 = arith.subf %138, %139 : vector<2x1xf32>
    %141 = vector.broadcast %135 : vector<2x1xf32> to vector<2x512xf32>
    %142 = arith.subf %120, %141 : vector<2x512xf32>
    %cst_77 = arith.constant 9.99999974E-6 : f32
    %143 = vector.broadcast %cst_77 : f32 to vector<2x1xf32>
    %144 = arith.addf %140, %143 : vector<2x1xf32>
    %145 = math.rsqrt %144 : vector<2x1xf32>
    %146 = arith.mulf %121, %145 : vector<2x1xf32>
    %147 = vector.broadcast %146 : vector<2x1xf32> to vector<2x512xf32>
    %148 = arith.mulf %142, %147 : vector<2x512xf32>
    %149 = vector.broadcast %122 : vector<2x1xf32> to vector<2x512xf32>
    %150 = arith.addf %148, %149 : vector<2x512xf32>
    %c0_78 = arith.constant 0 : index
    %c0_79 = arith.constant 0 : index
    %151 = vector.load %arg16[%c0_78, %c0_79] : memref<2x2xf32, #tpu.memory_space<vmem>>, vector<2x2xf32>
    %cst_80 = arith.constant dense<0.000000e+00> : vector<2x512xf32>
    %152 = tpu.matmul %151, %150, %cst_80 {dimension_numbers = #tpu.dot_dimension_numbers<[1], [0], [0], [1], [0, 0, 1, 1], [], []>} : vector<2x2xf32>, vector<2x512xf32>, vector<2x512xf32> -> vector<2x512xf32>
    %c0_81 = arith.constant 0 : index
    %c0_82 = arith.constant 0 : index
    %153 = vector.load %arg17[%c0_81, %c0_82] : memref<2x1xf32, #tpu.memory_space<vmem>>, vector<2x1xf32>
    %154 = vector.broadcast %153 : vector<2x1xf32> to vector<2x512xf32>
    %155 = arith.addf %152, %154 : vector<2x512xf32>
    %156 = math.tanh %155 : vector<2x512xf32>
    %c0_83 = arith.constant 0 : index
    %c0_84 = arith.constant 0 : index
    %157 = vector.load %arg18[%c0_83, %c0_84] : memref<2x1xf32, #tpu.memory_space<vmem>>, vector<2x1xf32>
    %c0_85 = arith.constant 0 : index
    %c0_86 = arith.constant 0 : index
    %158 = vector.load %arg19[%c0_85, %c0_86] : memref<2x1xf32, #tpu.memory_space<vmem>>, vector<2x1xf32>
    %159 = vector.broadcast %1 : vector<1x512xf32> to vector<2x512xf32>
    %160 = arith.mulf %156, %159 : vector<2x512xf32>
    %cst_87 = arith.constant dense<0.000000e+00> : vector<2xf32>
    %161 = vector.multi_reduction <add>, %160, %cst_87 [1] : vector<2x512xf32> to vector<2xf32>
    %162 = vector.shape_cast %161 : vector<2xf32> to vector<2x1xf32>
    %163 = arith.mulf %156, %156 : vector<2x512xf32>
    %164 = vector.broadcast %1 : vector<1x512xf32> to vector<2x512xf32>
    %165 = arith.mulf %163, %164 : vector<2x512xf32>
    %cst_88 = arith.constant dense<0.000000e+00> : vector<2xf32>
    %166 = vector.multi_reduction <add>, %165, %cst_88 [1] : vector<2x512xf32> to vector<2xf32>
    %167 = vector.shape_cast %166 : vector<2xf32> to vector<2x1xf32>
    %168 = tpu.concatenate %162, %167 in 1 : vector<2x1xf32>, vector<2x1xf32> -> vector<2x2xf32>
    %169 = vector.extract_strided_slice %168 {offsets = [0, 0], sizes = [2, 1], strides = [1, 1]} : vector<2x2xf32> to vector<2x1xf32>
    %cst_89 = arith.constant 4.000000e-03 : f32
    %170 = vector.broadcast %cst_89 : f32 to vector<2x1xf32>
    %171 = arith.mulf %169, %170 : vector<2x1xf32>
    %172 = vector.extract_strided_slice %168 {offsets = [0, 1], sizes = [2, 1], strides = [1, 1]} : vector<2x2xf32> to vector<2x1xf32>
    %cst_90 = arith.constant 4.000000e-03 : f32
    %173 = vector.broadcast %cst_90 : f32 to vector<2x1xf32>
    %174 = arith.mulf %172, %173 : vector<2x1xf32>
    %175 = arith.mulf %171, %171 : vector<2x1xf32>
    %176 = arith.subf %174, %175 : vector<2x1xf32>
    %177 = vector.broadcast %171 : vector<2x1xf32> to vector<2x512xf32>
    %178 = arith.subf %156, %177 : vector<2x512xf32>
    %cst_91 = arith.constant 9.99999974E-6 : f32
    %179 = vector.broadcast %cst_91 : f32 to vector<2x1xf32>
    %180 = arith.addf %176, %179 : vector<2x1xf32>
    %181 = math.rsqrt %180 : vector<2x1xf32>
    %182 = arith.mulf %157, %181 : vector<2x1xf32>
    %183 = vector.broadcast %182 : vector<2x1xf32> to vector<2x512xf32>
    %184 = arith.mulf %178, %183 : vector<2x512xf32>
    %185 = vector.broadcast %158 : vector<2x1xf32> to vector<2x512xf32>
    %186 = arith.addf %184, %185 : vector<2x512xf32>
    %187 = vector.extract_strided_slice %186 {offsets = [0, 1], sizes = [1, 256], strides = [1, 1]} : vector<2x512xf32> to vector<1x256xf32>
    %188 = vector.extract_strided_slice %186 {offsets = [1, 1], sizes = [1, 256], strides = [1, 1]} : vector<2x512xf32> to vector<1x256xf32>
    %189 = tpu.concatenate %187, %188 in 1 : vector<1x256xf32>, vector<1x256xf32> -> vector<1x512xf32>
    %190 = vector.extract_strided_slice %186 {offsets = [0, 253], sizes = [1, 256], strides = [1, 1]} : vector<2x512xf32> to vector<1x256xf32>
    %191 = vector.extract_strided_slice %186 {offsets = [1, 253], sizes = [1, 256], strides = [1, 1]} : vector<2x512xf32> to vector<1x256xf32>
    %192 = tpu.concatenate %190, %191 in 1 : vector<1x256xf32>, vector<1x256xf32> -> vector<1x512xf32>
    %193 = tpu.concatenate %189, %192 in 0 : vector<1x512xf32>, vector<1x512xf32> -> vector<2x512xf32>
    %c0_92 = arith.constant 0 : index
    %c0_93 = arith.constant 0 : index
    %194 = vector.load %arg20[%c0_92, %c0_93] : memref<512x40xf32, #tpu.memory_space<vmem>>, vector<512x40xf32>
    %cst_94 = arith.constant dense<0.000000e+00> : vector<2x40xf32>
    %195 = tpu.matmul %193, %194, %cst_94 {dimension_numbers = #tpu.dot_dimension_numbers<[1], [0], [0], [1], [0, 0, 1, 1], [], []>} : vector<2x512xf32>, vector<512x40xf32>, vector<2x40xf32> -> vector<2x40xf32>
    %c0_95 = arith.constant 0 : index
    %c0_96 = arith.constant 0 : index
    %196 = vector.load %arg21[%c0_95, %c0_96] : memref<1x40xf32, #tpu.memory_space<vmem>>, vector<1x40xf32>
    %197 = vector.broadcast %196 : vector<1x40xf32> to vector<2x40xf32>
    %198 = arith.addf %195, %197 : vector<2x40xf32>
    %c0_97 = arith.constant 0 : index
    %c0_98 = arith.constant 0 : index
    %199 = vector.load %arg24[%c0_97, %c0_98] : memref<2x40xf32, #tpu.memory_space<vmem>>, vector<2x40xf32>
    tpu.vector_store %arg24[%c0_97, %c0_98], %198 {strides = array<i32>} : memref<2x40xf32, #tpu.memory_space<vmem>>, vector<2x40xf32>,
    return
  }
  func.func @transform_0(%arg0: i32) -> (i32, i32) {
    %c0_i32 = arith.constant 0 : i32
    %c0_i32_0 = arith.constant 0 : i32
    %c0_i32_1 = arith.constant 0 : i32
    return %c0_i32, %c0_i32_0 : i32, i32
  }
  func.func @transform_1(%arg0: i32) -> (i32, i32) {
    %c0_i32 = arith.constant 0 : i32
    %c0_i32_0 = arith.constant 0 : i32
    %c0_i32_1 = arith.constant 0 : i32
    return %c0_i32, %c0_i32_0 : i32, i32
  }
  func.func @transform_2(%arg0: i32) -> (i32, i32) {
    %c0_i32 = arith.constant 0 : i32
    %c0_i32_0 = arith.constant 0 : i32
    %c0_i32_1 = arith.constant 0 : i32
    return %c0_i32, %c0_i32_0 : i32, i32
  }
  func.func @transform_3(%arg0: i32) -> (i32, i32) {
    %c0_i32 = arith.constant 0 : i32
    %c0_i32_0 = arith.constant 0 : i32
    %c0_i32_1 = arith.constant 0 : i32
    return %c0_i32, %c0_i32_0 : i32, i32
  }
  func.func @transform_4(%arg0: i32) -> (i32, i32) {
    %c0_i32 = arith.constant 0 : i32
    %c0_i32_0 = arith.constant 0 : i32
    %c0_i32_1 = arith.constant 0 : i32
    return %c0_i32, %c0_i32_0 : i32, i32
  }
  func.func @transform_5(%arg0: i32) -> (i32, i32) {
    %c0_i32 = arith.constant 0 : i32
    %c0_i32_0 = arith.constant 0 : i32
    %c0_i32_1 = arith.constant 0 : i32
    return %c0_i32, %c0_i32_0 : i32, i32
  }
  func.func @transform_6(%arg0: i32) -> (i32, i32) {
    %c0_i32 = arith.constant 0 : i32
    %c0_i32_0 = arith.constant 0 : i32
    %c0_i32_1 = arith.constant 0 : i32
    return %c0_i32, %c0_i32_0 : i32, i32
  }
  func.func @transform_7(%arg0: i32) -> (i32, i32) {
    %c0_i32 = arith.constant 0 : i32
    %c0_i32_0 = arith.constant 0 : i32
    %c0_i32_1 = arith.constant 0 : i32
    return %c0_i32, %c0_i32_0 : i32, i32
  }
  func.func @transform_8(%arg0: i32) -> (i32, i32) {
    %c0_i32 = arith.constant 0 : i32
    %c0_i32_0 = arith.constant 0 : i32
    %c0_i32_1 = arith.constant 0 : i32
    return %c0_i32, %c0_i32_0 : i32, i32
  }
  func.func @transform_9(%arg0: i32) -> (i32, i32) {
    %c0_i32 = arith.constant 0 : i32
    %c0_i32_0 = arith.constant 0 : i32
    %c0_i32_1 = arith.constant 0 : i32
    return %c0_i32, %c0_i32_0 : i32, i32
  }
  func.func @transform_10(%arg0: i32) -> (i32, i32) {
    %c0_i32 = arith.constant 0 : i32
    %c0_i32_0 = arith.constant 0 : i32
    %c0_i32_1 = arith.constant 0 : i32
    return %c0_i32, %c0_i32_0 : i32, i32
  }
  func.func @transform_11(%arg0: i32) -> (i32, i32) {
    %c0_i32 = arith.constant 0 : i32
    %c0_i32_0 = arith.constant 0 : i32
    %c0_i32_1 = arith.constant 0 : i32
    return %c0_i32, %c0_i32_0 : i32, i32
  }
  func.func @transform_12(%arg0: i32) -> (i32, i32) {
    %c0_i32 = arith.constant 0 : i32
    %c0_i32_0 = arith.constant 0 : i32
    %c0_i32_1 = arith.constant 0 : i32
    return %c0_i32, %c0_i32_0 : i32, i32
  }
  func.func @transform_13(%arg0: i32) -> (i32, i32) {
    %c0_i32 = arith.constant 0 : i32
    %c0_i32_0 = arith.constant 0 : i32
    %c0_i32_1 = arith.constant 0 : i32
    return %c0_i32, %c0_i32_0 : i32, i32
  }
  func.func @transform_14(%arg0: i32) -> (i32, i32) {
    %c0_i32 = arith.constant 0 : i32
    %c0_i32_0 = arith.constant 0 : i32
    %c0_i32_1 = arith.constant 0 : i32
    return %c0_i32, %c0_i32_0 : i32, i32
  }
  func.func @transform_15(%arg0: i32) -> (i32, i32) {
    %c0_i32 = arith.constant 0 : i32
    %c0_i32_0 = arith.constant 0 : i32
    %c0_i32_1 = arith.constant 0 : i32
    return %c0_i32, %c0_i32_0 : i32, i32
  }
  func.func @transform_16(%arg0: i32) -> (i32, i32) {
    %c0_i32 = arith.constant 0 : i32
    %c0_i32_0 = arith.constant 0 : i32
    %c0_i32_1 = arith.constant 0 : i32
    return %c0_i32, %c0_i32_0 : i32, i32
  }
  func.func @transform_17(%arg0: i32) -> (i32, i32) {
    %c0_i32 = arith.constant 0 : i32
    %c0_i32_0 = arith.constant 0 : i32
    %c0_i32_1 = arith.constant 0 : i32
    return %c0_i32, %c0_i32_0 : i32, i32
  }
  func.func @transform_18(%arg0: i32) -> (i32, i32) {
    %c0_i32 = arith.constant 0 : i32
    %c0_i32_0 = arith.constant 0 : i32
    %c0_i32_1 = arith.constant 0 : i32
    return %c0_i32, %c0_i32_0 : i32, i32
  }
  func.func @transform_19(%arg0: i32) -> (i32, i32) {
    %c0_i32 = arith.constant 0 : i32
    %c0_i32_0 = arith.constant 0 : i32
    %c0_i32_1 = arith.constant 0 : i32
    return %c0_i32, %c0_i32_0 : i32, i32
  }
  func.func @transform_20(%arg0: i32) -> (i32, i32) {
    %c0_i32 = arith.constant 0 : i32
    %c0_i32_0 = arith.constant 0 : i32
    %c0_i32_1 = arith.constant 0 : i32
    return %c0_i32, %c0_i32_0 : i32, i32
  }
  func.func @transform_21(%arg0: i32) -> (i32, i32) {
    %c0_i32 = arith.constant 0 : i32
    %c0_i32_0 = arith.constant 0 : i32
    %c0_i32_1 = arith.constant 0 : i32
    return %c0_i32, %c0_i32_0 : i32, i32
  }
  func.func @transform_22(%arg0: i32) -> (i32, i32) {
    %c0_i32 = arith.constant 0 : i32
    %c0_i32_0 = arith.constant 0 : i32
    %c0_i32_1 = arith.constant 0 : i32
    return %c0_i32, %c0_i32_0 : i32, i32
  }
  func.func @transform_23(%arg0: i32) -> (i32, i32) {
    %c0_i32 = arith.constant 0 : i32
    %c0_i32_0 = arith.constant 0 : i32
    %c0_i32_1 = arith.constant 0 : i32
    return %c0_i32, %c0_i32_0 : i32, i32
  }
}

</mosaic_0001>

<bundles_post_ra>
// kernel: forward.1
= control target key start
LH: loop header
LB: loop body
LE: loop exit
PB: predicated region body
PF: predicated region fallthrough
CT: control target
= control target key end

     0   :  { %s9549_s0 = inlined_call_operand.vmem [shape: f32[128,512], index: 0, kind: input, shape index: {}]   ;;  %s9550_s1 = inlined_call_operand.vmem [shape: f32[128,128], index: 1, kind: input, shape index: {}]   ;;  %s9551_s2 = inlined_call_operand.vmem [shape: f32[128,1], index: 2, kind: input, shape index: {}]   ;;  %s9552_s3 = inlined_call_operand.vmem [shape: f32[128,1], index: 3, kind: input, shape index: {}]   ;;  %s9553_s4 = inlined_call_operand.vmem [shape: f32[128,1], index: 4, kind: input, shape index: {}]   ;;  %s9554_s5 = inlined_call_operand.vmem [shape: f32[128,128], index: 5, kind: input, shape index: {}]   ;;  %s9555_s6 = inlined_call_operand.vmem [shape: f32[144,128], index: 6, kind: input, shape index: {}]   ;;  %s9556_s7 = inlined_call_operand.vmem [shape: f32[48,1], index: 7, kind: input, shape index: {}]   ;;  %s9557_s8 = inlined_call_operand.vmem [shape: f32[48,1], index: 8, kind: input, shape index: {}]   ;;  %s9558_s9 = inlined_call_operand.vmem [shape: f32[48,1], index: 9, kind: input, shape index: {}]   ;;  %s9559_s10 = inlined_call_operand.vmem [shape: f32[48,48], index: 10, kind: input, shape index: {}]   ;;  %s9560_s11 = inlined_call_operand.vmem [shape: f32[24,48], index: 11, kind: input, shape index: {}]   ;;  %s9561_s12 = inlined_call_operand.vmem [shape: f32[8,1], index: 12, kind: input, shape index: {}]   ;;  %s9562_s13 = inlined_call_operand.vmem [shape: f32[2,1], index: 13, kind: input, shape index: {}]   ;;  %s9563_s14 = inlined_call_operand.vmem [shape: f32[2,1], index: 14, kind: input, shape index: {}]   ;;  %s9564_s15 = inlined_call_operand.vmem [shape: f32[2,2], index: 15, kind: input, shape index: {}]   ;;  %s9565_s16 = inlined_call_operand.vmem [shape: f32[2,1], index: 16, kind: input, shape index: {}]   ;;  %s9566_s17 = inlined_call_operand.vmem [shape: f32[2,1], index: 17, kind: input, shape index: {}]   ;;  %s9567_s18 = inlined_call_operand.vmem [shape: f32[2,1], index: 18, kind: input, shape index: {}]   ;;  %s9568_s19 = inlined_call_operand.vmem [shape: f32[512,40], index: 19, kind: input, shape index: {}]   ;;  %s9569_s20 = inlined_call_operand.vmem [shape: f32[1,40], index: 20, kind: input, shape index: {}]   ;;  %s9570_s21 = inlined_call_operand.vmem [shape: f32[1,512], index: 21, kind: input, shape index: {}]   ;;  %s9571_s22 = inlined_call_operand.vmem [shape: f32[1,512], index: 22, kind: input, shape index: {}]   ;;  %s9572_s23 = inlined_call_operand.hbm [shape: f32[2,40], index: 23, kind: output, shape index: {}]  }
   0x1   :  { %9730 = sst [smem:[#allocation89_spill]] %s9549_s0 }
   0x2   :  { %9731 = sst [smem:[#allocation90_spill]] %s9550_s1 }
   0x3   :  { %9732 = sst [smem:[#allocation91_spill]] %s9551_s2 }
   0x4   :  { %9733 = sst [smem:[#allocation92_spill]] %s9552_s3 }
   0x5   :  { %9734 = sst [smem:[#allocation93_spill]] %s9553_s4 }
   0x6   :  { %9735 = sst [smem:[#allocation94_spill]] %s9554_s5 }
   0x7   :  { %9736 = sst [smem:[#allocation95_spill]] %s9555_s6 }
   0x8   :  { %9737 = sst [smem:[#allocation96_spill]] %s9556_s7 }
   0x9   :  { %s9738_s24 = sld [smem:[#allocation89_spill]]  ;;  %v5693_v17 = vmov 0  }
   0xa   :  { %s9739_s4 = sld [smem:[#allocation91_spill]]  ;;  %4963 = vset.pattern.permute.xlu0 %v5693_v17 }
   0xf   :  { %v153_v0 = vld [vmem:[%s9738_s24 + $0x1e0] sm:$0xff]  ;;  %v154_v1 = vld [vmem:[%s9738_s24 + $0x1e8] sm:$0xff]  ;;  %v155_v2 = vld [vmem:[%s9738_s24 + $0x1f0] sm:$0xff] }
  0x10   :  { %253 = vmatpush.msra.mxu0 %v153_v0  ;;  %318 = vmatpush.msra.mxu1 %v154_v1  ;;  %v156_v3 = vld [vmem:[%s9738_s24 + $0x1f8] sm:$0xff]  ;;  %v149_v4 = vld [vmem:[%s9738_s24 + $0x1c0] sm:$0xff]  ;;  %v150_v5 = vld [vmem:[%s9738_s24 + $0x1c8] sm:$0xff] }
  0x11   :  { %383 = vmatpush.msra.mxu2 %v155_v2  ;;  %448 = vmatpush.msra.mxu3 %v156_v3  ;;  %v151_v6 = vld [vmem:[%s9738_s24 + $0x1d0] sm:$0xff]  ;;  %v152_v7 = vld [vmem:[%s9738_s24 + $0x1d8] sm:$0xff]  ;;  %v145_v8 = vld [vmem:[%s9738_s24 + $0x1a0] sm:$0xff] }
  0x12   :  { %254 = vmatpush.msra.mxu0 %v149_v4  ;;  %319 = vmatpush.msra.mxu1 %v150_v5  ;;  %v146_v9 = vld [vmem:[%s9738_s24 + $0x1a8] sm:$0xff]  ;;  %v147_v10 = vld [vmem:[%s9738_s24 + $0x1b0] sm:$0xff]  ;;  %v148_v11 = vld [vmem:[%s9738_s24 + $0x1b8] sm:$0xff] }
  0x13   :  { %384 = vmatpush.msra.mxu2 %v151_v6  ;;  %449 = vmatpush.msra.mxu3 %v152_v7  ;;  %v141_v12 = vld [vmem:[%s9738_s24 + $0x180] sm:$0xff]  ;;  %v172_v13 = vld [vmem:[%s9739_s4 + $0x78] sm:$0xff]  ;;  %v142_v14 = vld [vmem:[%s9738_s24 + $0x188] sm:$0xff] }
  0x14   :  { %255 = vmatpush.msra.mxu0 %v145_v8  ;;  %320 = vmatpush.msra.mxu1 %v146_v9  ;;  %v143_v15 = vld [vmem:[%s9738_s24 + $0x190] sm:$0xff]  ;;  %v144_v16 = vld [vmem:[%s9738_s24 + $0x198] sm:$0xff]  ;;  %v137_v18 = vld [vmem:[%s9738_s24 + $0x160] sm:$0xff] }
  0x15   :  { %385 = vmatpush.msra.mxu2 %v147_v10  ;;  %450 = vmatpush.msra.mxu3 %v148_v11  ;;  %v138_v19 = vld [vmem:[%s9738_s24 + $0x168] sm:$0xff]  ;;  %v139_v20 = vld [vmem:[%s9738_s24 + $0x170] sm:$0xff]  ;;  %v140_v21 = vld [vmem:[%s9738_s24 + $0x178] sm:$0xff] }
  0x16   :  { %256 = vmatpush.msra.mxu0 %v141_v12  ;;  %250 = vperm.xlu0 %4963, %v172_v13   ;;  %v133_v22 = vld [vmem:[%s9738_s24 + $0x140] sm:$0xff]  ;;  %v134_v23 = vld [vmem:[%s9738_s24 + $0x148] sm:$0xff]  ;;  %v135_v24 = vld [vmem:[%s9738_s24 + $0x150] sm:$0xff] }
  0x17   :  { %321 = vmatpush.msra.mxu1 %v142_v14  ;;  %386 = vmatpush.msra.mxu2 %v143_v15  ;;  %v136_v25 = vld [vmem:[%s9738_s24 + $0x158] sm:$0xff]  ;;  %v129_v26 = vld [vmem:[%s9738_s24 + $0x120] sm:$0xff]  ;;  %v130_v27 = vld [vmem:[%s9738_s24 + $0x128] sm:$0xff] }
  0x18   :  { %451 = vmatpush.msra.mxu3 %v144_v16  ;;  %257 = vmatpush.msra.mxu0 %v137_v18  ;;  %v131_v28 = vld [vmem:[%s9738_s24 + $0x130] sm:$0xff]  ;;  %v132_v29 = vld [vmem:[%s9738_s24 + $0x138] sm:$0xff]  ;;  %v125_v31 = vld [vmem:[%s9738_s24 + $0x100] sm:$0xff] }
  0x19   :  { %322 = vmatpush.msra.mxu1 %v138_v19  ;;  %387 = vmatpush.msra.mxu2 %v139_v20  ;;  %v171_v30 = vld [vmem:[%s9739_s4 + $0x70] sm:$0xff]  ;;  %v126_v32 = vld [vmem:[%s9738_s24 + $0x108] sm:$0xff]  ;;  %v128_v34 = vld [vmem:[%s9738_s24 + $0x118] sm:$0xff] }
  0x1a   :  { %452 = vmatpush.msra.mxu3 %v140_v21  ;;  %258 = vmatpush.msra.mxu0 %v133_v22  ;;  %v127_v33 = vld [vmem:[%s9738_s24 + $0x110] sm:$0xff]  ;;  %v121_v35 = vld [vmem:[%s9738_s24 + $0xe0] sm:$0xff]  ;;  %v122_v36 = vld [vmem:[%s9738_s24 + $0xe8] sm:$0xff] }
  0x1b   :  { %323 = vmatpush.msra.mxu1 %v134_v23  ;;  %388 = vmatpush.msra.mxu2 %v135_v24  ;;  %v123_v37 = vld [vmem:[%s9738_s24 + $0xf0] sm:$0xff]  ;;  %v124_v38 = vld [vmem:[%s9738_s24 + $0xf8] sm:$0xff]  ;;  %v117_v39 = vld [vmem:[%s9738_s24 + $0xc0] sm:$0xff] }
  0x1c   :  { %453 = vmatpush.msra.mxu3 %v136_v25  ;;  %259 = vmatpush.msra.mxu0 %v129_v26  ;;  %v118_v40 = vld [vmem:[%s9738_s24 + $0xc8] sm:$0xff]  ;;  %v119_v41 = vld [vmem:[%s9738_s24 + $0xd0] sm:$0xff]  ;;  %v120_v42 = vld [vmem:[%s9738_s24 + $0xd8] sm:$0xff] }
  0x1d   :  { %324 = vmatpush.msra.mxu1 %v130_v27  ;;  %389 = vmatpush.msra.mxu2 %v131_v28  ;;  %v113_v43 = vld [vmem:[%s9738_s24 + $0xa0] sm:$0xff]  ;;  %v114_v44 = vld [vmem:[%s9738_s24 + $0xa8] sm:$0xff]  ;;  %v115_v45 = vld [vmem:[%s9738_s24 + $0xb0] sm:$0xff] }
  0x1e   :  { %454 = vmatpush.msra.mxu3 %v132_v29  ;;  %245 = vperm.xlu0 %4963, %v171_v30   ;;  %v116_v46 = vld [vmem:[%s9738_s24 + $0xb8] sm:$0xff]  ;;  %v166_v47 = vld [vmem:[%s9739_s4 + $0x48] sm:$0xff]  ;;  %v109_v48 = vld [vmem:[%s9738_s24 + $0x80] sm:$0xff] }
  0x1f   :  { %260 = vmatpush.msra.mxu0 %v125_v31  ;;  %325 = vmatpush.msra.mxu1 %v126_v32  ;;  %v110_v49 = vld [vmem:[%s9738_s24 + $0x88] sm:$0xff]  ;;  %v111_v50 = vld [vmem:[%s9738_s24 + $0x90] sm:$0xff]  ;;  %v112_v51 = vld [vmem:[%s9738_s24 + $0x98] sm:$0xff] }
  0x20   :  { %390 = vmatpush.msra.mxu2 %v127_v33  ;;  %455 = vmatpush.msra.mxu3 %v128_v34  ;;  %v105_v52 = vld [vmem:[%s9738_s24 + $0x60] sm:$0xff]  ;;  %v106_v53 = vld [vmem:[%s9738_s24 + $0x68] sm:$0xff]  ;;  %v107_v54 = vld [vmem:[%s9738_s24 + $0x70] sm:$0xff] }
  0x21   :  { %261 = vmatpush.msra.mxu0 %v121_v35  ;;  %326 = vmatpush.msra.mxu1 %v122_v36  ;;  %v108_v55 = vld [vmem:[%s9738_s24 + $0x78] sm:$0xff]  ;;  %v101_v56 = vld [vmem:[%s9738_s24 + $0x40] sm:$0xff]  ;;  %v102_v57 = vld [vmem:[%s9738_s24 + $0x48] sm:$0xff] }
  0x22   :  { %391 = vmatpush.msra.mxu2 %v123_v37  ;;  %456 = vmatpush.msra.mxu3 %v124_v38  ;;  %v103_v58 = vld [vmem:[%s9738_s24 + $0x50] sm:$0xff]  ;;  %v104_v59 = vld [vmem:[%s9738_s24 + $0x58] sm:$0xff] }
  0x23   :  { %262 = vmatpush.msra.mxu0 %v117_v39  ;;  %327 = vmatpush.msra.mxu1 %v118_v40 }
  0x24   :  { %392 = vmatpush.msra.mxu2 %v119_v41  ;;  %457 = vmatpush.msra.mxu3 %v120_v42 }
  0x25   :  { %263 = vmatpush.msra.mxu0 %v113_v43  ;;  %328 = vmatpush.msra.mxu1 %v114_v44 }
  0x26   :  { %393 = vmatpush.msra.mxu2 %v115_v45  ;;  %458 = vmatpush.msra.mxu3 %v116_v46 }
  0x27   :  { %220 = vperm.xlu0 %4963, %v166_v47   ;;  %264 = vmatpush.msra.mxu0 %v109_v48 }
  0x28   :  { %329 = vmatpush.msra.mxu1 %v110_v49  ;;  %394 = vmatpush.msra.mxu2 %v111_v50 }
  0x29   :  { %459 = vmatpush.msra.mxu3 %v112_v51  ;;  %265 = vmatpush.msra.mxu0 %v105_v52 }
  0x2a   :  { %330 = vmatpush.msra.mxu1 %v106_v53 }
  0x2b   :  { %28 = vsyncpa [#allocation5], 0  ;;  %395 = vmatpush.msra.mxu2 %v107_v54  ;;  %460 = vmatpush.msra.mxu3 %v108_v55  ;;  %v97_v60 = vld [vmem:[%s9738_s24 + $0x20] sm:$0xff]  ;;  %v98_v61 = vld [vmem:[%s9738_s24 + $0x28] sm:$0xff]  ;;  %s9740_s7 = sld [smem:[#allocation90_spill]]  ;;  %vm986_vm0 = vcmask 7168  }
  0x2c   :  { %266 = vmatpush.msra.mxu0 %v101_v56  ;;  %331 = vmatpush.msra.mxu1 %v102_v57  ;;  %v99_v62 = vld [vmem:[%s9738_s24 + $0x30] sm:$0xff]  ;;  %v100_v63 = vld [vmem:[%s9738_s24 + $0x38] sm:$0xff]  ;;  %v170_v1 = vld [vmem:[%s9739_s4 + $0x68] sm:$0xff]  ;;  %s9791_s28 = sld [smem:[#allocation93_spill]]  ;;  %s5694_s30 = smov 1  }
  0x2d   :  { %396 = vmatpush.msra.mxu2 %v103_v58  ;;  %461 = vmatpush.msra.mxu3 %v104_v59  ;;  %v163_v0 = vld [vmem:[%s9739_s4 + $0x30] sm:$0xff]  ;;  %v93_v2 = vld [vmem:[%s9738_s24] sm:$0xff]  ;;  %v94_v3 = vld [vmem:[%s9738_s24 + $0x8] sm:$0xff]  ;;  %s9792_s3 = sld [smem:[#allocation94_spill]]  ;;  %s5695_s5 = smov 127  }
  0x2e   :  { %267 = vmatpush.msra.mxu0 %v97_v60  ;;  %332 = vmatpush.msra.mxu1 %v98_v61  ;;  %v95_v4 = vld [vmem:[%s9738_s24 + $0x10] sm:$0xff]  ;;  %v96_v5 = vld [vmem:[%s9738_s24 + $0x18] sm:$0xff]  ;;  %v169_v9 = vld [vmem:[%s9739_s4 + $0x60] sm:$0xff]  ;;  %s9800_s29 = sld [smem:[#allocation92_spill]]  ;;  %s5696_s1 = smov 126  }
  0x2f   :  { %397 = vmatpush.msra.mxu2 %v99_v62  ;;  %462 = vmatpush.msra.mxu3 %v100_v63  ;;  %v168_v7 = vld [vmem:[%s9739_s4 + $0x58] sm:$0xff]  ;;  %v167_v11 = vld [vmem:[%s9739_s4 + $0x50] sm:$0xff]  ;;  %v157_v12 = vld [vmem:[%s9739_s4] sm:$0xff]  ;;  %s9963_s25 = sld [smem:[#allocation96_spill]] }
  0x30   :  { %4964 = vset.pattern.permute.xlu1 %v5693_v17  ;;  %205 = vperm.xlu0 %4963, %v163_v0   ;;  %v160_v8 = vld [vmem:[%s9739_s4 + $0x18] sm:$0xff]  ;;  %v165_v13 = vld [vmem:[%s9739_s4 + $0x40] sm:$0xff]  ;;  %v162_v16 = vld [vmem:[%s9739_s4 + $0x28] sm:$0xff] }
  0x31   :  { %v77_v6 = vld [vmem:[%s9740_s7] sm:$0xff]  ;;  %240 = vperm.xlu1 %4964, %v170_v1   ;;  %268 = vmatpush.msra.mxu0 %v93_v2  ;;  %v78_v10 = vld [vmem:[%s9740_s7 + $0x8] sm:$0xff]  ;;  %v79_v14 = vld [vmem:[%s9740_s7 + $0x10] sm:$0xff] }
  0x32   :  { %333 = vmatpush.msra.mxu1 %v94_v3  ;;  %398 = vmatpush.msra.mxu2 %v95_v4  ;;  %v164_v15 = vld [vmem:[%s9739_s4 + $0x38] sm:$0xff]  ;;  %v161_v18 = vld [vmem:[%s9739_s4 + $0x20] sm:$0xff]  ;;  %v159_v19 = vld [vmem:[%s9739_s4 + $0x10] sm:$0xff] }
  0x33   :  { %463 = vmatpush.msra.mxu3 %v96_v5  ;;  %269 = vmatmul.f32.vlgmr.msra.gmra.mxu0 %v77_v6  ;;  %v81_v20 = vld [vmem:[%s9740_s7 + $0x20] sm:$0xff]  ;;  %v158_v21 = vld [vmem:[%s9739_s4 + $0x8] sm:$0xff]  ;;  %v83_v23 = vld [vmem:[%s9740_s7 + $0x30] sm:$0xff] }
  0x34   :  { %334 = vmatmul.f32.vlgmr.msra.gmra.mxu1 %v77_v6  ;;  %399 = vmatmul.f32.vlgmr.msra.gmra.mxu2 %v77_v6  ;;  %v82_v22 = vld [vmem:[%s9740_s7 + $0x28] sm:$0xff]  ;;  %v84_v24 = vld [vmem:[%s9740_s7 + $0x38] sm:$0xff]  ;;  %v85_v25 = vld [vmem:[%s9740_s7 + $0x40] sm:$0xff] }
  0x35   :  { %464 = vmatmul.f32.vlgmr.msra.gmra.mxu3 %v77_v6  ;;  %4965 = vset.pattern.permute.xlu2 %v5693_v17  ;;  %v80_v17 = vld [vmem:[%s9740_s7 + $0x18] sm:$0xff]  ;;  %v86_v26 = vld [vmem:[%s9740_s7 + $0x48] sm:$0xff]  ;;  %v87_v27 = vld [vmem:[%s9740_s7 + $0x50] sm:$0xff] }
  0x36   :  { %230 = vperm.xlu2 %4965, %v168_v7   ;;  %v88_v28 = vld [vmem:[%s9740_s7 + $0x58] sm:$0xff]  ;;  %v89_v29 = vld [vmem:[%s9740_s7 + $0x60] sm:$0xff]  ;;  %v90_v30 = vld [vmem:[%s9740_s7 + $0x68] sm:$0xff] }
  0x37   :  { %v91_v31 = vld [vmem:[%s9740_s7 + $0x70] sm:$0xff]  ;;  %v92_v32 = vld [vmem:[%s9740_s7 + $0x78] sm:$0xff] }
  0x38   :  { %190 = vperm.xlu0 %4963, %v160_v8  }
  0x39   :  { %235 = vperm.xlu1 %4964, %v169_v9  }
  0x3b   :  { %272 = vmatmul.f32.gmra.mxu0 %v78_v10 }
  0x3c   :  { %337 = vmatmul.f32.gmra.mxu1 %v78_v10  ;;  %402 = vmatmul.f32.gmra.mxu2 %v78_v10 }
  0x3d   :  { %467 = vmatmul.f32.gmra.mxu3 %v78_v10  ;;  %v75_v10 = vld [vmem:[%s9570_s21] sm:$0xf] }
  0x3e   :  { %225 = vperm.xlu2 %4965, %v167_v11  }
  0x40   :  { %175 = vperm.xlu0 %4963, %v157_v12  }
  0x41   :  { %215 = vperm.xlu1 %4964, %v165_v13  }
  0x43   :  { %275 = vmatmul.f32.gmra.mxu0 %v79_v14 }
  0x44   :  { %340 = vmatmul.f32.gmra.mxu1 %v79_v14  ;;  %405 = vmatmul.f32.gmra.mxu2 %v79_v14 }
  0x45   :  { %470 = vmatmul.f32.gmra.mxu3 %v79_v14 }
  0x46   :  { %210 = vperm.xlu2 %4965, %v164_v15  }
  0x49   :  { %200 = vperm.xlu1 %4964, %v162_v16  }
  0x4b   :  { %278 = vmatmul.f32.gmra.mxu0 %v80_v17 }
  0x4c   :  { %343 = vmatmul.f32.gmra.mxu1 %v80_v17  ;;  %408 = vmatmul.f32.gmra.mxu2 %v80_v17 }
  0x4d   :  { %473 = vmatmul.f32.gmra.mxu3 %v80_v17 }
  0x4e   :  { %195 = vperm.xlu2 %4965, %v161_v18  }
  0x51   :  { %185 = vperm.xlu1 %4964, %v159_v19   ;;  %v6179_v19 = vperm.slane %v75_v10, 0 }
  0x53   :  { %281 = vmatmul.f32.gmra.mxu0 %v81_v20  ;;  %9741 = vst [vmem:[#allocation7_spill] sm:$0xff] %v6179_v19 }
  0x54   :  { %346 = vmatmul.f32.gmra.mxu1 %v81_v20  ;;  %411 = vmatmul.f32.gmra.mxu2 %v81_v20 }
  0x55   :  { %476 = vmatmul.f32.gmra.mxu3 %v81_v20 }
  0x56   :  { %180 = vperm.xlu2 %4965, %v158_v21  }
  0x5b   :  { %284 = vmatmul.f32.gmra.mxu0 %v82_v22 }
  0x5c   :  { %349 = vmatmul.f32.gmra.mxu1 %v82_v22  ;;  %414 = vmatmul.f32.gmra.mxu2 %v82_v22 }
  0x5d   :  { %479 = vmatmul.f32.gmra.mxu3 %v82_v22 }
  0x63   :  { %287 = vmatmul.f32.gmra.mxu0 %v83_v23 }
  0x64   :  { %352 = vmatmul.f32.gmra.mxu1 %v83_v23  ;;  %417 = vmatmul.f32.gmra.mxu2 %v83_v23 }
  0x65   :  { %482 = vmatmul.f32.gmra.mxu3 %v83_v23  ;;  %v6184_v23 = vperm.slane %v75_v10, 1 }
  0x67   :  { %9743 = vst [vmem:[#allocation9_spill] sm:$0xff] %v6184_v23 }
  0x6b   :  { %290 = vmatmul.f32.gmra.mxu0 %v84_v24 }
  0x6c   :  { %355 = vmatmul.f32.gmra.mxu1 %v84_v24  ;;  %420 = vmatmul.f32.gmra.mxu2 %v84_v24 }
  0x6d   :  { %485 = vmatmul.f32.gmra.mxu3 %v84_v24 }
  0x73   :  { %293 = vmatmul.f32.gmra.mxu0 %v85_v25 }
  0x74   :  { %358 = vmatmul.f32.gmra.mxu1 %v85_v25  ;;  %423 = vmatmul.f32.gmra.mxu2 %v85_v25 }
  0x75   :  { %488 = vmatmul.f32.gmra.mxu3 %v85_v25 }
  0x7b   :  { %296 = vmatmul.f32.gmra.mxu0 %v86_v26 }
  0x7c   :  { %361 = vmatmul.f32.gmra.mxu1 %v86_v26  ;;  %426 = vmatmul.f32.gmra.mxu2 %v86_v26 }
  0x7d   :  { %491 = vmatmul.f32.gmra.mxu3 %v86_v26 }
  0x83   :  { %299 = vmatmul.f32.gmra.mxu0 %v87_v27 }
  0x84   :  { %364 = vmatmul.f32.gmra.mxu1 %v87_v27  ;;  %429 = vmatmul.f32.gmra.mxu2 %v87_v27 }
  0x85   :  { %494 = vmatmul.f32.gmra.mxu3 %v87_v27 }
  0x88   :  { %v6110_v35 = vpop.permute.xlu0 %250 }
  0x8b   :  { %302 = vmatmul.f32.gmra.mxu0 %v88_v28 }
  0x8c   :  { %367 = vmatmul.f32.gmra.mxu1 %v88_v28  ;;  %432 = vmatmul.f32.gmra.mxu2 %v88_v28 }
  0x8d   :  { %497 = vmatmul.f32.gmra.mxu3 %v88_v28 }
  0x90   :  { %v6118_v40 = vpop.permute.xlu0 %245  ;;  %v6128_v45 = vpop.permute.xlu2 %230 }
  0x93   :  { %305 = vmatmul.f32.gmra.mxu0 %v89_v29 }
  0x94   :  { %370 = vmatmul.f32.gmra.mxu1 %v89_v29  ;;  %435 = vmatmul.f32.gmra.mxu2 %v89_v29 }
  0x95   :  { %500 = vmatmul.f32.gmra.mxu3 %v89_v29 }
  0x98   :  { %v6142_v52 = vpop.permute.xlu2 %225 }
  0x99   :  { %v6138_v50 = vpop.permute.xlu0 %220 }
  0x9b   :  { %308 = vmatmul.f32.gmra.mxu0 %v90_v30 }
  0x9c   :  { %373 = vmatmul.f32.gmra.mxu1 %v90_v30  ;;  %438 = vmatmul.f32.gmra.mxu2 %v90_v30 }
  0x9d   :  { %503 = vmatmul.f32.gmra.mxu3 %v90_v30 }
  0xa0   :  { %v211_v59 = vpop.permute.xlu2 %210 }
  0xa2   :  { %v206_v58 = vpop.permute.xlu0 %205 }
  0xa3   :  { %311 = vmatmul.f32.gmra.mxu0 %v91_v31  ;;  %v6130_v46 = vpop.permute.xlu1 %240 }
  0xa4   :  { %376 = vmatmul.f32.gmra.mxu1 %v91_v31  ;;  %441 = vmatmul.f32.gmra.mxu2 %v91_v31 }
  0xa5   :  { %506 = vmatmul.f32.gmra.mxu3 %v91_v31 }
  0xa8   :  { %v6170_v7 = vpop.permute.xlu2 %195 }
  0xaa   :  { %v6164_v1 = vpop.permute.xlu0 %190 }
  0xab   :  { %314 = vmatmul.f32.gmra.mxu0 %v92_v32  ;;  %v6144_v53 = vpop.permute.xlu1 %235 }
  0xac   :  { %379 = vmatmul.f32.gmra.mxu1 %v92_v32  ;;  %444 = vmatmul.f32.gmra.mxu2 %v92_v32 }
  0xad   :  { %509 = vmatmul.f32.gmra.mxu3 %v92_v32 }
  0xb0   :  { %v270_v33 = vpop.f32.mrf.mxu0  ;;  %v6194_v29 = vpop.permute.xlu2 %180 }
  0xb1   :  { %v335_v34 = vpop.f32.mrf.mxu1 }
  0xb2   :  { %v6177_v11 = vpop.permute.xlu0 %175 }
  0xb3   :  { %v6160_v63 = vpop.permute.xlu1 %215  ;;  %v271_v21 = vadd.f32 %v270_v33, %v6177_v11  ;;  %v336_v25 = vadd.f32 %v335_v34, %v6177_v11  ;;  %v6203_v34 = vperm.slane %v75_v10, 2 }
  0xb5   :  { %9745 = vst [vmem:[#allocation11_spill] sm:$0xff] %v6203_v34 }
  0xb7   :  { %v400_v36 = vpop.f32.mrf.mxu2 }
  0xb8   :  { %v6112_v37 = vpop.f32.mrf.mxu3  ;;  %v6114_v38 = vpop.f32.mrf.mxu0  ;;  %v401_v28 = vadd.f32 %v400_v36, %v6177_v11 }
  0xb9   :  { %v6116_v39 = vpop.f32.mrf.mxu1  ;;  %v274_v36 = vadd.f32 %v6114_v38, %v6194_v29 }
  0xbb   :  { %v6172_v9 = vpop.permute.xlu1 %200 }
  0xbf   :  { %v6120_v41 = vpop.f32.mrf.mxu2 }
  0xc0   :  { %v6122_v42 = vpop.f32.mrf.mxu3  ;;  %v6124_v43 = vpop.f32.mrf.mxu0 }
  0xc1   :  { %v6126_v44 = vpop.f32.mrf.mxu1 }
  0xc3   :  { %v6200_v32 = vpop.permute.xlu1 %185 }
  0xc7   :  { %v6132_v47 = vpop.f32.mrf.mxu2 }
  0xc8   :  { %v6134_v48 = vpop.f32.mrf.mxu3  ;;  %v6136_v49 = vpop.f32.mrf.mxu0 }
  0xc9   :  { %v6140_v51 = vpop.f32.mrf.mxu1 }
  0xcf   :  { %v6146_v54 = vpop.f32.mrf.mxu2 }
  0xd0   :  { %v6148_v55 = vpop.f32.mrf.mxu3  ;;  %v6150_v56 = vpop.f32.mrf.mxu0 }
  0xd1   :  { %v6152_v57 = vpop.f32.mrf.mxu1 }
  0xd7   :  { %v6154_v60 = vpop.f32.mrf.mxu2 }
  0xd8   :  { %v6156_v61 = vpop.f32.mrf.mxu3  ;;  %v6158_v62 = vpop.f32.mrf.mxu0 }
  0xd9   :  { %v6162_v0 = vpop.f32.mrf.mxu1 }
  0xdf   :  { %v6166_v2 = vpop.f32.mrf.mxu2 }
  0xe0   :  { %v6168_v3 = vpop.f32.mrf.mxu3  ;;  %v288_v4 = vpop.f32.mrf.mxu0 }
  0xe1   :  { %v289_v5 = vadd.f32 %v288_v4, %v206_v58  ;;  %v353_v6 = vpop.f32.mrf.mxu1 }
  0xe2   :  { %v354_v8 = vadd.f32 %v353_v6, %v206_v58 }
  0xe3   :  { %5427 = vtanh.f32 %v289_v5  ;;  %v6208_v5 = vperm.slane %v75_v10, 3 }
  0xe4   :  { %5429 = vtanh.f32 %v354_v8 }
  0xe7   :  { %v418_v12 = vpop.f32.mrf.mxu2 }
  0xe8   :  { %v419_v13 = vadd.f32 %v418_v12, %v206_v58  ;;  %v483_v14 = vpop.f32.mrf.mxu3  ;;  %v291_v15 = vpop.f32.mrf.mxu0  ;;  %v277_v12 = vadd.f32 %v6124_v43, %v6200_v32 }
  0xe9   :  { %v484_v16 = vadd.f32 %v483_v14, %v206_v58  ;;  %v292_v17 = vadd.f32 %v291_v15, %v211_v59  ;;  %v356_v18 = vpop.f32.mrf.mxu1  ;;  %v6181_v20 = vpop.eup %5427 }
  0xea   :  { %9742 = vst [vmem:[#allocation8_spill] sm:$0xff] %v6181_v20  ;;  %5431 = vtanh.f32 %v419_v13  ;;  %v357_v22 = vadd.f32 %v356_v18, %v211_v59  ;;  %v6186_v24 = vpop.eup %5429  ;;  %v658_v26 = vmul.f32 %v6181_v20, %v6179_v19  ;;  %v802_v27 = vmul.f32 %v6181_v20, %v6181_v20 }
  0xeb   :  { %9744 = vst [vmem:[#allocation10_spill] sm:$0xff] %v6186_v24  ;;  %5433 = vtanh.f32 %v484_v16  ;;  %v659_v30 = vmul.f32 %v6186_v24, %v6184_v23  ;;  %v803_v31 = vmul.f32 %v6186_v24, %v6186_v24 }
  0xec   :  { %5435 = vtanh.f32 %v292_v17  ;;  %v866_v33 = vmul.f32 %v802_v27, %v6179_v19 }
  0xed   :  { %5437 = vtanh.f32 %v357_v22  ;;  %v867_v58 = vmul.f32 %v803_v31, %v6184_v23  ;;  %v728_v6 = vadd.f32 %v659_v30, %v658_v26 }
  0xee   :  { %5439 = vtanh.f32 %v271_v21 }
  0xef   :  { %5441 = vtanh.f32 %v336_v25  ;;  %v421_v4 = vpop.f32.mrf.mxu2  ;;  %v936_v16 = vadd.f32 %v867_v58, %v866_v33 }
  0xf0   :  { %v6210_v8 = vpop.eup %5431  ;;  %5443 = vtanh.f32 %v401_v28  ;;  %v422_v13 = vadd.f32 %v421_v4, %v211_v59  ;;  %v486_v14 = vpop.f32.mrf.mxu3 }
  0xf1   :  { %9746 = vst [vmem:[#allocation12_spill] sm:$0xff] %v6210_v8  ;;  %v294_v15 = vpop.f32.mrf.mxu0  ;;  %v6214_v17 = vpop.eup %5433  ;;  %v487_v18 = vadd.f32 %v486_v14, %v211_v59  ;;  %v660_v10 = vmul.f32 %v6210_v8, %v6203_v34  ;;  %v804_v22 = vmul.f32 %v6210_v8, %v6210_v8 }
  0xf2   :  { %9747 = vst [vmem:[#allocation13_spill] sm:$0xff] %v6214_v17  ;;  %v295_v21 = vadd.f32 %v294_v15, %v6160_v63  ;;  %v359_v38 = vpop.f32.mrf.mxu1  ;;  %v6221_v25 = vpop.eup %5435  ;;  %5445 = vtanh.f32 %v422_v13  ;;  %v661_v26 = vmul.f32 %v6214_v17, %v6208_v5  ;;  %v805_v59 = vmul.f32 %v6214_v17, %v6214_v17 }
  0xf3   :  { %9748 = vst [vmem:[#allocation14_spill] sm:$0xff] %v6221_v25  ;;  %v360_v43 = vadd.f32 %v359_v38, %v6160_v63  ;;  %v6228_v27 = vpop.eup %5437  ;;  %5447 = vtanh.f32 %v487_v18  ;;  %v729_v28 = vadd.f32 %v728_v6, %v660_v10  ;;  %v868_v30 = vmul.f32 %v804_v22, %v6203_v34 }
  0xf4   :  { %9749 = vst [vmem:[#allocation15_spill] sm:$0xff] %v6228_v27  ;;  %v806_v31 = vmul.f32 %v6221_v25, %v6221_v25  ;;  %v6233_v33 = vpop.eup %5439  ;;  %5449 = vtanh.f32 %v295_v21  ;;  %v869_v58 = vmul.f32 %v805_v59, %v6208_v5  ;;  %v807_v4 = vmul.f32 %v6228_v27, %v6228_v27 }
  0xf5   :  { %v662_v13 = vmul.f32 %v6221_v25, %v6179_v19  ;;  %v6240_v14 = vpop.eup %5441  ;;  %5451 = vtanh.f32 %v360_v43  ;;  %v730_v6 = vadd.f32 %v729_v28, %v661_v26  ;;  %v937_v15 = vadd.f32 %v936_v16, %v868_v30 }
  0xf6   :  { %v870_v18 = vmul.f32 %v806_v31, %v6179_v19  ;;  %v6243_v38 = vpop.eup %5443  ;;  %5453 = vtanh.f32 %v274_v36  ;;  %v871_v21 = vmul.f32 %v807_v4, %v6184_v23  ;;  %v663_v10 = vmul.f32 %v6228_v27, %v6184_v23 }
  0xf7   :  { %9750 = vst [vmem:[#allocation16_spill] sm:$0xff] %v6243_v38  ;;  %v342_v22 = vadd.f32 %v6126_v44, %v6200_v32  ;;  %5455 = vtanh.f32 %v277_v12  ;;  %v424_v59 = vpop.f32.mrf.mxu2  ;;  %731 = vadd.xlane.f32.xlu0 %v730_v6  ;;  %v938_v17 = vadd.f32 %v937_v15, %v869_v58  ;;  %v407_v16 = vadd.f32 %v6132_v47, %v6200_v32 }
  0xf8   :  { %v6250_v43 = vpop.eup %5445  ;;  %v425_v26 = vadd.f32 %v424_v59, %v6160_v63  ;;  %v489_v36 = vpop.f32.mrf.mxu3  ;;  %v941_v30 = vadd.f32 %v871_v21, %v870_v18  ;;  %v733_v31 = vadd.f32 %v663_v10, %v662_v13  ;;  %v472_v15 = vadd.f32 %v6134_v48, %v6200_v32 }
  0xf9   :  { %9751 = vst [vmem:[#allocation17_spill] sm:$0xff] %v6250_v43  ;;  %v297_v28 = vpop.f32.mrf.mxu0  ;;  %v6255_v4 = vpop.eup %5447  ;;  %v490_v27 = vadd.f32 %v489_v36, %v6160_v63  ;;  %939 = vadd.xlane.f32.xlu1 %v938_v17  ;;  %v808_v58 = vmul.f32 %v6250_v43, %v6250_v43  ;;  %v664_v47 = vmul.f32 %v6250_v43, %v6203_v34 }
  0xfa   :  { %9752 = vst [vmem:[#allocation18_spill] sm:$0xff] %v6255_v4  ;;  %v298_v44 = vadd.f32 %v297_v28, %v6138_v50  ;;  %v362_v12 = vpop.f32.mrf.mxu1  ;;  %v6263_v6 = vpop.eup %5449  ;;  %5457 = vtanh.f32 %v425_v26  ;;  %v809_v63 = vmul.f32 %v6255_v4, %v6255_v4  ;;  %v665_v48 = vmul.f32 %v6255_v4, %v6208_v5 }
  0xfb   :  { %v363_v13 = vadd.f32 %v362_v12, %v6138_v50  ;;  %v6270_v18 = vpop.eup %5451  ;;  %5459 = vtanh.f32 %v490_v27  ;;  %v872_v17 = vmul.f32 %v808_v58, %v6203_v34  ;;  %v734_v21 = vadd.f32 %v733_v31, %v664_v47 }
  0xfc   :  { %9753 = vst [vmem:[#allocation19_spill] sm:$0xff] %v6270_v18  ;;  %v666_v10 = vmul.f32 %v6263_v6, %v6179_v19  ;;  %v6275_v59 = vpop.eup %5453  ;;  %5461 = vtanh.f32 %v298_v44  ;;  %v667_v32 = vmul.f32 %v6270_v18, %v6184_v23  ;;  %v810_v26 = vmul.f32 %v6263_v6, %v6263_v6 }
  0xfd   :  { %v6283_v36 = vpop.eup %5455  ;;  %5463 = vtanh.f32 %v363_v13  ;;  %v873_v27 = vmul.f32 %v809_v63, %v6208_v5  ;;  %v942_v28 = vadd.f32 %v941_v30, %v872_v17  ;;  %v811_v31 = vmul.f32 %v6270_v18, %v6270_v18 }
  0xfe   :  { %5465 = vtanh.f32 %v342_v22  ;;  %v735_v44 = vadd.f32 %v734_v21, %v665_v48  ;;  %v738_v47 = vadd.f32 %v667_v32, %v666_v10  ;;  %v874_v4 = vmul.f32 %v810_v26, %v6179_v19 }
  0xff   :  { %v427_v12 = vpop.f32.mrf.mxu2  ;;  %v943_v58 = vadd.f32 %v942_v28, %v873_v27  ;;  %v875_v43 = vmul.f32 %v811_v31, %v6184_v23  ;;  %5467 = vtanh.f32 %v407_v16  ;;  %v280_v13 = vadd.f32 %v6136_v49, %v6164_v1 }
 0x100   :  { %v6290_v25 = vpop.eup %5457  ;;  %v428_v30 = vadd.f32 %v427_v12, %v6138_v50  ;;  %v492_v63 = vpop.f32.mrf.mxu3  ;;  %5469 = vtanh.f32 %v472_v15  ;;  %v345_v49 = vadd.f32 %v6140_v51, %v6164_v1 }
 0x101   :  { %9754 = vst [vmem:[#allocation20_spill] sm:$0xff] %v6290_v25  ;;  %v300_v17 = vpop.f32.mrf.mxu0  ;;  %v6295_v8 = vpop.eup %5459  ;;  %v493_v22 = vadd.f32 %v492_v63, %v6138_v50  ;;  %944 = vadd.xlane.f32.xlu2 %v943_v58  ;;  %736 = vadd.xlane.f32.xlu1 %v735_v44  ;;  %v668_v16 = vmul.f32 %v6290_v25, %v6203_v34 }
 0x102   :  { %9755 = vst [vmem:[#allocation21_spill] sm:$0xff] %v6295_v8  ;;  %v301_v21 = vadd.f32 %v300_v17, %v6142_v52  ;;  %v365_v10 = vpop.f32.mrf.mxu1  ;;  %v6301_v48 = vpop.eup %5461  ;;  %5471 = vtanh.f32 %v428_v30  ;;  %v812_v15 = vmul.f32 %v6290_v25, %v6290_v25  ;;  %v813_v27 = vmul.f32 %v6295_v8, %v6295_v8 }
 0x103   :  { %9756 = vst [vmem:[#allocation22_spill] sm:$0xff] %v6301_v48  ;;  %v366_v32 = vadd.f32 %v365_v10, %v6142_v52  ;;  %v6308_v50 = vpop.eup %5463  ;;  %5473 = vtanh.f32 %v493_v22  ;;  %v739_v26 = vadd.f32 %v738_v47, %v668_v16  ;;  %v946_v28 = vadd.f32 %v875_v43, %v874_v4 }
 0x104   :  { %9757 = vst [vmem:[#allocation23_spill] sm:$0xff] %v6308_v50  ;;  %v6312_v31 = vpop.eup %5465  ;;  %5475 = vtanh.f32 %v301_v21  ;;  %v876_v44 = vmul.f32 %v812_v15, %v6203_v34  ;;  %v814_v51 = vmul.f32 %v6301_v48, %v6301_v48  ;;  %v815_v12 = vmul.f32 %v6308_v50, %v6308_v50 }
 0x105   :  { %5477 = vtanh.f32 %v366_v32  ;;  %v669_v58 = vmul.f32 %v6295_v8, %v6208_v5  ;;  %v6321_v47 = vpop.eup %5467  ;;  %v877_v30 = vmul.f32 %v813_v27, %v6208_v5  ;;  %v670_v4 = vmul.f32 %v6301_v48, %v6179_v19 }
 0x106   :  { %9758 = vst [vmem:[#allocation24_spill] sm:$0xff] %v6321_v47  ;;  %v947_v43 = vadd.f32 %v946_v28, %v876_v44  ;;  %v671_v63 = vmul.f32 %v6308_v50, %v6184_v23  ;;  %v6328_v17 = vpop.eup %5469  ;;  %5479 = vtanh.f32 %v280_v13  ;;  %v878_v10 = vmul.f32 %v814_v51, %v6179_v19 }
 0x107   :  { %9759 = vst [vmem:[#allocation25_spill] sm:$0xff] %v6328_v17  ;;  %v430_v22 = vpop.f32.mrf.mxu2  ;;  %v740_v21 = vadd.f32 %v739_v26, %v669_v58  ;;  %v879_v16 = vmul.f32 %v815_v12, %v6184_v23  ;;  %5481 = vtanh.f32 %v345_v49  ;;  %v286_v15 = vadd.f32 %v6158_v62, %v6172_v9 }
 0x108   :  { %v6332_v32 = vpop.eup %5471  ;;  %v431_v27 = vadd.f32 %v430_v22, %v6142_v52  ;;  %v495_v28 = vpop.f32.mrf.mxu3  ;;  %v948_v8 = vadd.f32 %v947_v43, %v877_v30 }
 0x109   :  { %9760 = vst [vmem:[#allocation26_spill] sm:$0xff] %v6332_v32  ;;  %v303_v44 = vpop.f32.mrf.mxu0  ;;  %v6337_v25 = vpop.eup %5473  ;;  %v496_v13 = vadd.f32 %v495_v28, %v6142_v52  ;;  %741 = vadd.xlane.f32.xlu2 %v740_v21  ;;  %v816_v12 = vmul.f32 %v6332_v32, %v6332_v32  ;;  %v672_v49 = vmul.f32 %v6332_v32, %v6203_v34 }
 0x10a   :  { %9761 = vst [vmem:[#allocation27_spill] sm:$0xff] %v6337_v25  ;;  %v304_v26 = vadd.f32 %v303_v44, %v6128_v45  ;;  %v368_v51 = vpop.f32.mrf.mxu1  ;;  %v6345_v62 = vpop.eup %5475  ;;  %5483 = vtanh.f32 %v431_v27  ;;  %949 = vadd.xlane.f32.xlu0 %v948_v8  ;;  %v817_v30 = vmul.f32 %v6337_v25, %v6337_v25  ;;  %v743_v52 = vadd.f32 %v671_v63, %v670_v4 }
 0x10b   :  { %9762 = vst [vmem:[#allocation28_spill] sm:$0xff] %v6345_v62  ;;  %v369_v58 = vadd.f32 %v368_v51, %v6128_v45  ;;  %v6350_v43 = vpop.eup %5477  ;;  %5485 = vtanh.f32 %v496_v13  ;;  %v880_v22 = vmul.f32 %v816_v12, %v6203_v34  ;;  %v951_v21 = vadd.f32 %v879_v16, %v878_v10 }
 0x10c   :  { %9763 = vst [vmem:[#allocation29_spill] sm:$0xff] %v6350_v43  ;;  %v818_v28 = vmul.f32 %v6345_v62, %v6345_v62  ;;  %5487 = vtanh.f32 %v304_v26  ;;  %v744_v44 = vadd.f32 %v743_v52, %v672_v49  ;;  %v819_v27 = vmul.f32 %v6350_v43, %v6350_v43  ;;  %v6359_v51 = vpop.eup %5479 }
 0x10d   :  { %v674_v8 = vmul.f32 %v6345_v62, %v6179_v19  ;;  %5489 = vtanh.f32 %v369_v58  ;;  %v881_v4 = vmul.f32 %v817_v30, %v6208_v5  ;;  %v952_v63 = vadd.f32 %v951_v21, %v880_v22  ;;  %v6362_v13 = vpop.eup %5481 }
 0x10e   :  { %v673_v10 = vmul.f32 %v6337_v25, %v6208_v5  ;;  %v882_v16 = vmul.f32 %v818_v28, %v6179_v19  ;;  %v883_v26 = vmul.f32 %v819_v27, %v6184_v23  ;;  %v675_v12 = vmul.f32 %v6350_v43, %v6184_v23 }
 0x10f   :  { %v410_v49 = vadd.f32 %v6146_v54, %v6164_v1  ;;  %v283_v58 = vadd.f32 %v6150_v56, %v6170_v7  ;;  %v351_v30 = vadd.f32 %v6162_v0, %v6172_v9  ;;  %v433_v52 = vpop.f32.mrf.mxu2  ;;  %v953_v22 = vadd.f32 %v952_v63, %v881_v4 }
 0x110   :  { %v6376_v21 = vpop.eup %5483  ;;  %5491 = vtanh.f32 %v286_v15  ;;  %v434_v28 = vadd.f32 %v433_v52, %v6128_v45  ;;  %v498_v27 = vpop.f32.mrf.mxu3  ;;  %v745_v62 = vadd.f32 %v744_v44, %v673_v10  ;;  %v748_v43 = vadd.f32 %v675_v12, %v674_v8 }
 0x111   :  { %9764 = vst [vmem:[#allocation30_spill] sm:$0xff] %v6376_v21  ;;  %v306_v25 = vpop.f32.mrf.mxu0  ;;  %v6379_v32 = vpop.eup %5485  ;;  %v499_v54 = vadd.f32 %v498_v27, %v6128_v45  ;;  %954 = vadd.xlane.f32.xlu1 %v953_v22  ;;  %v820_v0 = vmul.f32 %v6376_v21, %v6376_v21  ;;  %v676_v15 = vmul.f32 %v6376_v21, %v6203_v34 }
 0x112   :  { %9765 = vst [vmem:[#allocation31_spill] sm:$0xff] %v6379_v32  ;;  %v307_v56 = vadd.f32 %v306_v25, %v6144_v53  ;;  %v371_v50 = vpop.f32.mrf.mxu1  ;;  %v6387_v4 = vpop.eup %5487  ;;  %5493 = vtanh.f32 %v434_v28  ;;  %746 = vadd.xlane.f32.xlu0 %v745_v62  ;;  %v821_v8 = vmul.f32 %v6379_v32, %v6379_v32  ;;  %v956_v45 = vadd.f32 %v883_v26, %v882_v16 }
 0x113   :  { %9766 = vst [vmem:[#allocation32_spill] sm:$0xff] %v6387_v4  ;;  %v372_v44 = vadd.f32 %v371_v50, %v6144_v53  ;;  %v6392_v63 = vpop.eup %5489  ;;  %5495 = vtanh.f32 %v499_v54  ;;  %v884_v25 = vmul.f32 %v820_v0, %v6203_v34  ;;  %v677_v10 = vmul.f32 %v6379_v32, %v6208_v5 }
 0x114   :  { %9767 = vst [vmem:[#allocation33_spill] sm:$0xff] %v6392_v63  ;;  %v749_v12 = vadd.f32 %v748_v43, %v676_v15  ;;  %5497 = vtanh.f32 %v307_v56  ;;  %v678_v52 = vmul.f32 %v6387_v4, %v6179_v19  ;;  %v679_v50 = vmul.f32 %v6392_v63, %v6184_v23 }
 0x115   :  { %v822_v62 = vmul.f32 %v6387_v4, %v6387_v4  ;;  %5499 = vtanh.f32 %v372_v44  ;;  %v885_v16 = vmul.f32 %v821_v8, %v6208_v5  ;;  %v957_v26 = vadd.f32 %v956_v45, %v884_v25 }
 0x116   :  { %v823_v22 = vmul.f32 %v6392_v63, %v6392_v63  ;;  %v6406_v28 = vpop.eup %5491  ;;  %5501 = vtanh.f32 %v351_v30  ;;  %v750_v54 = vadd.f32 %v749_v12, %v677_v10  ;;  %v6414_v44 = vadd.f32 %v6116_v39, %v6194_v29 }
 0x117   :  { %v436_v43 = vpop.f32.mrf.mxu2  ;;  %v958_v27 = vadd.f32 %v957_v26, %v885_v16  ;;  %v886_v56 = vmul.f32 %v822_v62, %v6179_v19  ;;  %5503 = vtanh.f32 %v410_v49  ;;  %v753_v32 = vadd.f32 %v679_v50, %v678_v52 }
 0x118   :  { %v887_v0 = vmul.f32 %v823_v22, %v6184_v23  ;;  %v6410_v15 = vpop.eup %5493  ;;  %v437_v8 = vadd.f32 %v436_v43, %v6144_v53  ;;  %v501_v45 = vpop.f32.mrf.mxu3  ;;  %5505 = vtanh.f32 %v283_v58  ;;  %v416_v49 = vadd.f32 %v6166_v2, %v6172_v9 }
 0x119   :  { %9768 = vst [vmem:[#allocation34_spill] sm:$0xff] %v6410_v15  ;;  %v309_v25 = vpop.f32.mrf.mxu0  ;;  %v6417_v30 = vpop.eup %5495  ;;  %v502_v10 = vadd.f32 %v501_v45, %v6144_v53  ;;  %959 = vadd.xlane.f32.xlu2 %v958_v27  ;;  %751 = vadd.xlane.f32.xlu1 %v750_v54  ;;  %v680_v39 = vmul.f32 %v6410_v15, %v6203_v34 }
 0x11a   :  { %9769 = vst [vmem:[#allocation35_spill] sm:$0xff] %v6417_v30  ;;  %v310_v12 = vadd.f32 %v309_v25, %v6130_v46  ;;  %v374_v62 = vpop.f32.mrf.mxu1  ;;  %v6423_v16 = vpop.eup %5497  ;;  %5507 = vtanh.f32 %v437_v8  ;;  %v824_v58 = vmul.f32 %v6410_v15, %v6410_v15  ;;  %v825_v26 = vmul.f32 %v6417_v30, %v6417_v30 }
 0x11b   :  { %9770 = vst [vmem:[#allocation36_spill] sm:$0xff] %v6423_v16  ;;  %v375_v52 = vadd.f32 %v374_v62, %v6130_v46  ;;  %v6430_v53 = vpop.eup %5499  ;;  %5509 = vtanh.f32 %v502_v10  ;;  %v754_v50 = vadd.f32 %v753_v32, %v680_v39  ;;  %v961_v22 = vadd.f32 %v887_v0, %v886_v56 }
 0x11c   :  { %9771 = vst [vmem:[#allocation37_spill] sm:$0xff] %v6430_v53  ;;  %v6434_v43 = vpop.eup %5501  ;;  %5511 = vtanh.f32 %v310_v12  ;;  %v888_v27 = vmul.f32 %v824_v58, %v6203_v34  ;;  %v826_v2 = vmul.f32 %v6423_v16, %v6423_v16  ;;  %v827_v54 = vmul.f32 %v6430_v53, %v6430_v53 }
 0x11d   :  { %v6443_v8 = vadd.f32 %v6120_v41, %v6194_v29  ;;  %v481_v32 = vadd.f32 %v6168_v3, %v6172_v9  ;;  %5513 = vtanh.f32 %v375_v52  ;;  %v681_v56 = vmul.f32 %v6417_v30, %v6208_v5  ;;  %v6449_v0 = vpop.eup %5503 }
 0x11e   :  { %9772 = vst [vmem:[#allocation38_spill] sm:$0xff] %v6449_v0  ;;  %v889_v45 = vmul.f32 %v825_v26, %v6208_v5  ;;  %v962_v25 = vadd.f32 %v961_v22, %v888_v27  ;;  %v682_v10 = vmul.f32 %v6423_v16, %v6179_v19  ;;  %v683_v12 = vmul.f32 %v6430_v53, %v6184_v23  ;;  %v6456_v41 = vpop.eup %5505 }
 0x11f   :  { %5515 = vtanh.f32 %v416_v49  ;;  %v439_v62 = vpop.f32.mrf.mxu2  ;;  %v755_v3 = vadd.f32 %v754_v50, %v681_v56  ;;  %v890_v9 = vmul.f32 %v826_v2, %v6179_v19  ;;  %v891_v39 = vmul.f32 %v827_v54, %v6184_v23 }
 0x120   :  { %v6460_v52 = vpop.eup %5507  ;;  %v440_v58 = vadd.f32 %v439_v62, %v6130_v46  ;;  %v504_v26 = vpop.f32.mrf.mxu3  ;;  %v963_v27 = vadd.f32 %v962_v25, %v889_v45  ;;  %v798_v30 = vmul.f32 %v6406_v28, %v6406_v28  ;;  %v799_v15 = vmul.f32 %v6434_v43, %v6434_v43 }
 0x121   :  { %9773 = vst [vmem:[#allocation39_spill] sm:$0xff] %v6460_v52  ;;  %v312_v22 = vpop.f32.mrf.mxu0  ;;  %v6467_v49 = vpop.eup %5509  ;;  %v505_v50 = vadd.f32 %v504_v26, %v6130_v46  ;;  %756 = vadd.xlane.f32.xlu2 %v755_v3  ;;  %v828_v56 = vmul.f32 %v6460_v52, %v6460_v52  ;;  %v684_v45 = vmul.f32 %v6460_v52, %v6203_v34 }
 0x122   :  { %9774 = vst [vmem:[#allocation40_spill] sm:$0xff] %v6467_v49  ;;  %v313_v2 = vadd.f32 %v312_v22, %v6118_v40  ;;  %v377_v54 = vpop.f32.mrf.mxu1  ;;  %v6475_v25 = vpop.eup %5511  ;;  %5517 = vtanh.f32 %v440_v58  ;;  %964 = vadd.xlane.f32.xlu0 %v963_v27  ;;  %v829_v21 = vmul.f32 %v6467_v49, %v6467_v49  ;;  %v758_v46 = vadd.f32 %v683_v12, %v682_v10 }
 0x123   :  { %9775 = vst [vmem:[#allocation41_spill] sm:$0xff] %v6475_v25  ;;  %v378_v62 = vadd.f32 %v377_v54, %v6118_v40  ;;  %v6480_v26 = vpop.eup %5513  ;;  %5519 = vtanh.f32 %v505_v50  ;;  %v892_v3 = vmul.f32 %v828_v56, %v6203_v34  ;;  %v966_v22 = vadd.f32 %v891_v39, %v890_v9 }
 0x124   :  { %9776 = vst [vmem:[#allocation42_spill] sm:$0xff] %v6480_v26  ;;  %v830_v53 = vmul.f32 %v6475_v25, %v6475_v25  ;;  %5521 = vtanh.f32 %v313_v2  ;;  %v759_v52 = vadd.f32 %v758_v46, %v684_v45  ;;  %v831_v58 = vmul.f32 %v6480_v26, %v6480_v26 }
 0x125   :  { %v686_v27 = vmul.f32 %v6475_v25, %v6179_v19  ;;  %v6489_v54 = vpop.eup %5515  ;;  %v348_v10 = vadd.f32 %v6152_v57, %v6170_v7  ;;  %5523 = vtanh.f32 %v378_v62  ;;  %v893_v12 = vmul.f32 %v829_v21, %v6208_v5 }
 0x126   :  { %9777 = vst [vmem:[#allocation43_spill] sm:$0xff] %v6489_v54  ;;  %v967_v9 = vadd.f32 %v966_v22, %v892_v3  ;;  %v685_v39 = vmul.f32 %v6467_v49, %v6208_v5  ;;  %v894_v50 = vmul.f32 %v830_v53, %v6179_v19  ;;  %v895_v2 = vmul.f32 %v831_v58, %v6184_v23 }
 0x127   :  { %v687_v56 = vmul.f32 %v6480_v26, %v6184_v23  ;;  %v413_v45 = vadd.f32 %v6154_v60, %v6170_v7  ;;  %5525 = vtanh.f32 %v481_v32  ;;  %v442_v46 = vpop.f32.mrf.mxu2  ;;  %v862_v62 = vmul.f32 %v798_v30, %v6179_v19 }
 0x128   :  { %v968_v57 = vadd.f32 %v967_v9, %v893_v12  ;;  %v6503_v21 = vpop.eup %5517  ;;  %v443_v3 = vadd.f32 %v442_v46, %v6118_v40  ;;  %v507_v22 = vpop.f32.mrf.mxu3  ;;  %v760_v53 = vadd.f32 %v759_v52, %v685_v39  ;;  %v863_v58 = vmul.f32 %v799_v15, %v6184_v23 }
 0x129   :  { %9778 = vst [vmem:[#allocation44_spill] sm:$0xff] %v6503_v21  ;;  %v315_v49 = vpop.f32.mrf.mxu0  ;;  %v763_v25 = vadd.f32 %v687_v56, %v686_v27  ;;  %v6507_v16 = vpop.eup %5519  ;;  %v508_v26 = vadd.f32 %v507_v22, %v6118_v40  ;;  %v832_v30 = vmul.f32 %v6503_v21, %v6503_v21  ;;  %v688_v12 = vmul.f32 %v6503_v21, %v6203_v34 }
 0x12a   :  { %9779 = vst [vmem:[#allocation45_spill] sm:$0xff] %v6507_v16  ;;  %v316_v60 = vadd.f32 %v315_v49, %v6110_v35  ;;  %v380_v32 = vpop.f32.mrf.mxu1  ;;  %969 = vadd.xlane.f32.xlu1 %v968_v57  ;;  %v6515_v9 = vpop.eup %5521  ;;  %5527 = vtanh.f32 %v443_v3  ;;  %761 = vadd.xlane.f32.xlu0 %v760_v53  ;;  %v833_v15 = vmul.f32 %v6507_v16, %v6507_v16 }
 0x12b   :  { %9780 = vst [vmem:[#allocation46_spill] sm:$0xff] %v6515_v9  ;;  %v381_v52 = vadd.f32 %v380_v32, %v6110_v35  ;;  %v971_v40 = vadd.f32 %v895_v2, %v894_v50  ;;  %v6520_v27 = vpop.eup %5523  ;;  %5529 = vtanh.f32 %v508_v26  ;;  %v896_v49 = vmul.f32 %v832_v30, %v6203_v34 }
 0x12c   :  { %9781 = vst [vmem:[#allocation47_spill] sm:$0xff] %v6520_v27  ;;  %v689_v39 = vmul.f32 %v6507_v16, %v6208_v5  ;;  %v764_v56 = vadd.f32 %v763_v25, %v688_v12  ;;  %5531 = vtanh.f32 %v316_v60  ;;  %v690_v46 = vmul.f32 %v6515_v9, %v6179_v19 }
 0x12d   :  { %v691_v57 = vmul.f32 %v6520_v27, %v6184_v23  ;;  %v834_v3 = vmul.f32 %v6515_v9, %v6515_v9  ;;  %v6531_v50 = vpop.eup %5525  ;;  %5533 = vtanh.f32 %v381_v52  ;;  %v897_v26 = vmul.f32 %v833_v15, %v6208_v5 }
 0x12e   :  { %9782 = vst [vmem:[#allocation48_spill] sm:$0xff] %v6531_v50  ;;  %v972_v2 = vadd.f32 %v971_v40, %v896_v49  ;;  %v835_v22 = vmul.f32 %v6520_v27, %v6520_v27  ;;  %v475_v25 = vadd.f32 %v6148_v55, %v6164_v1  ;;  %5535 = vtanh.f32 %v348_v10 }
 0x12f   :  { %v478_v53 = vadd.f32 %v6156_v61, %v6170_v7  ;;  %v6542_v60 = vmul.f32 %v6283_v36, %v6283_v36  ;;  %v445_v32 = vpop.f32.mrf.mxu2  ;;  %v765_v12 = vadd.f32 %v764_v56, %v689_v39  ;;  %v898_v52 = vmul.f32 %v834_v3, %v6179_v19 }
 0x130   :  { %v973_v30 = vadd.f32 %v972_v2, %v897_v26  ;;  %v899_v15 = vmul.f32 %v835_v22, %v6184_v23  ;;  %v6546_v40 = vpop.eup %5527  ;;  %v446_v49 = vadd.f32 %v445_v32, %v6110_v35  ;;  %v510_v55 = vpop.f32.mrf.mxu3  ;;  %v768_v1 = vadd.f32 %v691_v57, %v690_v46 }
 0x131   :  { %9783 = vst [vmem:[#allocation49_spill] sm:$0xff] %v6546_v40  ;;  %v800_v61 = vmul.f32 %v6489_v54, %v6489_v54  ;;  %v931_v7 = vadd.f32 %v863_v58, %v862_v62  ;;  %v6551_v10 = vpop.eup %5529  ;;  %5537 = vtanh.f32 %v413_v45  ;;  %v511_v26 = vadd.f32 %v510_v55, %v6110_v35 }
 0x132   :  { %9784 = vst [vmem:[#allocation50_spill] sm:$0xff] %v6551_v10  ;;  %974 = vadd.xlane.f32.xlu2 %v973_v30  ;;  %766 = vadd.xlane.f32.xlu1 %v765_v12  ;;  %v692_v39 = vmul.f32 %v6546_v40, %v6203_v34  ;;  %v836_v56 = vmul.f32 %v6546_v40, %v6546_v40  ;;  %v6558_v3 = vpop.eup %5531  ;;  %5539 = vtanh.f32 %v446_v49 }
 0x133   :  { %v693_v46 = vmul.f32 %v6551_v10, %v6208_v5  ;;  %v837_v62 = vmul.f32 %v6551_v10, %v6551_v10  ;;  %v801_v35 = vmul.f32 %v6531_v50, %v6531_v50  ;;  %v6566_v45 = vpop.eup %5533  ;;  %5541 = vtanh.f32 %v511_v26 }
 0x134   :  { %v769_v58 = vadd.f32 %v768_v1, %v692_v39  ;;  %v900_v57 = vmul.f32 %v836_v56, %v6203_v34  ;;  %v976_v2 = vadd.f32 %v899_v15, %v898_v52  ;;  %v6569_v22 = vpop.eup %5535  ;;  %v694_v32 = vmul.f32 %v6558_v3, %v6179_v19 }
 0x135   :  { %v864_v30 = vmul.f32 %v800_v61, %v6203_v34  ;;  %v838_v12 = vmul.f32 %v6558_v3, %v6558_v3  ;;  %v839_v49 = vmul.f32 %v6566_v45, %v6566_v45  ;;  %v901_v26 = vmul.f32 %v837_v62, %v6208_v5 }
 0x136   :  { %v770_v55 = vadd.f32 %v769_v58, %v693_v46  ;;  %v977_v1 = vadd.f32 %v976_v2, %v900_v57  ;;  %v695_v52 = vmul.f32 %v6566_v45, %v6184_v23  ;;  %5543 = vtanh.f32 %v475_v25 }
 0x137   :  { %v646_v15 = vmul.f32 %v6359_v51, %v6179_v19  ;;  %v790_v61 = vmul.f32 %v6359_v51, %v6359_v51  ;;  %v787_v39 = vmul.f32 %v6312_v31, %v6312_v31  ;;  %v6587_v56 = vpop.eup %5537  ;;  %v902_v62 = vmul.f32 %v838_v12, %v6179_v19 }
 0x138   :  { %9785 = vst [vmem:[#allocation51_spill] sm:$0xff] %v6587_v56  ;;  %771 = vadd.xlane.f32.xlu0 %v770_v55  ;;  %v978_v46 = vadd.f32 %v977_v1, %v901_v26  ;;  %v903_v58 = vmul.f32 %v839_v49, %v6184_v23  ;;  %v647_v25 = vmul.f32 %v6362_v13, %v6184_v23  ;;  %v6593_v57 = vpop.eup %5539  ;;  %5545 = vtanh.f32 %v478_v53 }
 0x139   :  { %v865_v2 = vmul.f32 %v801_v35, %v6208_v5  ;;  %v650_v10 = vmul.f32 %v6456_v41, %v6179_v19  ;;  %v651_v40 = vmul.f32 %v6569_v22, %v6184_v23  ;;  %v6600_v55 = vpop.eup %5541  ;;  %v696_v12 = vmul.f32 %v6593_v57, %v6203_v34 }
 0x13a   :  { %9786 = vst [vmem:[#allocation52_spill] sm:$0xff] %v6600_v55  ;;  %979 = vadd.xlane.f32.xlu2 %v978_v46  ;;  %v773_v49 = vadd.f32 %v695_v52, %v694_v32  ;;  %v932_v26 = vadd.f32 %v931_v7, %v864_v30  ;;  %v840_v1 = vmul.f32 %v6593_v57, %v6593_v57  ;;  %5547 = vtanh.f32 %v6414_v44 }
 0x13b   :  { %v841_v53 = vmul.f32 %v6600_v55, %v6600_v55  ;;  %v654_v35 = vmul.f32 %v6406_v28, %v6179_v19  ;;  %v655_v27 = vmul.f32 %v6434_v43, %v6184_v23  ;;  %v791_v46 = vmul.f32 %v6362_v13, %v6362_v13 }
 0x13c   :  { %v697_v9 = vmul.f32 %v6600_v55, %v6208_v5  ;;  %v774_v32 = vadd.f32 %v773_v49, %v696_v12  ;;  %v904_v7 = vmul.f32 %v840_v1, %v6203_v34  ;;  %v981_v30 = vadd.f32 %v903_v58, %v902_v62  ;;  %v6617_v52 = vpop.eup %5543 }
 0x13d   :  { %v652_v16 = vmul.f32 %v6587_v56, %v6203_v34  ;;  %v718_v21 = vadd.f32 %v651_v40, %v650_v10  ;;  %v648_v63 = vmul.f32 %v6449_v0, %v6203_v34  ;;  %v713_v4 = vadd.f32 %v647_v25, %v646_v15 }
 0x13e   :  { %v775_v48 = vadd.f32 %v774_v32, %v697_v9  ;;  %v933_v24 = vadd.f32 %v932_v26, %v865_v2  ;;  %v905_v20 = vmul.f32 %v841_v53, %v6208_v5  ;;  %v982_v18 = vadd.f32 %v981_v30, %v904_v7  ;;  %v6624_v55 = vpop.eup %5545 }
 0x13f   :  { %9787 = vst [vmem:[#allocation53_spill] sm:$0xff] %v6624_v55  ;;  %v850_v62 = vmul.f32 %v6542_v60, %v6179_v19  ;;  %v851_v58 = vmul.f32 %v787_v39, %v6184_v23  ;;  %v794_v12 = vmul.f32 %v6456_v41, %v6456_v41  ;;  %v795_v40 = vmul.f32 %v6569_v22, %v6569_v22 }
 0x140   :  { %776 = vadd.xlane.f32.xlu1 %v775_v48  ;;  %934 = vadd.xlane.f32.xlu0 %v933_v24  ;;  %v983_v9 = vadd.f32 %v982_v18, %v905_v20  ;;  %v656_v10 = vmul.f32 %v6489_v54, %v6203_v34  ;;  %v723_v15 = vadd.f32 %v655_v27, %v654_v35  ;;  %5549 = vtanh.f32 %v6443_v8  ;;  %v6660_v8 = vpop.eup %5547 }
 0x141   :  { %v792_v60 = vmul.f32 %v6449_v0, %v6449_v0  ;;  %v854_v39 = vmul.f32 %v790_v61, %v6179_v19  ;;  %v855_v25 = vmul.f32 %v791_v46, %v6184_v23  ;;  %v788_v2 = vmul.f32 %v6321_v47, %v6321_v47 }
 0x142   :  { %984 = vadd.xlane.f32.xlu2 %v983_v9  ;;  %v653_v48 = vmul.f32 %v6624_v55, %v6208_v5  ;;  %v719_v24 = vadd.f32 %v718_v21, %v652_v16  ;;  %v649_v20 = vmul.f32 %v6617_v52, %v6208_v5  ;;  %v714_v18 = vadd.f32 %v713_v4, %v648_v63 }
 0x143   :  { %v466_v44 = vadd.f32 %v6112_v37, %v6177_v11  ;;  %v469_v27 = vadd.f32 %v6122_v42, %v6194_v29  ;;  %v858_v61 = vmul.f32 %v794_v12, %v6179_v19  ;;  %v657_v49 = vmul.f32 %v6531_v50, %v6208_v5 }
 0x144   :  { %v724_v26 = vadd.f32 %v723_v15, %v656_v10  ;;  %v796_v16 = vmul.f32 %v6587_v56, %v6587_v56  ;;  %v859_v21 = vmul.f32 %v795_v40, %v6184_v23  ;;  %v921_v4 = vadd.f32 %v855_v25, %v854_v39 }
 0x145   :  { %v789_v37 = vmul.f32 %v6328_v17, %v6328_v17  ;;  %v852_v11 = vmul.f32 %v788_v2, %v6203_v34  ;;  %v916_v63 = vadd.f32 %v851_v58, %v850_v62  ;;  %v720_v42 = vadd.f32 %v719_v24, %v653_v48 }
 0x146   :  { %v715_v29 = vadd.f32 %v714_v18, %v649_v20  ;;  %v793_v1 = vmul.f32 %v6617_v52, %v6617_v52  ;;  %v856_v53 = vmul.f32 %v792_v60, %v6203_v34  ;;  %v797_v35 = vmul.f32 %v6624_v55, %v6624_v55  ;;  %v6670_v62 = vpop.eup %5549 }
 0x147   :  { %v634_v46 = vmul.f32 %v6233_v33, %v6179_v19  ;;  %5551 = vtanh.f32 %v466_v44  ;;  %v725_v32 = vadd.f32 %v724_v26, %v657_v49  ;;  %v860_v7 = vmul.f32 %v796_v16, %v6203_v34  ;;  %9788 = vst [vmem:[#allocation54_spill] sm:$0xff] %v6670_v62 }
 0x148   :  { %721 = vadd.xlane.f32.xlu1 %v720_v42  ;;  %716 = vadd.xlane.f32.xlu0 %v715_v29  ;;  %v926_v30 = vadd.f32 %v859_v21, %v858_v61  ;;  %5553 = vtanh.f32 %v469_v27  ;;  %v638_v58 = vmul.f32 %v6275_v59, %v6179_v19  ;;  %v639_v12 = vmul.f32 %v6660_v8, %v6184_v23 }
 0x149   :  { %v635_v40 = vmul.f32 %v6240_v14, %v6184_v23  ;;  %v857_v9 = vmul.f32 %v793_v1, %v6208_v5  ;;  %v922_v10 = vadd.f32 %v921_v4, %v856_v53  ;;  %v853_v15 = vmul.f32 %v789_v37, %v6208_v5 }
 0x14a   :  { %726 = vadd.xlane.f32.xlu2 %v725_v32  ;;  %v917_v60 = vadd.f32 %v916_v63, %v852_v11  ;;  %v861_v39 = vmul.f32 %v797_v35, %v6208_v5  ;;  %v927_v25 = vadd.f32 %v926_v30, %v860_v7  ;;  %v642_v2 = vmul.f32 %v6283_v36, %v6179_v19 }
 0x14b   :  { %v643_v48 = vmul.f32 %v6312_v31, %v6184_v23  ;;  %v636_v24 = vmul.f32 %v6243_v38, %v6203_v34  ;;  %v698_v20 = vadd.f32 %v635_v40, %v634_v46  ;;  %v778_v18 = vmul.f32 %v6233_v33, %v6233_v33 }
 0x14c   :  { %v779_v44 = vmul.f32 %v6240_v14, %v6240_v14  ;;  %v923_v61 = vadd.f32 %v922_v10, %v857_v9  ;;  %v918_v49 = vadd.f32 %v917_v60, %v853_v15  ;;  %v640_v26 = vmul.f32 %v6670_v62, %v6203_v34 }
 0x14d   :  { %v6691_v27 = vpop.eup %5551  ;;  %v703_v16 = vadd.f32 %v639_v12, %v638_v58  ;;  %v782_v4 = vmul.f32 %v6275_v59, %v6275_v59  ;;  %v783_v37 = vmul.f32 %v6660_v8, %v6660_v8  ;;  %v928_v11 = vadd.f32 %v927_v25, %v861_v39 }
 0x14e   :  { %9789 = vst [vmem:[#allocation55_spill] sm:$0xff] %v6691_v27  ;;  %v6695_v21 = vpop.eup %5553  ;;  %v644_v63 = vmul.f32 %v6321_v47, %v6203_v34  ;;  %v708_v42 = vadd.f32 %v643_v48, %v642_v2  ;;  %v780_v29 = vmul.f32 %v6243_v38, %v6243_v38  ;;  %v842_v1 = vmul.f32 %v778_v18, %v6179_v19 }
 0x14f   :  { %9790 = vst [vmem:[#allocation56_spill] sm:$0xff] %v6695_v21  ;;  %v843_v53 = vmul.f32 %v779_v44, %v6184_v23  ;;  %v641_v35 = vmul.f32 %v6695_v21, %v6208_v5  ;;  %v704_v46 = vadd.f32 %v703_v16, %v640_v26  ;;  %v637_v32 = vmul.f32 %v6691_v27, %v6208_v5 }
 0x150   :  { %924 = vadd.xlane.f32.xlu1 %v923_v61  ;;  %919 = vadd.xlane.f32.xlu0 %v918_v49  ;;  %v699_v7 = vadd.f32 %v698_v20, %v636_v24  ;;  %v846_v30 = vmul.f32 %v782_v4, %v6179_v19  ;;  %v645_v58 = vmul.f32 %v6328_v17, %v6208_v5  ;;  %v624_v4 = vld [vmem:[%s9791_s28 + $0x78] sm:$0xff] }
 0x151   :  { %v709_v12 = vadd.f32 %v708_v42, %v644_v63  ;;  %v784_v40 = vmul.f32 %v6670_v62, %v6670_v62  ;;  %v847_v9 = vmul.f32 %v783_v37, %v6184_v23  ;;  %v906_v10 = vadd.f32 %v843_v53, %v842_v1  ;;  %v622_v1 = vld [vmem:[%s9791_s28 + $0x68] sm:$0xff] }
 0x152   :  { %929 = vadd.xlane.f32.xlu2 %v928_v11  ;;  %v705_v15 = vadd.f32 %v704_v46, %v641_v35  ;;  %v700_v60 = vadd.f32 %v699_v7, %v637_v32  ;;  %v781_v39 = vmul.f32 %v6691_v27, %v6691_v27  ;;  %v844_v25 = vmul.f32 %v780_v29, %v6203_v34  ;;  %v623_v11 = vld [vmem:[%s9791_s28 + $0x70] sm:$0xff]  ;;  %v621_v32 = vld [vmem:[%s9791_s28 + $0x60] sm:$0xff] }
 0x153   :  { %v785_v2 = vmul.f32 %v6695_v21, %v6695_v21  ;;  %v710_v48 = vadd.f32 %v709_v12, %v645_v58  ;;  %v848_v24 = vmul.f32 %v784_v40, %v6203_v34  ;;  %v911_v20 = vadd.f32 %v847_v9, %v846_v30  ;;  %v620_v58 = vld [vmem:[%s9791_s28 + $0x58] sm:$0xff] }
 0x154   :  { %v845_v18 = vmul.f32 %v781_v39, %v6208_v5  ;;  %v907_v44 = vadd.f32 %v906_v10, %v844_v25  ;;  %v619_v10 = vld [vmem:[%s9791_s28 + $0x50] sm:$0xff]  ;;  %v618_v25 = vld [vmem:[%s9791_s28 + $0x48] sm:$0xff] }
 0x155   :  { %v849_v61 = vmul.f32 %v785_v2, %v6208_v5  ;;  %v912_v49 = vadd.f32 %v911_v20, %v848_v24  ;;  %v617_v20 = vld [vmem:[%s9791_s28 + $0x40] sm:$0xff] }
 0x156   :  { %v908_v26 = vadd.f32 %v907_v44, %v845_v18 }
 0x157   :  { %v913_v16 = vadd.f32 %v912_v49, %v849_v61 }
 0x158   :  { %706 = vadd.xlane.f32.xlu1 %v705_v15  ;;  %701 = vadd.xlane.f32.xlu0 %v700_v60 }
 0x15a   :  { %711 = vadd.xlane.f32.xlu2 %v710_v48 }
 0x160   :  { %909 = vadd.xlane.f32.xlu1 %v908_v26 }
 0x162   :  { %914 = vadd.xlane.f32.xlu2 %v913_v16 }
 0x16a   :  { %v732_v42 = vpop.xlane.xlu0 %731 }
 0x16c   :  { %v940_v37 = vpop.xlane.xlu1 %939 }
 0x174   :  { %v945_v63 = vpop.xlane.xlu2 %944  ;;  %v737_v29 = vpop.xlane.xlu1 %736 }
 0x17a   :  { %1801 = vperm.xlu2 %4965, %v624_v4  }
 0x17c   :  { %v742_v53 = vpop.xlane.xlu2 %741 }
 0x17d   :  { %v950_v35 = vpop.xlane.xlu0 %949 }
 0x182   :  { %1796 = vperm.xlu2 %4965, %v623_v11  }
 0x184   :  { %v955_v46 = vpop.xlane.xlu1 %954 }
 0x185   :  { %v747_v30 = vpop.xlane.xlu0 %746 }
 0x18a   :  { %1791 = vperm.xlu2 %4965, %v622_v1  }
 0x18c   :  { %v960_v7 = vpop.xlane.xlu2 %959  ;;  %v752_v12 = vpop.xlane.xlu1 %751 }
 0x192   :  { %1786 = vperm.xlu2 %4965, %v621_v32  }
 0x194   :  { %v757_v40 = vpop.xlane.xlu2 %756 }
 0x195   :  { %v965_v9 = vpop.xlane.xlu0 %964 }
 0x196   :  { %v998_v32 = vsel %vm986_vm0, %v757_v40, %v965_v9 }
 0x19a   :  { %1781 = vperm.xlu2 %4965, %v620_v58   ;;  %v997_v58 = vsel %vm986_vm0, %v752_v12, %v960_v7 }
 0x19d   :  { %v970_v15 = vpop.xlane.xlu1 %969  ;;  %v762_v39 = vpop.xlane.xlu0 %761 }
 0x19e   :  { %v999_v11 = vsel %vm986_vm0, %v762_v39, %v970_v15  ;;  %v993_v15 = vsel %vm986_vm0, %v732_v42, %v940_v37 }
 0x1a2   :  { %1776 = vperm.xlu2 %4965, %v619_v10   ;;  %v996_v10 = vsel %vm986_vm0, %v747_v30, %v955_v46 }
 0x1a5   :  { %v975_v60 = vpop.xlane.xlu2 %974  ;;  %v767_v2 = vpop.xlane.xlu1 %766 }
 0x1a6   :  { %v1000_v16 = vsel %vm986_vm0, %v767_v2, %v975_v60  ;;  %v994_v2 = vsel %vm986_vm0, %v737_v29, %v945_v63 }
 0x1aa   :  { %1771 = vperm.xlu2 %4965, %v618_v25  }
 0x1ab   :  { %v772_v24 = vpop.xlane.xlu0 %771 }
 0x1ad   :  { %v980_v48 = vpop.xlane.xlu2 %979 }
 0x1ae   :  { %v1001_v49 = vsel %vm986_vm0, %v772_v24, %v980_v48  ;;  %v995_v24 = vsel %vm986_vm0, %v742_v53, %v950_v35  ;;  %v577_v35 = vld [vmem:[%s9792_s3] sm:$0xff] }
 0x1b2   :  { %1766 = vperm.xlu2 %4965, %v617_v20   ;;  %v578_v20 = vld [vmem:[%s9792_s3 + $0x8] sm:$0xff] }
 0x1b3   :  { %v777_v18 = vpop.xlane.xlu1 %776  ;;  %v935_v26 = vpop.xlane.xlu0 %934 }
 0x1b5   :  { %v985_v44 = vpop.xlane.xlu2 %984 }
 0x1b6   :  { %v1002_v61 = vsel %vm986_vm0, %v777_v18, %v985_v44  ;;  %v579_v18 = vld [vmem:[%s9792_s3 + $0x10] sm:$0xff]  ;;  %v580_v44 = vld [vmem:[%s9792_s3 + $0x18] sm:$0xff] }
 0x1b7   :  { %1003 = vmatpush.msrb.mxu0 %v1002_v61  ;;  %v581_v61 = vld [vmem:[%s9792_s3 + $0x20] sm:$0xff] }
 0x1b9   :  { %1004 = vmatpush.msrb.mxu0 %v1001_v49  ;;  %v582_v49 = vld [vmem:[%s9792_s3 + $0x28] sm:$0xff] }
 0x1bb   :  { %1005 = vmatpush.msrb.mxu0 %v1000_v16  ;;  %v722_v4 = vpop.xlane.xlu1 %721  ;;  %v717_v25 = vpop.xlane.xlu0 %716  ;;  %v584_v16 = vld [vmem:[%s9792_s3 + $0x38] sm:$0xff] }
 0x1bd   :  { %1006 = vmatpush.msrb.mxu0 %v999_v11  ;;  %v727_v1 = vpop.xlane.xlu2 %726  ;;  %v586_v11 = vld [vmem:[%s9792_s3 + $0x48] sm:$0xff] }
 0x1be   :  { %v992_v40 = vsel %vm986_vm0, %v727_v1, %v935_v26  ;;  %v583_v26 = vld [vmem:[%s9792_s3 + $0x30] sm:$0xff] }
 0x1bf   :  { %1007 = vmatpush.msrb.mxu0 %v998_v32  ;;  %v587_v1 = vld [vmem:[%s9792_s3 + $0x50] sm:$0xff]  ;;  %v588_v32 = vld [vmem:[%s9792_s3 + $0x58] sm:$0xff] }
 0x1c1   :  { %1008 = vmatpush.msrb.mxu0 %v997_v58  ;;  %v589_v58 = vld [vmem:[%s9792_s3 + $0x60] sm:$0xff] }
 0x1c3   :  { %1009 = vmatpush.msrb.mxu0 %v996_v10  ;;  %v925_v48 = vpop.xlane.xlu1 %924  ;;  %v920_v46 = vpop.xlane.xlu0 %919  ;;  %v590_v10 = vld [vmem:[%s9792_s3 + $0x68] sm:$0xff] }
 0x1c4   :  { %v990_v9 = vsel %vm986_vm0, %v717_v25, %v925_v48  ;;  %v591_v25 = vld [vmem:[%s9792_s3 + $0x70] sm:$0xff]  ;;  %v592_v48 = vld [vmem:[%s9792_s3 + $0x78] sm:$0xff] }
 0x1c5   :  { %1010 = vmatpush.msrb.mxu0 %v995_v24  ;;  %v930_v60 = vpop.xlane.xlu2 %929 }
 0x1c6   :  { %v991_v12 = vsel %vm986_vm0, %v722_v4, %v930_v60  ;;  %v585_v4 = vld [vmem:[%s9792_s3 + $0x40] sm:$0xff]  ;;  %s9938_s3 = sld [smem:[#allocation95_spill]] }
 0x1c7   :  { %1011 = vmatpush.msrb.mxu0 %v994_v2 }
 0x1c9   :  { %1012 = vmatpush.msrb.mxu0 %v993_v15 }
 0x1cb   :  { %1013 = vmatpush.msrb.mxu0 %v992_v40  ;;  %v707_v7 = vpop.xlane.xlu1 %706  ;;  %v702_v42 = vpop.xlane.xlu0 %701 }
 0x1cd   :  { %1014 = vmatpush.msrb.mxu0 %v991_v12  ;;  %v712_v30 = vpop.xlane.xlu2 %711 }
 0x1ce   :  { %v989_v53 = vsel %vm986_vm0, %v712_v30, %v920_v46 }
 0x1cf   :  { %1015 = vmatpush.msrb.mxu0 %v990_v9 }
 0x1d1   :  { %1016 = vmatpush.msrb.mxu0 %v989_v53 }
 0x1d3   :  { %v910_v63 = vpop.xlane.xlu1 %909 }
 0x1d4   :  { %v987_v39 = vsel %vm986_vm0, %v702_v42, %v910_v63 }
 0x1d5   :  { %v915_v29 = vpop.xlane.xlu2 %914 }
 0x1d6   :  { %v988_v37 = vsel %vm986_vm0, %v707_v7, %v915_v29 }
 0x1d7   :  { %1017 = vmatpush.msrb.mxu0 %v988_v37 }
 0x1d9   :  { %1018 = vmatpush.msrb.mxu0 %v987_v39 }
 0x1da   :  { %1019 = vmatmul.f32.vlgmr.msrb.gmra.mxu0 %v577_v35 }
 0x1dd   :  { %v6837_v35 = vpop.permute.xlu2 %1801 }
 0x1e2   :  { %1022 = vmatmul.f32.gmra.mxu0 %v578_v20 }
 0x1ea   :  { %1025 = vmatmul.f32.gmra.mxu0 %v579_v18 }
 0x1f2   :  { %1028 = vmatmul.f32.gmra.mxu0 %v580_v44  ;;  %v6845_v44 = vpop.permute.xlu2 %1796 }
 0x1f3   :  { %9793 = vst [vmem:[#allocation57_spill] sm:$0xff] %v6845_v44 }
 0x1fa   :  { %1031 = vmatmul.f32.gmra.mxu0 %v581_v61 }
 0x202   :  { %1034 = vmatmul.f32.gmra.mxu0 %v582_v49 }
 0x20a   :  { %1037 = vmatmul.f32.gmra.mxu0 %v583_v26 }
 0x212   :  { %1040 = vmatmul.f32.gmra.mxu0 %v584_v16  ;;  %v6853_v16 = vpop.permute.xlu2 %1791 }
 0x21a   :  { %1043 = vmatmul.f32.gmra.mxu0 %v585_v4 }
 0x222   :  { %1046 = vmatmul.f32.gmra.mxu0 %v586_v11 }
 0x22a   :  { %1049 = vmatmul.f32.gmra.mxu0 %v587_v1 }
 0x232   :  { %1052 = vmatmul.f32.gmra.mxu0 %v588_v32 }
 0x23a   :  { %1055 = vmatmul.f32.gmra.mxu0 %v589_v58 }
 0x242   :  { %1058 = vmatmul.f32.gmra.mxu0 %v590_v10  ;;  %v6862_v10 = vpop.permute.xlu2 %1786 }
 0x243   :  { %9794 = vst [vmem:[#allocation58_spill] sm:$0xff] %v6862_v10 }
 0x24a   :  { %1061 = vmatmul.f32.gmra.mxu0 %v591_v25 }
 0x252   :  { %1064 = vmatmul.f32.gmra.mxu0 %v592_v48 }
 0x257   :  { %v1020_v24 = vpop.f32.mrf.mxu0 }
 0x258   :  { %v6813_v60 = vmul.f32 0.00025, %v1020_v24 }
 0x25a   :  { %v1084_v2 = vmul.f32 %v6813_v60, %v6813_v60 }
 0x25c   :  { %1116 = vrot.lane.b32.xlu0 %v1084_v2, %s5694_s30 }
 0x25f   :  { %v1023_v15 = vpop.f32.mrf.mxu0 }
 0x260   :  { %v6818_v40 = vmul.f32 0.00025, %v1023_v15  ;;  %v6873_v15 = vpop.permute.xlu2 %1781 }
 0x262   :  { %v1085_v7 = vmul.f32 %v6818_v40, %v6818_v40 }
 0x264   :  { %1118 = vrot.lane.b32.xlu1 %v1085_v7, %s5694_s30 }
 0x267   :  { %v1026_v12 = vpop.f32.mrf.mxu0 }
 0x268   :  { %v6823_v46 = vmul.f32 0.00025, %v1026_v12  ;;  %v6877_v12 = vpop.permute.xlu2 %1776 }
 0x269   :  { %9795 = vst [vmem:[#allocation59_spill] sm:$0xff] %v6877_v12 }
 0x26a   :  { %v1086_v30 = vmul.f32 %v6823_v46, %v6823_v46 }
 0x26c   :  { %1120 = vrot.lane.b32.xlu2 %v1086_v30, %s5694_s30 }
 0x26f   :  { %v1029_v9 = vpop.f32.mrf.mxu0 }
 0x270   :  { %v6828_v53 = vmul.f32 0.00025, %v1029_v9 }
 0x272   :  { %v1087_v63 = vmul.f32 %v6828_v53, %v6828_v53 }
 0x274   :  { %1122 = vrot.lane.b32.xlu0 %v1087_v63, %s5694_s30 }
 0x277   :  { %v1032_v29 = vpop.f32.mrf.mxu0 }
 0x278   :  { %v6833_v37 = vmul.f32 0.00025, %v1032_v29 }
 0x27a   :  { %v1088_v42 = vmul.f32 %v6833_v37, %v6833_v37 }
 0x27c   :  { %1124 = vrot.lane.b32.xlu1 %v1088_v42, %s5694_s30  ;;  %v6887_v42 = vpop.permute.xlu2 %1771 }
 0x27f   :  { %v1035_v39 = vpop.f32.mrf.mxu0 }
 0x280   :  { %v6840_v20 = vmul.f32 0.00025, %v1035_v39 }
 0x282   :  { %v1089_v18 = vmul.f32 %v6840_v20, %v6840_v20 }
 0x284   :  { %1126 = vrot.lane.b32.xlu2 %v1089_v18, %s5694_s30 }
 0x287   :  { %v1038_v61 = vpop.f32.mrf.mxu0 }
 0x288   :  { %v6847_v49 = vmul.f32 0.00025, %v1038_v61 }
 0x28a   :  { %1212 = vperm.xlu1 %4964, %v6847_v49   ;;  %v1090_v26 = vmul.f32 %v6847_v49, %v6847_v49 }
 0x28c   :  { %1128 = vrot.lane.b32.xlu0 %v1090_v26, %s5694_s30 }
 0x28f   :  { %v1041_v4 = vpop.f32.mrf.mxu0 }
 0x290   :  { %v6855_v11 = vmul.f32 0.00025, %v1041_v4 }
 0x292   :  { %1217 = vperm.xlu1 %4964, %v6855_v11   ;;  %v1091_v58 = vmul.f32 %v6855_v11, %v6855_v11 }
 0x297   :  { %v1044_v1 = vpop.f32.mrf.mxu0 }
 0x298   :  { %v6858_v32 = vmul.f32 0.00025, %v1044_v1  ;;  %v6897_v1 = vpop.permute.xlu2 %1766 }
 0x299   :  { %9796 = vst [vmem:[#allocation60_spill] sm:$0xff] %v6897_v1 }
 0x29a   :  { %1130 = vrot.lane.b32.xlu1 %v1091_v58, %s5694_s30  ;;  %v1092_v25 = vmul.f32 %v6858_v32, %v6858_v32 }
 0x29c   :  { %1132 = vrot.lane.b32.xlu2 %v1092_v25, %s5694_s30 }
 0x29f   :  { %v1047_v48 = vpop.f32.mrf.mxu0 }
 0x2a0   :  { %v6868_v24 = vmul.f32 0.00025, %v1047_v48 }
 0x2a2   :  { %1222 = vperm.xlu1 %4964, %v6858_v32   ;;  %v1093_v2 = vmul.f32 %v6868_v24, %v6868_v24 }
 0x2a4   :  { %1134 = vrot.lane.b32.xlu0 %v1093_v2, %s5694_s30 }
 0x2a7   :  { %v1050_v7 = vpop.f32.mrf.mxu0 }
 0x2a8   :  { %v6879_v30 = vmul.f32 0.00025, %v1050_v7 }
 0x2aa   :  { %1227 = vperm.xlu1 %4964, %v6868_v24   ;;  %v1094_v61 = vmul.f32 %v6879_v30, %v6879_v30 }
 0x2af   :  { %v1053_v9 = vpop.f32.mrf.mxu0 }
 0x2b0   :  { %v6881_v63 = vmul.f32 0.00025, %v1053_v9 }
 0x2b2   :  { %1232 = vperm.xlu1 %4964, %v6879_v30   ;;  %v1095_v29 = vmul.f32 %v6881_v63, %v6881_v63 }
 0x2b4   :  { %1138 = vrot.lane.b32.xlu2 %v1095_v29, %s5694_s30 }
 0x2b7   :  { %v1056_v39 = vpop.f32.mrf.mxu0 }
 0x2b8   :  { %v6889_v18 = vmul.f32 0.00025, %v1056_v39 }
 0x2ba   :  { %1136 = vrot.lane.b32.xlu1 %v1094_v61, %s5694_s30  ;;  %v1096_v26 = vmul.f32 %v6889_v18, %v6889_v18 }
 0x2bc   :  { %1140 = vrot.lane.b32.xlu0 %v1096_v26, %s5694_s30 }
 0x2bf   :  { %v1059_v4 = vpop.f32.mrf.mxu0 }
 0x2c0   :  { %v6905_v7 = vmul.f32 0.00025, %v1059_v4 }
 0x2c2   :  { %1237 = vperm.xlu1 %4964, %v6881_v63  }
 0x2c6   :  { %v1121_v48 = vpop.permute.xlu2 %1120 }
 0x2c7   :  { %v1062_v58 = vpop.f32.mrf.mxu0  ;;  %v1166_v2 = vsub.f32 %v6823_v46, %v1121_v48 }
 0x2c8   :  { %v6900_v25 = vmul.f32 0.00025, %v1062_v58 }
 0x2c9   :  { %v6910_v26 = vadd.f32 1e-05, %v1166_v2  ;;  %v1097_v2 = vmul.f32 %v6905_v7, %v6905_v7 }
 0x2ca   :  { %1242 = vperm.xlu1 %4964, %v6889_v18   ;;  %1252 = vperm.xlu0 %4963, %v6900_v25   ;;  %v1098_v29 = vmul.f32 %v6900_v25, %v6900_v25 }
 0x2cb   :  { %vm1366_vm8 = vweird.f32 %v6910_v26 }
 0x2ce   :  { %v1117_v9 = vpop.permute.xlu0 %1116 }
 0x2cf   :  { %v1164_v39 = vsub.f32 %v6813_v60, %v1117_v9  ;;  %v1065_v61 = vpop.f32.mrf.mxu0 }
 0x2d0   :  { %v6912_v58 = vmul.f32 0.00025, %v1065_v61 }
 0x2d1   :  { %v1324_v27 = vadd.f32 1e-05, %v1164_v39 }
 0x2d2   :  { %1247 = vperm.xlu1 %4964, %v6905_v7   ;;  %1144 = vrot.lane.b32.xlu0 %v1098_v29, %s5694_s30  ;;  %v1099_v4 = vmul.f32 %v6912_v58, %v6912_v58  ;;  %v616_v29 = vld [vmem:[%s9791_s28 + $0x38] sm:$0xff] }
 0x2d3   :  { %5555 = vrsqrt.f32 %v1324_v27  ;;  %vm1346_vm2 = vweird.f32 %v1324_v27 }
 0x2d4   :  { %5557 = vrsqrt.f32 %v6910_v26  ;;  %1146 = vrot.lane.b32.xlu2 %v1099_v4, %s5694_s30 }
 0x2d6   :  { %v1119_v48 = vpop.permute.xlu1 %1118 }
 0x2d7   :  { %v1165_v9 = vsub.f32 %v6818_v40, %v1119_v48 }
 0x2d9   :  { %v5556_v61 = vpop.eup %5555  ;;  %v1325_v39 = vadd.f32 1e-05, %v1165_v9 }
 0x2da   :  { %v5558_v21 = vpop.eup %5557  ;;  %v1341_v17 = vmul.f32 %v5556_v61, %v1324_v27  ;;  %1142 = vrot.lane.b32.xlu1 %v1097_v2, %s5694_s30  ;;  %vm1347_vm1 = vweird.f32 %v5556_v61 }
 0x2db   :  { %5559 = vrsqrt.f32 %v1325_v39  ;;  %v1361_v4 = vmul.f32 %v5558_v21, %v6910_v26  ;;  %vm1348_vm3 = vmor %vm1346_vm2, %vm1347_vm1  ;;  %vm1356_vm5 = vweird.f32 %v1325_v39  ;;  %vm1367_vm7 = vweird.f32 %v5558_v21 }
 0x2dc   :  { %v1342_v38 = vmul.f32 %v5556_v61, %v1341_v17  ;;  %1761 = vperm.xlu2 %4965, %v616_v29   ;;  %vm1368_vm9 = vmor %vm1366_vm8, %vm1367_vm7 }
 0x2dd   :  { %v1362_v0 = vmul.f32 %v5558_v21, %v1361_v4 }
 0x2de   :  { %v1127_v55 = vpop.permute.xlu2 %1126  ;;  %v1343_v48 = vmul.f32 0.5, %v1342_v38 }
 0x2df   :  { %v1169_v62 = vsub.f32 %v6840_v20, %v1127_v55  ;;  %v1363_v38 = vmul.f32 0.5, %v1362_v0 }
 0x2e0   :  { %v1344_v47 = vsub.f32 1.5, %v1343_v48 }
 0x2e1   :  { %v5560_v9 = vpop.eup %5559  ;;  %v1329_v12 = vadd.f32 1e-05, %v1169_v62  ;;  %v1364_v54 = vsub.f32 1.5, %v1363_v38 }
 0x2e2   :  { %v1351_v44 = vmul.f32 %v5560_v9, %v1325_v39  ;;  %1207 = vperm.xlu1 %4964, %v6840_v20   ;;  %v1345_v56 = vmul.f32 %v5556_v61, %v1344_v47  ;;  %vm1357_vm4 = vweird.f32 %v5560_v9 }
 0x2e3   :  { %5561 = vrsqrt.f32 %v1329_v12  ;;  %vm1358_vm6 = vmor %vm1356_vm5, %vm1357_vm4  ;;  %v1365_v0 = vmul.f32 %v5558_v21, %v1364_v54  ;;  %vm1396_vm11 = vweird.f32 %v1329_v12 }
 0x2e4   :  { %v1352_v17 = vmul.f32 %v5560_v9, %v1351_v44  ;;  %v1349_v2 = vsel %vm1348_vm3, %v5556_v61, %v1345_v56 }
 0x2e5   :  { %1516 = vrot.lane.b32.xlu2 %v1349_v2, %s5695_s5 }
 0x2e6   :  { %v1123_v29 = vpop.permute.xlu0 %1122  ;;  %v1353_v55 = vmul.f32 0.5, %v1352_v17 }
 0x2e7   :  { %v1167_v48 = vsub.f32 %v6828_v53, %v1123_v29  ;;  %v1369_v29 = vsel %vm1368_vm9, %v5558_v21, %v1365_v0 }
 0x2e8   :  { %v1354_v50 = vsub.f32 1.5, %v1353_v55 }
 0x2e9   :  { %v5562_v62 = vpop.eup %5561  ;;  %v1327_v4 = vadd.f32 1e-05, %v1167_v48 }
 0x2ea   :  { %v1391_v20 = vmul.f32 %v5562_v62, %v1329_v12  ;;  %1257 = vperm.xlu1 %4964, %v6912_v58   ;;  %v1355_v47 = vmul.f32 %v5560_v9, %v1354_v50  ;;  %vm1397_vm10 = vweird.f32 %v5562_v62 }
 0x2eb   :  { %5563 = vrsqrt.f32 %v1327_v4  ;;  %vm1398_vm12 = vmor %vm1396_vm11, %vm1397_vm10  ;;  %vm1376_vm14 = vweird.f32 %v1327_v4 }
 0x2ec   :  { %v1392_v56 = vmul.f32 %v5562_v62, %v1391_v20  ;;  %v1359_v27 = vsel %vm1358_vm6, %v5560_v9, %v1355_v47 }
 0x2ed   :  { %1518 = vrot.lane.b32.xlu0 %v1359_v27, %s5695_s5 }
 0x2ee   :  { %v1125_v44 = vpop.permute.xlu1 %1124  ;;  %v1393_v61 = vmul.f32 0.5, %v1392_v56 }
 0x2ef   :  { %v1168_v17 = vsub.f32 %v6833_v37, %v1125_v44 }
 0x2f0   :  { %v1394_v50 = vsub.f32 1.5, %v1393_v61 }
 0x2f1   :  { %v5564_v2 = vpop.eup %5563  ;;  %v1328_v38 = vadd.f32 1e-05, %v1168_v17 }
 0x2f2   :  { %v1371_v39 = vmul.f32 %v5564_v2, %v1327_v4  ;;  %1520 = vrot.lane.b32.xlu1 %v1369_v29, %s5695_s5  ;;  %v1395_v55 = vmul.f32 %v5562_v62, %v1394_v50  ;;  %vm1377_vm13 = vweird.f32 %v5564_v2 }
 0x2f3   :  { %5565 = vrsqrt.f32 %v1328_v38  ;;  %vm1378_vm15 = vmor %vm1376_vm14, %vm1377_vm13  ;;  %vm1386_vm2 = vweird.f32 %v1328_v38 }
 0x2f4   :  { %v1372_v9 = vmul.f32 %v5564_v2, %v1371_v39  ;;  %v1399_v27 = vsel %vm1398_vm12, %v5562_v62, %v1395_v55 }
 0x2f6   :  { %v1133_v54 = vpop.permute.xlu2 %1132  ;;  %v1373_v48 = vmul.f32 0.5, %v1372_v9 }
 0x2f7   :  { %v1172_v20 = vsub.f32 %v6858_v32, %v1133_v54 }
 0x2f8   :  { %v1374_v47 = vsub.f32 1.5, %v1373_v48 }
 0x2f9   :  { %v5566_v26 = vpop.eup %5565  ;;  %v1332_v56 = vadd.f32 1e-05, %v1172_v20 }
 0x2fa   :  { %v1381_v21 = vmul.f32 %v5566_v26, %v1328_v38  ;;  %1526 = vrot.lane.b32.xlu1 %v1399_v27, %s5695_s5  ;;  %v1375_v0 = vmul.f32 %v5564_v2, %v1374_v47  ;;  %vm1387_vm1 = vweird.f32 %v5566_v26 }
 0x2fb   :  { %5567 = vrsqrt.f32 %v1332_v56  ;;  %vm1388_vm3 = vmor %vm1386_vm2, %vm1387_vm1  ;;  %vm1426_vm5 = vweird.f32 %v1332_v56 }
 0x2fc   :  { %v1382_v44 = vmul.f32 %v5566_v26, %v1381_v21  ;;  %v6939_v61 = vpop.permute.xlu1 %1212  ;;  %v1379_v17 = vsel %vm1378_vm15, %v5564_v2, %v1375_v0 }
 0x2fd   :  { %9797 = vst [vmem:[#allocation61_spill] sm:$0xff] %v6939_v61  ;;  %1522 = vrot.lane.b32.xlu2 %v1379_v17, %s5695_s5 }
 0x2fe   :  { %v1129_v32 = vpop.permute.xlu0 %1128  ;;  %v1383_v12 = vmul.f32 0.5, %v1382_v44 }
 0x2ff   :  { %v1170_v29 = vsub.f32 %v6847_v49, %v1129_v32 }
 0x300   :  { %v1384_v50 = vsub.f32 1.5, %v1383_v12 }
 0x301   :  { %v5568_v62 = vpop.eup %5567  ;;  %v1330_v39 = vadd.f32 1e-05, %v1170_v29 }
 0x302   :  { %v1421_v9 = vmul.f32 %v5568_v62, %v1332_v56  ;;  %v1385_v55 = vmul.f32 %v5566_v26, %v1384_v50  ;;  %vm1427_vm4 = vweird.f32 %v5568_v62 }
 0x303   :  { %5569 = vrsqrt.f32 %v1330_v39  ;;  %vm1428_vm6 = vmor %vm1426_vm5, %vm1427_vm4  ;;  %vm1406_vm8 = vweird.f32 %v1330_v39 }
 0x304   :  { %v1422_v4 = vmul.f32 %v5568_v62, %v1421_v9  ;;  %v6943_v54 = vpop.permute.xlu1 %1217  ;;  %v1389_v48 = vsel %vm1388_vm3, %v5566_v26, %v1385_v55 }
 0x305   :  { %1524 = vrot.lane.b32.xlu0 %v1389_v48, %s5695_s5 }
 0x306   :  { %v1423_v2 = vmul.f32 0.5, %v1422_v4 }
 0x308   :  { %v1424_v20 = vsub.f32 1.5, %v1423_v2 }
 0x309   :  { %v5570_v47 = vpop.eup %5569 }
 0x30a   :  { %v1401_v49 = vmul.f32 %v5570_v47, %v1330_v39  ;;  %v1425_v27 = vmul.f32 %v5568_v62, %v1424_v20  ;;  %vm1407_vm7 = vweird.f32 %v5570_v47 }
 0x30b   :  { %vm1408_vm9 = vmor %vm1406_vm8, %vm1407_vm7 }
 0x30c   :  { %v1402_v21 = vmul.f32 %v5570_v47, %v1401_v49  ;;  %v1131_v0 = vpop.permute.xlu1 %1130  ;;  %v1429_v44 = vsel %vm1428_vm6, %v5568_v62, %v1425_v27 }
 0x30d   :  { %v1171_v38 = vsub.f32 %v6855_v11, %v1131_v0  ;;  %1532 = vrot.lane.b32.xlu1 %v1429_v44, %s5695_s5 }
 0x30e   :  { %v1139_v17 = vpop.permute.xlu2 %1138  ;;  %v1403_v32 = vmul.f32 0.5, %v1402_v21 }
 0x30f   :  { %v1331_v26 = vadd.f32 1e-05, %v1171_v38  ;;  %v1175_v12 = vsub.f32 %v6881_v63, %v1139_v17 }
 0x310   :  { %v1404_v29 = vsub.f32 1.5, %v1403_v32 }
 0x311   :  { %5571 = vrsqrt.f32 %v1331_v26  ;;  %v1335_v50 = vadd.f32 1e-05, %v1175_v12  ;;  %vm1416_vm11 = vweird.f32 %v1331_v26 }
 0x312   :  { %v1405_v9 = vmul.f32 %v5570_v47, %v1404_v29 }
 0x313   :  { %5573 = vrsqrt.f32 %v1335_v50  ;;  %vm1456_vm14 = vweird.f32 %v1335_v50 }
 0x314   :  { %v6949_v56 = vpop.permute.xlu1 %1222  ;;  %v1409_v62 = vsel %vm1408_vm9, %v5570_v47, %v1405_v9 }
 0x315   :  { %1528 = vrot.lane.b32.xlu2 %v1409_v62, %s5695_s5 }
 0x316   :  { %v1135_v11 = vpop.permute.xlu0 %1134 }
 0x317   :  { %v5572_v55 = vpop.eup %5571  ;;  %v1173_v4 = vsub.f32 %v6868_v24, %v1135_v11 }
 0x318   :  { %v1411_v48 = vmul.f32 %v5572_v55, %v1331_v26  ;;  %vm1417_vm10 = vweird.f32 %v5572_v55 }
 0x319   :  { %v5574_v2 = vpop.eup %5573  ;;  %v1333_v63 = vadd.f32 1e-05, %v1173_v4  ;;  %vm1418_vm13 = vmor %vm1416_vm11, %vm1417_vm10 }
 0x31a   :  { %v1412_v20 = vmul.f32 %v5572_v55, %v1411_v48  ;;  %v1451_v49 = vmul.f32 %v5574_v2, %v1335_v50  ;;  %vm1457_vm12 = vweird.f32 %v5574_v2 }
 0x31b   :  { %5575 = vrsqrt.f32 %v1333_v63  ;;  %vm1458_vm15 = vmor %vm1456_vm14, %vm1457_vm12  ;;  %vm1436_vm2 = vweird.f32 %v1333_v63 }
 0x31c   :  { %v1452_v27 = vmul.f32 %v5574_v2, %v1451_v49  ;;  %v6953_v21 = vpop.permute.xlu1 %1227  ;;  %v1413_v39 = vmul.f32 0.5, %v1412_v20 }
 0x31e   :  { %v1414_v0 = vsub.f32 1.5, %v1413_v39  ;;  %v1453_v44 = vmul.f32 0.5, %v1452_v27 }
 0x320   :  { %v1415_v47 = vmul.f32 %v5572_v55, %v1414_v0  ;;  %v1454_v38 = vsub.f32 1.5, %v1453_v44 }
 0x321   :  { %v5576_v17 = vpop.eup %5575 }
 0x322   :  { %v1431_v24 = vmul.f32 %v5576_v17, %v1333_v63  ;;  %v1419_v32 = vsel %vm1418_vm13, %v5572_v55, %v1415_v47  ;;  %v1455_v12 = vmul.f32 %v5574_v2, %v1454_v38  ;;  %vm1437_vm1 = vweird.f32 %v5576_v17 }
 0x323   :  { %1530 = vrot.lane.b32.xlu0 %v1419_v32, %s5695_s5  ;;  %vm1438_vm3 = vmor %vm1436_vm2, %vm1437_vm1 }
 0x324   :  { %v1432_v29 = vmul.f32 %v5576_v17, %v1431_v24  ;;  %v6956_v9 = vpop.permute.xlu1 %1232  ;;  %v1459_v62 = vsel %vm1458_vm15, %v5574_v2, %v1455_v12 }
 0x325   :  { %1538 = vrot.lane.b32.xlu1 %v1459_v62, %s5695_s5 }
 0x326   :  { %v1433_v11 = vmul.f32 0.5, %v1432_v29 }
 0x328   :  { %v1434_v4 = vsub.f32 1.5, %v1433_v11 }
 0x32a   :  { %v1435_v26 = vmul.f32 %v5576_v17, %v1434_v4 }
 0x32c   :  { %v1137_v48 = vpop.permute.xlu1 %1136  ;;  %v1439_v20 = vsel %vm1438_vm3, %v5576_v17, %v1435_v26 }
 0x32d   :  { %v1174_v55 = vsub.f32 %v6879_v30, %v1137_v48  ;;  %1534 = vrot.lane.b32.xlu2 %v1439_v20, %s5695_s5 }
 0x32e   :  { %v1141_v50 = vpop.permute.xlu0 %1140  ;;  %v1147_v49 = vpop.permute.xlu2 %1146 }
 0x32f   :  { %v1334_v27 = vadd.f32 1e-05, %v1174_v55  ;;  %v1176_v39 = vsub.f32 %v6889_v18, %v1141_v50  ;;  %v1179_v2 = vsub.f32 %v6912_v58, %v1147_v49 }
 0x331   :  { %5577 = vrsqrt.f32 %v1334_v27  ;;  %v1336_v0 = vadd.f32 1e-05, %v1176_v39  ;;  %v1339_v44 = vadd.f32 1e-05, %v1179_v2  ;;  %vm1446_vm5 = vweird.f32 %v1334_v27 }
 0x333   :  { %5579 = vrsqrt.f32 %v1336_v0  ;;  %vm1466_vm8 = vweird.f32 %v1336_v0  ;;  %vm1496_vm11 = vweird.f32 %v1339_v44 }
 0x334   :  { %5581 = vrsqrt.f32 %v1339_v44  ;;  %v6963_v63 = vpop.permute.xlu1 %1237 }
 0x337   :  { %v5578_v47 = vpop.eup %5577 }
 0x338   :  { %v1441_v38 = vmul.f32 %v5578_v47, %v1334_v27  ;;  %vm1447_vm4 = vweird.f32 %v5578_v47 }
 0x339   :  { %v5580_v17 = vpop.eup %5579  ;;  %vm1448_vm6 = vmor %vm1446_vm5, %vm1447_vm4  ;;  %vm2464_vm4 = vcmask 1039360   ;;  %vm2875_vm5 = vcmask 1031168  }
 0x33a   :  { %v5582_v30 = vpop.eup %5581  ;;  %v1442_v24 = vmul.f32 %v5578_v47, %v1441_v38  ;;  %v1461_v32 = vmul.f32 %v5580_v17, %v1336_v0  ;;  %vm1467_vm7 = vweird.f32 %v5580_v17 }
 0x33b   :  { %v1491_v12 = vmul.f32 %v5582_v30, %v1339_v44  ;;  %vm1468_vm9 = vmor %vm1466_vm8, %vm1467_vm7  ;;  %vm1497_vm10 = vweird.f32 %v5582_v30  ;;  %vm3459_vm7 = vcmask 392192  }
 0x33c   :  { %v1462_v29 = vmul.f32 %v5580_v17, %v1461_v32  ;;  %v6965_v62 = vpop.permute.xlu1 %1242  ;;  %v6967_v18 = vpop.permute.xlu0 %1252  ;;  %v1443_v58 = vmul.f32 0.5, %v1442_v24  ;;  %vm1498_vm12 = vmor %vm1496_vm11, %vm1497_vm10 }
 0x33d   :  { %9798 = vst [vmem:[#allocation62_spill] sm:$0xff] %v6965_v62  ;;  %v1492_v11 = vmul.f32 %v5582_v30, %v1491_v12 }
 0x33e   :  { %v1444_v4 = vsub.f32 1.5, %v1443_v58  ;;  %v1463_v26 = vmul.f32 0.5, %v1462_v29 }
 0x33f   :  { %v1493_v55 = vmul.f32 0.5, %v1492_v11 }
 0x340   :  { %v1445_v48 = vmul.f32 %v5578_v47, %v1444_v4  ;;  %v1464_v20 = vsub.f32 1.5, %v1463_v26 }
 0x341   :  { %v1494_v32 = vsub.f32 1.5, %v1493_v55 }
 0x342   :  { %v1449_v50 = vsel %vm1448_vm6, %v5578_v47, %v1445_v48  ;;  %v1465_v49 = vmul.f32 %v5580_v17, %v1464_v20  ;;  %vm3296_vm6 = vcmask 990208  }
 0x343   :  { %1536 = vrot.lane.b32.xlu0 %v1449_v50, %s5695_s5  ;;  %v1495_v12 = vmul.f32 %v5582_v30, %v1494_v32 }
 0x344   :  { %v6970_v39 = vpop.permute.xlu1 %1247  ;;  %v1145_v2 = vpop.permute.xlu0 %1144  ;;  %v1469_v24 = vsel %vm1468_vm9, %v5580_v17, %v1465_v49  ;;  %v615_v17 = vld [vmem:[%s9791_s28 + $0x30] sm:$0xff]  ;;  %v614_v49 = vld [vmem:[%s9791_s28 + $0x28] sm:$0xff] }
 0x345   :  { %v1178_v38 = vsub.f32 %v6900_v25, %v1145_v2  ;;  %1540 = vrot.lane.b32.xlu2 %v1469_v24, %s5695_s5  ;;  %v1499_v58 = vsel %vm1498_vm12, %v5582_v30, %v1495_v12  ;;  %v6986_v12 = vpop.permute.xlu2 %1761 }
 0x346   :  { %9799 = vst [vmem:[#allocation63_spill] sm:$0xff] %v6986_v12 }
 0x347   :  { %v1338_v27 = vadd.f32 1e-05, %v1178_v38 }
 0x349   :  { %5583 = vrsqrt.f32 %v1338_v27  ;;  %vm1486_vm14 = vweird.f32 %v1338_v27 }
 0x34c   :  { %v1143_v29 = vpop.permute.xlu1 %1142 }
 0x34d   :  { %v1177_v47 = vsub.f32 %v6905_v7, %v1143_v29  ;;  %1546 = vrot.lane.b32.xlu2 %v1499_v58, %s5695_s5  ;;  %v613_v29 = vld [vmem:[%s9791_s28 + $0x20] sm:$0xff] }
 0x34f   :  { %v1337_v11 = vadd.f32 1e-05, %v1177_v47  ;;  %v5584_v0 = vpop.eup %5583  ;;  %v594_v47 = vld [vmem:[%s9800_s29 + $0x8] sm:$0xff] }
 0x350   :  { %v1481_v4 = vmul.f32 %v5584_v0, %v1338_v27  ;;  %vm1487_vm13 = vweird.f32 %v5584_v0 }
 0x351   :  { %5585 = vrsqrt.f32 %v1337_v11  ;;  %vm1488_vm15 = vmor %vm1486_vm14, %vm1487_vm13  ;;  %vm1476_vm2 = vweird.f32 %v1337_v11 }
 0x352   :  { %v1482_v25 = vmul.f32 %v5584_v0, %v1481_v4  ;;  %v1517_v4 = vpop.permute.xlu2 %1516 }
 0x354   :  { %v1483_v26 = vmul.f32 0.5, %v1482_v25  ;;  %v6979_v55 = vpop.permute.xlu1 %1207  ;;  %v595_v25 = vld [vmem:[%s9800_s29 + $0x10] sm:$0xff] }
 0x355   :  { %1756 = vperm.xlu2 %4965, %v615_v17  }
 0x356   :  { %v1484_v44 = vsub.f32 1.5, %v1483_v26  ;;  %v596_v26 = vld [vmem:[%s9800_s29 + $0x18] sm:$0xff] }
 0x357   :  { %v5586_v48 = vpop.eup %5585 }
 0x358   :  { %v1471_v20 = vmul.f32 %v5586_v48, %v1337_v11  ;;  %v1485_v30 = vmul.f32 %v5584_v0, %v1484_v44  ;;  %vm1477_vm1 = vweird.f32 %v5586_v48 }
 0x359   :  { %vm1478_vm3 = vmor %vm1476_vm2, %vm1477_vm1 }
 0x35a   :  { %v1472_v7 = vmul.f32 %v5586_v48, %v1471_v20  ;;  %v1489_v50 = vsel %vm1488_vm15, %v5584_v0, %v1485_v30  ;;  %v612_v0 = vld [vmem:[%s9791_s28 + $0x18] sm:$0xff] }
 0x35b   :  { %1544 = vrot.lane.b32.xlu1 %v1489_v50, %s5695_s5  ;;  %v593_v50 = vld [vmem:[%s9800_s29] sm:$0xff] }
 0x35c   :  { %v1473_v2 = vmul.f32 0.5, %v1472_v7  ;;  %v6988_v27 = vpop.permute.xlu1 %1257 }
 0x35d   :  { %1751 = vperm.xlu2 %4965, %v614_v49  }
 0x35e   :  { %v1474_v38 = vsub.f32 1.5, %v1473_v2  ;;  %v599_v2 = vld [vmem:[%s9800_s29 + $0x30] sm:$0xff] }
 0x35f   :  { %v1519_v58 = vpop.permute.xlu0 %1518 }
 0x360   :  { %v1475_v24 = vmul.f32 %v5586_v48, %v1474_v38  ;;  %v1565_v11 = vmul.f32 %v1519_v58, %v594_v47  ;;  %v601_v58 = vld [vmem:[%s9800_s29 + $0x40] sm:$0xff] }
 0x362   :  { %v1479_v32 = vsel %vm1478_vm3, %v5586_v48, %v1475_v24  ;;  %v1523_v48 = vpop.permute.xlu2 %1522 }
 0x363   :  { %1542 = vrot.lane.b32.xlu0 %v1479_v32, %s5695_s5  ;;  %1202 = vperm.xlu1 %4964, %v6833_v37   ;;  %v1567_v20 = vmul.f32 %v1523_v48, %v596_v26 }
 0x364   :  { %v1521_v37 = vpop.permute.xlu1 %1520 }
 0x365   :  { %1746 = vperm.xlu2 %4965, %v613_v29   ;;  %v1566_v17 = vmul.f32 %v1521_v37, %v595_v25  ;;  %v602_v25 = vld [vmem:[%s9800_s29 + $0x48] sm:$0xff]  ;;  %v608_v37 = vld [vmem:[%s9800_s29 + $0x78] sm:$0xff] }
 0x36b   :  { %1587 = vperm.xlu0 %4963, %v1565_v11   ;;  %1197 = vperm.xlu1 %4964, %v6828_v53   ;;  %v597_v53 = vld [vmem:[%s9800_s29 + $0x20] sm:$0xff] }
 0x36c   :  { %v1527_v30 = vpop.permute.xlu1 %1526 }
 0x36d   :  { %1741 = vperm.xlu2 %4965, %v612_v0  }
 0x36f   :  { %v1529_v38 = vpop.permute.xlu2 %1528 }
 0x370   :  { %v1570_v24 = vmul.f32 %v1529_v38, %v599_v2  ;;  %v606_v38 = vld [vmem:[%s9800_s29 + $0x68] sm:$0xff] }
 0x373   :  { %1592 = vperm.xlu0 %4963, %v1566_v17   ;;  %1192 = vperm.xlu1 %4964, %v6823_v46   ;;  %v598_v46 = vld [vmem:[%s9800_s29 + $0x28] sm:$0xff] }
 0x374   :  { %v1569_v49 = vmul.f32 %v1527_v30, %v598_v46  ;;  %v609_v46 = vld [vmem:[%s9791_s28] sm:$0xff]  ;;  %v604_v30 = vld [vmem:[%s9800_s29 + $0x58] sm:$0xff] }
 0x377   :  { %v1525_v44 = vpop.permute.xlu0 %1524 }
 0x378   :  { %v1568_v7 = vmul.f32 %v1525_v44, %v597_v53  ;;  %v603_v53 = vld [vmem:[%s9800_s29 + $0x50] sm:$0xff] }
 0x37b   :  { %1597 = vperm.xlu0 %4963, %v1567_v20   ;;  %1187 = vperm.xlu1 %4964, %v6818_v40   ;;  %v1564_v40 = vmul.f32 %v1517_v4, %v593_v50  ;;  %v611_v20 = vld [vmem:[%s9791_s28 + $0x10] sm:$0xff] }
 0x37f   :  { %v1533_v11 = vpop.permute.xlu1 %1532 }
 0x380   :  { %v1572_v0 = vmul.f32 %v1533_v11, %v601_v58 }
 0x383   :  { %1602 = vperm.xlu0 %4963, %v1568_v7   ;;  %1182 = vperm.xlu1 %4964, %v6813_v60   ;;  %v600_v60 = vld [vmem:[%s9800_s29 + $0x38] sm:$0xff] }
 0x387   :  { %v1535_v29 = vpop.permute.xlu2 %1534 }
 0x388   :  { %v1573_v17 = vmul.f32 %v1535_v29, %v602_v25  ;;  %v607_v29 = vld [vmem:[%s9800_s29 + $0x70] sm:$0xff]  ;;  %v610_v25 = vld [vmem:[%s9791_s28 + $0x8] sm:$0xff] }
 0x38b   :  { %1607 = vperm.xlu0 %4963, %v1569_v49   ;;  %1582 = vperm.xlu1 %4964, %v1564_v40   ;;  %v605_v40 = vld [vmem:[%s9800_s29 + $0x60] sm:$0xff] }
 0x393   :  { %1612 = vperm.xlu0 %4963, %v1570_v24  }
 0x395   :  { %v1531_v32 = vpop.permute.xlu0 %1530 }
 0x396   :  { %v1571_v47 = vmul.f32 %v1531_v32, %v600_v60 }
 0x397   :  { %v1539_v50 = vpop.permute.xlu1 %1538 }
 0x398   :  { %v1575_v49 = vmul.f32 %v1539_v50, %v604_v30  ;;  %v1320_v30 = vsub.f32 %v6558_v3, %v6988_v27  ;;  %v1321_v50 = vsub.f32 %v6566_v45, %v6988_v27 }
 0x39b   :  { %1617 = vperm.xlu0 %4963, %v1571_v47  }
 0x39f   :  { %v1541_v4 = vpop.permute.xlu2 %1540 }
 0x3a0   :  { %v1576_v2 = vmul.f32 %v1541_v4, %v605_v40 }
 0x3a3   :  { %1622 = vperm.xlu0 %4963, %v1572_v0  }
 0x3a7   :  { %v1547_v26 = vpop.permute.xlu2 %1546 }
 0x3a8   :  { %v1579_v48 = vmul.f32 %v1547_v26, %v608_v37 }
 0x3aa   :  { %1657 = vperm.xlu2 %4965, %v1579_v48  }
 0x3ab   :  { %1627 = vperm.xlu0 %4963, %v1573_v17  }
 0x3af   :  { %v7057_v11 = vpop.permute.xlu2 %1756 }
 0x3b0   :  { %9801 = vst [vmem:[#allocation64_spill] sm:$0xff] %v7057_v11 }
 0x3b2   :  { %1736 = vperm.xlu2 %4965, %v611_v20  }
 0x3b5   :  { %v1537_v44 = vpop.permute.xlu0 %1536 }
 0x3b6   :  { %v1574_v7 = vmul.f32 %v1537_v44, %v603_v53 }
 0x3b7   :  { %v7066_v37 = vpop.permute.xlu2 %1751 }
 0x3b8   :  { %1632 = vperm.xlu0 %4963, %v1574_v7   ;;  %9803 = vst [vmem:[#allocation66_spill] sm:$0xff] %v7066_v37 }
 0x3ba   :  { %1726 = vperm.xlu2 %4965, %v609_v46  }
 0x3bf   :  { %v7072_v48 = vpop.permute.xlu2 %1746 }
 0x3c0   :  { %1637 = vperm.xlu0 %4963, %v1575_v49   ;;  %9806 = vst [vmem:[#allocation69_spill] sm:$0xff] %v7072_v48  ;;  %v1322_v49 = vsub.f32 %v6593_v57, %v6988_v27 }
 0x3c7   :  { %v7080_v7 = vpop.permute.xlu2 %1741 }
 0x3c8   :  { %1642 = vperm.xlu0 %4963, %v1576_v2   ;;  %9809 = vst [vmem:[#allocation72_spill] sm:$0xff] %v7080_v7 }
 0x3cd   :  { %v1545_v60 = vpop.permute.xlu1 %1544 }
 0x3ce   :  { %v1578_v58 = vmul.f32 %v1545_v60, %v607_v29 }
 0x3d5   :  { %v1543_v24 = vpop.permute.xlu0 %1542  ;;  %v7059_v0 = vpop.permute.xlu1 %1202 }
 0x3d6   :  { %v1577_v32 = vmul.f32 %v1543_v24, %v606_v38 }
 0x3d8   :  { %1647 = vperm.xlu0 %4963, %v1577_v32  }
 0x3dd   :  { %v7055_v47 = vpop.permute.xlu0 %1587  ;;  %v7068_v17 = vpop.permute.xlu1 %1197 }
 0x3de   :  { %9804 = vst [vmem:[#allocation67_spill] sm:$0xff] %v7068_v17 }
 0x3e0   :  { %1652 = vperm.xlu0 %4963, %v1578_v58  }
 0x3e5   :  { %v7061_v4 = vpop.permute.xlu0 %1592  ;;  %v7074_v20 = vpop.permute.xlu1 %1192 }
 0x3e6   :  { %9802 = vst [vmem:[#allocation65_spill] sm:$0xff] %v7061_v4  ;;  %v1268_v32 = vsub.f32 %v6283_v36, %v7074_v20  ;;  %v1269_v45 = vsub.f32 %v6312_v31, %v7074_v20  ;;  %v1280_v36 = vsub.f32 %v6406_v28, %v6979_v55 }
 0x3e7   :  { %9807 = vst [vmem:[#allocation70_spill] sm:$0xff] %v7074_v20  ;;  %v9861_v20 = vld [vmem:[#allocation45_spill] sm:$0xff] }
 0x3e8   :  { %1731 = vperm.xlu0 %4963, %v610_v25   ;;  %v1668_v31 = vmul.f32 %v7061_v4, %v1268_v32 }
 0x3ed   :  { %v7070_v26 = vpop.permute.xlu0 %1597  ;;  %v7082_v46 = vpop.permute.xlu1 %1187 }
 0x3ee   :  { %9805 = vst [vmem:[#allocation68_spill] sm:$0xff] %v7070_v26 }
 0x3f5   :  { %v7076_v53 = vpop.permute.xlu0 %1602  ;;  %v7099_v3 = vpop.permute.xlu1 %1182 }
 0x3f6   :  { %9811 = vst [vmem:[#allocation74_spill] sm:$0xff] %v7099_v3 }
 0x3fd   :  { %v7078_v44 = vpop.permute.xlu0 %1607 }
 0x3fe   :  { %9808 = vst [vmem:[#allocation71_spill] sm:$0xff] %v7078_v44 }
 0x404   :  { %v7092_v2 = vpop.permute.xlu2 %1657 }
 0x405   :  { %v7090_v40 = vpop.permute.xlu0 %1612  ;;  %v1720_v38 = vmul.f32 %v7092_v2, %v1320_v30  ;;  %v1721_v24 = vmul.f32 %v7092_v2, %v1321_v50  ;;  %v1722_v60 = vmul.f32 %v7092_v2, %v1322_v49  ;;  %v1281_v49 = vsub.f32 %v6434_v43, %v6979_v55 }
 0x406   :  { %9810 = vst [vmem:[#allocation73_spill] sm:$0xff] %v7090_v40 }
 0x407   :  { %v1864_v57 = vadd.f32 %v6837_v35, %v1720_v38  ;;  %v1865_v29 = vadd.f32 %v6837_v35, %v1721_v24  ;;  %v1866_v58 = vadd.f32 %v6837_v35, %v1722_v60  ;;  %v1669_v38 = vmul.f32 %v7061_v4, %v1269_v45 }
 0x409   :  { %v1928_v25 = vmul.f32 %v1864_v57, %v6179_v19  ;;  %v1929_v30 = vmul.f32 %v1865_v29, %v6184_v23  ;;  %v7109_v50 = vmul.f32 %v1866_v58, %v6203_v34  ;;  %v1680_v57 = vmul.f32 %v7078_v44, %v1280_v36 }
 0x40a   :  { %v1681_v29 = vmul.f32 %v7078_v44, %v1281_v49  ;;  %v1260_v49 = vsub.f32 %v6233_v33, %v7099_v3  ;;  %v1276_v44 = vsub.f32 %v6456_v41, %v7059_v0 }
 0x40b   :  { %9812 = vst [vmem:[#allocation75_spill] sm:$0xff] %v7109_v50  ;;  %2072 = vmatpush.msrb.mxu1 %v1928_v25  ;;  %2107 = vmatpush.msrb.mxu2 %v1929_v30  ;;  %v7119_v60 = vpack.i.bf16 %v1929_v30, %v1928_v25  ;;  %v7134_v25 = vpop.permute.xlu1 %1582  ;;  %v1824_v30 = vadd.f32 %v7066_v37, %v1680_v57 }
 0x40c   :  { %2142 = vmatpush.msrb.mxu3 %v7109_v50  ;;  %v7124_v28 = vpop.permute.xlu2 %1736  ;;  %9817 = vst [vmem:[#allocation80_spill] sm:$0xff] %v7134_v25  ;;  %v1825_v36 = vadd.f32 %v7066_v37, %v1681_v29  ;;  %v1292_v57 = vsub.f32 %v6263_v6, %v6949_v56  ;;  %v9818_v29 = vld [vmem:[#allocation19_spill] sm:$0xff]  ;;  %v1660_v33 = vmul.f32 %v7134_v25, %v1260_v49 }
 0x40d   :  { %v7117_v24 = vpop.permute.xlu0 %1617  ;;  %9813 = vst [vmem:[#allocation76_spill] sm:$0xff] %v7119_v60  ;;  %v1812_v43 = vadd.f32 %v7124_v28, %v1668_v31  ;;  %v1813_v58 = vadd.f32 %v7124_v28, %v1669_v38  ;;  %v1261_v31 = vsub.f32 %v6240_v14, %v7099_v3  ;;  %v1293_v50 = vsub.f32 %v9818_v29, %v6949_v56 }
 0x40e   :  { %9814 = vst [vmem:[#allocation77_spill] sm:$0xff] %v7124_v28  ;;  %v7165_v6 = vmul.f32 %v1825_v36, %v6184_v23  ;;  %v1277_v37 = vsub.f32 %v6569_v22, %v7059_v0 }
 0x40f   :  { %v7129_v32 = vmul.f32 %v1812_v43, %v6179_v19  ;;  %v7132_v45 = vmul.f32 %v1813_v58, %v6184_v23  ;;  %v1272_v43 = vsub.f32 %v6359_v51, %v7068_v17  ;;  %v1273_v58 = vsub.f32 %v6362_v13, %v7068_v17 }
 0x410   :  { %v1661_v28 = vmul.f32 %v7134_v25, %v1261_v31  ;;  %v7162_v13 = vmul.f32 %v1824_v30, %v6179_v19  ;;  %9821 = vst [vmem:[#allocation82_spill] sm:$0xff] %v7165_v6  ;;  %v1677_v22 = vmul.f32 %v7076_v53, %v1277_v37 }
 0x411   :  { %9815 = vst [vmem:[#allocation78_spill] sm:$0xff] %v7129_v32  ;;  %v4976_v38 = vpack.i.bf16 %v7132_v45, %v7129_v32  ;;  %v1673_v51 = vmul.f32 %v7070_v26, %v1273_v58 }
 0x412   :  { %9816 = vst [vmem:[#allocation79_spill] sm:$0xff] %v7132_v45  ;;  %v1672_v45 = vmul.f32 %v7070_v26, %v1272_v43  ;;  %v4991_v36 = vpack.i.bf16 %v7165_v6, %v7162_v13 }
 0x413   :  { %4977 = vrot.lane.b32.xlu0 %v4976_v38, %s5695_s5  ;;  %9820 = vst [vmem:[#allocation81_spill] sm:$0xff] %v7162_v13  ;;  %v1817_v25 = vadd.f32 %v7080_v7, %v1673_v51 }
 0x414   :  { %v7159_v32 = vpop.permute.xlu2 %1726  ;;  %v1816_v30 = vadd.f32 %v7080_v7, %v1672_v45 }
 0x415   :  { %v7155_v14 = vpop.permute.xlu0 %1622  ;;  %9819 = vst [vmem:[#allocation19_spill] sm:$0xff] %v7159_v32  ;;  %v1804_v49 = vadd.f32 %v7159_v32, %v1660_v33  ;;  %v1805_v31 = vadd.f32 %v7159_v32, %v1661_v28  ;;  %v9824_v33 = vld [vmem:[#allocation8_spill] sm:$0xff]  ;;  %v7195_v51 = vmul.f32 %v1817_v25, %v6184_v23 }
 0x416   :  { %v1692_v38 = vmul.f32 %v7155_v14, %v1292_v57  ;;  %v1693_v29 = vmul.f32 %v7155_v14, %v1293_v50  ;;  %v7192_v45 = vmul.f32 %v1816_v30, %v6179_v19 }
 0x417   :  { %v7172_v43 = vmul.f32 %v1804_v49, %v6179_v19  ;;  %v7175_v58 = vmul.f32 %v1805_v31, %v6184_v23  ;;  %v1284_v49 = vsub.f32 %v9824_v33, %v6939_v61  ;;  %v9825_v31 = vld [vmem:[#allocation10_spill] sm:$0xff] }
 0x418   :  { %v1836_v57 = vadd.f32 %v6897_v1, %v1692_v38  ;;  %v1837_v50 = vadd.f32 %v6897_v1, %v1693_v29  ;;  %v1285_v32 = vsub.f32 %v9825_v31, %v6939_v61  ;;  %9826 = vst [vmem:[#allocation8_spill] sm:$0xff] %v7192_v45  ;;  %v4981_v30 = vpack.i.bf16 %v7195_v51, %v7192_v45 }
 0x419   :  { %9822 = vst [vmem:[#allocation83_spill] sm:$0xff] %v7172_v43  ;;  %v4966_v28 = vpack.i.bf16 %v7175_v58, %v7172_v43  ;;  %v1684_v38 = vmul.f32 %v7090_v40, %v1284_v49 }
 0x41a   :  { %9823 = vst [vmem:[#allocation84_spill] sm:$0xff] %v7175_v58  ;;  %v1685_v29 = vmul.f32 %v7090_v40, %v1285_v32  ;;  %v7200_v58 = vmul.f32 %v1836_v57, %v6179_v19  ;;  %v7203_v33 = vmul.f32 %v1837_v50, %v6184_v23  ;;  %v9830_v32 = vld [vmem:[#allocation22_spill] sm:$0xff]  ;;  %v9831_v57 = vld [vmem:[#allocation23_spill] sm:$0xff] }
 0x41b   :  { %4992 = vrot.lane.b32.xlu0 %v4991_v36, %s5695_s5  ;;  %4967 = vrot.lane.b32.xlu1 %v4966_v28, %s5695_s5  ;;  %9827 = vst [vmem:[#allocation10_spill] sm:$0xff] %v7195_v51  ;;  %v1828_v25 = vadd.f32 %v7057_v11, %v1684_v38  ;;  %v1296_v49 = vsub.f32 %v9830_v32, %v6953_v21 }
 0x41c   :  { %9828 = vst [vmem:[#allocation85_spill] sm:$0xff] %v7200_v58  ;;  %v5006_v36 = vpack.i.bf16 %v7203_v33, %v7200_v58  ;;  %v1829_v28 = vadd.f32 %v7057_v11, %v1685_v29  ;;  %v1297_v43 = vsub.f32 %v9831_v57, %v6953_v21  ;;  %v9851_v58 = vld [vmem:[#allocation20_spill] sm:$0xff]  ;;  %v9859_v11 = vld [vmem:[#allocation35_spill] sm:$0xff] }
 0x41d   :  { %9829 = vst [vmem:[#allocation86_spill] sm:$0xff] %v7203_v33  ;;  %v7205_v31 = vpop.permute.xlu0 %1627  ;;  %v7222_v51 = vmul.f32 %v1828_v25, %v6179_v19  ;;  %v9836_v25 = vld [vmem:[#allocation32_spill] sm:$0xff]  ;;  %v9857_v33 = vld [vmem:[#allocation31_spill] sm:$0xff]  ;;  %v1307_v40 = vsub.f32 %v9859_v11, %v6963_v63 }
 0x41e   :  { %v1696_v50 = vmul.f32 %v7205_v31, %v1296_v49  ;;  %v1697_v3 = vmul.f32 %v7205_v31, %v1297_v43  ;;  %v7225_v38 = vmul.f32 %v1829_v28, %v6184_v23  ;;  %v1304_v28 = vsub.f32 %v9836_v25, %v6963_v63  ;;  %v9837_v49 = vld [vmem:[#allocation33_spill] sm:$0xff]  ;;  %v9838_v25 = vld [vmem:[#allocation52_spill] sm:$0xff] }
 0x41f   :  { %9832 = vst [vmem:[#allocation22_spill] sm:$0xff] %v7222_v51  ;;  %v1305_v45 = vsub.f32 %v9837_v49, %v6963_v63  ;;  %v1323_v13 = vsub.f32 %v9838_v25, %v6988_v27 }
 0x420   :  { %9833 = vst [vmem:[#allocation23_spill] sm:$0xff] %v7225_v38  ;;  %v4996_v32 = vpack.i.bf16 %v7225_v38, %v7222_v51  ;;  %v1840_v57 = vadd.f32 %v6887_v42, %v1696_v50 }
 0x421   :  { %v1723_v38 = vmul.f32 %v7092_v2, %v1323_v13 }
 0x423   :  { %5007 = vrot.lane.b32.xlu0 %v5006_v36, %s5695_s5  ;;  %4982 = vrot.lane.b32.xlu1 %v4981_v30, %s5695_s5  ;;  %v1841_v36 = vadd.f32 %v6887_v42, %v1697_v3  ;;  %v7235_v30 = vmul.f32 %v1840_v57, %v6179_v19 }
 0x425   :  { %9834 = vst [vmem:[#allocation87_spill] sm:$0xff] %v7235_v30  ;;  %v7238_v43 = vmul.f32 %v1841_v36, %v6184_v23 }
 0x427   :  { %9835 = vst [vmem:[#allocation88_spill] sm:$0xff] %v7238_v43  ;;  %v5011_v50 = vpack.i.bf16 %v7238_v43, %v7235_v30 }
 0x42a   :  { %v7227_v29 = vpop.permute.xlu0 %1632 }
 0x42b   :  { %4997 = vrot.lane.b32.xlu1 %v4996_v32, %s5695_s5 }
 0x432   :  { %v7244_v6 = vpop.permute.xlu0 %1637 }
 0x433   :  { %v1704_v3 = vmul.f32 %v7244_v6, %v1304_v28  ;;  %v1705_v32 = vmul.f32 %v7244_v6, %v1305_v45  ;;  %5012 = vrot.lane.b32.xlu1 %v5011_v50, %s5695_s5  ;;  %v9840_v28 = vld [vmem:[#allocation36_spill] sm:$0xff]  ;;  %v9841_v50 = vld [vmem:[#allocation37_spill] sm:$0xff] }
 0x434   :  { %v1308_v45 = vsub.f32 %v9840_v28, %v6965_v62  ;;  %v1309_v51 = vsub.f32 %v9841_v50, %v6965_v62 }
 0x435   :  { %v1848_v57 = vadd.f32 %v6873_v15, %v1704_v3  ;;  %v1849_v36 = vadd.f32 %v6873_v15, %v1705_v32 }
 0x437   :  { %v7256_v49 = vmul.f32 %v1848_v57, %v6179_v19  ;;  %v7259_v4 = vmul.f32 %v1849_v36, %v6184_v23  ;;  %v1867_v36 = vadd.f32 %v6837_v35, %v1723_v38  ;;  %v9853_v38 = vld [vmem:[#allocation26_spill] sm:$0xff]  ;;  %v1315_v35 = vsub.f32 %v9861_v20, %v6970_v39 }
 0x439   :  { %9839 = vst [vmem:[#allocation32_spill] sm:$0xff] %v7256_v49  ;;  %v5021_v3 = vpack.i.bf16 %v7259_v4, %v7256_v49  ;;  %v7283_v50 = vmul.f32 %v1867_v36, %v6208_v5  ;;  %v9864_v49 = vld [vmem:[#allocation47_spill] sm:$0xff]  ;;  %v9865_v36 = vld [vmem:[#allocation49_spill] sm:$0xff] }
 0x43a   :  { %v7268_v32 = vpop.permute.xlu0 %1642  ;;  %v1317_v20 = vsub.f32 %v9864_v49, %v6967_v18  ;;  %v1318_v41 = vsub.f32 %v9865_v36, %v6967_v18 }
 0x43b   :  { %9842 = vst [vmem:[#allocation33_spill] sm:$0xff] %v7268_v32  ;;  %v1708_v27 = vmul.f32 %v7268_v32, %v1308_v45  ;;  %v1709_v57 = vmul.f32 %v7268_v32, %v1309_v51  ;;  %5022 = vrot.lane.b32.xlu0 %v5021_v3, %s5695_s5  ;;  %v9847_v3 = vld [vmem:[#allocation14_spill] sm:$0xff]  ;;  %v1275_v45 = vsub.f32 %v6617_v52, %v7068_v17 }
 0x43c   :  { %9845 = vst [vmem:[#allocation37_spill] sm:$0xff] %v7283_v50  ;;  %v9858_v50 = vld [vmem:[#allocation34_spill] sm:$0xff] }
 0x43d   :  { %v1852_v2 = vadd.f32 %v6862_v10, %v1708_v27  ;;  %v1853_v13 = vadd.f32 %v6862_v10, %v1709_v57  ;;  %v9848_v57 = vld [vmem:[#allocation15_spill] sm:$0xff]  ;;  %v9854_v27 = vld [vmem:[#allocation28_spill] sm:$0xff]  ;;  %v1306_v12 = vsub.f32 %v9858_v50, %v6963_v63  ;;  %v1675_v52 = vmul.f32 %v7070_v26, %v1275_v45  ;;  %v9863_v63 = vld [vmem:[#allocation46_spill] sm:$0xff] }
 0x43e   :  { %v1300_v43 = vsub.f32 %v9854_v27, %v6956_v9  ;;  %v9860_v27 = vld [vmem:[#allocation44_spill] sm:$0xff]  ;;  %v9862_v50 = vld [vmem:[#allocation39_spill] sm:$0xff]  ;;  %v1316_v11 = vsub.f32 %v9863_v63, %v6967_v18  ;;  %v9866_v45 = vld [vmem:[#allocation41_spill] sm:$0xff] }
 0x43f   :  { %v7277_v25 = vmul.f32 %v1852_v2, %v6179_v19  ;;  %v7280_v28 = vmul.f32 %v1853_v13, %v6184_v23  ;;  %v9855_v2 = vld [vmem:[#allocation29_spill] sm:$0xff]  ;;  %v9856_v13 = vld [vmem:[#allocation30_spill] sm:$0xff]  ;;  %v1314_v61 = vsub.f32 %v9860_v27, %v6970_v39  ;;  %v1310_v17 = vsub.f32 %v9862_v50, %v6965_v62  ;;  %v9869_v26 = vld [vmem:[#allocation43_spill] sm:$0xff] }
 0x440   :  { %v1312_v50 = vsub.f32 %v9866_v45, %v6970_v39  ;;  %v9867_v63 = vld [vmem:[#allocation42_spill] sm:$0xff] }
 0x441   :  { %9843 = vst [vmem:[#allocation52_spill] sm:$0xff] %v7277_v25  ;;  %v5026_v51 = vpack.i.bf16 %v7280_v28, %v7277_v25  ;;  %v1313_v36 = vsub.f32 %v9867_v63, %v6970_v39  ;;  %v1710_v37 = vmul.f32 %v7268_v32, %v1310_v17  ;;  %v9868_v62 = vld [vmem:[#allocation50_spill] sm:$0xff]  ;;  %v1821_v17 = vadd.f32 %v7072_v48, %v1677_v22 }
 0x442   :  { %9844 = vst [vmem:[#allocation36_spill] sm:$0xff] %v7280_v28  ;;  %v1676_v28 = vmul.f32 %v7076_v53, %v1276_v44  ;;  %v1265_v44 = vsub.f32 %v6660_v8, %v7082_v46  ;;  %v1319_v45 = vsub.f32 %v9868_v62, %v6967_v18  ;;  %v9872_v62 = vld [vmem:[#allocation51_spill] sm:$0xff] }
 0x443   :  { %5027 = vrot.lane.b32.xlu1 %v5026_v51, %s5695_s5 }
 0x444   :  { %v1820_v8 = vadd.f32 %v7072_v48, %v1676_v28 }
 0x44a   :  { %v1648_v1 = vpop.permute.xlu0 %1647 }
 0x44b   :  { %v1715_v51 = vmul.f32 %v1648_v1, %v1315_v35  ;;  %v1714_v27 = vmul.f32 %v1648_v1, %v1314_v61  ;;  %5042 = vrot.lane.b32.xlu1 %v7119_v60, %s5695_s5  ;;  %v1264_v35 = vsub.f32 %v6275_v59, %v7082_v46  ;;  %v1819_v60 = vadd.f32 %v7080_v7, %v1675_v52  ;;  %v9871_v52 = vld [vmem:[#allocation48_spill] sm:$0xff] }
 0x44c   :  { %v1712_v39 = vmul.f32 %v1648_v1, %v1312_v50  ;;  %v1713_v63 = vmul.f32 %v1648_v1, %v1313_v36  ;;  %v1854_v1 = vadd.f32 %v6862_v10, %v1710_v37  ;;  %v9875_v37 = vld [vmem:[#allocation57_spill] sm:$0xff] }
 0x44d   :  { %v1858_v61 = vadd.f32 %v6853_v16, %v1714_v27  ;;  %v1859_v49 = vadd.f32 %v6853_v16, %v1715_v51  ;;  %v1664_v59 = vmul.f32 %v7055_v47, %v1264_v35  ;;  %v7375_v28 = vmul.f32 %v1819_v60, %v6208_v5 }
 0x44e   :  { %v1856_v35 = vadd.f32 %v6853_v16, %v1712_v39  ;;  %v1857_v48 = vadd.f32 %v6853_v16, %v1713_v63  ;;  %v1706_v16 = vmul.f32 %v7244_v6, %v1306_v12 }
 0x44f   :  { %v7358_v27 = vmul.f32 %v1858_v61, %v6203_v34  ;;  %v7361_v51 = vmul.f32 %v1859_v49, %v6208_v5  ;;  %v1665_v49 = vmul.f32 %v7055_v47, %v1265_v44  ;;  %v7382_v61 = vmul.f32 %v1820_v8, %v6179_v19 }
 0x450   :  { %v7385_v44 = vmul.f32 %v1821_v17, %v6184_v23  ;;  %v7406_v8 = vmul.f32 %v1856_v35, %v6179_v19 }
 0x451   :  { %9870 = vst [vmem:[#allocation14_spill] sm:$0xff] %v7358_v27 }
 0x452   :  { %v1653_v7 = vpop.permute.xlu0 %1652  ;;  %9873 = vst [vmem:[#allocation15_spill] sm:$0xff] %v7382_v61 }
 0x453   :  { %v1719_v50 = vmul.f32 %v1653_v7, %v1319_v45  ;;  %v1716_v36 = vmul.f32 %v1653_v7, %v1316_v11  ;;  %v1717_v32 = vmul.f32 %v1653_v7, %v1317_v20  ;;  %v1718_v18 = vmul.f32 %v1653_v7, %v1318_v41  ;;  %9874 = vst [vmem:[#allocation20_spill] sm:$0xff] %v7385_v44 }
 0x454   :  { %v1707_v7 = vmul.f32 %v7244_v6, %v1307_v40  ;;  %v7393_v20 = vmul.f32 %v1854_v1, %v6203_v34  ;;  %v1700_v41 = vmul.f32 %v7227_v29, %v1300_v43  ;;  %v9876_v40 = vsub.f32 %v9855_v2, %v6956_v9 }
 0x455   :  { %v1860_v60 = vadd.f32 %v9875_v37, %v1716_v36  ;;  %v1861_v10 = vadd.f32 %v9875_v37, %v1717_v32  ;;  %v1862_v22 = vadd.f32 %v9875_v37, %v1718_v18  ;;  %v1863_v11 = vadd.f32 %v9875_v37, %v1719_v50  ;;  %v9879_v50 = vld [vmem:[#allocation59_spill] sm:$0xff] }
 0x456   :  { %v1701_v12 = vmul.f32 %v7227_v29, %v9876_v40  ;;  %v9877_v6 = vsub.f32 %v9856_v13, %v6956_v9  ;;  %v7421_v18 = vmul.f32 %v1857_v48, %v6184_v23  ;;  %v9880_v36 = vsub.f32 %v9847_v3, %v6943_v54 }
 0x457   :  { %v1924_v45 = vmul.f32 %v1860_v60, %v6179_v19  ;;  %v1925_v39 = vmul.f32 %v1861_v10, %v6184_v23  ;;  %v7400_v63 = vmul.f32 %v1862_v22, %v6203_v34  ;;  %v7403_v32 = vmul.f32 %v1863_v11, %v6208_v5 }
 0x458   :  { %v1702_v43 = vmul.f32 %v7227_v29, %v9877_v6  ;;  %v9878_v10 = vsub.f32 %v9853_v38, %v6953_v21  ;;  %v1850_v22 = vadd.f32 %v6873_v15, %v1706_v16  ;;  %v1844_v38 = vadd.f32 %v9879_v50, %v1700_v41 }
 0x459   :  { %2073 = vmatpush.msrb.mxu1 %v1924_v45  ;;  %2108 = vmatpush.msrb.mxu2 %v1925_v39  ;;  %v7423_v1 = vpack.i.bf16 %v1925_v39, %v1924_v45  ;;  %v5046_v2 = vpack.i.bf16 %v7403_v32, %v7393_v20  ;;  %v1688_v35 = vmul.f32 %v7117_v24, %v9880_v36 }
 0x45a   :  { %v1698_v17 = vmul.f32 %v7205_v31, %v9878_v10  ;;  %2143 = vmatpush.msrb.mxu3 %v7400_v63  ;;  %v7428_v13 = vpop.permute.xlu0 %1731  ;;  %v9881_v48 = vsub.f32 %v9848_v57, %v6943_v54  ;;  %v1851_v60 = vadd.f32 %v6873_v15, %v1707_v7  ;;  %v1845_v3 = vadd.f32 %v9879_v50, %v1701_v12  ;;  %v9885_v12 = vld [vmem:[#allocation17_spill] sm:$0xff]  ;;  %v9887_v10 = vld [vmem:[#allocation32_spill] sm:$0xff] }
 0x45b   :  { %v1808_v11 = vadd.f32 %v7428_v13, %v1664_v59  ;;  %v1809_v45 = vadd.f32 %v7428_v13, %v1665_v49  ;;  %2074 = vmatpush.msrb.mxu1 %v7406_v8  ;;  %2109 = vmatpush.msrb.mxu2 %v7421_v18  ;;  %v1846_v57 = vadd.f32 %v9879_v50, %v1702_v43 }
 0x45c   :  { %v1689_v37 = vmul.f32 %v7117_v24, %v9881_v48  ;;  %2144 = vmatpush.msrb.mxu3 %v7358_v27  ;;  %5037 = vrot.lane.b32.xlu0 %v7423_v1, %s5695_s5  ;;  %v9882_v15 = vsub.f32 %v9851_v58, %v6949_v56  ;;  %v1842_v16 = vadd.f32 %v6887_v42, %v1698_v17  ;;  %v9884_v58 = vld [vmem:[#allocation36_spill] sm:$0xff] }
 0x45d   :  { %5047 = vrot.lane.b32.xlu1 %v5046_v2, %s5695_s5  ;;  %2075 = vmatpush.msrb.mxu1 %v7277_v25  ;;  %v7457_v49 = vmul.f32 %v1808_v11, %v6179_v19  ;;  %v7460_v7 = vmul.f32 %v1809_v45, %v6184_v23  ;;  %v9883_v41 = vsub.f32 %v9857_v33, %v6956_v9  ;;  %v9888_v2 = vld [vmem:[#allocation21_spill] sm:$0xff]  ;;  %v9901_v25 = vld [vmem:[#allocation70_spill] sm:$0xff]  ;;  %v9903_v27 = vld [vmem:[#allocation88_spill] sm:$0xff] }
 0x45e   :  { %v1694_v59 = vmul.f32 %v7155_v14, %v9882_v15  ;;  %2110 = vmatpush.msrb.mxu2 %v9884_v58  ;;  %2145 = vmatpush.msrb.mxu3 %v7393_v20  ;;  %v7470_v40 = vmul.f32 %v1850_v22, %v6203_v34  ;;  %v9886_v6 = vsub.f32 %v9885_v12, %v6943_v54  ;;  %v9893_v45 = vld [vmem:[#allocation61_spill] sm:$0xff] }
 0x45f   :  { %v1703_v39 = vmul.f32 %v7227_v29, %v9883_v41  ;;  %2076 = vmatpush.msrb.mxu1 %v9887_v10  ;;  %v4971_v17 = vpack.i.bf16 %v7460_v7, %v7457_v49  ;;  %v7480_v9 = vmul.f32 %v1844_v38, %v6179_v19  ;;  %v7483_v33 = vmul.f32 %v1851_v60, %v6208_v5  ;;  %v9895_v41 = vld [vmem:[#allocation73_spill] sm:$0xff]  ;;  %v9900_v29 = vld [vmem:[#allocation38_spill] sm:$0xff]  ;;  %v9902_v10 = vld [vmem:[#allocation24_spill] sm:$0xff] }
 0x460   :  { %v1690_v43 = vmul.f32 %v7117_v24, %v9886_v6  ;;  %v9889_v22 = vsub.f32 %v9888_v2, %v6949_v56  ;;  %2111 = vmatpush.msrb.mxu2 %v7259_v4  ;;  %2146 = vmatpush.msrb.mxu3 %v7470_v40  ;;  %v7494_v48 = vmul.f32 %v1845_v3, %v6184_v23  ;;  %v9891_v56 = vld [vmem:[#allocation60_spill] sm:$0xff]  ;;  %v9896_v3 = vld [vmem:[#allocation63_spill] sm:$0xff] }
 0x461   :  { %v7497_v38 = vmul.f32 %v1846_v57, %v6203_v34  ;;  %4972 = vrot.lane.b32.xlu2 %v4971_v17, %s5695_s5  ;;  %2077 = vmatpush.msrb.mxu1 %v7480_v9  ;;  %v7502_v60 = vmul.f32 %v1842_v16, %v6203_v34  ;;  %v1838_v11 = vadd.f32 %v9891_v56, %v1694_v59  ;;  %v9898_v16 = vld [vmem:[#allocation71_spill] sm:$0xff] }
 0x462   :  { %v1695_v36 = vmul.f32 %v7155_v14, %v9889_v22  ;;  %v9892_v14 = vld [vmem:[#allocation12_spill] sm:$0xff]  ;;  %2112 = vmatpush.msrb.mxu2 %v7494_v48  ;;  %v1832_v57 = vadd.f32 %v9896_v3, %v1688_v35  ;;  %v1833_v6 = vadd.f32 %v9896_v3, %v1689_v37  ;;  %v9897_v17 = vsub.f32 %v9869_v26, %v6979_v55  ;;  %v9899_v35 = vld [vmem:[#allocation67_spill] sm:$0xff] }
 0x463   :  { %9890 = vst [vmem:[#allocation26_spill] sm:$0xff] %v7502_v60  ;;  %v9894_v15 = vsub.f32 %v9892_v14, %v9893_v45  ;;  %2147 = vmatpush.msrb.mxu3 %v7497_v38  ;;  %v1847_v59 = vadd.f32 %v9879_v50, %v1703_v39  ;;  %2078 = vmatpush.msrb.mxu1 %v7235_v30  ;;  %v9905_v39 = vld [vmem:[#allocation64_spill] sm:$0xff] }
 0x464   :  { %v1682_v2 = vmul.f32 %v9898_v16, %v9897_v17  ;;  %v5051_v22 = vpack.i.bf16 %v7361_v51, %v7470_v40  ;;  %v5061_v14 = vpack.i.bf16 %v7483_v33, %v7502_v60  ;;  %v1274_v37 = vsub.f32 %v9900_v29, %v9899_v35  ;;  %2113 = vmatpush.msrb.mxu2 %v9903_v27  ;;  %v9907_v35 = vld [vmem:[#allocation85_spill] sm:$0xff] }
 0x465   :  { %v1686_v12 = vmul.f32 %v9895_v41, %v9894_v15  ;;  %v1834_v15 = vadd.f32 %v9896_v3, %v1690_v43  ;;  %v1270_v26 = vsub.f32 %v9902_v10, %v9901_v25  ;;  %v1839_v17 = vadd.f32 %v9891_v56, %v1695_v36  ;;  %2148 = vmatpush.msrb.mxu3 %v7502_v60  ;;  %v9908_v36 = vld [vmem:[#allocation86_spill] sm:$0xff] }
 0x466   :  { %5052 = vrot.lane.b32.xlu0 %v5051_v22, %s5695_s5  ;;  %5062 = vrot.lane.b32.xlu1 %v5061_v14, %s5695_s5  ;;  %v7534_v50 = vmul.f32 %v1838_v11, %v6203_v34  ;;  %v9906_v29 = vsub.f32 %v9872_v62, %v7059_v0  ;;  %v7544_v56 = vmul.f32 %v1832_v57, %v6179_v19  ;;  %v9909_v14 = vld [vmem:[#allocation68_spill] sm:$0xff]  ;;  %v9921_v19 = vld [vmem:[#allocation81_spill] sm:$0xff] }
 0x467   :  { %v1830_v43 = vadd.f32 %v9905_v39, %v1686_v12  ;;  %2079 = vmatpush.msrb.mxu1 %v9907_v35  ;;  %2114 = vmatpush.msrb.mxu2 %v9908_v36  ;;  %v7547_v22 = vmul.f32 %v1833_v6, %v6184_v23  ;;  %v1674_v11 = vmul.f32 %v9909_v14, %v1274_v37  ;;  %v9912_v23 = vld [vmem:[#allocation18_spill] sm:$0xff] }
 0x468   :  { %9904 = vst [vmem:[#allocation28_spill] sm:$0xff] %v7534_v50  ;;  %v1678_v10 = vmul.f32 %v7076_v53, %v9906_v29  ;;  %2149 = vmatpush.msrb.mxu3 %v7534_v50  ;;  %v7552_v12 = vmul.f32 %v1834_v15, %v6203_v34  ;;  %v4986_v62 = vpack.i.bf16 %v7385_v44, %v7382_v61  ;;  %v9910_v29 = vld [vmem:[#allocation66_spill] sm:$0xff] }
 0x469   :  { %v1826_v30 = vadd.f32 %v9910_v29, %v1682_v2  ;;  %v7558_v36 = vmul.f32 %v1847_v59, %v6208_v5  ;;  %v9911_v57 = vsub.f32 %v9871_v52, %v6979_v55  ;;  %v9913_v37 = vsub.f32 %v9912_v23, %v6943_v54  ;;  %2080 = vmatpush.msrb.mxu1 %v7544_v56  ;;  %v9914_v2 = vld [vmem:[#allocation54_spill] sm:$0xff]  ;;  %v9916_v23 = vld [vmem:[#allocation69_spill] sm:$0xff]  ;;  %v9918_v52 = vld [vmem:[#allocation23_spill] sm:$0xff] }
 0x46a   :  { %2115 = vmatpush.msrb.mxu2 %v7547_v22  ;;  %v7571_v15 = vmul.f32 %v1839_v17, %v6208_v5  ;;  %v1266_v59 = vsub.f32 %v9914_v2, %v7082_v46  ;;  %2150 = vmatpush.msrb.mxu3 %v7552_v12  ;;  %v7578_v55 = vmul.f32 %v1830_v43, %v6203_v34 }
 0x46b   :  { %v1683_v6 = vmul.f32 %v9898_v16, %v9911_v57  ;;  %v1691_v14 = vmul.f32 %v7117_v24, %v9913_v37  ;;  %4987 = vrot.lane.b32.xlu2 %v4986_v62, %s5695_s5  ;;  %v1822_v54 = vadd.f32 %v9916_v23, %v1678_v10  ;;  %v9917_v24 = vld [vmem:[#allocation22_spill] sm:$0xff]  ;;  %v7585_v16 = vmul.f32 %v1826_v30, %v6203_v34  ;;  %v9919_v57 = vld [vmem:[#allocation72_spill] sm:$0xff]  ;;  %v9920_v62 = vld [vmem:[#allocation65_spill] sm:$0xff] }
 0x46c   :  { %9915 = vst [vmem:[#allocation29_spill] sm:$0xff] %v7578_v55  ;;  %2081 = vmatpush.msrb.mxu1 %v9917_v24  ;;  %2116 = vmatpush.msrb.mxu2 %v9918_v52  ;;  %v5066_v17 = vpack.i.bf16 %v7558_v36, %v7534_v50  ;;  %v1818_v37 = vadd.f32 %v9919_v57, %v1674_v11  ;;  %v9922_v24 = vld [vmem:[#allocation82_spill] sm:$0xff]  ;;  %v9923_v11 = vld [vmem:[#allocation77_spill] sm:$0xff]  ;;  %v9926_v57 = vld [vmem:[#allocation16_spill] sm:$0xff] }
 0x46d   :  { %2151 = vmatpush.msrb.mxu3 %v7578_v55  ;;  %v1670_v2 = vmul.f32 %v9920_v62, %v1270_v26  ;;  %v1827_v43 = vadd.f32 %v9910_v29, %v1683_v6  ;;  %v1835_v10 = vadd.f32 %v9896_v3, %v1691_v14  ;;  %v5076_v60 = vpack.i.bf16 %v7571_v15, %v7578_v55  ;;  %v9924_v3 = vld [vmem:[#allocation53_spill] sm:$0xff]  ;;  %v9925_v14 = vld [vmem:[#allocation74_spill] sm:$0xff] }
 0x46e   :  { %2082 = vmatpush.msrb.mxu1 %v9921_v19  ;;  %2117 = vmatpush.msrb.mxu2 %v9922_v24  ;;  %v7600_v30 = vmul.f32 %v1822_v54, %v6203_v34  ;;  %v1666_v29 = vmul.f32 %v7055_v47, %v1266_v59  ;;  %v1279_v6 = vsub.f32 %v9924_v3, %v7059_v0  ;;  %v9927_v55 = vld [vmem:[#allocation25_spill] sm:$0xff]  ;;  %v9928_v0 = vld [vmem:[#allocation8_spill] sm:$0xff]  ;;  %v9935_v19 = vld [vmem:[#allocation79_spill] sm:$0xff] }
 0x46f   :  { %2152 = vmatpush.msrb.mxu3 %v7585_v16  ;;  %5067 = vrot.lane.b32.xlu0 %v5066_v17, %s5695_s5  ;;  %v1814_v26 = vadd.f32 %v9923_v11, %v1670_v2  ;;  %v1262_v24 = vsub.f32 %v9926_v57, %v9925_v14  ;;  %v1271_v17 = vsub.f32 %v9927_v55, %v9901_v25  ;;  %v9929_v25 = vld [vmem:[#allocation80_spill] sm:$0xff]  ;;  %v9930_v57 = vld [vmem:[#allocation10_spill] sm:$0xff] }
 0x470   :  { %5077 = vrot.lane.b32.xlu1 %v5076_v60, %s5695_s5  ;;  %2083 = vmatpush.msrb.mxu1 %v7382_v61  ;;  %v7615_v54 = vmul.f32 %v1818_v37, %v6203_v34  ;;  %v1810_v59 = vadd.f32 %v7428_v13, %v1666_v29  ;;  %v5001_v2 = vpack.i.bf16 %v7547_v22, %v7544_v56  ;;  %v9933_v61 = vld [vmem:[#allocation62_spill] sm:$0xff] }
 0x471   :  { %2118 = vmatpush.msrb.mxu2 %v7385_v44  ;;  %2153 = vmatpush.msrb.mxu3 %v7600_v30  ;;  %v7622_v60 = vmul.f32 %v1835_v10, %v6208_v5  ;;  %v7625_v3 = vmul.f32 %v1827_v43, %v6208_v5  ;;  %v1662_v55 = vmul.f32 %v9929_v25, %v1262_v24  ;;  %v9932_v10 = vld [vmem:[#allocation19_spill] sm:$0xff]  ;;  %v9934_v43 = vld [vmem:[#allocation40_spill] sm:$0xff] }
 0x472   :  { %2084 = vmatpush.msrb.mxu1 %v9928_v0  ;;  %v7631_v37 = vmul.f32 %v1814_v26, %v6203_v34  ;;  %v1679_v29 = vmul.f32 %v7076_v53, %v1279_v6  ;;  %v9931_v0 = vld [vmem:[#allocation78_spill] sm:$0xff]  ;;  %v1311_v50 = vsub.f32 %v9934_v43, %v9933_v61  ;;  %v7642_v24 = vmul.f32 %v1810_v59, %v6203_v34 }
 0x473   :  { %2119 = vmatpush.msrb.mxu2 %v9930_v57  ;;  %2154 = vmatpush.msrb.mxu3 %v7615_v54  ;;  %v1806_v44 = vadd.f32 %v9932_v10, %v1662_v55  ;;  %v1671_v26 = vmul.f32 %v9920_v62, %v1271_v17  ;;  %v5081_v53 = vpack.i.bf16 %v7622_v60, %v7585_v16  ;;  %v9937_v55 = vld [vmem:[#allocation33_spill] sm:$0xff] }
 0x474   :  { %5002 = vrot.lane.b32.xlu2 %v5001_v2, %s5695_s5  ;;  %2085 = vmatpush.msrb.mxu1 %v9931_v0  ;;  %v5091_v6 = vpack.i.bf16 %v7625_v3, %v7615_v54  ;;  %v9936_v2 = vld [vmem:[#allocation56_spill] sm:$0xff]  ;;  %v1711_v59 = vmul.f32 %v9937_v55, %v1311_v50  ;;  %v1823_v43 = vadd.f32 %v9916_v23, %v1679_v29  ;;  %v9941_v50 = vld [vmem:[#allocation37_spill] sm:$0xff] }
 0x475   :  { %2120 = vmatpush.msrb.mxu2 %v9935_v19  ;;  %2155 = vmatpush.msrb.mxu3 %v7631_v37  ;;  %v1267_v61 = vsub.f32 %v9936_v2, %v7082_v46  ;;  %v1815_v62 = vadd.f32 %v9923_v11, %v1671_v26  ;;  %v7660_v17 = vmul.f32 %v1806_v44, %v6203_v34  ;;  %v7665_v46 = vld [vmem:[%s9938_s3] sm:$0xff]  ;;  %v9940_v19 = vld [vmem:[#allocation84_spill] sm:$0xff] }
 0x476   :  { %2086 = vmatpush.msrb.mxu1 %v7457_v49  ;;  %v9939_v2 = vld [vmem:[#allocation83_spill] sm:$0xff]  ;;  %v5016_v23 = vpack.i.bf16 %v7494_v48, %v7480_v9  ;;  %v9943_v26 = vld [vmem:[#allocation58_spill] sm:$0xff] }
 0x477   :  { %2121 = vmatpush.msrb.mxu2 %v7460_v7  ;;  %2156 = vmatpush.msrb.mxu3 %v7642_v24  ;;  %v9942_v11 = vld [vmem:[#allocation27_spill] sm:$0xff]  ;;  %v1667_v29 = vmul.f32 %v7055_v47, %v1267_v61  ;;  %v7682_v34 = vmul.f32 %v1815_v62, %v6208_v5 }
 0x478   :  { %5082 = vrot.lane.b32.xlu0 %v5081_v53, %s5695_s5  ;;  %5092 = vrot.lane.b32.xlu1 %v5091_v6, %s5695_s5  ;;  %v1299_v44 = vsub.f32 %v9942_v11, %v6953_v21  ;;  %v1855_v53 = vadd.f32 %v9943_v26, %v1711_v59  ;;  %v9944_v6 = vld [vmem:[#allocation55_spill] sm:$0xff]  ;;  %v7687_v21 = vmul.f32 %v1823_v43, %v6208_v5 }
 0x479   :  { %2087 = vmatpush.msrb.mxu1 %v9939_v2  ;;  %2122 = vmatpush.msrb.mxu2 %v9940_v19  ;;  %v1263_v55 = vsub.f32 %v9944_v6, %v9925_v14  ;;  %v1811_v59 = vadd.f32 %v7428_v13, %v1667_v29  ;;  %v5106_v62 = vpack.i.bf16 %v7682_v34, %v7660_v17  ;;  %v7711_v11 = vld [vmem:[%s9938_s3 + $0x8] sm:$0xff] }
 0x47a   :  { %2157 = vmatpush.msrb.mxu3 %v7660_v17  ;;  %2088 = vmatmul.f32.vlgmr.msrb.gmra.mxu1 %v7665_v46  ;;  %v1699_v47 = vmul.f32 %v7205_v31, %v1299_v44  ;;  %v5096_v14 = vpack.i.bf16 %v7687_v21, %v7631_v37  ;;  %v9945_v31 = vld [vmem:[#allocation13_spill] sm:$0xff]  ;;  %v5131_v6 = vpack.i.bf16 %v7403_v32, %v9884_v58  ;;  %v7787_v58 = vld [vmem:[%s9938_s3 + $0x20] sm:$0xff] }
 0x47b   :  { %2177 = vmatpush.msra.mxu1 %v9941_v50  ;;  %2123 = vmatmul.f32.vlgmr.msrb.gmra.mxu2 %v7665_v46  ;;  %v1663_v61 = vmul.f32 %v9929_v25, %v1263_v55  ;;  %v1287_v13 = vsub.f32 %v9945_v31, %v9893_v45  ;;  %v7714_v44 = vmul.f32 %v1811_v59, %v6208_v5  ;;  %v7766_v55 = vld [vmem:[%s9938_s3 + $0x18] sm:$0xff] }
 0x47c   :  { %5017 = vrot.lane.b32.xlu2 %v5016_v23, %s5695_s5  ;;  %2158 = vmatmul.f32.vlgmr.msrb.gmra.mxu3 %v7665_v46  ;;  %v7699_v23 = vmul.f32 %v1855_v53, %v6208_v5  ;;  %v1843_v25 = vadd.f32 %v6887_v42, %v1699_v47  ;;  %v9947_v31 = vpack.i.bf16 %v7361_v51, %v7259_v4 }
 0x47d   :  { %2178 = vmatpush.msra.mxu1 %v7403_v32  ;;  %v1807_v43 = vadd.f32 %v9932_v10, %v1663_v61  ;;  %v5031_v10 = vpack.i.bf16 %v7421_v18, %v7406_v8  ;;  %v1687_v29 = vmul.f32 %v9895_v41, %v1287_v13  ;;  %v7742_v41 = vld [vmem:[%s9938_s3 + $0x10] sm:$0xff]  ;;  %v5141_v32 = vpack.i.bf16 %v7480_v9, %v7400_v63 }
 0x47e   :  { %v7728_v42 = vmul.f32 %v1843_v25, %v6208_v5  ;;  %v5056_v26 = vpack.i.bf16 %v7699_v23, %v7497_v38  ;;  %v5161_v9 = vpack.i.bf16 %v7483_v33, %v9903_v27  ;;  %v9951_v25 = vld [vmem:[#allocation28_spill] sm:$0xff] }
 0x47f   :  { %2179 = vmatpush.msra.mxu1 %v7361_v51  ;;  %v7722_v45 = vmul.f32 %v1807_v43, %v6208_v5  ;;  %v1831_v18 = vadd.f32 %v9905_v39, %v1687_v29  ;;  %v5101_v43 = vpack.i.bf16 %v7375_v28, %v7642_v24  ;;  %v9949_v51 = vld [vmem:[#allocation26_spill] sm:$0xff]  ;;  %v9953_v29 = vld [vmem:[#allocation87_spill] sm:$0xff] }
 0x480   :  { %5097 = vrot.lane.b32.xlu0 %v5096_v14, %s5695_s5  ;;  %5107 = vrot.lane.b32.xlu1 %v5106_v62, %s5695_s5  ;;  %v5071_v61 = vpack.i.bf16 %v7728_v42, %v7552_v12  ;;  %v7806_v62 = vld [vmem:[%s9938_s3 + $0x28] sm:$0xff]  ;;  %v5181_v13 = vpack.i.bf16 %v7728_v42, %v7547_v22  ;;  %v9950_v22 = vld [vmem:[#allocation81_spill] sm:$0xff] }
 0x481   :  { %2180 = vmatpush.msra.mxu1 %v7699_v23  ;;  %v5111_v8 = vpack.i.bf16 %v7722_v45, %v7714_v44  ;;  %v7748_v39 = vmul.f32 %v1831_v18, %v6208_v5 }
 0x482   :  { %2091 = vmatmul.f32.gmra.mxu1 %v7711_v11 }
 0x483   :  { %2181 = vmatpush.msra.mxu1 %v7483_v33  ;;  %2126 = vmatmul.f32.gmra.mxu2 %v7711_v11  ;;  %v5086_v59 = vpack.i.bf16 %v7748_v39, %v7600_v30  ;;  %v5166_v33 = vpack.i.bf16 %v9907_v35, %v7393_v20  ;;  %v5191_v20 = vpack.i.bf16 %v7571_v15, %v9918_v52  ;;  %v9948_v35 = vld [vmem:[#allocation14_spill] sm:$0xff] }
 0x484   :  { %5032 = vrot.lane.b32.xlu2 %v5031_v10, %s5695_s5  ;;  %2161 = vmatmul.f32.gmra.mxu3 %v7711_v11 }
 0x485   :  { %2182 = vmatpush.msra.mxu1 %v7558_v36 }
 0x487   :  { %2183 = vmatpush.msra.mxu1 %v7728_v42  ;;  %v9954_v42 = vpack.i.bf16 %v9953_v29, %v9948_v35 }
 0x488   :  { %5112 = vrot.lane.b32.xlu0 %v5111_v8, %s5695_s5  ;;  %5117 = vrot.lane.b32.xlu1 %v7423_v1, %s5696_s1  ;;  %v9946_v1 = vld [vmem:[#allocation75_spill] sm:$0xff]  ;;  %v9955_v8 = vld [vmem:[#allocation20_spill] sm:$0xff] }
 0x489   :  { %2184 = vmatpush.msra.mxu1 %v7571_v15  ;;  %v5121_v53 = vpack.i.bf16 %v7400_v63, %v9946_v1  ;;  %v5146_v63 = vpack.i.bf16 %v7699_v23, %v7494_v48  ;;  %v5176_v48 = vpack.i.bf16 %v7544_v56, %v7470_v40  ;;  %v7822_v23 = vpop.permute.xlu0 %4977  ;;  %v5151_v56 = vpack.i.bf16 %v9941_v50, %v9948_v35  ;;  %v9952_v15 = vld [vmem:[#allocation15_spill] sm:$0xff] }
 0x48a   :  { %2094 = vmatmul.f32.gmra.mxu1 %v7742_v41  ;;  %v5206_v52 = vpack.i.bf16 %v9952_v15, %v9951_v25  ;;  %v5211_v18 = vpack.i.bf16 %v7748_v39, %v9955_v8  ;;  %v9961_v35 = vpack.i.bf16 %v7375_v28, %v7460_v7 }
 0x48b   :  { %2185 = vmatpush.msra.mxu1 %v7622_v60  ;;  %2129 = vmatmul.f32.gmra.mxu2 %v7742_v41 }
 0x48c   :  { %5057 = vrot.lane.b32.xlu2 %v5056_v26, %s5695_s5  ;;  %2164 = vmatmul.f32.gmra.mxu3 %v7742_v41  ;;  %v5231_v26 = vpack.i.bf16 %v7625_v3, %v9930_v57 }
 0x48d   :  { %2186 = vmatpush.msra.mxu1 %v7748_v39  ;;  %v7768_v47 = vpop.permute.xlu1 %4967  ;;  %v9957_v39 = vld [vmem:[#allocation32_spill] sm:$0xff] }
 0x48f   :  { %2187 = vmatpush.msra.mxu1 %v7625_v3 }
 0x490   :  { %5122 = vrot.lane.b32.xlu0 %v5121_v53, %s5695_s5  ;;  %5132 = vrot.lane.b32.xlu1 %v5131_v6, %s5696_s1 }
 0x491   :  { %2188 = vmatpush.msra.mxu1 %v7687_v21  ;;  %v7841_v4 = vpop.permute.xlu0 %4992 }
 0x492   :  { %2097 = vmatmul.f32.gmra.mxu1 %v7766_v55 }
 0x493   :  { %2189 = vmatpush.msra.mxu1 %v7375_v28  ;;  %2132 = vmatmul.f32.gmra.mxu2 %v7766_v55 }
 0x494   :  { %5072 = vrot.lane.b32.xlu2 %v5071_v61, %s5695_s5  ;;  %2167 = vmatmul.f32.gmra.mxu3 %v7766_v55 }
 0x495   :  { %2190 = vmatpush.msra.mxu1 %v7682_v34  ;;  %v7792_v14 = vpop.permute.xlu1 %4982 }
 0x497   :  { %2191 = vmatpush.msra.mxu1 %v7714_v44 }
 0x498   :  { %5127 = vrot.lane.b32.xlu0 %v5031_v10, %s5696_s1  ;;  %5142 = vrot.lane.b32.xlu1 %v5141_v32, %s5696_s1  ;;  %v9956_v32 = vld [vmem:[#allocation86_spill] sm:$0xff] }
 0x499   :  { %2192 = vmatpush.msra.mxu1 %v7722_v45  ;;  %v7862_v53 = vpop.permute.xlu0 %5007 }
 0x49a   :  { %2100 = vmatmul.f32.gmra.mxu1 %v7787_v58 }
 0x49b   :  { %2135 = vmatmul.f32.gmra.mxu2 %v7787_v58 }
 0x49c   :  { %5087 = vrot.lane.b32.xlu2 %v5086_v59, %s5695_s5  ;;  %2170 = vmatmul.f32.gmra.mxu3 %v7787_v58  ;;  %v5171_v59 = vpack.i.bf16 %v7558_v36, %v9956_v32  ;;  %v9958_v36 = vld [vmem:[#allocation22_spill] sm:$0xff] }
 0x49d   :  { %v7814_v27 = vpop.permute.xlu1 %4997  ;;  %v1996_v32 = vld [vmem:[%s9963_s25] sm:$0xff] }
 0x4a0   :  { %5147 = vrot.lane.b32.xlu0 %v5146_v63, %s5696_s1  ;;  %5162 = vrot.lane.b32.xlu1 %v5161_v9, %s5696_s1  ;;  %v5236_v63 = vpack.i.bf16 %v9957_v39, %v9946_v1  ;;  %v5251_v9 = vpack.i.bf16 %v7457_v49, %v7585_v16  ;;  %v5266_v1 = vpack.i.bf16 %v7682_v34, %v9940_v19 }
 0x4a1   :  { %v5281_v34 = vpack.i.bf16 %v7660_v17, %v7642_v24  ;;  %v1999_v24 = vld [vmem:[%s9963_s25 + $0x18] sm:$0xff]  ;;  %v5271_v17 = vpack.i.bf16 %v7714_v44, %v7615_v54 }
 0x4a2   :  { %2103 = vmatmul.f32.gmra.mxu1 %v7806_v62 }
 0x4a3   :  { %2138 = vmatmul.f32.gmra.mxu2 %v7806_v62 }
 0x4a4   :  { %5102 = vrot.lane.b32.xlu2 %v5101_v43, %s5695_s5  ;;  %2173 = vmatmul.f32.gmra.mxu3 %v7806_v62 }
 0x4a5   :  { %v7833_v40 = vpop.permute.xlu1 %5012 }
 0x4a6   :  { %v5014_v39 = vunpack.i.l.bf16 %v7833_v40 }
 0x4a8   :  { %5167 = vrot.lane.b32.xlu0 %v5166_v33, %s5696_s1  ;;  %5177 = vrot.lane.b32.xlu1 %v5176_v48, %s5696_s1  ;;  %v5186_v33 = vpack.i.bf16 %v9958_v36, %v7497_v38 }
 0x4aa   :  { %2193 = vmatmul.f32.vlgmr.msra.gmra.mxu1 %v7665_v46  ;;  %v5196_v46 = vpack.i.bf16 %v9950_v22, %v9949_v51  ;;  %v9962_v51 = vld [vmem:[#allocation76_spill] sm:$0xff] }
 0x4ac   :  { %5137 = vrot.lane.b32.xlu2 %v9947_v31, %s5696_s1 }
 0x4ad   :  { %v7883_v43 = vpop.permute.xlu0 %5022 }
 0x4ae   :  { %v5025_v25 = vunpack.i.h.bf16 %v7883_v43  ;;  %v5024_v15 = vunpack.i.l.bf16 %v7883_v43 }
 0x4b0   :  { %5182 = vrot.lane.b32.xlu0 %v5181_v13, %s5696_s1  ;;  %5192 = vrot.lane.b32.xlu1 %v5191_v20, %s5696_s1 }
 0x4b2   :  { %2196 = vmatmul.f32.gmra.mxu1 %v7711_v11 }
 0x4b4   :  { %5152 = vrot.lane.b32.xlu2 %v5151_v56, %s5695_s5 }
 0x4b5   :  { %v7849_v10 = vpop.permute.xlu1 %5027 }
 0x4b6   :  { %v5030_v28 = vunpack.i.h.bf16 %v7849_v10  ;;  %v5029_v7 = vunpack.i.l.bf16 %v7849_v10 }
 0x4b8   :  { %5197 = vrot.lane.b32.xlu0 %v5196_v46, %s5696_s1  ;;  %5207 = vrot.lane.b32.xlu1 %v5206_v52, %s5696_s1  ;;  %v2501_v29 = vsel %vm2464_vm4, %v5029_v7, %v5030_v28 }
 0x4ba   :  { %2199 = vmatmul.f32.gmra.mxu1 %v7742_v41 }
 0x4bb   :  { %v7856_v11 = vpop.permute.xlu2 %4972 }
 0x4bc   :  { %5157 = vrot.lane.b32.xlu2 %v9954_v42, %s5696_s1 }
 0x4bd   :  { %v7866_v6 = vpop.permute.xlu1 %5042 }
 0x4be   :  { %v5045_v61 = vunpack.i.h.bf16 %v7866_v6  ;;  %v5044_v41 = vunpack.i.l.bf16 %v7866_v6  ;;  %v8090_v6 = vld [vmem:[%s9938_s3 + $0x40] sm:$0xff] }
 0x4c0   :  { %5212 = vrot.lane.b32.xlu0 %v5211_v18, %s5696_s1  ;;  %5232 = vrot.lane.b32.xlu1 %v5231_v26, %s5696_s1  ;;  %v2510_v3 = vsel %vm2464_vm4, %v5044_v41, %v5045_v61  ;;  %v9964_v18 = vld [vmem:[#allocation52_spill] sm:$0xff] }
 0x4c1   :  { %2577 = vmatpush.msra.mxu2 %v2510_v3  ;;  %v9965_v26 = vpack.i.bf16 %v9964_v18, %v9941_v50  ;;  %v2001_v41 = vld [vmem:[%s9963_s25 + $0x28] sm:$0xff]  ;;  %v5015_v3 = vunpack.i.h.bf16 %v7833_v40  ;;  %v5010_v50 = vunpack.i.h.bf16 %v7862_v53  ;;  %v8155_v40 = vld [vmem:[%s9938_s3 + $0x50] sm:$0xff] }
 0x4c2   :  { %2202 = vmatmul.f32.gmra.mxu1 %v7766_v55  ;;  %v9959_v55 = vld [vmem:[#allocation29_spill] sm:$0xff] }
 0x4c3   :  { %v5241_v48 = vpack.i.bf16 %v9931_v0, %v9959_v55 }
 0x4c4   :  { %5172 = vrot.lane.b32.xlu2 %v5171_v59, %s5696_s1  ;;  %v2498_v59 = vsel %vm2464_vm4, %v5024_v15, %v5025_v25 }
 0x4c5   :  { %v7876_v57 = vpop.permute.xlu2 %4987 }
 0x4c6   :  { %v4989_v15 = vunpack.i.l.bf16 %v7876_v57 }
 0x4c8   :  { %5237 = vrot.lane.b32.xlu0 %v5236_v63, %s5696_s1  ;;  %5252 = vrot.lane.b32.xlu1 %v5251_v9, %s5696_s1  ;;  %v5009_v9 = vunpack.i.l.bf16 %v7862_v53 }
 0x4ca   :  { %2205 = vmatmul.f32.gmra.mxu1 %v7787_v58  ;;  %v9960_v58 = vld [vmem:[#allocation82_spill] sm:$0xff] }
 0x4cb   :  { %v5201_v0 = vpack.i.bf16 %v7622_v60, %v9960_v58  ;;  %v9966_v58 = vld [vmem:[#allocation8_spill] sm:$0xff] }
 0x4cc   :  { %5187 = vrot.lane.b32.xlu2 %v5186_v33, %s5696_s1 }
 0x4ce   :  { %v7895_v49 = vpop.permute.xlu2 %5002  ;;  %v7899_v16 = vpop.permute.xlu0 %5037 }
 0x4cf   :  { %v5040_v38 = vunpack.i.h.bf16 %v7899_v16  ;;  %v5039_v31 = vunpack.i.l.bf16 %v7899_v16  ;;  %v7903_v13 = vpop.permute.xlu1 %5047  ;;  %v5005_v33 = vunpack.i.h.bf16 %v7895_v49  ;;  %v5004_v55 = vunpack.i.l.bf16 %v7895_v49 }
 0x4d0   :  { %5242 = vrot.lane.b32.xlu0 %v5241_v48, %s5696_s1  ;;  %5267 = vrot.lane.b32.xlu1 %v5266_v1, %s5696_s1 }
 0x4d1   :  { %v2507_v19 = vsel %vm2464_vm4, %v5039_v31, %v5040_v38  ;;  %v2492_v31 = vsel %vm2464_vm4, %v5014_v39, %v5015_v3  ;;  %v2486_v7 = vsel %vm2464_vm4, %v5004_v55, %v5005_v33  ;;  %v9729_v39 = vunpack.i.h.bf16 %v7822_v23 }
 0x4d2   :  { %2578 = vmatpush.msra.mxu2 %v2507_v19  ;;  %2208 = vmatmul.f32.gmra.mxu1 %v7806_v62  ;;  %v5000_v19 = vunpack.i.h.bf16 %v7814_v27  ;;  %v9728_v55 = vunpack.i.h.bf16 %v7856_v11 }
 0x4d4   :  { %5202 = vrot.lane.b32.xlu2 %v5201_v0, %s5696_s1  ;;  %v5226_v0 = vpack.i.bf16 %v9966_v58, %v7552_v12  ;;  %v4994_v12 = vunpack.i.l.bf16 %v7841_v4 }
 0x4d6   :  { %v7914_v20 = vpop.permute.xlu2 %5017 }
 0x4d7   :  { %v5020_v42 = vunpack.i.h.bf16 %v7914_v20  ;;  %v5019_v8 = vunpack.i.l.bf16 %v7914_v20 }
 0x4d8   :  { %5257 = vrot.lane.b32.xlu0 %v9961_v35, %s5696_s1  ;;  %5282 = vrot.lane.b32.xlu1 %v5281_v34, %s5696_s1  ;;  %v7921_v60 = vpop.permute.xlu0 %5052  ;;  %v7923_v56 = vpop.permute.xlu1 %5062  ;;  %v4999_v34 = vunpack.i.l.bf16 %v7814_v27  ;;  %v2489_v35 = vsel %vm2464_vm4, %v5009_v9, %v5010_v50  ;;  %v4979_v9 = vunpack.i.l.bf16 %v7822_v23 }
 0x4d9   :  { %v2495_v36 = vsel %vm2464_vm4, %v5019_v8, %v5020_v42  ;;  %v4984_v8 = vunpack.i.l.bf16 %v7792_v14 }
 0x4dc   :  { %5217 = vrot.lane.b32.xlu2 %v9962_v51, %s5696_s1  ;;  %v1998_v51 = vld [vmem:[%s9963_s25 + $0x10] sm:$0xff] }
 0x4de   :  { %v7932_v62 = vpop.permute.xlu2 %5032 }
 0x4df   :  { %v5035_v22 = vunpack.i.h.bf16 %v7932_v62  ;;  %v5034_v46 = vunpack.i.l.bf16 %v7932_v62 }
 0x4e0   :  { %5272 = vrot.lane.b32.xlu0 %v5271_v17, %s5696_s1  ;;  %2229 = vperm.xlu1 %4964, %v1999_v24   ;;  %v4995_v24 = vunpack.i.h.bf16 %v7841_v4  ;;  %v8193_v4 = vld [vmem:[%s9938_s3 + $0x58] sm:$0xff] }
 0x4e1   :  { %v7941_v52 = vpop.permute.xlu0 %5067  ;;  %v2504_v54 = vsel %vm2464_vm4, %v5034_v46, %v5035_v22  ;;  %v4990_v46 = vunpack.i.h.bf16 %v7876_v57 }
 0x4e2   :  { %v7946_v44 = vpop.permute.xlu1 %5077  ;;  %2579 = vmatpush.msra.mxu2 %v2504_v54  ;;  %v2483_v54 = vsel %vm2464_vm4, %v4999_v34, %v5000_v19  ;;  %v4969_v34 = vunpack.i.l.bf16 %v7768_v47 }
 0x4e4   :  { %5222 = vrot.lane.b32.xlu2 %v9965_v26, %s5696_s1  ;;  %2580 = vmatpush.msra.mxu2 %v2501_v29  ;;  %v4985_v29 = vunpack.i.h.bf16 %v7792_v14 }
 0x4e6   :  { %v7968_v63 = vpop.permute.xlu2 %5057  ;;  %2581 = vmatpush.msra.mxu2 %v2498_v59 }
 0x4e8   :  { %2239 = vperm.xlu0 %4963, %v2001_v41   ;;  %2214 = vperm.xlu1 %4964, %v1996_v32   ;;  %v2480_v41 = vsel %vm2464_vm4, %v4994_v12, %v4995_v24  ;;  %v9967_v32 = vld [vmem:[#allocation79_spill] sm:$0xff] }
 0x4e9   :  { %2582 = vmatpush.msra.mxu2 %v2495_v36  ;;  %v5246_v59 = vpack.i.bf16 %v7687_v21, %v9967_v32  ;;  %v2477_v36 = vsel %vm2464_vm4, %v4989_v15, %v4990_v46  ;;  %v2474_v21 = vsel %vm2464_vm4, %v4984_v8, %v4985_v29  ;;  %v8050_v8 = vld [vmem:[%s9938_s3 + $0x30] sm:$0xff] }
 0x4ea   :  { %v7977_v48 = vpop.permute.xlu0 %5082  ;;  %v7979_v1 = vpop.permute.xlu1 %5092 }
 0x4eb   :  { %2583 = vmatpush.msra.mxu2 %v2492_v31  ;;  %v4974_v31 = vunpack.i.l.bf16 %v7856_v11 }
 0x4ec   :  { %5227 = vrot.lane.b32.xlu2 %v5226_v0, %s5696_s1  ;;  %v9727_v0 = vunpack.i.h.bf16 %v7768_v47 }
 0x4ed   :  { %2584 = vmatpush.msra.mxu2 %v2489_v35  ;;  %v2471_v35 = vsel %vm2464_vm4, %v4979_v9, %v9729_v39  ;;  %v2468_v15 = vsel %vm2464_vm4, %v4974_v31, %v9728_v55  ;;  %v8066_v31 = vld [vmem:[%s9938_s3 + $0x38] sm:$0xff] }
 0x4ee   :  { %v7997_v17 = vpop.permute.xlu2 %5072 }
 0x4ef   :  { %2585 = vmatpush.msra.mxu2 %v2486_v7 }
 0x4f0   :  { %2224 = vperm.xlu0 %4963, %v1998_v51  }
 0x4f1   :  { %2586 = vmatpush.msra.mxu2 %v2483_v54  ;;  %v5261_v54 = vpack.i.bf16 %v9939_v2, %v7600_v30  ;;  %v5276_v30 = vpack.i.bf16 %v7722_v45, %v7631_v37  ;;  %v2000_v45 = vld [vmem:[%s9963_s25 + $0x20] sm:$0xff] }
 0x4f2   :  { %v8009_v18 = vpop.permute.xlu0 %5097  ;;  %v8011_v26 = vpop.permute.xlu1 %5107 }
 0x4f3   :  { %2587 = vmatpush.msra.mxu2 %v2480_v41  ;;  %v2465_v41 = vsel %vm2464_vm4, %v4969_v34, %v9727_v0  ;;  %v1997_v0 = vld [vmem:[%s9963_s25 + $0x8] sm:$0xff]  ;;  %v5110_v14 = vunpack.i.h.bf16 %v8011_v26  ;;  %s5697_s25 = smov 3  }
 0x4f4   :  { %5247 = vrot.lane.b32.xlu2 %v5246_v59, %s5696_s1 }
 0x4f5   :  { %2588 = vmatpush.msra.mxu2 %v2477_v36 }
 0x4f6   :  { %v8026_v58 = vpop.permute.xlu2 %5087 }
 0x4f7   :  { %2589 = vmatpush.msra.mxu2 %v2474_v21  ;;  %v8036_v51 = vpop.f32.mrf.mxu1  ;;  %v5090_v49 = vunpack.i.h.bf16 %v8026_v58 }
 0x4f9   :  { %2590 = vmatpush.msra.mxu2 %v2471_v35 }
 0x4fa   :  { %v8038_v12 = vpop.permute.xlu0 %5112  ;;  %v8040_v7 = vpop.permute.xlu1 %5117 }
 0x4fb   :  { %2591 = vmatpush.msra.mxu2 %v2468_v15 }
 0x4fc   :  { %5262 = vrot.lane.b32.xlu2 %v5261_v54, %s5696_s1 }
 0x4fd   :  { %2592 = vmatpush.msra.mxu2 %v2465_v41 }
 0x4fe   :  { %2593 = vmatmul.f32.vlgmr.msra.gmra.mxu2 %v8050_v8  ;;  %v8057_v32 = vpop.permute.xlu2 %5102 }
 0x4ff   :  { %v8068_v21 = vpop.f32.mrf.mxu1 }
 0x502   :  { %v5123_v59 = vpop.permute.xlu0 %5122  ;;  %v8059_v9 = vpop.permute.xlu1 %5132 }
 0x503   :  { %v5125_v2 = vunpack.i.h.bf16 %v5123_v59  ;;  %v5124_v36 = vunpack.i.l.bf16 %v5123_v59 }
 0x504   :  { %5277 = vrot.lane.b32.xlu2 %v5276_v30, %s5696_s1  ;;  %v5050_v30 = vunpack.i.h.bf16 %v7903_v13 }
 0x505   :  { %v2511_v34 = vsel %vm2464_vm4, %v5045_v61, %v5124_v36  ;;  %v2508_v37 = vsel %vm2464_vm4, %v5040_v38, %v5125_v2  ;;  %v5049_v38 = vunpack.i.l.bf16 %v7903_v13  ;;  %v5055_v13 = vunpack.i.h.bf16 %v7921_v60 }
 0x506   :  { %2612 = vmatpush.msra.mxu3 %v2511_v34  ;;  %2596 = vmatmul.f32.gmra.mxu2 %v8066_v31  ;;  %v8075_v35 = vpop.permute.xlu2 %5137  ;;  %v5054_v34 = vunpack.i.l.bf16 %v7921_v60  ;;  %v5064_v60 = vunpack.i.l.bf16 %v7923_v56 }
 0x507   :  { %v8092_v61 = vpop.f32.mrf.mxu1  ;;  %v2502_v62 = vsel %vm2464_vm4, %v5030_v28, %v5049_v38  ;;  %v5065_v28 = vunpack.i.h.bf16 %v7923_v56 }
 0x508   :  { %2613 = vmatpush.msra.mxu3 %v2508_v37  ;;  %v2499_v10 = vsel %vm2464_vm4, %v5025_v25, %v5054_v34  ;;  %v5070_v25 = vunpack.i.h.bf16 %v7941_v52 }
 0x50a   :  { %v8083_v15 = vpop.permute.xlu0 %5127  ;;  %v8085_v54 = vpop.permute.xlu1 %5142 }
 0x50c   :  { %2234 = vperm.xlu2 %4965, %v2000_v45  }
 0x50e   :  { %2599 = vmatmul.f32.gmra.mxu2 %v8090_v6  ;;  %v5153_v16 = vpop.permute.xlu2 %5152 }
 0x50f   :  { %v5155_v41 = vunpack.i.h.bf16 %v5153_v16  ;;  %v5154_v59 = vunpack.i.l.bf16 %v5153_v16  ;;  %v5059_v16 = vunpack.i.l.bf16 %v7968_v63 }
 0x511   :  { %2682 = vmatpush.msrb.mxu2 %v5155_v41  ;;  %v2505_v37 = vsel %vm2464_vm4, %v5035_v22, %v5154_v59  ;;  %v2512_v45 = vsel %vm2464_vm4, %v5124_v36, %v5155_v41  ;;  %v8117_v22 = vld [vmem:[%s9938_s3 + $0x48] sm:$0xff]  ;;  %v5060_v36 = vunpack.i.h.bf16 %v7968_v63  ;;  %v2509_v41 = vsel %vm2464_vm4, %v5125_v2, %v5050_v30  ;;  %v8131_v2 = vpop.f32.mrf.mxu1 }
 0x512   :  { %v8105_v55 = vpop.permute.xlu0 %5147  ;;  %v8107_v39 = vpop.permute.xlu1 %5162  ;;  %2614 = vmatpush.msra.mxu3 %v2505_v37  ;;  %2647 = vmatpush.msrb.mxu1 %v2512_v45  ;;  %v2506_v63 = vsel %vm2464_vm4, %v5154_v59, %v5055_v13  ;;  %v2496_v43 = vsel %vm2464_vm4, %v5020_v42, %v5059_v16  ;;  %v2493_v59 = vsel %vm2464_vm4, %v5015_v3, %v5064_v60  ;;  %v5075_v45 = vunpack.i.h.bf16 %v7997_v17 }
 0x513   :  { %2683 = vmatpush.msrb.mxu2 %v5050_v30  ;;  %v2503_v56 = vsel %vm2464_vm4, %v5049_v38, %v5060_v36  ;;  %v5074_v30 = vunpack.i.l.bf16 %v7997_v17  ;;  %v2500_v42 = vsel %vm2464_vm4, %v5054_v34, %v5065_v28  ;;  %v5079_v38 = vunpack.i.l.bf16 %v7946_v44 }
 0x514   :  { %2219 = vperm.xlu2 %4965, %v1997_v0   ;;  %2615 = vmatpush.msra.mxu3 %v2502_v62  ;;  %v5069_v0 = vunpack.i.l.bf16 %v7941_v52  ;;  %v5080_v3 = vunpack.i.h.bf16 %v7946_v44  ;;  %v2497_v17 = vsel %vm2464_vm4, %v5059_v16, %v5070_v25  ;;  %v5084_v34 = vunpack.i.l.bf16 %v7977_v48 }
 0x515   :  { %2648 = vmatpush.msrb.mxu1 %v2509_v41  ;;  %2684 = vmatpush.msrb.mxu2 %v5055_v13  ;;  %v2487_v53 = vsel %vm2464_vm4, %v5005_v33, %v5074_v30  ;;  %v2494_v62 = vsel %vm2464_vm4, %v5064_v60, %v5075_v45  ;;  %v5085_v44 = vunpack.i.h.bf16 %v7977_v48  ;;  %v2484_v16 = vsel %vm2464_vm4, %v5000_v19, %v5079_v38 }
 0x516   :  { %2602 = vmatmul.f32.gmra.mxu2 %v8117_v22  ;;  %v8127_v37 = vpop.permute.xlu2 %5157  ;;  %2616 = vmatpush.msra.mxu3 %v2499_v10  ;;  %v2490_v52 = vsel %vm2464_vm4, %v5010_v50, %v5069_v0  ;;  %v2491_v33 = vsel %vm2464_vm4, %v5069_v0, %v5080_v3  ;;  %v5094_v41 = vunpack.i.l.bf16 %v7979_v1  ;;  %v2481_v48 = vsel %vm2464_vm4, %v4995_v24, %v5084_v34 }
 0x517   :  { %2649 = vmatpush.msrb.mxu1 %v2506_v63  ;;  %2685 = vmatpush.msrb.mxu2 %v5060_v36  ;;  %v5089_v36 = vunpack.i.l.bf16 %v8026_v58  ;;  %v5095_v60 = vunpack.i.h.bf16 %v7979_v1  ;;  %v2488_v58 = vsel %vm2464_vm4, %v5074_v30, %v5085_v44  ;;  %v2485_v1 = vsel %vm2464_vm4, %v5079_v38, %v5090_v49 }
 0x518   :  { %2617 = vmatpush.msra.mxu3 %v2496_v43  ;;  %v5100_v24 = vunpack.i.h.bf16 %v8009_v18  ;;  %v5104_v0 = vunpack.i.l.bf16 %v8057_v32  ;;  %v2475_v57 = vsel %vm2464_vm4, %v4985_v29, %v5094_v41 }
 0x519   :  { %2650 = vmatpush.msrb.mxu1 %v2503_v56  ;;  %2686 = vmatpush.msrb.mxu2 %v5065_v28  ;;  %v8175_v10 = vpop.f32.mrf.mxu1  ;;  %v5099_v28 = vunpack.i.l.bf16 %v8009_v18  ;;  %v2478_v63 = vsel %vm2464_vm4, %v4990_v46, %v5089_v36  ;;  %v5105_v46 = vunpack.i.h.bf16 %v8057_v32  ;;  %v2482_v56 = vsel %vm2464_vm4, %v5084_v34, %v5095_v60 }
 0x51a   :  { %v8143_v13 = vpop.permute.xlu0 %5167  ;;  %v8145_v20 = vpop.permute.xlu1 %5177  ;;  %2618 = vmatpush.msra.mxu3 %v2493_v59  ;;  %v9968_v18 = vunpack.i.h.bf16 %v7822_v23  ;;  %v2479_v29 = vsel %vm2464_vm4, %v5089_v36, %v5100_v24  ;;  %v9969_v32 = vunpack.i.h.bf16 %v7856_v11  ;;  %v5114_v11 = vunpack.i.l.bf16 %v8038_v12 }
 0x51b   :  { %2651 = vmatpush.msrb.mxu1 %v2500_v42  ;;  %2687 = vmatpush.msrb.mxu2 %v5070_v25  ;;  %v5109_v25 = vunpack.i.l.bf16 %v8011_v26  ;;  %v2476_v23 = vsel %vm2464_vm4, %v5094_v41, %v5105_v46  ;;  %v9970_v26 = vunpack.i.h.bf16 %v7768_v47 }
 0x51c   :  { %2619 = vmatpush.msra.mxu3 %v2490_v52  ;;  %v2472_v30 = vsel %vm2464_vm4, %v9968_v18, %v5099_v28  ;;  %v2469_v59 = vsel %vm2464_vm4, %v9969_v32, %v5104_v0 }
 0x51d   :  { %2652 = vmatpush.msrb.mxu1 %v2497_v17  ;;  %2688 = vmatpush.msrb.mxu2 %v5075_v45  ;;  %v2466_v52 = vsel %vm2464_vm4, %v9970_v26, %v5109_v25  ;;  %v2473_v17 = vsel %vm2464_vm4, %v5099_v28, %v5110_v14  ;;  %v5139_v26 = vunpack.i.l.bf16 %v8075_v35 }
 0x51e   :  { %2605 = vmatmul.f32.gmra.mxu2 %v8155_v40  ;;  %v8164_v50 = vpop.permute.xlu2 %5172  ;;  %2620 = vmatpush.msra.mxu3 %v2487_v53  ;;  %v2470_v53 = vsel %vm2464_vm4, %v5104_v0, %v5114_v11 }
 0x51f   :  { %2653 = vmatpush.msrb.mxu1 %v2494_v62  ;;  %2689 = vmatpush.msrb.mxu2 %v5080_v3  ;;  %v5115_v3 = vunpack.i.h.bf16 %v8038_v12 }
 0x520   :  { %2621 = vmatpush.msra.mxu3 %v2484_v16  ;;  %v5120_v16 = vunpack.i.h.bf16 %v8040_v7 }
 0x521   :  { %2654 = vmatpush.msrb.mxu1 %v2491_v33  ;;  %2690 = vmatpush.msrb.mxu2 %v5085_v44  ;;  %v8220_v38 = vpop.f32.mrf.mxu1  ;;  %v2467_v47 = vsel %vm2464_vm4, %v5109_v25, %v5115_v3 }
 0x522   :  { %v8181_v27 = vpop.permute.xlu0 %5182  ;;  %v8183_v19 = vpop.permute.xlu1 %5192  ;;  %2622 = vmatpush.msra.mxu3 %v2481_v48  ;;  %v5130_v48 = vunpack.i.h.bf16 %v8083_v15 }
 0x523   :  { %2655 = vmatpush.msrb.mxu1 %v2488_v58  ;;  %2691 = vmatpush.msrb.mxu2 %v5090_v49  ;;  %v5119_v49 = vunpack.i.l.bf16 %v8040_v7 }
 0x524   :  { %2623 = vmatpush.msra.mxu3 %v2478_v63  ;;  %v5144_v63 = vunpack.i.l.bf16 %v8085_v54 }
 0x525   :  { %2656 = vmatpush.msrb.mxu1 %v2485_v1  ;;  %2692 = vmatpush.msrb.mxu2 %v5095_v60  ;;  %v5129_v60 = vunpack.i.l.bf16 %v8083_v15  ;;  %v2918_v1 = vsel %vm2875_vm5, %v5119_v49, %v5120_v16 }
 0x526   :  { %2608 = vmatmul.f32.gmra.mxu2 %v8193_v4  ;;  %v8203_v43 = vpop.permute.xlu2 %5187  ;;  %2624 = vmatpush.msra.mxu3 %v2475_v57  ;;  %v5134_v57 = vunpack.i.l.bf16 %v8059_v9 }
 0x527   :  { %2657 = vmatpush.msrb.mxu1 %v2482_v56  ;;  %2693 = vmatpush.msrb.mxu2 %v5100_v24  ;;  %v5159_v24 = vunpack.i.l.bf16 %v8127_v37  ;;  %v2915_v0 = vsel %vm2875_vm5, %v5129_v60, %v5130_v48  ;;  %v8290_v60 = vpop.f32.mrf.mxu2 }
 0x528   :  { %2625 = vmatpush.msra.mxu3 %v2472_v30  ;;  %v2919_v30 = vsel %vm2875_vm5, %v5120_v16, %v5144_v63 }
 0x529   :  { %2658 = vmatpush.msrb.mxu1 %v2479_v29  ;;  %2694 = vmatpush.msrb.mxu2 %v5105_v46  ;;  %v8239_v44 = vpop.f32.mrf.mxu1  ;;  %v5179_v29 = vunpack.i.l.bf16 %v8145_v20  ;;  %v2916_v32 = vsel %vm2875_vm5, %v5130_v48, %v5159_v24  ;;  %v5150_v48 = vunpack.i.h.bf16 %v8105_v55 }
 0x52a   :  { %v8215_v45 = vpop.permute.xlu0 %5197  ;;  %v8217_v42 = vpop.permute.xlu1 %5207  ;;  %2626 = vmatpush.msra.mxu3 %v2469_v59 }
 0x52b   :  { %2659 = vmatpush.msrb.mxu1 %v2476_v23  ;;  %2695 = vmatpush.msrb.mxu2 %v5110_v14  ;;  %v2910_v49 = vsel %vm2875_vm5, %v5139_v26, %v5179_v29 }
 0x52c   :  { %2627 = vmatpush.msra.mxu3 %v2466_v52 }
 0x52d   :  { %2660 = vmatpush.msrb.mxu1 %v2473_v17  ;;  %2628 = vmatmul.f32.vlgmr.msra.gmra.mxu3 %v8050_v8  ;;  %v5189_v17 = vunpack.i.l.bf16 %v8203_v43 }
 0x52e   :  { %2696 = vmatpush.msrb.mxu2 %v5114_v11  ;;  %v8229_v34 = vpop.permute.xlu2 %5202  ;;  %v5149_v11 = vunpack.i.l.bf16 %v8105_v55 }
 0x52f   :  { %2661 = vmatpush.msrb.mxu1 %v2470_v53 }
 0x530   :  { %2697 = vmatpush.msrb.mxu2 %v5115_v3  ;;  %v5135_v3 = vunpack.i.h.bf16 %v8059_v9  ;;  %v5160_v9 = vunpack.i.h.bf16 %v8127_v37 }
 0x531   :  { %2662 = vmatpush.msrb.mxu1 %v2467_v47  ;;  %2698 = vmatmul.f32.vlgmr.msrb.gmra.mxu2 %v8050_v8  ;;  %v8259_v56 = vpop.f32.mrf.mxu1 }
 0x532   :  { %v8234_v62 = vpop.permute.xlu0 %5212  ;;  %v8236_v12 = vpop.permute.xlu1 %5232  ;;  %2663 = vmatmul.f32.vlgmr.msrb.gmra.mxu1 %v8050_v8 }
 0x535   :  { %2631 = vmatmul.f32.gmra.mxu3 %v8066_v31 }
 0x536   :  { %v5218_v36 = vpop.permute.xlu2 %5217 }
 0x537   :  { %v5220_v33 = vunpack.i.h.bf16 %v5218_v36  ;;  %v5219_v41 = vunpack.i.l.bf16 %v5218_v36  ;;  %v5140_v36 = vunpack.i.h.bf16 %v8075_v35 }
 0x539   :  { %2701 = vmatmul.f32.gmra.mxu2 %v8066_v31  ;;  %v2921_v8 = vsel %vm2875_vm5, %v5219_v41, %v5220_v33  ;;  %v5199_v41 = vunpack.i.l.bf16 %v8215_v45  ;;  %v2917_v55 = vsel %vm2875_vm5, %v5159_v24, %v5140_v36  ;;  %v5180_v24 = vunpack.i.h.bf16 %v8145_v20 }
 0x53a   :  { %v5238_v58 = vpop.permute.xlu0 %5237  ;;  %v8248_v28 = vpop.permute.xlu1 %5252  ;;  %2666 = vmatmul.f32.gmra.mxu1 %v8066_v31  ;;  %2988 = vmatpush.msrb.mxu3 %v2921_v8  ;;  %v5169_v31 = vunpack.i.l.bf16 %v8143_v13  ;;  %v2907_v8 = vsel %vm2875_vm5, %v5149_v11, %v5189_v17 }
 0x53b   :  { %v5239_v7 = vunpack.i.l.bf16 %v5238_v58  ;;  %v5240_v14 = vunpack.i.h.bf16 %v5238_v58  ;;  %v5174_v58 = vunpack.i.l.bf16 %v8164_v50  ;;  %v5254_v20 = vunpack.i.l.bf16 %v8248_v28 }
 0x53c   :  { %2989 = vmatpush.msrb.mxu3 %v2918_v1  ;;  %v2913_v47 = vsel %vm2875_vm5, %v5134_v57, %v5169_v31  ;;  %v5170_v1 = vunpack.i.h.bf16 %v8143_v13  ;;  %v2914_v13 = vsel %vm2875_vm5, %v5169_v31, %v5150_v48 }
 0x53d   :  { %v2922_v15 = vsel %vm2875_vm5, %v5220_v33, %v5239_v7  ;;  %2634 = vmatmul.f32.gmra.mxu3 %v8090_v6  ;;  %v2909_v16 = vsel %vm2875_vm5, %v5240_v14, %v5139_v26  ;;  %v2920_v33 = vsel %vm2875_vm5, %v5144_v63, %v5135_v3  ;;  %v5209_v63 = vunpack.i.l.bf16 %v8217_v42 }
 0x53e   :  { %3023 = vmatpush.msra.mxu0 %v2922_v15  ;;  %v5223_v46 = vpop.permute.xlu2 %5222  ;;  %2990 = vmatpush.msrb.mxu3 %v2915_v0  ;;  %v8302_v15 = vpop.f32.mrf.mxu1  ;;  %v2900_v14 = vsel %vm2875_vm5, %v5170_v1, %v5174_v58 }
 0x53f   :  { %v5225_v25 = vunpack.i.h.bf16 %v5223_v46  ;;  %v5224_v18 = vunpack.i.l.bf16 %v5223_v46 }
 0x540   :  { %3024 = vmatpush.msra.mxu0 %v2919_v30  ;;  %v5190_v30 = vunpack.i.h.bf16 %v8203_v43 }
 0x541   :  { %2704 = vmatmul.f32.gmra.mxu2 %v8090_v6  ;;  %v2912_v59 = vsel %vm2875_vm5, %v5225_v25, %v5134_v57  ;;  %v2923_v23 = vsel %vm2875_vm5, %v5239_v7, %v5224_v18  ;;  %v5165_v7 = vunpack.i.h.bf16 %v8107_v39  ;;  %v5184_v57 = vunpack.i.l.bf16 %v8181_v27 }
 0x542   :  { %v8268_v52 = vpop.permute.xlu1 %5267  ;;  %3025 = vmatpush.msra.mxu0 %v2916_v32  ;;  %2669 = vmatmul.f32.gmra.mxu1 %v8090_v6  ;;  %v8274_v53 = vpop.permute.xlu0 %5242  ;;  %v5145_v6 = vunpack.i.h.bf16 %v8085_v54  ;;  %v5164_v54 = vunpack.i.l.bf16 %v8107_v39  ;;  %v2901_v32 = vsel %vm2875_vm5, %v5174_v58, %v5209_v63  ;;  %v5215_v58 = vunpack.i.h.bf16 %v8234_v62 }
 0x543   :  { %3093 = vmatpush.msra.mxu2 %v5224_v18  ;;  %2991 = vmatpush.msrb.mxu3 %v2912_v59  ;;  %v5175_v18 = vunpack.i.h.bf16 %v8164_v50  ;;  %v5244_v59 = vunpack.i.l.bf16 %v8274_v53  ;;  %v2911_v50 = vsel %vm2875_vm5, %v5179_v29, %v5165_v7  ;;  %v2897_v26 = vsel %vm2875_vm5, %v5180_v24, %v5184_v57 }
 0x544   :  { %3026 = vmatpush.msra.mxu0 %v2913_v47  ;;  %3058 = vmatpush.msra.mxu1 %v2923_v23  ;;  %v2906_v37 = vsel %vm2875_vm5, %v5145_v6, %v5149_v11  ;;  %v2903_v0 = vsel %vm2875_vm5, %v5160_v9, %v5164_v54  ;;  %v2904_v39 = vsel %vm2875_vm5, %v5164_v54, %v5199_v41  ;;  %v5194_v23 = vunpack.i.l.bf16 %v8183_v19 }
 0x545   :  { %3094 = vmatpush.msra.mxu2 %v5135_v3  ;;  %2992 = vmatpush.msrb.mxu3 %v2909_v16  ;;  %v5185_v47 = vunpack.i.h.bf16 %v8181_v27  ;;  %v2908_v29 = vsel %vm2875_vm5, %v5189_v17, %v5175_v18  ;;  %v5195_v6 = vunpack.i.h.bf16 %v8183_v19  ;;  %v5214_v9 = vunpack.i.l.bf16 %v8234_v62  ;;  %v8346_v27 = vpop.f32.mrf.mxu2 }
 0x546   :  { %3027 = vmatpush.msra.mxu0 %v2910_v49  ;;  %3059 = vmatpush.msra.mxu1 %v2920_v33  ;;  %v8286_v35 = vpop.permute.xlu2 %5227  ;;  %v2894_v16 = vsel %vm2875_vm5, %v5190_v30, %v5194_v23  ;;  %v2895_v43 = vsel %vm2875_vm5, %v5194_v23, %v5244_v59  ;;  %v5210_v33 = vunpack.i.h.bf16 %v8217_v42  ;;  %v5245_v1 = vunpack.i.h.bf16 %v8274_v53 }
 0x547   :  { %2637 = vmatmul.f32.gmra.mxu3 %v8117_v22  ;;  %3095 = vmatpush.msra.mxu2 %v5140_v36  ;;  %v5229_v46 = vunpack.i.l.bf16 %v8286_v35  ;;  %v5200_v36 = vunpack.i.h.bf16 %v8215_v45  ;;  %v2905_v17 = vsel %vm2875_vm5, %v5199_v41, %v5185_v47  ;;  %v5230_v54 = vunpack.i.h.bf16 %v8286_v35 }
 0x548   :  { %2993 = vmatpush.msrb.mxu3 %v2906_v37  ;;  %3028 = vmatpush.msra.mxu0 %v2907_v8  ;;  %v2203_v37 = vpop.f32.mrf.mxu1  ;;  %v2902_v45 = vsel %vm2875_vm5, %v5209_v63, %v5195_v6  ;;  %v2896_v35 = vsel %vm2875_vm5, %v5244_v59, %v5215_v58  ;;  %v5255_v24 = vunpack.i.h.bf16 %v8248_v28 }
 0x549   :  { %3060 = vmatpush.msra.mxu1 %v2917_v55  ;;  %3096 = vmatpush.msra.mxu2 %v5150_v48  ;;  %v2898_v3 = vsel %vm2875_vm5, %v5184_v57, %v5229_v46  ;;  %v5205_v48 = vunpack.i.h.bf16 %v8229_v34 }
 0x54a   :  { %v8307_v25 = vpop.permute.xlu1 %5282  ;;  %2707 = vmatmul.f32.gmra.mxu2 %v8117_v22  ;;  %2994 = vmatpush.msrb.mxu3 %v2903_v0  ;;  %v8323_v31 = vpop.permute.xlu0 %5257 }
 0x54b   :  { %3029 = vmatpush.msra.mxu0 %v2904_v39  ;;  %3061 = vmatpush.msra.mxu1 %v2914_v13  ;;  %v2899_v42 = vsel %vm2875_vm5, %v5229_v46, %v5205_v48  ;;  %v5259_v62 = vunpack.i.l.bf16 %v8323_v31  ;;  %v5235_v13 = vunpack.i.h.bf16 %v8236_v12 }
 0x54c   :  { %2672 = vmatmul.f32.gmra.mxu1 %v8117_v22  ;;  %3097 = vmatpush.msra.mxu2 %v5165_v7  ;;  %v5204_v22 = vunpack.i.l.bf16 %v8229_v34  ;;  %v5234_v34 = vunpack.i.l.bf16 %v8236_v12  ;;  %v2888_v7 = vsel %vm2875_vm5, %v5210_v33, %v5214_v9 }
 0x54d   :  { %2995 = vmatpush.msrb.mxu3 %v2900_v14  ;;  %3030 = vmatpush.msra.mxu0 %v2901_v32  ;;  %v5269_v14 = vunpack.i.l.bf16 %v8268_v52  ;;  %v2893_v32 = vsel %vm2875_vm5, %v5254_v20, %v5235_v13  ;;  %v8391_v59 = vpop.f32.mrf.mxu2  ;;  %v2879_v28 = vsel %vm2875_vm5, %v5255_v24, %v5259_v62 }
 0x54e   :  { %3062 = vmatpush.msra.mxu1 %v2911_v50  ;;  %3098 = vmatpush.msra.mxu2 %v5175_v18  ;;  %v8334_v11 = vpop.permute.xlu2 %5247  ;;  %v2891_v19 = vsel %vm2875_vm5, %v5200_v36, %v5204_v22  ;;  %v2892_v8 = vsel %vm2875_vm5, %v5204_v22, %v5254_v20  ;;  %v2885_v57 = vsel %vm2875_vm5, %v5230_v54, %v5234_v34  ;;  %v5260_v50 = vunpack.i.h.bf16 %v8323_v31 }
 0x54f   :  { %2996 = vmatpush.msrb.mxu3 %v2897_v26  ;;  %3031 = vmatpush.msra.mxu0 %v2898_v3  ;;  %v5249_v55 = vunpack.i.l.bf16 %v8334_v11  ;;  %v5270_v22 = vunpack.i.h.bf16 %v8268_v52  ;;  %v2741_v3 = vld [vmem:[%s9938_s3 + $0x60] sm:$0xff]  ;;  %v5284_v31 = vunpack.i.l.bf16 %v8307_v25 }
 0x550   :  { %3063 = vmatpush.msra.mxu1 %v2908_v29  ;;  %2640 = vmatmul.f32.gmra.mxu3 %v8155_v40 }
 0x551   :  { %3099 = vmatpush.msra.mxu2 %v5185_v47  ;;  %2997 = vmatpush.msrb.mxu3 %v2894_v16  ;;  %v2882_v18 = vsel %vm2875_vm5, %v5245_v1, %v5249_v55 }
 0x552   :  { %3032 = vmatpush.msra.mxu0 %v2895_v43  ;;  %3064 = vmatpush.msra.mxu1 %v2905_v17  ;;  %v8354_v49 = vpop.permute.xlu1 %2229  ;;  %v5273_v0 = vpop.permute.xlu0 %5272  ;;  %v2742_v17 = vld [vmem:[%s9938_s3 + $0x68] sm:$0xff] }
 0x553   :  { %3100 = vmatpush.msra.mxu2 %v5195_v6  ;;  %2998 = vmatpush.msrb.mxu3 %v2891_v19  ;;  %v8366_v41 = vadd.f32 %v8354_v49, %v2203_v37  ;;  %v5274_v12 = vunpack.i.l.bf16 %v5273_v0  ;;  %v5275_v29 = vunpack.i.h.bf16 %v5273_v0  ;;  %v2880_v6 = vsel %vm2875_vm5, %v5259_v62, %v5284_v31  ;;  %v2743_v37 = vld [vmem:[%s9938_s3 + $0x70] sm:$0xff] }
 0x554   :  { %2710 = vmatmul.f32.gmra.mxu2 %v8155_v40  ;;  %3033 = vmatpush.msra.mxu0 %v2892_v8 }
 0x555   :  { %3065 = vmatpush.msra.mxu1 %v2902_v45  ;;  %3101 = vmatpush.msra.mxu2 %v5205_v48  ;;  %v2886_v26 = vsel %vm2875_vm5, %v5234_v34, %v5274_v12  ;;  %v2887_v47 = vsel %vm2875_vm5, %v5274_v12, %v5260_v50  ;;  %v8410_v43 = vpop.f32.mrf.mxu2  ;;  %v2206_v48 = vpop.f32.mrf.mxu1 }
 0x556   :  { %2675 = vmatmul.f32.gmra.mxu1 %v8155_v40  ;;  %2999 = vmatpush.msrb.mxu3 %v2888_v7  ;;  %v5263_v63 = vpop.permute.xlu2 %5262  ;;  %v5250_v40 = vunpack.i.h.bf16 %v8334_v11  ;;  %v2159_v45 = vpop.f32.mrf.mxu3 }
 0x557   :  { %3066 = vmatpush.msra.mxu1 %v2899_v42  ;;  %3102 = vmatpush.msra.mxu2 %v5215_v58  ;;  %v5264_v39 = vunpack.i.l.bf16 %v5263_v63  ;;  %v5265_v46 = vunpack.i.h.bf16 %v5263_v63  ;;  %v2744_v58 = vld [vmem:[%s9938_s3 + $0x78] sm:$0xff]  ;;  %v2746_v63 = vld [vmem:[%s9938_s3 + $0x88] sm:$0xff] }
 0x558   :  { %3000 = vmatpush.msrb.mxu3 %v2885_v57 }
 0x559   :  { %3067 = vmatpush.msra.mxu1 %v2896_v35  ;;  %2643 = vmatmul.f32.gmra.mxu3 %v8193_v4  ;;  %v2889_v30 = vsel %vm2875_vm5, %v5214_v9, %v5264_v39  ;;  %v2890_v53 = vsel %vm2875_vm5, %v5264_v39, %v5250_v40  ;;  %v2876_v23 = vsel %vm2875_vm5, %v5265_v46, %v5269_v14 }
 0x55a   :  { %3103 = vmatpush.msra.mxu2 %v5235_v13  ;;  %3001 = vmatpush.msrb.mxu3 %v2882_v18  ;;  %v2881_v9 = vsel %vm2875_vm5, %v5284_v31, %v5275_v29  ;;  %v2254_v39 = vadd.f32 %v8354_v49, %v8131_v2  ;;  %v8458_v24 = vpop.permute.xlu0 %2239 }
 0x55b   :  { %3068 = vmatpush.msra.mxu1 %v2893_v32  ;;  %3034 = vmatpush.msra.mxu0 %v2889_v30 }
 0x55c   :  { %3104 = vmatpush.msra.mxu2 %v5250_v40  ;;  %3002 = vmatpush.msrb.mxu3 %v2879_v28 }
 0x55d   :  { %2713 = vmatmul.f32.gmra.mxu2 %v8193_v4  ;;  %3069 = vmatpush.msra.mxu1 %v2890_v53  ;;  %v8425_v8 = vpop.f32.mrf.mxu2  ;;  %v8460_v18 = vpop.f32.mrf.mxu1 }
 0x55e   :  { %2678 = vmatmul.f32.gmra.mxu1 %v8193_v4  ;;  %3105 = vmatpush.msra.mxu2 %v5260_v50  ;;  %v5278_v11 = vpop.permute.xlu2 %5277  ;;  %v5285_v4 = vunpack.i.h.bf16 %v8307_v25  ;;  %v8435_v7 = vpop.f32.mrf.mxu3 }
 0x55f   :  { %3003 = vmatpush.msrb.mxu3 %v2876_v23  ;;  %3035 = vmatpush.msra.mxu0 %v2886_v26  ;;  %v5279_v20 = vunpack.i.l.bf16 %v5278_v11  ;;  %v5280_v52 = vunpack.i.h.bf16 %v5278_v11  ;;  %v8468_v53 = vpop.permute.xlu1 %2214 }
 0x560   :  { %3106 = vmatpush.msra.mxu2 %v5270_v22  ;;  %3070 = vmatpush.msra.mxu1 %v2887_v47  ;;  %v2877_v25 = vsel %vm2875_vm5, %v5269_v14, %v5285_v4  ;;  %v2262_v14 = vadd.f32 %v8458_v24, %v8220_v38  ;;  %v2245_v50 = vadd.f32 %v8468_v53, %v8239_v44 }
 0x561   :  { %3004 = vmatmul.f32.vlgmr.msrb.gmra.mxu3 %v2741_v3  ;;  %v2883_v36 = vsel %vm2875_vm5, %v5249_v55, %v5279_v20  ;;  %v2884_v16 = vsel %vm2875_vm5, %v5279_v20, %v5270_v22  ;;  %v2878_v33 = vsel %vm2875_vm5, %v5285_v4, %v5280_v52  ;;  %v2745_v55 = vld [vmem:[%s9938_s3 + $0x80] sm:$0xff] }
 0x562   :  { %3107 = vmatpush.msra.mxu2 %v5275_v29  ;;  %3036 = vmatpush.msra.mxu0 %v2883_v36 }
 0x563   :  { %3071 = vmatpush.msra.mxu1 %v2884_v16 }
 0x564   :  { %3108 = vmatpush.msra.mxu2 %v5280_v52  ;;  %3037 = vmatpush.msra.mxu0 %v2880_v6 }
 0x565   :  { %3109 = vmatmul.f32.vlgmr.msra.gmra.mxu2 %v2741_v3  ;;  %3072 = vmatpush.msra.mxu1 %v2881_v9  ;;  %v8430_v34 = vpop.f32.mrf.mxu2 }
 0x566   :  { %v8416_v19 = vpop.permute.xlu2 %2234  ;;  %3038 = vmatpush.msra.mxu0 %v2877_v25  ;;  %v8444_v62 = vpop.f32.mrf.mxu3 }
 0x567   :  { %3073 = vmatpush.msra.mxu1 %v2878_v33  ;;  %3039 = vmatmul.f32.vlgmr.msra.gmra.mxu0 %v2741_v3  ;;  %v8420_v54 = vadd.f32 %v8416_v19, %v2206_v48  ;;  %v2243_v33 = vadd.f32 %v8468_v53, %v8290_v60  ;;  %v2244_v48 = vadd.f32 %v8468_v53, %v2159_v45 }
 0x568   :  { %3074 = vmatmul.f32.vlgmr.msra.gmra.mxu1 %v2741_v3 }
 0x569   :  { %3007 = vmatmul.f32.gmra.mxu3 %v2742_v17 }
 0x56d   :  { %3112 = vmatmul.f32.gmra.mxu2 %v2742_v17 }
 0x56e   :  { %v8448_v57 = vpop.f32.mrf.mxu3  ;;  %v2220_v3 = vpop.permute.xlu2 %2219 }
 0x56f   :  { %3042 = vmatmul.f32.gmra.mxu0 %v2742_v17  ;;  %v2249_v31 = vadd.f32 %v2220_v3, %v8259_v56 }
 0x570   :  { %3077 = vmatmul.f32.gmra.mxu1 %v2742_v17 }
 0x571   :  { %3010 = vmatmul.f32.gmra.mxu3 %v2743_v37 }
 0x575   :  { %3115 = vmatmul.f32.gmra.mxu2 %v2743_v37 }
 0x576   :  { %v8454_v35 = vpop.f32.mrf.mxu3 }
 0x577   :  { %3045 = vmatmul.f32.gmra.mxu0 %v2743_v37 }
 0x578   :  { %3080 = vmatmul.f32.gmra.mxu1 %v2743_v37 }
 0x579   :  { %3013 = vmatmul.f32.gmra.mxu3 %v2744_v58 }
 0x57d   :  { %3118 = vmatmul.f32.gmra.mxu2 %v2744_v58 }
 0x57e   :  { %v8462_v30 = vpop.f32.mrf.mxu3 }
 0x57f   :  { %3048 = vmatmul.f32.gmra.mxu0 %v2744_v58 }
 0x580   :  { %3083 = vmatmul.f32.gmra.mxu1 %v2744_v58 }
 0x581   :  { %3016 = vmatmul.f32.gmra.mxu3 %v2745_v55  ;;  %v8437_v42 = vpop.f32.mrf.mxu2 }
 0x585   :  { %3121 = vmatmul.f32.gmra.mxu2 %v2745_v55 }
 0x587   :  { %3051 = vmatmul.f32.gmra.mxu0 %v2745_v55 }
 0x588   :  { %3086 = vmatmul.f32.gmra.mxu1 %v2745_v55 }
 0x589   :  { %3019 = vmatmul.f32.gmra.mxu3 %v2746_v63  ;;  %v8442_v1 = vpop.f32.mrf.mxu2 }
 0x58d   :  { %3124 = vmatmul.f32.gmra.mxu2 %v2746_v63 }
 0x58f   :  { %3054 = vmatmul.f32.gmra.mxu0 %v2746_v63 }
 0x590   :  { %3089 = vmatmul.f32.gmra.mxu1 %v2746_v63 }
 0x591   :  { %v8446_v0 = vpop.f32.mrf.mxu2 }
 0x599   :  { %v2603_v13 = vpop.f32.mrf.mxu2 }
 0x59a   :  { %v8452_v40 = vadd.f32 %v2603_v13, %v2254_v39 }
 0x5a1   :  { %v8456_v46 = vpop.f32.mrf.mxu2 }
 0x5a9   :  { %v2609_v12 = vpop.f32.mrf.mxu2 }
 0x5aa   :  { %v8466_v32 = vadd.f32 %v2609_v12, %v2262_v14  ;;  %v2247_v14 = vadd.f32 %v2220_v3, %v8346_v27 }
 0x5af   :  { %v2664_v2 = vpop.f32.mrf.mxu1 }
 0x5b0   :  { %v2629_v28 = vpop.f32.mrf.mxu3  ;;  %v2719_v58 = vadd.f32 %v2664_v2, %v2244_v48 }
 0x5b1   :  { %v2718_v37 = vadd.f32 %v2629_v28, %v2243_v33 }
 0x5b4   :  { %v2699_v23 = vpop.f32.mrf.mxu2 }
 0x5b5   :  { %v8472_v22 = vadd.f32 %v2699_v23, %v2245_v50 }
 0x5b7   :  { %v2667_v26 = vpop.f32.mrf.mxu1 }
 0x5b8   :  { %v2632_v11 = vpop.f32.mrf.mxu3 }
 0x5b9   :  { %v2722_v50 = vadd.f32 %v2632_v11, %v2247_v14 }
 0x5bc   :  { %v2702_v47 = vpop.f32.mrf.mxu2 }
 0x5bd   :  { %v8475_v38 = vadd.f32 %v2702_v47, %v2249_v31 }
 0x5bf   :  { %v8477_v20 = vpop.f32.mrf.mxu1 }
 0x5c0   :  { %v2635_v29 = vpop.f32.mrf.mxu3 }
 0x5c4   :  { %v8479_v52 = vpop.f32.mrf.mxu2 }
 0x5c9   :  { %v8481_v4 = vpop.f32.mrf.mxu1 }
 0x5ca   :  { %v2638_v36 = vpop.f32.mrf.mxu3 }
 0x5cd   :  { %v2708_v44 = vpop.f32.mrf.mxu2 }
 0x5ce   :  { %v8484_v16 = vadd.f32 %v2708_v44, %v8366_v41  ;;  %v8502_v44 = vpop.permute.xlu0 %2224 }
 0x5cf   :  { %v2251_v2 = vadd.f32 %v8502_v44, %v8391_v59 }
 0x5d1   :  { %v2726_v28 = vadd.f32 %v2635_v29, %v2251_v2 }
 0x5d3   :  { %v8486_v6 = vpop.f32.mrf.mxu1  ;;  %v2641_v9 = vpop.f32.mrf.mxu3 }
 0x5d7   :  { %v8490_v56 = vpop.f32.mrf.mxu2 }
 0x5db   :  { %v8488_v25 = vpop.f32.mrf.mxu1 }
 0x5dc   :  { %v8492_v17 = vpop.f32.mrf.mxu3 }
 0x5e0   :  { %v8499_v13 = vpop.f32.mrf.mxu2 }
 0x5e4   :  { %v3040_v55 = vpop.f32.mrf.mxu0  ;;  %v3005_v12 = vpop.f32.mrf.mxu3 }
 0x5e5   :  { %v3129_v63 = vadd.f32 %v3040_v55, %v2718_v37  ;;  %v3075_v41 = vpop.f32.mrf.mxu1 }
 0x5e6   :  { %v8497_v39 = vadd.f32 %v3075_v41, %v2719_v58  ;;  %v2248_v58 = vadd.f32 %v2220_v3, %v8435_v7 }
 0x5e7   :  { %5587 = vtanh.f32 %v3129_v63  ;;  %v2255_v63 = vadd.f32 %v8354_v49, %v8410_v43  ;;  %v2259_v43 = vadd.f32 %v8416_v19, %v8425_v8  ;;  %v2263_v8 = vadd.f32 %v8458_v24, %v8430_v34 }
 0x5e8   :  { %v8505_v45 = vpop.f32.mrf.mxu2  ;;  %v2723_v55 = vadd.f32 %v2667_v26, %v2248_v58  ;;  %v2252_v34 = vadd.f32 %v8502_v44, %v8444_v62 }
 0x5e9   :  { %v2730_v14 = vadd.f32 %v2638_v36, %v2255_v63  ;;  %v2734_v2 = vadd.f32 %v2641_v9, %v2259_v43  ;;  %v2260_v9 = vadd.f32 %v8416_v19, %v8454_v35  ;;  %v2258_v35 = vadd.f32 %v8416_v19, %v8175_v10 }
 0x5eb   :  { %v2735_v58 = vadd.f32 %v8486_v6, %v2260_v9  ;;  %v2727_v6 = vadd.f32 %v8477_v20, %v2252_v34  ;;  %v2733_v62 = vadd.f32 %v8456_v46, %v2258_v35 }
 0x5ec   :  { %v3043_v23 = vpop.f32.mrf.mxu0  ;;  %v3008_v33 = vpop.f32.mrf.mxu3 }
 0x5ed   :  { %v3133_v31 = vadd.f32 %v3043_v23, %v2722_v50  ;;  %v3078_v47 = vpop.f32.mrf.mxu1  ;;  %v5588_v60 = vpop.eup %5587 }
 0x5ee   :  { %3202 = vrot.lane.b32.xlu2 %v5588_v60, %s5694_s30  ;;  %v3134_v50 = vadd.f32 %v3078_v47, %v2723_v55  ;;  %v2246_v60 = vadd.f32 %v2220_v3, %v8068_v21  ;;  %v2242_v21 = vadd.f32 %v8468_v53, %v8036_v51  ;;  %v2738_v51 = vadd.f32 %v8492_v17, %v2263_v8 }
 0x5ef   :  { %5589 = vtanh.f32 %v3133_v31 }
 0x5f0   :  { %v8513_v41 = vpop.f32.mrf.mxu2  ;;  %v2721_v26 = vadd.f32 %v8442_v1, %v2246_v60  ;;  %v2717_v1 = vadd.f32 %v8437_v42, %v2242_v21  ;;  %v2256_v42 = vadd.f32 %v8354_v49, %v8448_v57  ;;  %v2250_v49 = vadd.f32 %v8502_v44, %v8092_v61 }
 0x5f1   :  { %v2253_v57 = vadd.f32 %v8502_v44, %v8302_v15 }
 0x5f2   :  { %v3132_v36 = vadd.f32 %v3008_v33, %v2721_v26  ;;  %v3128_v53 = vadd.f32 %v3005_v12, %v2717_v1  ;;  %v2731_v17 = vadd.f32 %v8481_v4, %v2256_v42  ;;  %v2725_v19 = vadd.f32 %v8446_v0, %v2250_v49  ;;  %v9973_v49 = vld [vmem:[#allocation11_spill] sm:$0xff] }
 0x5f3   :  { %v2728_v46 = vadd.f32 %v8479_v52, %v2253_v57  ;;  %v2264_v0 = vadd.f32 %v8458_v24, %v8462_v30  ;;  %v2265_v52 = vadd.f32 %v8458_v24, %v8460_v18  ;;  %v2736_v24 = vadd.f32 %v8490_v56, %v8420_v54 }
 0x5f4   :  { %v3046_v48 = vpop.f32.mrf.mxu0  ;;  %v8515_v31 = vpop.f32.mrf.mxu3  ;;  %v3135_v54 = vadd.f32 %v8513_v41, %v8475_v38 }
 0x5f5   :  { %v3137_v27 = vadd.f32 %v3046_v48, %v2726_v28  ;;  %v5590_v37 = vpop.eup %5589  ;;  %v3081_v11 = vpop.f32.mrf.mxu1  ;;  %v3136_v20 = vadd.f32 %v8515_v31, %v2725_v19  ;;  %v2739_v44 = vadd.f32 %v8488_v25, %v2264_v0 }
 0x5f6   :  { %3210 = vrot.lane.b32.xlu0 %v5590_v37, %s5694_s30 }
 0x5f7   :  { %5591 = vtanh.f32 %v3137_v27 }
 0x5f8   :  { %5593 = vtanh.f32 %v3134_v50  ;;  %v3116_v47 = vpop.f32.mrf.mxu2 }
 0x5fc   :  { %v3049_v59 = vpop.f32.mrf.mxu0  ;;  %v3014_v3 = vpop.f32.mrf.mxu3 }
 0x5fd   :  { %v3141_v29 = vadd.f32 %v3049_v59, %v2730_v14  ;;  %v5592_v23 = vpop.eup %5591  ;;  %v3084_v7 = vpop.f32.mrf.mxu1  ;;  %v3140_v61 = vadd.f32 %v3014_v3, %v8452_v40 }
 0x5fe   :  { %3218 = vrot.lane.b32.xlu1 %v5592_v23, %s5694_s30  ;;  %v5594_v48 = vpop.eup %5593  ;;  %v3138_v23 = vadd.f32 %v3081_v11, %v2727_v6  ;;  %v3142_v60 = vadd.f32 %v3084_v7, %v2731_v17  ;;  %v3139_v11 = vadd.f32 %v3116_v47, %v2728_v46  ;;  %v2740_v47 = vadd.f32 %v8499_v13, %v2265_v52  ;;  %v9971_v17 = vld [vmem:[#allocation7_spill] sm:$0xff] }
 0x5ff   :  { %5595 = vtanh.f32 %v3141_v29  ;;  %v3131_v13 = vadd.f32 %v8505_v45, %v8472_v22 }
 0x600   :  { %5597 = vtanh.f32 %v3132_v36  ;;  %v3119_v29 = vpop.f32.mrf.mxu2 }
 0x601   :  { %v3143_v18 = vadd.f32 %v3119_v29, %v8484_v16 }
 0x604   :  { %v3052_v28 = vpop.f32.mrf.mxu0  ;;  %v3017_v12 = vpop.f32.mrf.mxu3 }
 0x605   :  { %v3145_v27 = vadd.f32 %v3052_v28, %v2734_v2  ;;  %v5596_v37 = vpop.eup %5595  ;;  %v3087_v33 = vpop.f32.mrf.mxu1  ;;  %v3144_v43 = vadd.f32 %v3017_v12, %v2733_v62  ;;  %v9972_v62 = vld [vmem:[#allocation9_spill] sm:$0xff] }
 0x606   :  { %3212 = vrot.lane.b32.xlu1 %v5594_v48, %s5694_s30  ;;  %3226 = vrot.lane.b32.xlu2 %v5596_v37, %s5694_s30  ;;  %v5598_v63 = vpop.eup %5597  ;;  %v3146_v14 = vadd.f32 %v3087_v33, %v2735_v58 }
 0x607   :  { %5599 = vtanh.f32 %v3145_v27 }
 0x608   :  { %5601 = vtanh.f32 %v3128_v53  ;;  %v3122_v10 = vpop.f32.mrf.mxu2 }
 0x60c   :  { %v3055_v55 = vpop.f32.mrf.mxu0  ;;  %v3020_v15 = vpop.f32.mrf.mxu3 }
 0x60d   :  { %v3149_v50 = vadd.f32 %v3055_v55, %v2738_v51  ;;  %v5600_v59 = vpop.eup %5599  ;;  %v3090_v40 = vpop.f32.mrf.mxu1  ;;  %v3148_v48 = vadd.f32 %v3020_v15, %v8466_v32  ;;  %v3147_v32 = vadd.f32 %v3122_v10, %v2736_v24 }
 0x60e   :  { %3234 = vrot.lane.b32.xlu0 %v5600_v59, %s5694_s30  ;;  %3208 = vrot.lane.b32.xlu1 %v5598_v63, %s5694_s30  ;;  %v5602_v26 = vpop.eup %5601  ;;  %v3150_v27 = vadd.f32 %v3090_v40, %v2739_v44 }
 0x60f   :  { %5603 = vtanh.f32 %v3149_v50 }
 0x610   :  { %5605 = vtanh.f32 %v3146_v14  ;;  %v3125_v31 = vpop.f32.mrf.mxu2 }
 0x611   :  { %5607 = vtanh.f32 %v3138_v23  ;;  %v3151_v21 = vadd.f32 %v3125_v31, %v2740_v47 }
 0x612   :  { %5609 = vtanh.f32 %v3142_v60 }
 0x613   :  { %5611 = vtanh.f32 %v3144_v43 }
 0x614   :  { %5613 = vtanh.f32 %v3136_v20 }
 0x615   :  { %v5604_v2 = vpop.eup %5603  ;;  %5615 = vtanh.f32 %v3140_v61 }
 0x616   :  { %v5606_v36 = vpop.eup %5605  ;;  %3242 = vrot.lane.b32.xlu2 %v5604_v2, %s5694_s30  ;;  %3200 = vrot.lane.b32.xlu0 %v5602_v26, %s5694_s30  ;;  %5617 = vtanh.f32 %v3139_v11 }
 0x617   :  { %3236 = vrot.lane.b32.xlu1 %v5606_v36, %s5694_s30  ;;  %v5608_v4 = vpop.eup %5607  ;;  %5619 = vtanh.f32 %v3148_v48 }
 0x618   :  { %v5610_v7 = vpop.eup %5609  ;;  %5621 = vtanh.f32 %v3150_v27 }
 0x619   :  { %v5612_v28 = vpop.eup %5611  ;;  %5623 = vtanh.f32 %v3151_v21 }
 0x61a   :  { %v5614_v37 = vpop.eup %5613  ;;  %5625 = vtanh.f32 %v3143_v18 }
 0x61b   :  { %v5616_v30 = vpop.eup %5615  ;;  %5627 = vtanh.f32 %v3147_v32 }
 0x61c   :  { %v5618_v3 = vpop.eup %5617  ;;  %5629 = vtanh.f32 %v3131_v13 }
 0x61d   :  { %v5620_v25 = vpop.eup %5619  ;;  %5631 = vtanh.f32 %v8497_v39 }
 0x61e   :  { %3220 = vrot.lane.b32.xlu2 %v5608_v4, %s5694_s30  ;;  %3228 = vrot.lane.b32.xlu0 %v5610_v7, %s5694_s30  ;;  %v5622_v8 = vpop.eup %5621  ;;  %5633 = vtanh.f32 %v3135_v54 }
 0x61f   :  { %3232 = vrot.lane.b32.xlu1 %v5612_v28, %s5694_s30  ;;  %v5624_v1 = vpop.eup %5623 }
 0x620   :  { %v5626_v16 = vpop.eup %5625 }
 0x621   :  { %v5628_v56 = vpop.eup %5627 }
 0x622   :  { %v5630_v9 = vpop.eup %5629 }
 0x623   :  { %v5632_v22 = vpop.eup %5631 }
 0x624   :  { %v5634_v45 = vpop.eup %5633 }
 0x626   :  { %3216 = vrot.lane.b32.xlu2 %v5614_v37, %s5694_s30  ;;  %3224 = vrot.lane.b32.xlu0 %v5616_v30, %s5694_s30 }
 0x627   :  { %3222 = vrot.lane.b32.xlu1 %v5618_v3, %s5694_s30 }
 0x62e   :  { %3244 = vrot.lane.b32.xlu2 %v5622_v8, %s5694_s30  ;;  %3240 = vrot.lane.b32.xlu0 %v5620_v25, %s5694_s30 }
 0x62f   :  { %3246 = vrot.lane.b32.xlu1 %v5624_v1, %s5694_s30 }
 0x636   :  { %3230 = vrot.lane.b32.xlu2 %v5626_v16, %s5694_s30  ;;  %3238 = vrot.lane.b32.xlu0 %v5628_v56, %s5694_s30 }
 0x637   :  { %3206 = vrot.lane.b32.xlu1 %v5630_v9, %s5694_s30 }
 0x63e   :  { %3204 = vrot.lane.b32.xlu2 %v5632_v22, %s5694_s30  ;;  %3214 = vrot.lane.b32.xlu0 %v5634_v45, %s5694_s30 }
 0x648   :  { %v8584_v33 = vpop.permute.xlu2 %3202 }
 0x660   :  { %v3227_v38 = vpop.permute.xlu2 %3226 }
 0x668   :  { %v8586_v51 = vpop.permute.xlu0 %3210 }
 0x670   :  { %v3219_v41 = vpop.permute.xlu1 %3218  ;;  %v3243_v58 = vpop.permute.xlu2 %3242 }
 0x678   :  { %v8588_v39 = vpop.permute.xlu1 %3212  ;;  %v3221_v53 = vpop.permute.xlu2 %3220 }
 0x679   :  { %v8607_v26 = vsel %vm986_vm0, %v3219_v41, %v3221_v53 }
 0x67a   :  { %v3331_v10 = vmul.f32 %v8607_v26, %v9973_v49 }
 0x680   :  { %v3235_v55 = vpop.permute.xlu0 %3234  ;;  %v8590_v63 = vpop.permute.xlu1 %3208 }
 0x681   :  { %v3217_v14 = vpop.permute.xlu2 %3216 }
 0x682   :  { %v8597_v34 = vsel %vm986_vm0, %v3217_v14, %v3219_v41  ;;  %v8600_v42 = vsel %vm986_vm0, 0.0, %v3217_v14 }
 0x683   :  { %v3329_v12 = vmul.f32 %v8600_v42, %v9971_v17  ;;  %v3330_v23 = vmul.f32 %v8597_v34, %v9972_v62 }
 0x685   :  { %v3355_v36 = vadd.f32 %v3330_v23, %v3329_v12  ;;  %v3383_v12 = vmul.f32 %v8600_v42, %v8600_v42 }
 0x687   :  { %v3356_v44 = vadd.f32 %v3355_v36, %v3331_v10 }
 0x688   :  { %v8592_v50 = vpop.permute.xlu0 %3200 }
 0x689   :  { %v8594_v59 = vpop.permute.xlu1 %3236  ;;  %v3245_v29 = vpop.permute.xlu2 %3244 }
 0x68a   :  { %v8635_v15 = vsel %vm986_vm0, %v3243_v58, %v3245_v29  ;;  %v8660_v13 = vsel %vm986_vm0, %v3235_v55, %v8594_v59 }
 0x68b   :  { %v3397_v1 = vmul.f32 %v8635_v15, %v8635_v15 }
 0x690   :  { %v3229_v35 = vpop.permute.xlu0 %3228 }
 0x691   :  { %v3233_v6 = vpop.permute.xlu1 %3232  ;;  %v3231_v60 = vpop.permute.xlu2 %3230  ;;  %v8610_v43 = vsel %vm986_vm0, %v3227_v38, %v3229_v35 }
 0x692   :  { %v3259_v2 = vsel %vm986_vm0, %v3229_v35, %v3231_v60  ;;  %v3389_v57 = vmul.f32 %v8610_v43, %v8610_v43  ;;  %v3335_v52 = vmul.f32 %v8610_v43, %v9973_v49  ;;  %v8646_v37 = vsel %vm986_vm0, %v3233_v6, %v3235_v55 }
 0x693   :  { %v8618_v46 = vsel %vm3296_vm6, %v3259_v2, 0.0  ;;  %v8649_v21 = vsel %vm986_vm0, 0.0, %v3233_v6  ;;  %v3392_v22 = vmul.f32 %v8646_v37, %v8646_v37  ;;  %v3338_v14 = vmul.f32 %v8646_v37, %v9972_v62 }
 0x694   :  { %v3390_v30 = vmul.f32 %v8618_v46, %v8618_v46  ;;  %v3413_v24 = vmul.f32 %v3389_v57, %v9973_v49  ;;  %v3336_v18 = vmul.f32 %v8618_v46, %v6208_v5  ;;  %v3391_v54 = vmul.f32 %v8649_v21, %v8649_v21 }
 0x695   :  { %v3337_v55 = vmul.f32 %v8649_v21, %v9971_v17  ;;  %v3384_v2 = vmul.f32 %v8597_v34, %v8597_v34  ;;  %v3393_v57 = vmul.f32 %v8660_v13, %v8660_v13 }
 0x698   :  { %v3225_v19 = vpop.permute.xlu0 %3224 }
 0x699   :  { %v8621_v20 = vsel %vm986_vm0, %v3225_v19, %v3227_v38  ;;  %v8624_v61 = vsel %vm986_vm0, 0.0, %v3225_v19  ;;  %v3223_v4 = vpop.permute.xlu1 %3222 }
 0x69a   :  { %v3333_v11 = vmul.f32 %v8624_v61, %v9971_v17  ;;  %v3334_v7 = vmul.f32 %v8621_v20, %v9972_v62  ;;  %v3387_v28 = vmul.f32 %v8624_v61, %v8624_v61  ;;  %v3388_v0 = vmul.f32 %v8621_v20, %v8621_v20 }
 0x69b   :  { %v3256_v40 = vsel %vm986_vm0, %v3221_v53, %v3223_v4  ;;  %v3414_v53 = vmul.f32 %v3390_v30, %v6208_v5  ;;  %v3415_v4 = vmul.f32 %v3391_v54, %v9971_v17 }
 0x69c   :  { %v3360_v31 = vadd.f32 %v3334_v7, %v3333_v11  ;;  %v3411_v47 = vmul.f32 %v3387_v28, %v9971_v17  ;;  %v3412_v48 = vmul.f32 %v3388_v0, %v9972_v62  ;;  %v8643_v27 = vsel %vm3296_vm6, %v3256_v40, 0.0 }
 0x69d   :  { %v3332_v3 = vmul.f32 %v8643_v27, %v6208_v5  ;;  %v3416_v11 = vmul.f32 %v3392_v22, %v9972_v62  ;;  %v8706_v7 = vsel %vm986_vm0, %v8590_v63, %v8586_v51  ;;  %v3421_v28 = vmul.f32 %v3397_v1, %v9973_v49 }
 0x69e   :  { %v3361_v32 = vadd.f32 %v3360_v31, %v3335_v52  ;;  %v3438_v25 = vadd.f32 %v3412_v48, %v3411_v47  ;;  %v3365_v0 = vadd.f32 %v3338_v14, %v3337_v55  ;;  %v8712_v40 = vsel %vm986_vm0, %v8586_v51, %v8588_v39 }
 0x69f   :  { %v3357_v8 = vadd.f32 %v3356_v44, %v3332_v3  ;;  %v3385_v44 = vmul.f32 %v8607_v26, %v8607_v26  ;;  %v3407_v47 = vmul.f32 %v3383_v12, %v9971_v17  ;;  %v3339_v48 = vmul.f32 %v8660_v13, %v9973_v49 }
 0x6a0   :  { %v3241_v16 = vpop.permute.xlu0 %3240  ;;  %v3362_v56 = vadd.f32 %v3361_v32, %v3336_v18  ;;  %v3439_v9 = vadd.f32 %v3438_v25, %v3413_v24  ;;  %v3326_v51 = vmul.f32 %v8706_v7, %v9972_v62  ;;  %v3417_v18 = vmul.f32 %v3393_v57, %v9973_v49 }
 0x6a1   :  { %3358 = vadd.xlane.f32.xlu0 %v3357_v8  ;;  %v8669_v45 = vsel %vm986_vm0, %v3241_v16, %v3243_v58  ;;  %v8672_v38 = vsel %vm986_vm0, 0.0, %v3241_v16  ;;  %v3247_v41 = vpop.permute.xlu1 %3246  ;;  %v8685_v58 = vsel %vm986_vm0, 0.0, %v8590_v63  ;;  %v3408_v63 = vmul.f32 %v3384_v2, %v9972_v62 }
 0x6a2   :  { %v3395_v35 = vmul.f32 %v8672_v38, %v8672_v38  ;;  %v3396_v6 = vmul.f32 %v8669_v45, %v8669_v45  ;;  %3363 = vadd.xlane.f32.xlu2 %v3362_v56  ;;  %v3265_v23 = vsel %vm986_vm0, %v3245_v29, %v3247_v41  ;;  %v3440_v60 = vadd.f32 %v3439_v9, %v3414_v53 }
 0x6a3   :  { %v8695_v19 = vsel %vm3296_vm6, %v3265_v23, 0.0  ;;  %v3325_v31 = vmul.f32 %v8685_v58, %v9971_v17  ;;  %v3443_v25 = vadd.f32 %v3416_v11, %v3415_v4  ;;  %v3386_v8 = vmul.f32 %v8643_v27, %v8643_v27 }
 0x6a4   :  { %v3419_v36 = vmul.f32 %v3395_v35, %v9971_v17  ;;  %v3420_v10 = vmul.f32 %v3396_v6, %v9972_v62  ;;  %v3398_v29 = vmul.f32 %v8695_v19, %v8695_v19  ;;  %3441 = vadd.xlane.f32.xlu1 %v3440_v60  ;;  %v3366_v16 = vadd.f32 %v3365_v0, %v3339_v48  ;;  %v3205_v35 = vpop.permute.xlu2 %3204 }
 0x6a5   :  { %v3341_v56 = vmul.f32 %v8672_v38, %v9971_v17  ;;  %v3342_v9 = vmul.f32 %v8669_v45, %v9972_v62  ;;  %v3327_v41 = vmul.f32 %v8712_v40, %v9973_v49  ;;  %v3433_v55 = vadd.f32 %v3408_v63, %v3407_v47 }
 0x6a6   :  { %v3448_v52 = vadd.f32 %v3420_v10, %v3419_v36  ;;  %v3422_v3 = vmul.f32 %v3398_v29, %v6208_v5  ;;  %v8745_v14 = vsel %vm986_vm0, 0.0, %v8592_v50  ;;  %v3444_v23 = vadd.f32 %v3443_v25, %v3417_v18 }
 0x6a7   :  { %v3409_v60 = vmul.f32 %v3385_v44, %v9973_v49  ;;  %v3379_v2 = vmul.f32 %v8685_v58, %v8685_v58  ;;  %v8754_v36 = vsel %vm986_vm0, %v8592_v50, %v8584_v33  ;;  %v3410_v10 = vmul.f32 %v3386_v8, %v6208_v5 }
 0x6a8   :  { %v3239_v30 = vpop.permute.xlu0 %3238  ;;  %v3449_v24 = vadd.f32 %v3448_v52, %v3421_v28  ;;  %v3350_v57 = vadd.f32 %v3326_v51, %v3325_v31  ;;  %v3370_v4 = vadd.f32 %v3342_v9, %v3341_v56  ;;  %v3380_v28 = vmul.f32 %v8706_v7, %v8706_v7 }
 0x6a9   :  { %v3262_v32 = vsel %vm986_vm0, %v8594_v59, %v3239_v30  ;;  %v3207_v53 = vpop.permute.xlu1 %3206  ;;  %v3375_v0 = vmul.f32 %v8745_v14, %v8745_v14  ;;  %v8764_v52 = vsel %vm986_vm0, %v8584_v33, %v3205_v35  ;;  %v3434_v44 = vadd.f32 %v3433_v55, %v3409_v60 }
 0x6aa   :  { %v8731_v1 = vsel %vm3296_vm6, %v3262_v32, 0.0  ;;  %v3450_v54 = vadd.f32 %v3449_v24, %v3422_v3  ;;  %v3250_v11 = vsel %vm986_vm0, %v3205_v35, %v3207_v53  ;;  %v3321_v31 = vmul.f32 %v8745_v14, %v9971_v17 }
 0x6ab   :  { %v3340_v22 = vmul.f32 %v8731_v1, %v6208_v5  ;;  %v3394_v59 = vmul.f32 %v8731_v1, %v8731_v1  ;;  %v3376_v47 = vmul.f32 %v8754_v36, %v8754_v36  ;;  %v3343_v63 = vmul.f32 %v8635_v15, %v9973_v49 }
 0x6ac   :  { %3451 = vadd.xlane.f32.xlu2 %v3450_v54  ;;  %v3322_v30 = vmul.f32 %v8754_v36, %v9972_v62  ;;  %v8777_v33 = vsel %vm3296_vm6, %v3250_v11, 0.0  ;;  %v3435_v24 = vadd.f32 %v3434_v44, %v3410_v10  ;;  %v3377_v51 = vmul.f32 %v8764_v52, %v8764_v52 }
 0x6ad   :  { %v3367_v6 = vadd.f32 %v3366_v16, %v3340_v22  ;;  %v3418_v12 = vmul.f32 %v3394_v59, %v6208_v5  ;;  %v3351_v32 = vadd.f32 %v3350_v57, %v3327_v41  ;;  %v3371_v25 = vadd.f32 %v3370_v4, %v3343_v63 }
 0x6ae   :  { %v3404_v8 = vmul.f32 %v3380_v28, %v9972_v62  ;;  %v3399_v54 = vmul.f32 %v3375_v0, %v9971_v17  ;;  %v3323_v16 = vmul.f32 %v8764_v52, %v9973_v49  ;;  %v3400_v56 = vmul.f32 %v3376_v47, %v9972_v62 }
 0x6af   :  { %3368 = vadd.xlane.f32.xlu1 %v3367_v6  ;;  %v3445_v29 = vadd.f32 %v3444_v23, %v3418_v12  ;;  %v3344_v9 = vmul.f32 %v8695_v19, %v6208_v5  ;;  %v3378_v22 = vmul.f32 %v8777_v33, %v8777_v33  ;;  %v3345_v41 = vadd.f32 %v3322_v30, %v3321_v31 }
 0x6b0   :  { %v3215_v50 = vpop.permute.xlu0 %3214  ;;  %v3324_v53 = vmul.f32 %v8777_v33, %v6208_v5  ;;  %v3381_v55 = vmul.f32 %v8712_v40, %v8712_v40  ;;  %v3401_v35 = vmul.f32 %v3377_v51, %v9973_v49 }
 0x6b1   :  { %v3253_v48 = vsel %vm986_vm0, %v8588_v39, %v3215_v50  ;;  %3446 = vadd.xlane.f32.xlu0 %v3445_v29  ;;  %v3403_v39 = vmul.f32 %v3379_v2, %v9971_v17  ;;  %v3372_v12 = vadd.f32 %v3371_v25, %v3344_v9  ;;  %v3346_v23 = vadd.f32 %v3345_v41, %v3323_v16  ;;  %v3304_v41 = vld [vmem:[%s9559_s10 + $0x8] sm:$0xff] }
 0x6b2   :  { %v8780_v3 = vsel %vm3296_vm6, %v3253_v48, 0.0  ;;  %v3402_v60 = vmul.f32 %v3378_v22, %v6208_v5  ;;  %v3423_v2 = vadd.f32 %v3400_v56, %v3399_v54  ;;  %v3405_v4 = vmul.f32 %v3381_v55, %v9973_v49  ;;  %v3303_v22 = vld [vmem:[%s9559_s10] sm:$0xff]  ;;  %v3306_v55 = vld [vmem:[%s9559_s10 + $0x18] sm:$0xff] }
 0x6b3   :  { %v3328_v18 = vmul.f32 %v8780_v3, %v6208_v5  ;;  %v3382_v6 = vmul.f32 %v8780_v3, %v8780_v3  ;;  %v3428_v10 = vadd.f32 %v3404_v8, %v3403_v39  ;;  %v3347_v57 = vadd.f32 %v3346_v23, %v3324_v53  ;;  %v3305_v53 = vld [vmem:[%s9559_s10 + $0x10] sm:$0xff] }
 0x6b4   :  { %3436 = vadd.xlane.f32.xlu2 %v3435_v24  ;;  %v3424_v11 = vadd.f32 %v3423_v2, %v3401_v35  ;;  %v3307_v35 = vld [vmem:[%s9559_s10 + $0x20] sm:$0xff] }
 0x6b5   :  { %v3352_v59 = vadd.f32 %v3351_v32, %v3328_v18  ;;  %v3406_v29 = vmul.f32 %v3382_v6, %v6208_v5  ;;  %v3429_v0 = vadd.f32 %v3428_v10, %v3405_v4  ;;  %v3308_v6 = vld [vmem:[%s9559_s10 + $0x28] sm:$0xff] }
 0x6b6   :  { %v3425_v28 = vadd.f32 %v3424_v11, %v3402_v60 }
 0x6b7   :  { %3353 = vadd.xlane.f32.xlu1 %v3352_v59  ;;  %v3430_v50 = vadd.f32 %v3429_v0, %v3406_v29 }
 0x6b9   :  { %3373 = vadd.xlane.f32.xlu0 %v3372_v12 }
 0x6bc   :  { %3348 = vadd.xlane.f32.xlu2 %v3347_v57 }
 0x6bf   :  { %3426 = vadd.xlane.f32.xlu1 %v3425_v28 }
 0x6c1   :  { %3431 = vadd.xlane.f32.xlu0 %v3430_v50 }
 0x714   :  { %v3359_v47 = vpop.xlane.xlu0 %3358 }
 0x715   :  { %v3364_v44 = vpop.xlane.xlu2 %3363 }
 0x717   :  { %v3442_v31 = vpop.xlane.xlu1 %3441 }
 0x718   :  { %v3456_v39 = vsel %vm986_vm0, %v3364_v44, %v3442_v31 }
 0x71f   :  { %v3452_v63 = vpop.xlane.xlu2 %3451 }
 0x722   :  { %v3369_v48 = vpop.xlane.xlu1 %3368 }
 0x724   :  { %v3447_v30 = vpop.xlane.xlu0 %3446 }
 0x725   :  { %v3457_v25 = vsel %vm986_vm0, %v3369_v48, %v3447_v30 }
 0x727   :  { %v3437_v51 = vpop.xlane.xlu2 %3436 }
 0x728   :  { %v3455_v8 = vsel %vm986_vm0, %v3359_v47, %v3437_v51 }
 0x72a   :  { %v3354_v24 = vpop.xlane.xlu1 %3353 }
 0x72c   :  { %v3374_v18 = vpop.xlane.xlu0 %3373 }
 0x72d   :  { %v3458_v32 = vsel %vm986_vm0, %v3374_v18, %v3452_v63 }
 0x72e   :  { %3488 = vmatpush.msra.mxu3 %v3458_v32 }
 0x72f   :  { %v3349_v9 = vpop.xlane.xlu2 %3348 }
 0x730   :  { %3489 = vmatpush.msra.mxu3 %v3457_v25 }
 0x732   :  { %3490 = vmatpush.msra.mxu3 %v3456_v39  ;;  %v3427_v54 = vpop.xlane.xlu1 %3426 }
 0x733   :  { %v3453_v59 = vsel %vm986_vm0, %v3349_v9, %v3427_v54 }
 0x734   :  { %v3432_v16 = vpop.xlane.xlu0 %3431  ;;  %3491 = vmatpush.msra.mxu3 %v3455_v8 }
 0x735   :  { %v3454_v56 = vsel %vm986_vm0, %v3354_v24, %v3432_v16 }
 0x736   :  { %3492 = vmatpush.msra.mxu3 %v3454_v56 }
 0x738   :  { %3493 = vmatpush.msra.mxu3 %v3453_v59 }
 0x739   :  { %4931 = vmatmul.msk.f32.vlgmr.msra.gmra.mxu3 %vm3459_vm7, %v3303_v22 }
 0x741   :  { %4932 = vmatmul.msk.f32.gmra.mxu3 %vm3459_vm7, %v3304_v41 }
 0x749   :  { %4933 = vmatmul.msk.f32.gmra.mxu3 %vm3459_vm7, %v3305_v53 }
 0x751   :  { %4934 = vmatmul.msk.f32.gmra.mxu3 %vm3459_vm7, %v3306_v55 }
 0x759   :  { %4935 = vmatmul.msk.f32.gmra.mxu3 %vm3459_vm7, %v3307_v35 }
 0x761   :  { %4936 = vmatmul.msk.f32.gmra.mxu3 %vm3459_vm7, %v3308_v6 }
 0x7bc   :  { %v3495_v12 = vpop.f32.mrf.mxu3 }
 0x7bd   :  { %v8853_v48 = vmul.f32 0.00066666666, %v3495_v12 }
 0x7bf   :  { %v3519_v30 = vmul.f32 %v8853_v48, %v8853_v48 }
 0x7c4   :  { %v3498_v23 = vpop.f32.mrf.mxu3 }
 0x7c5   :  { %v8842_v28 = vmul.f32 0.00066666666, %v3498_v23 }
 0x7c7   :  { %v3520_v44 = vmul.f32 %v8842_v28, %v8842_v28 }
 0x7cc   :  { %v3501_v60 = vpop.f32.mrf.mxu3 }
 0x7cd   :  { %v8848_v47 = vmul.f32 0.00066666666, %v3501_v60 }
 0x7cf   :  { %v3521_v63 = vmul.f32 %v8848_v47, %v8848_v47 }
 0x7d4   :  { %v3504_v2 = vpop.f32.mrf.mxu3 }
 0x7d5   :  { %v8836_v10 = vmul.f32 0.00066666666, %v3504_v2 }
 0x7d7   :  { %v3522_v57 = vmul.f32 %v8836_v10, %v8836_v10 }
 0x7d9   :  { %3537 = vrot.lane.b32.xlu1 %v3522_v57, %s5694_s30 }
 0x7dc   :  { %v3507_v4 = vpop.f32.mrf.mxu3 }
 0x7dd   :  { %v3517_v11 = vmul.f32 0.00066666666, %v3507_v4 }
 0x7df   :  { %v3523_v29 = vmul.f32 %v3517_v11, %v3517_v11 }
 0x7e1   :  { %3539 = vrot.lane.b32.xlu2 %v3523_v29, %s5694_s30 }
 0x7e4   :  { %v3510_v0 = vpop.f32.mrf.mxu3 }
 0x7e5   :  { %v3518_v50 = vmul.f32 0.00066666666, %v3510_v0 }
 0x7e7   :  { %v3524_v31 = vmul.f32 %v3518_v50, %v3518_v50  ;;  %3582 = vperm.xlu1 %4964, %v3518_v50  }
 0x7e9   :  { %3533 = vrot.lane.b32.xlu2 %v3520_v44, %s5694_s30  ;;  %3541 = vrot.lane.b32.xlu0 %v3524_v31, %s5694_s30 }
 0x7f1   :  { %3577 = vperm.xlu2 %4965, %v3517_v11   ;;  %3535 = vrot.lane.b32.xlu0 %v3521_v63, %s5694_s30 }
 0x7f9   :  { %3531 = vrot.lane.b32.xlu0 %v3519_v30, %s5694_s30 }
 0x83b   :  { %v3540_v24 = vpop.permute.xlu2 %3539 }
 0x83c   :  { %v3553_v51 = vsub.f32 %v3517_v11, %v3540_v24 }
 0x83e   :  { %v3613_v18 = vadd.f32 1e-05, %v3553_v51 }
 0x840   :  { %5635 = vrsqrt.f32 %v3613_v18  ;;  %vm3661_vm12 = vweird.f32 %v3613_v18 }
 0x843   :  { %v3534_v32 = vpop.permute.xlu2 %3533 }
 0x844   :  { %v3550_v25 = vsub.f32 %v8842_v28, %v3534_v32 }
 0x846   :  { %v3610_v39 = vadd.f32 1e-05, %v3550_v25  ;;  %v5636_v8 = vpop.eup %5635 }
 0x847   :  { %v3656_v54 = vmul.f32 %v5636_v8, %v3613_v18  ;;  %vm3662_vm11 = vweird.f32 %v5636_v8 }
 0x848   :  { %5637 = vrsqrt.f32 %v3610_v39  ;;  %vm3631_vm9 = vweird.f32 %v3610_v39  ;;  %vm3663_vm13 = vmor %vm3661_vm12, %vm3662_vm11 }
 0x849   :  { %v3657_v9 = vmul.f32 %v5636_v8, %v3656_v54 }
 0x84b   :  { %v3658_v41 = vmul.f32 0.5, %v3657_v9  ;;  %v3538_v57 = vpop.permute.xlu1 %3537 }
 0x84c   :  { %v3552_v29 = vsub.f32 %v8836_v10, %v3538_v57 }
 0x84d   :  { %v3659_v35 = vsub.f32 1.5, %v3658_v41 }
 0x84e   :  { %v5638_v16 = vpop.eup %5637  ;;  %v3612_v31 = vadd.f32 1e-05, %v3552_v29 }
 0x84f   :  { %v3626_v56 = vmul.f32 %v5638_v16, %v3610_v39  ;;  %vm3632_vm8 = vweird.f32 %v5638_v16  ;;  %v3660_v60 = vmul.f32 %v5636_v8, %v3659_v35 }
 0x850   :  { %vm3633_vm10 = vmor %vm3631_vm9, %vm3632_vm8  ;;  %vm3651_vm12 = vweird.f32 %v3612_v31 }
 0x851   :  { %v3627_v22 = vmul.f32 %v5638_v16, %v3626_v56  ;;  %v3664_v4 = vsel %vm3663_vm13, %v5636_v8, %v3660_v60 }
 0x853   :  { %v3628_v59 = vmul.f32 0.5, %v3627_v22 }
 0x855   :  { %v3629_v53 = vsub.f32 1.5, %v3628_v59 }
 0x857   :  { %v3630_v55 = vmul.f32 %v5638_v16, %v3629_v53 }
 0x859   :  { %v3634_v6 = vsel %vm3633_vm10, %v5638_v16, %v3630_v55 }
 0x85a   :  { %3683 = vrot.lane.b32.xlu2 %v3634_v6, %s5695_s5 }
 0x85b   :  { %v3542_v12 = vpop.permute.xlu0 %3541 }
 0x85c   :  { %v3554_v23 = vsub.f32 %v3518_v50, %v3542_v12  ;;  %v3316_v50 = vld [vmem:[%s9558_s9 + $0x8] sm:$0xff] }
 0x85e   :  { %v3614_v2 = vadd.f32 1e-05, %v3554_v23 }
 0x860   :  { %5639 = vrsqrt.f32 %v3614_v2  ;;  %vm3671_vm6 = vweird.f32 %v3614_v2 }
 0x862   :  { %3689 = vrot.lane.b32.xlu2 %v3664_v4, %s5695_s5 }
 0x863   :  { %v3536_v11 = vpop.permute.xlu0 %3535 }
 0x864   :  { %v3551_v0 = vsub.f32 %v8848_v47, %v3536_v11 }
 0x866   :  { %v3611_v44 = vadd.f32 1e-05, %v3551_v0  ;;  %v5640_v63 = vpop.eup %5639 }
 0x867   :  { %v3666_v51 = vmul.f32 %v5640_v63, %v3614_v2  ;;  %vm3672_vm2 = vweird.f32 %v5640_v63  ;;  %v3320_v2 = vld [vmem:[%s9558_s9 + $0x28] sm:$0xff] }
 0x868   :  { %5641 = vrsqrt.f32 %v3611_v44  ;;  %vm3641_vm15 = vweird.f32 %v3611_v44  ;;  %vm3673_vm9 = vmor %vm3671_vm6, %vm3672_vm2  ;;  %vm4524_vm2 = vcmask 15360  }
 0x869   :  { %5643 = vrsqrt.f32 %v3612_v31  ;;  %v3667_v39 = vmul.f32 %v5640_v63, %v3666_v51 }
 0x86a   :  { %3766 = vperm.xlu2 %4965, %v3316_v50  }
 0x86b   :  { %v3532_v30 = vpop.permute.xlu0 %3531  ;;  %v3668_v9 = vmul.f32 0.5, %v3667_v39  ;;  %v3314_v39 = vld [vmem:[%s9557_s8 + $0x28] sm:$0xff] }
 0x86c   :  { %v3549_v24 = vsub.f32 %v8853_v48, %v3532_v30 }
 0x86d   :  { %v3669_v35 = vsub.f32 1.5, %v3668_v9 }
 0x86e   :  { %v5642_v18 = vpop.eup %5641  ;;  %v3609_v32 = vadd.f32 1e-05, %v3549_v24  ;;  %v3310_v24 = vld [vmem:[%s9557_s8 + $0x8] sm:$0xff] }
 0x86f   :  { %v3636_v25 = vmul.f32 %v5642_v18, %v3611_v44  ;;  %v5644_v54 = vpop.eup %5643  ;;  %vm3642_vm14 = vweird.f32 %v5642_v18  ;;  %v3670_v4 = vmul.f32 %v5640_v63, %v3669_v35 }
 0x870   :  { %5645 = vrsqrt.f32 %v3609_v32  ;;  %v3646_v56 = vmul.f32 %v5644_v54, %v3612_v31  ;;  %vm3643_vm1 = vmor %vm3641_vm15, %vm3642_vm14  ;;  %vm3621_vm8 = vweird.f32 %v3609_v32  ;;  %vm3652_vm11 = vweird.f32 %v5644_v54  ;;  %v3317_v31 = vld [vmem:[%s9558_s9 + $0x10] sm:$0xff] }
 0x871   :  { %v3637_v8 = vmul.f32 %v5642_v18, %v3636_v25  ;;  %v3674_v0 = vsel %vm3673_vm9, %v5640_v63, %v3670_v4  ;;  %vm3653_vm13 = vmor %vm3651_vm12, %vm3652_vm11  ;;  %v3319_v63 = vld [vmem:[%s9558_s9 + $0x20] sm:$0xff]  ;;  %vm4760_vm9 = vcmask 1040384  }
 0x872   :  { %v3647_v55 = vmul.f32 %v5644_v54, %v3646_v56 }
 0x873   :  { %v3638_v16 = vmul.f32 0.5, %v3637_v8  ;;  %v3309_v8 = vld [vmem:[%s9557_s8] sm:$0xff] }
 0x874   :  { %v3648_v60 = vmul.f32 0.5, %v3647_v55  ;;  %v3313_v55 = vld [vmem:[%s9557_s8 + $0x20] sm:$0xff] }
 0x875   :  { %v3639_v22 = vsub.f32 1.5, %v3638_v16 }
 0x876   :  { %v5646_v59 = vpop.eup %5645  ;;  %v3649_v29 = vsub.f32 1.5, %v3648_v60 }
 0x877   :  { %v3616_v41 = vmul.f32 %v5646_v59, %v3609_v32  ;;  %v3640_v53 = vmul.f32 %v5642_v18, %v3639_v22  ;;  %vm3622_vm3 = vweird.f32 %v5646_v59  ;;  %v3312_v22 = vld [vmem:[%s9557_s8 + $0x18] sm:$0xff] }
 0x878   :  { %vm3623_vm10 = vmor %vm3621_vm8, %vm3622_vm3  ;;  %v3650_v50 = vmul.f32 %v5644_v54, %v3649_v29 }
 0x879   :  { %v3617_v6 = vmul.f32 %v5646_v59, %v3616_v41  ;;  %v3644_v12 = vsel %vm3643_vm1, %v5642_v18, %v3640_v53  ;;  %v8892_v18 = vpop.permute.xlu1 %3582  ;;  %v3315_v41 = vld [vmem:[%s9558_s9] sm:$0xff] }
 0x87a   :  { %3685 = vrot.lane.b32.xlu1 %v3644_v12, %s5695_s5  ;;  %v3654_v30 = vsel %vm3653_vm13, %v5644_v54, %v3650_v50 }
 0x87b   :  { %v3618_v23 = vmul.f32 0.5, %v3617_v6 }
 0x87d   :  { %v3619_v57 = vsub.f32 1.5, %v3618_v23 }
 0x87f   :  { %v3620_v11 = vmul.f32 %v5646_v59, %v3619_v57 }
 0x881   :  { %v3624_v44 = vsel %vm3623_vm10, %v5646_v59, %v3620_v11 }
 0x882   :  { %3691 = vrot.lane.b32.xlu1 %v3674_v0, %s5695_s5  ;;  %3681 = vrot.lane.b32.xlu0 %v3624_v44, %s5695_s5 }
 0x88a   :  { %3572 = vperm.xlu1 %4964, %v8836_v10   ;;  %3687 = vrot.lane.b32.xlu0 %v3654_v30, %s5695_s5  ;;  %v3318_v10 = vld [vmem:[%s9558_s9 + $0x18] sm:$0xff] }
 0x892   :  { %3567 = vperm.xlu1 %4964, %v8848_v47   ;;  %3786 = vperm.xlu0 %4963, %v3320_v2   ;;  %v8887_v47 = vpop.permute.xlu2 %3577 }
 0x89a   :  { %3562 = vperm.xlu1 %4964, %v8842_v28   ;;  %3781 = vperm.xlu0 %4963, %v3319_v63  }
 0x8a2   :  { %3557 = vperm.xlu1 %4964, %v8853_v48   ;;  %3776 = vperm.xlu0 %4963, %v3318_v10   ;;  %v3311_v48 = vld [vmem:[%s9557_s8 + $0x10] sm:$0xff] }
 0x8aa   :  { %3771 = vperm.xlu0 %4963, %v3317_v31  }
 0x8b4   :  { %v3684_v28 = vpop.permute.xlu2 %3683 }
 0x8b5   :  { %v3700_v51 = vmul.f32 %v3684_v28, %v3310_v24 }
 0x8b7   :  { %3712 = vperm.xlu2 %4965, %v3700_v51  }
 0x8bc   :  { %v3690_v35 = vpop.permute.xlu2 %3689 }
 0x8bd   :  { %v3703_v6 = vmul.f32 %v3690_v35, %v3313_v55 }
 0x8c4   :  { %v8916_v60 = vpop.permute.xlu2 %3766 }
 0x8ec   :  { %v3686_v32 = vpop.permute.xlu1 %3685 }
 0x8ed   :  { %v3701_v25 = vmul.f32 %v3686_v32, %v3311_v48  ;;  %v3601_v48 = vsub.f32 %v8649_v21, %v8887_v47  ;;  %v3602_v32 = vsub.f32 %v8646_v37, %v8887_v47  ;;  %v3607_v21 = vsub.f32 %v8635_v15, %v8892_v18 }
 0x8ee   :  { %v3608_v37 = vsub.f32 %v8695_v19, %v8892_v18 }
 0x8ef   :  { %3717 = vperm.xlu2 %4965, %v3701_v25   ;;  %v3603_v25 = vsub.f32 %v8660_v13, %v8887_v47 }
 0x8f4   :  { %v3692_v54 = vpop.permute.xlu1 %3691  ;;  %v3682_v16 = vpop.permute.xlu0 %3681 }
 0x8f5   :  { %v3704_v56 = vmul.f32 %v3692_v54, %v3314_v39  ;;  %v3699_v9 = vmul.f32 %v3682_v16, %v3309_v8  ;;  %v3604_v39 = vsub.f32 %v8731_v1, %v8887_v47  ;;  %v3605_v8 = vsub.f32 %v8672_v38, %v8892_v18 }
 0x8f6   :  { %v3606_v16 = vsub.f32 %v8669_v45, %v8892_v18 }
 0x8f7   :  { %3732 = vperm.xlu0 %4963, %v3704_v56   ;;  %3707 = vperm.xlu1 %4964, %v3699_v9  }
 0x8fc   :  { %v3688_v59 = vpop.permute.xlu0 %3687  ;;  %v3573_v57 = vpop.permute.xlu1 %3572 }
 0x8fd   :  { %v3702_v53 = vmul.f32 %v3688_v59, %v3312_v22  ;;  %v3597_v9 = vsub.f32 %v8624_v61, %v3573_v57  ;;  %v3598_v22 = vsub.f32 %v8621_v20, %v3573_v57  ;;  %v3599_v15 = vsub.f32 %v8610_v43, %v3573_v57 }
 0x8fe   :  { %v3600_v55 = vsub.f32 %v8618_v46, %v3573_v57 }
 0x8ff   :  { %3761 = vperm.xlu0 %4963, %v3315_v41   ;;  %3722 = vperm.xlu2 %4965, %v3702_v53  }
 0x904   :  { %v8912_v12 = vpop.permute.xlu0 %3786  ;;  %v3568_v29 = vpop.permute.xlu1 %3567 }
 0x905   :  { %v3593_v0 = vsub.f32 %v8600_v42, %v3568_v29  ;;  %v3594_v44 = vsub.f32 %v8597_v34, %v3568_v29  ;;  %v3595_v35 = vsub.f32 %v8607_v26, %v3568_v29  ;;  %v3596_v61 = vsub.f32 %v8643_v27, %v3568_v29 }
 0x907   :  { %3727 = vperm.xlu2 %4965, %v3703_v6  }
 0x90c   :  { %v8914_v23 = vpop.permute.xlu0 %3781  ;;  %v8940_v51 = vpop.permute.xlu1 %3562 }
 0x90d   :  { %v3589_v54 = vsub.f32 %v8685_v58, %v8940_v51  ;;  %v3591_v13 = vsub.f32 %v8712_v40, %v8940_v51  ;;  %v3592_v1 = vsub.f32 %v8780_v3, %v8940_v51  ;;  %v3590_v43 = vsub.f32 %v8706_v7, %v8940_v51 }
 0x911   :  { %v8918_v4 = vpop.permute.xlu2 %3712 }
 0x912   :  { %v3739_v38 = vmul.f32 %v8918_v4, %v3589_v54  ;;  %v3741_v59 = vmul.f32 %v8918_v4, %v3591_v13  ;;  %v3742_v19 = vmul.f32 %v8918_v4, %v3592_v1  ;;  %v3740_v45 = vmul.f32 %v8918_v4, %v3590_v43 }
 0x914   :  { %v8920_v11 = vpop.permute.xlu0 %3776  ;;  %v8970_v41 = vpop.permute.xlu1 %3557  ;;  %v8987_v46 = vadd.f32 %v8916_v60, %v3741_v59  ;;  %v3794_v51 = vadd.f32 %v8916_v60, %v3740_v45 }
 0x915   :  { %v3585_v26 = vsub.f32 %v8745_v14, %v8970_v41 }
 0x916   :  { %v3819_v7 = vmul.f32 %v8987_v46, %v9973_v49 }
 0x91c   :  { %v8924_v63 = vpop.permute.xlu0 %3771 }
 0x949   :  { %v3718_v50 = vpop.permute.xlu2 %3717 }
 0x94a   :  { %v3743_v30 = vmul.f32 %v3718_v50, %v3593_v0  ;;  %v3744_v2 = vmul.f32 %v3718_v50, %v3594_v44  ;;  %v8984_v44 = vadd.f32 %v8916_v60, %v3739_v38 }
 0x94c   :  { %v3797_v10 = vadd.f32 %v8924_v63, %v3743_v30  ;;  %v3798_v31 = vadd.f32 %v8924_v63, %v3744_v2  ;;  %v3745_v30 = vmul.f32 %v3718_v50, %v3595_v35 }
 0x94e   :  { %v8929_v24 = vmul.f32 %v3797_v10, %v9971_v17  ;;  %v8932_v28 = vmul.f32 %v3798_v31, %v9972_v62  ;;  %v8996_v31 = vadd.f32 %v8916_v60, %v3742_v19 }
 0x950   :  { %v8936_v42 = vpack.i.bf16 %v8932_v28, %v8929_v24  ;;  %v3820_v4 = vmul.f32 %v8996_v31, %v6208_v5 }
 0x952   :  { %5302 = vrot.lane.b32.xlu2 %v8936_v42, %s5695_s5 }
 0x959   :  { %v3723_v34 = vpop.permute.xlu2 %3722 }
 0x95a   :  { %v3748_v20 = vmul.f32 %v3723_v34, %v3598_v22  ;;  %v3747_v2 = vmul.f32 %v3723_v34, %v3597_v9  ;;  %v3749_v10 = vmul.f32 %v3723_v34, %v3599_v15 }
 0x95c   :  { %v3802_v13 = vadd.f32 %v8920_v11, %v3748_v20  ;;  %v3803_v9 = vadd.f32 %v8920_v11, %v3749_v10 }
 0x95e   :  { %v3826_v15 = vmul.f32 %v3802_v13, %v9972_v62 }
 0x961   :  { %v3728_v56 = vpop.permute.xlu2 %3727 }
 0x962   :  { %v3751_v47 = vmul.f32 %v3728_v56, %v3601_v48  ;;  %v3752_v58 = vmul.f32 %v3728_v56, %v3602_v32  ;;  %v3754_v40 = vmul.f32 %v3728_v56, %v3604_v39  ;;  %v3586_v48 = vsub.f32 %v8754_v36, %v8970_v41 }
 0x963   :  { %v3746_v32 = vmul.f32 %v3718_v50, %v3596_v61  ;;  %v3750_v39 = vmul.f32 %v3723_v34, %v3600_v55  ;;  %v3753_v54 = vmul.f32 %v3728_v56, %v3603_v25  ;;  %v3799_v36 = vadd.f32 %v8924_v63, %v3745_v30 }
 0x964   :  { %v3805_v53 = vadd.f32 %v8914_v23, %v3751_v47  ;;  %v3806_v3 = vadd.f32 %v8914_v23, %v3752_v58  ;;  %v3808_v27 = vadd.f32 %v8914_v23, %v3754_v40  ;;  %v3587_v47 = vsub.f32 %v8764_v52, %v8970_v41 }
 0x965   :  { %v3801_v58 = vadd.f32 %v8920_v11, %v3747_v2  ;;  %v3807_v52 = vadd.f32 %v8914_v23, %v3753_v54  ;;  %v3804_v56 = vadd.f32 %v8920_v11, %v3750_v39  ;;  %v3800_v22 = vadd.f32 %v8924_v63, %v3746_v32 }
 0x966   :  { %v3829_v6 = vmul.f32 %v3805_v53, %v9971_v17  ;;  %v8981_v0 = vmul.f32 %v3806_v3, %v9972_v62  ;;  %v3832_v50 = vmul.f32 %v3808_v27, %v6208_v5 }
 0x967   :  { %v3825_v63 = vmul.f32 %v3801_v58, %v9971_v17  ;;  %v9033_v30 = vmul.f32 %v3807_v52, %v9973_v49 }
 0x968   :  { %v8993_v29 = vpack.i.bf16 %v8981_v0, %v3829_v6  ;;  %v9028_v11 = vpack.i.bf16 %v3832_v50, %v3826_v15 }
 0x969   :  { %v3733_v57 = vpop.permute.xlu0 %3732  ;;  %v3708_v34 = vpop.permute.xlu1 %3707 }
 0x96a   :  { %v3755_v1 = vmul.f32 %v3733_v57, %v3605_v8  ;;  %v3757_v38 = vmul.f32 %v3733_v57, %v3607_v21  ;;  %v3758_v14 = vmul.f32 %v3733_v57, %v3608_v37  ;;  %5337 = vrot.lane.b32.xlu0 %v8993_v29, %s5696_s1  ;;  %v3588_v37 = vsub.f32 %v8777_v33, %v8970_v41 }
 0x96b   :  { %v3735_v53 = vmul.f32 %v3708_v34, %v3585_v26  ;;  %v3736_v3 = vmul.f32 %v3708_v34, %v3586_v48  ;;  %v3823_v33 = vmul.f32 %v3799_v36, %v9973_v49  ;;  %v3827_v41 = vmul.f32 %v3803_v9, %v9973_v49 }
 0x96c   :  { %v3809_v25 = vadd.f32 %v8912_v12, %v3755_v1  ;;  %v3811_v8 = vadd.f32 %v8912_v12, %v3757_v38  ;;  %v3812_v21 = vadd.f32 %v8912_v12, %v3758_v14  ;;  %v3738_v55 = vmul.f32 %v3708_v34, %v3588_v37 }
 0x96d   :  { %v3737_v2 = vmul.f32 %v3708_v34, %v3587_v47  ;;  %v3756_v10 = vmul.f32 %v3733_v57, %v3606_v16  ;;  %v3828_v26 = vmul.f32 %v3804_v56, %v6208_v5  ;;  %v3824_v16 = vmul.f32 %v3800_v22, %v6208_v5 }
 0x96e   :  { %v9019_v59 = vmul.f32 %v3809_v25, %v9971_v17  ;;  %v9022_v19 = vmul.f32 %v3811_v8, %v9973_v49  ;;  %v3836_v40 = vmul.f32 %v3812_v21, %v6208_v5  ;;  %v3817_v57 = vmul.f32 %v8984_v44, %v9971_v17  ;;  %v3861_v44 = vld [vmem:[%s9561_s12] sm:$0xff] }
 0x96f   :  { %v3810_v54 = vadd.f32 %v8912_v12, %v3756_v10 }
 0x970   :  { %3900 = vmatpush.msrb.mxu0 %v9019_v59  ;;  %3940 = vmatpush.msrb.mxu1 %v9022_v19  ;;  %v5366_v60 = vpack.i.bf16 %v3825_v63, %v3836_v40  ;;  %v5371_v43 = vpack.i.bf16 %v3828_v26, %v9022_v19 }
 0x971   :  { %v3762_v23 = vpop.permute.xlu0 %3761  ;;  %3960 = vmatpush.msrb.mxu2 %v3836_v40  ;;  %v3834_v12 = vmul.f32 %v3810_v54, %v9972_v62 }
 0x972   :  { %v3789_v35 = vadd.f32 %v3762_v23, %v3735_v53  ;;  %v3790_v61 = vadd.f32 %v3762_v23, %v3736_v3  ;;  %v3792_v20 = vadd.f32 %v3762_v23, %v3738_v55  ;;  %5342 = vrot.lane.b32.xlu0 %v9028_v11, %s5696_s1  ;;  %3901 = vmatpush.msrb.mxu0 %v3829_v6 }
 0x973   :  { %3941 = vmatpush.msrb.mxu1 %v9033_v30  ;;  %3961 = vmatpush.msrb.mxu2 %v3832_v50  ;;  %v3791_v18 = vadd.f32 %v3762_v23, %v3737_v2 }
 0x974   :  { %v3813_v27 = vmul.f32 %v3789_v35, %v9971_v17  ;;  %v3814_v48 = vmul.f32 %v3790_v61, %v9972_v62  ;;  %v3816_v32 = vmul.f32 %v3792_v20, %v6208_v5  ;;  %3902 = vmatpush.msrb.mxu0 %v3825_v63 }
 0x975   :  { %3942 = vmatpush.msrb.mxu1 %v3827_v41  ;;  %3962 = vmatpush.msrb.mxu2 %v3828_v26  ;;  %v3815_v17 = vmul.f32 %v3791_v18, %v9973_v49  ;;  %v3862_v49 = vld [vmem:[%s9560_s11] sm:$0xff]  ;;  %v3979_v26 = vld [vmem:[%s9560_s11 + $0x8] sm:$0xff] }
 0x976   :  { %v5306_v6 = vpack.i.bf16 %v3816_v32, %v3823_v33  ;;  %3903 = vmatpush.msrb.mxu0 %v8929_v24  ;;  %v5286_v39 = vpack.i.bf16 %v3814_v48, %v3813_v27  ;;  %v3818_v24 = vmul.f32 %v3794_v51, %v9972_v62  ;;  %v5316_v62 = vpack.i.bf16 %v3820_v4, %v3827_v41 }
 0x977   :  { %3943 = vmatpush.msrb.mxu1 %v3823_v33  ;;  %3963 = vmatpush.msrb.mxu2 %v3824_v16 }
 0x978   :  { %3904 = vmatpush.msrb.mxu0 %v3817_v57  ;;  %5307 = vrot.lane.b32.xlu2 %v5306_v6, %s5695_s5  ;;  %v5291_v5 = vpack.i.bf16 %v3818_v24, %v3817_v57 }
 0x979   :  { %3944 = vmatpush.msrb.mxu1 %v3819_v7  ;;  %3964 = vmatpush.msrb.mxu2 %v3820_v4 }
 0x97a   :  { %5287 = vrot.lane.b32.xlu1 %v5286_v39, %s5695_s5  ;;  %5362 = vrot.lane.b32.xlu0 %v5286_v39, %s5696_s1 }
 0x97b   :  { %3945 = vmatpush.msrb.mxu1 %v3815_v17  ;;  %3965 = vmatpush.msrb.mxu2 %v3816_v32 }
 0x97c   :  { %3905 = vmatpush.msrb.mxu0 %v3813_v27  ;;  %4940 = vmatmul.msk.f32.vlgmr.msrb.gmra.mxu2 %vm3459_vm7, %v3862_v49 }
 0x97d   :  { %4937 = vmatmul.msk.f32.vlgmr.msrb.gmra.mxu0 %vm3459_vm7, %v3862_v49  ;;  %4939 = vmatmul.msk.f32.vlgmr.msrb.gmra.mxu1 %vm3459_vm7, %v3862_v49 }
 0x97e   :  { %3920 = vmatpush.msra.mxu0 %v3834_v12 }
 0x980   :  { %3921 = vmatpush.msra.mxu0 %v8981_v0  ;;  %5312 = vrot.lane.b32.xlu2 %v8936_v42, %s5696_s1  ;;  %v5296_v42 = vpack.i.bf16 %v3815_v17, %v3819_v7  ;;  %v5331_v0 = vpack.i.bf16 %v3824_v16, %v9033_v30 }
 0x982   :  { %3922 = vmatpush.msra.mxu0 %v3826_v15  ;;  %5292 = vrot.lane.b32.xlu1 %v5291_v5, %s5695_s5 }
 0x983   :  { %5367 = vrot.lane.b32.xlu0 %v5366_v60, %s5695_s5 }
 0x984   :  { %3923 = vmatpush.msra.mxu0 %v8932_v28  ;;  %v5376_v28 = vpack.i.bf16 %v3834_v12, %v9019_v59 }
 0x986   :  { %3924 = vmatpush.msra.mxu0 %v3818_v24 }
 0x988   :  { %3925 = vmatpush.msra.mxu0 %v3814_v48  ;;  %5317 = vrot.lane.b32.xlu2 %v5316_v62, %s5695_s5 }
 0x989   :  { %4938 = vmatmul.msk.f32.vlgmr.msra.gmra.mxu0 %vm3459_vm7, %v3862_v49 }
 0x98a   :  { %5297 = vrot.lane.b32.xlu1 %v5296_v42, %s5695_s5 }
 0x98b   :  { %5372 = vrot.lane.b32.xlu0 %v5371_v43, %s5695_s5 }
 0x990   :  { %5322 = vrot.lane.b32.xlu2 %v8993_v29, %s5695_s5 }
 0x992   :  { %5327 = vrot.lane.b32.xlu1 %v9028_v11, %s5695_s5 }
 0x993   :  { %5377 = vrot.lane.b32.xlu0 %v5376_v28, %s5696_s1 }
 0x998   :  { %5332 = vrot.lane.b32.xlu2 %v5331_v0, %s5695_s5 }
 0x99a   :  { %5347 = vrot.lane.b32.xlu1 %v5376_v28, %s5695_s5 }
 0x99b   :  { %5397 = vrot.lane.b32.xlu0 %v5371_v43, %s5696_s1 }
 0x9a0   :  { %5357 = vrot.lane.b32.xlu2 %v5331_v0, %s5696_s1 }
 0x9a2   :  { %5352 = vrot.lane.b32.xlu1 %v5291_v5, %s5696_s1 }
 0x9a3   :  { %5402 = vrot.lane.b32.xlu0 %v5296_v42, %s5696_s1 }
 0x9a8   :  { %5392 = vrot.lane.b32.xlu2 %v5306_v6, %s5696_s1 }
 0x9aa   :  { %5382 = vrot.lane.b32.xlu1 %v5366_v60, %s5696_s1 }
 0x9ac   :  { %v9101_v46 = vpop.permute.xlu2 %5302 }
 0x9ad   :  { %v5305_v18 = vunpack.i.h.bf16 %v9101_v46  ;;  %v5304_v16 = vunpack.i.l.bf16 %v9101_v46 }
 0x9af   :  { %v4058_v60 = vsel %vm2464_vm4, %v5304_v16, %v5305_v18 }
 0x9b2   :  { %5387 = vrot.lane.b32.xlu1 %v5316_v62, %s5696_s1 }
 0x9ba   :  { %3972 = vperm.xlu1 %4964, %v3861_v44  }
 0x9d2   :  { %v9103_v29 = vpop.permute.xlu2 %5307 }
 0x9d3   :  { %v5309_v53 = vunpack.i.l.bf16 %v9103_v29  ;;  %v5310_v63 = vunpack.i.h.bf16 %v9103_v29 }
 0x9d5   :  { %v4059_v49 = vsel %vm2464_vm4, %v5305_v18, %v5309_v53 }
 0x9da   :  { %v9107_v13 = vpop.permute.xlu2 %5312 }
 0x9dc   :  { %v9105_v31 = vpop.permute.xlu0 %5337 }
 0x9dd   :  { %v5340_v46 = vunpack.i.h.bf16 %v9105_v31  ;;  %v5339_v29 = vunpack.i.l.bf16 %v9105_v31 }
 0x9e2   :  { %v9115_v47 = vpop.permute.xlu2 %5317 }
 0x9e3   :  { %v5319_v59 = vunpack.i.l.bf16 %v9115_v47  ;;  %v5320_v33 = vunpack.i.h.bf16 %v9115_v47 }
 0x9e4   :  { %v9109_v1 = vpop.permute.xlu0 %5342 }
 0x9ea   :  { %v5323_v50 = vpop.permute.xlu2 %5322 }
 0x9eb   :  { %v5325_v41 = vunpack.i.h.bf16 %v5323_v50  ;;  %v5324_v20 = vunpack.i.l.bf16 %v5323_v50  ;;  %v5314_v50 = vunpack.i.l.bf16 %v9107_v13 }
 0x9ec   :  { %v9111_v38 = vpop.permute.xlu1 %5287  ;;  %v9113_v14 = vpop.permute.xlu0 %5362 }
 0x9ed   :  { %v4064_v57 = vsel %vm2464_vm4, %v5324_v20, %v5325_v41  ;;  %v5290_v12 = vunpack.i.h.bf16 %v9111_v38  ;;  %v5289_v24 = vunpack.i.l.bf16 %v9111_v38 }
 0x9ef   :  { %v4052_v38 = vsel %vm2464_vm4, %v5289_v24, %v5290_v12 }
 0x9f2   :  { %v5333_v37 = vpop.permute.xlu2 %5332 }
 0x9f3   :  { %v5334_v56 = vunpack.i.l.bf16 %v5333_v37  ;;  %v5335_v19 = vunpack.i.h.bf16 %v5333_v37  ;;  %v4242_v37 = vsel %vm2875_vm5, %v5339_v29, %v5340_v46 }
 0x9f4   :  { %v9117_v58 = vpop.permute.xlu1 %5292 }
 0x9f5   :  { %v5368_v9 = vpop.permute.xlu0 %5367  ;;  %v4060_v11 = vsel %vm2464_vm4, %v5309_v53, %v5335_v19  ;;  %v4065_v39 = vsel %vm2464_vm4, %v5325_v41, %v5334_v56  ;;  %v5295_v54 = vunpack.i.h.bf16 %v9117_v58  ;;  %v5294_v7 = vunpack.i.l.bf16 %v9117_v58 }
 0x9f6   :  { %v5369_v36 = vunpack.i.l.bf16 %v5368_v9  ;;  %v5370_v6 = vunpack.i.h.bf16 %v5368_v9 }
 0x9f7   :  { %v4055_v28 = vsel %vm2464_vm4, %v5294_v7, %v5295_v54 }
 0x9f8   :  { %4167 = vmatpush.msra.mxu2 %v5369_v36 }
 0x9fa   :  { %v9158_v62 = vpop.permute.xlu2 %5357 }
 0x9fb   :  { %v5359_v47 = vunpack.i.l.bf16 %v9158_v62 }
 0x9fc   :  { %v9119_v34 = vpop.permute.xlu1 %5297 }
 0x9fd   :  { %v5373_v25 = vpop.permute.xlu0 %5372  ;;  %v5299_v3 = vunpack.i.l.bf16 %v9119_v34  ;;  %v5300_v35 = vunpack.i.h.bf16 %v9119_v34 }
 0x9fe   :  { %v5374_v8 = vunpack.i.l.bf16 %v5373_v25  ;;  %v5375_v22 = vunpack.i.h.bf16 %v5373_v25  ;;  %v5344_v25 = vunpack.i.l.bf16 %v9109_v1 }
 0x9ff   :  { %v4057_v10 = vsel %vm2464_vm4, %v5299_v3, %v5320_v33  ;;  %v4054_v45 = vsel %vm2464_vm4, %v5300_v35, %v5310_v63  ;;  %v4056_v44 = vsel %vm2464_vm4, %v5295_v54, %v5299_v3  ;;  %v4053_v58 = vsel %vm2464_vm4, %v5290_v12, %v5300_v35  ;;  %v3967_v7 = vpop.f32.mrf.mxu2 }
 0xa00   :  { %v4069_v21 = vsel %vm2464_vm4, %v5374_v8, %v5369_v36  ;;  %v4063_v55 = vsel %vm2464_vm4, %v5319_v59, %v5375_v22  ;;  %v5315_v36 = vunpack.i.h.bf16 %v9107_v13 }
 0xa01   :  { %4147 = vmatpush.msra.mxu1 %v4069_v21 }
 0xa04   :  { %v5328_v52 = vpop.permute.xlu1 %5327 }
 0xa05   :  { %v5330_v15 = vunpack.i.h.bf16 %v5328_v52  ;;  %v9128_v23 = vpop.permute.xlu0 %5377  ;;  %v5329_v27 = vunpack.i.l.bf16 %v5328_v52  ;;  %v5345_v52 = vunpack.i.h.bf16 %v9109_v1  ;;  %v5364_v1 = vunpack.i.l.bf16 %v9113_v14 }
 0xa06   :  { %v5380_v42 = vunpack.i.h.bf16 %v9128_v23  ;;  %v5379_v43 = vunpack.i.l.bf16 %v9128_v23 }
 0xa07   :  { %4168 = vmatpush.msra.mxu2 %v5330_v15  ;;  %v4066_v40 = vsel %vm2464_vm4, %v5334_v56, %v5330_v15  ;;  %v4061_v4 = vsel %vm2464_vm4, %v5370_v6, %v5329_v27  ;;  %v4062_v17 = vsel %vm2464_vm4, %v5329_v27, %v5319_v59  ;;  %v4243_v56 = vsel %vm2875_vm5, %v5340_v46, %v5359_v47 }
 0xa08   :  { %4148 = vmatpush.msra.mxu1 %v4066_v40  ;;  %v4245_v9 = vsel %vm2875_vm5, %v5379_v43, %v5380_v42  ;;  %v5365_v40 = vunpack.i.h.bf16 %v9113_v14  ;;  %v4244_v3 = vsel %vm2875_vm5, %v5359_v47, %v5345_v52  ;;  %v4181_v14 = vld [vmem:[%s9560_s11 + $0x10] sm:$0xff] }
 0xa09   :  { %4169 = vmatpush.msra.mxu2 %v5375_v22 }
 0xa0a   :  { %4149 = vmatpush.msra.mxu1 %v4063_v55  ;;  %v5393_v55 = vpop.permute.xlu2 %5392  ;;  %v4230_v20 = vsel %vm2875_vm5, %v5364_v1, %v5365_v40 }
 0xa0b   :  { %4170 = vmatpush.msra.mxu2 %v5335_v19  ;;  %v4236_v19 = vsel %vm2875_vm5, %v5314_v50, %v5315_v36  ;;  %v5394_v41 = vunpack.i.l.bf16 %v5393_v55 }
 0xa0c   :  { %v5348_v61 = vpop.permute.xlu1 %5347  ;;  %4150 = vmatpush.msra.mxu1 %v4060_v11 }
 0xa0d   :  { %v5350_v30 = vunpack.i.h.bf16 %v5348_v61  ;;  %v5349_v2 = vunpack.i.l.bf16 %v5348_v61  ;;  %4171 = vmatpush.msra.mxu2 %v5320_v33  ;;  %v9154_v5 = vpop.permute.xlu0 %5397  ;;  %v5360_v33 = vunpack.i.h.bf16 %v9158_v62 }
 0xa0e   :  { %4151 = vmatpush.msra.mxu1 %v4057_v10  ;;  %v5399_v0 = vunpack.i.l.bf16 %v9154_v5  ;;  %v5400_v53 = vunpack.i.h.bf16 %v9154_v5 }
 0xa0f   :  { %4172 = vmatpush.msra.mxu2 %v5310_v63  ;;  %v4067_v48 = vsel %vm2464_vm4, %v5349_v2, %v5350_v30  ;;  %v4068_v32 = vsel %vm2464_vm4, %v5350_v30, %v5374_v8  ;;  %v5395_v30 = vunpack.i.h.bf16 %v5393_v55 }
 0xa10   :  { %4107 = vmatpush.msrb.mxu3 %v4067_v48  ;;  %4127 = vmatpush.msrb.mxu0 %v4068_v32  ;;  %v4246_v31 = vsel %vm2875_vm5, %v5380_v42, %v5399_v0  ;;  %v4237_v48 = vsel %vm2875_vm5, %v5315_v36, %v5394_v41  ;;  %v4238_v32 = vsel %vm2875_vm5, %v5394_v41, %v5360_v33 }
 0xa11   :  { %4152 = vmatpush.msra.mxu1 %v4054_v45  ;;  %4944 = vmatmul.msk.f32.vlgmr.msra.gmra.mxu2 %vm3459_vm7, %v3979_v26 }
 0xa12   :  { %4943 = vmatmul.msk.f32.vlgmr.msra.gmra.mxu1 %vm3459_vm7, %v3979_v26  ;;  %4108 = vmatpush.msrb.mxu3 %v4064_v57  ;;  %v3907_v57 = vpop.f32.mrf.mxu0 }
 0xa13   :  { %4128 = vmatpush.msrb.mxu0 %v4065_v39  ;;  %v3947_v39 = vpop.f32.mrf.mxu1 }
 0xa14   :  { %v9149_v51 = vpop.permute.xlu1 %5352  ;;  %4109 = vmatpush.msrb.mxu3 %v4061_v4 }
 0xa15   :  { %4129 = vmatpush.msrb.mxu0 %v4062_v17  ;;  %v5355_v13 = vunpack.i.h.bf16 %v9149_v51  ;;  %v5354_v22 = vunpack.i.l.bf16 %v9149_v51  ;;  %v5403_v11 = vpop.permute.xlu0 %5402 }
 0xa16   :  { %4110 = vmatpush.msrb.mxu3 %v4058_v60  ;;  %v5404_v2 = vunpack.i.l.bf16 %v5403_v11  ;;  %v5405_v27 = vunpack.i.h.bf16 %v5403_v11 }
 0xa17   :  { %4130 = vmatpush.msrb.mxu0 %v4059_v49  ;;  %v4233_v23 = vsel %vm2875_vm5, %v5354_v22, %v5355_v13 }
 0xa18   :  { %4111 = vmatpush.msrb.mxu3 %v4055_v28  ;;  %v4234_v45 = vsel %vm2875_vm5, %v5355_v13, %v5404_v2  ;;  %v4231_v16 = vsel %vm2875_vm5, %v5365_v40, %v5405_v27  ;;  %v4232_v6 = vsel %vm2875_vm5, %v5405_v27, %v5395_v30 }
 0xa19   :  { %4131 = vmatpush.msrb.mxu0 %v4056_v44 }
 0xa1a   :  { %4112 = vmatpush.msrb.mxu3 %v4052_v38  ;;  %v3927_v54 = vpop.f32.mrf.mxu0 }
 0xa1b   :  { %4132 = vmatpush.msrb.mxu0 %v4053_v58  ;;  %4941 = vmatmul.msk.f32.vlgmr.msrb.gmra.mxu3 %vm3459_vm7, %v3979_v26 }
 0xa1c   :  { %4942 = vmatmul.msk.f32.vlgmr.msrb.gmra.mxu0 %vm3459_vm7, %v3979_v26  ;;  %4285 = vmatpush.msra.mxu3 %v4245_v9  ;;  %v5383_v34 = vpop.permute.xlu1 %5382 }
 0xa1d   :  { %4305 = vmatpush.msra.mxu0 %v4246_v31  ;;  %v5385_v8 = vunpack.i.h.bf16 %v5383_v34  ;;  %v5384_v21 = vunpack.i.l.bf16 %v5383_v34 }
 0xa1e   :  { %4286 = vmatpush.msra.mxu3 %v4242_v37 }
 0xa1f   :  { %4306 = vmatpush.msra.mxu0 %v4243_v56  ;;  %4345 = vmatpush.msrb.mxu2 %v5384_v21  ;;  %v4239_v15 = vsel %vm2875_vm5, %v5385_v8, %v5344_v25  ;;  %v4247_v59 = vsel %vm2875_vm5, %v5399_v0, %v5384_v21 }
 0xa20   :  { %4287 = vmatpush.msra.mxu3 %v4239_v15  ;;  %4325 = vmatpush.msrb.mxu1 %v4247_v59 }
 0xa21   :  { %4346 = vmatpush.msrb.mxu2 %v5345_v52 }
 0xa22   :  { %4288 = vmatpush.msra.mxu3 %v4236_v19  ;;  %4326 = vmatpush.msrb.mxu1 %v4244_v3 }
 0xa23   :  { %4347 = vmatpush.msrb.mxu2 %v5400_v53 }
 0xa24   :  { %v5388_v63 = vpop.permute.xlu1 %5387  ;;  %4289 = vmatpush.msra.mxu3 %v4233_v23 }
 0xa25   :  { %v5390_v35 = vunpack.i.h.bf16 %v5388_v63  ;;  %v5389_v61 = vunpack.i.l.bf16 %v5388_v63  ;;  %4348 = vmatpush.msrb.mxu2 %v5360_v33 }
 0xa26   :  { %4290 = vmatpush.msra.mxu3 %v4230_v20 }
 0xa27   :  { %4945 = vmatmul.msk.f32.vlgmr.msra.gmra.mxu3 %vm3459_vm7, %v4181_v14  ;;  %4349 = vmatpush.msrb.mxu2 %v5390_v35  ;;  %v4240_v10 = vsel %vm2875_vm5, %v5344_v25, %v5389_v61  ;;  %v4241_v26 = vsel %vm2875_vm5, %v5389_v61, %v5400_v53  ;;  %v4235_v18 = vsel %vm2875_vm5, %v5404_v2, %v5390_v35  ;;  %vm4439_vm5 = vcmask 1041408  }
 0xa28   :  { %4307 = vmatpush.msra.mxu0 %v4240_v10  ;;  %4327 = vmatpush.msrb.mxu1 %v4241_v26 }
 0xa29   :  { %4350 = vmatpush.msrb.mxu2 %v5395_v30 }
 0xa2a   :  { %4308 = vmatpush.msra.mxu0 %v4237_v48  ;;  %4328 = vmatpush.msrb.mxu1 %v4238_v32 }
 0xa2b   :  { %4948 = vmatmul.msk.f32.vlgmr.msrb.gmra.mxu2 %vm3459_vm7, %v4181_v14 }
 0xa2c   :  { %4309 = vmatpush.msra.mxu0 %v4234_v45  ;;  %4329 = vmatpush.msrb.mxu1 %v4235_v18  ;;  %v3973_v51 = vpop.permute.xlu1 %3972 }
 0xa2d   :  { %v3975_v5 = vadd.f32 %v3973_v51, %v3907_v57  ;;  %v3976_v60 = vadd.f32 %v3973_v51, %v3927_v54  ;;  %v3977_v49 = vadd.f32 %v3973_v51, %v3947_v39  ;;  %v3978_v28 = vadd.f32 %v3973_v51, %v3967_v7 }
 0xa2e   :  { %4310 = vmatpush.msra.mxu0 %v4231_v16  ;;  %4330 = vmatpush.msrb.mxu1 %v4232_v6 }
 0xa2f   :  { %4946 = vmatmul.msk.f32.vlgmr.msra.gmra.mxu0 %vm3459_vm7, %v4181_v14  ;;  %4947 = vmatmul.msk.f32.vlgmr.msrb.gmra.mxu1 %vm3459_vm7, %v4181_v14  ;;  %v76_v14 = vld [vmem:[%s9571_s22] sm:$0xf]  ;;  %vm4422_vm7 = vcmask 982016  }
 0xa30   :  { %v9221_v41 = vperm.slane %v76_v14, 0  ;;  %v9223_v35 = vperm.slane %v76_v14, 1  ;;  %v9238_v32 = vperm.slane %v76_v14, 2 }
 0xa8f   :  { %v4154_v17 = vpop.f32.mrf.mxu1 }
 0xa90   :  { %v4179_v43 = vadd.f32 %v4154_v17, %v3977_v49  ;;  %v9254_v17 = vperm.slane %v76_v14, 3 }
 0xa94   :  { %v4174_v24 = vpop.f32.mrf.mxu2 }
 0xa95   :  { %v4180_v38 = vadd.f32 %v4174_v24, %v3978_v28 }
 0xa99   :  { %v4134_v12 = vpop.f32.mrf.mxu0 }
 0xa9a   :  { %v4178_v0 = vadd.f32 %v4134_v12, %v3976_v60 }
 0xa9e   :  { %v4114_v4 = vpop.f32.mrf.mxu3 }
 0xa9f   :  { %v4177_v62 = vadd.f32 %v4114_v4, %v3975_v5 }
 0xaaa   :  { %v4292_v42 = vpop.f32.mrf.mxu3 }
 0xaab   :  { %v4355_v44 = vadd.f32 %v4292_v42, %v4177_v62 }
 0xaac   :  { %v4312_v46 = vpop.f32.mrf.mxu0  ;;  %v4332_v29 = vpop.f32.mrf.mxu1 }
 0xaad   :  { %5647 = vtanh.f32 %v4355_v44  ;;  %v4356_v47 = vadd.f32 %v4312_v46, %v4178_v0  ;;  %v4357_v58 = vadd.f32 %v4332_v29, %v4179_v43 }
 0xaae   :  { %v4352_v9 = vpop.f32.mrf.mxu2 }
 0xaaf   :  { %5649 = vtanh.f32 %v4356_v47  ;;  %v4358_v36 = vadd.f32 %v4352_v9, %v4180_v38 }
 0xab0   :  { %5651 = vtanh.f32 %v4357_v58 }
 0xab1   :  { %5653 = vtanh.f32 %v4358_v36  ;;  %v4518_v36 = vld [vmem:[%s9565_s16] sm:$0x3] }
 0xab3   :  { %v5648_v50 = vpop.eup %5647 }
 0xab4   :  { %v4367_v31 = vrot.slane %v5648_v50, 2 }
 0xab5   :  { %v5650_v34 = vpop.eup %5649 }
 0xab6   :  { %v5652_v25 = vpop.eup %5651  ;;  %v4368_v8 = vrot.slane %v5650_v34, 2  ;;  %v4375_v21 = vmax.f32 %v5648_v50, %v4367_v31 }
 0xab7   :  { %v5654_v37 = vpop.eup %5653  ;;  %v4369_v52 = vrot.slane %v5652_v25, 2 }
 0xab8   :  { %4383 = vrot.lane.b32.xlu2 %v4375_v21, %s5695_s5  ;;  %v4376_v56 = vmax.f32 %v5650_v34, %v4368_v8  ;;  %v4370_v22 = vrot.slane %v5654_v37, 2 }
 0xab9   :  { %v4377_v13 = vmax.f32 %v5652_v25, %v4369_v52 }
 0xaba   :  { %4385 = vrot.lane.b32.xlu0 %v4376_v56, %s5695_s5  ;;  %v4378_v15 = vmax.f32 %v5654_v37, %v4370_v22 }
 0xabb   :  { %4387 = vrot.lane.b32.xlu1 %v4377_v13, %s5695_s5 }
 0xac0   :  { %4389 = vrot.lane.b32.xlu2 %v4378_v15, %s5695_s5 }
 0xb12   :  { %v4384_v59 = vpop.permute.xlu2 %4383 }
 0xb1a   :  { %v4390_v40 = vpop.permute.xlu2 %4389 }
 0xb1b   :  { %v4401_v63 = vmax.f32 %v4378_v15, %v4390_v40 }
 0xb2c   :  { %v4386_v19 = vpop.permute.xlu0 %4385 }
 0xb2d   :  { %v4388_v1 = vpop.permute.xlu1 %4387  ;;  %v4391_v53 = vsel %vm2464_vm4, %v4384_v59, %v4386_v19 }
 0xb2e   :  { %v4393_v3 = vsel %vm2464_vm4, %v4388_v1, %v4390_v40  ;;  %v4392_v55 = vsel %vm2464_vm4, %v4386_v19, %v4388_v1  ;;  %v4398_v33 = vmax.f32 %v4375_v21, %v4391_v53  ;;  %v4424_v1 = vld [vmem:[%s9562_s13] sm:$0x3]  ;;  %s4922_s13 = sshll.u32 %s9572_s23, 4  ;;  %s4923_s13 = int_to_ptr.hbm [resolvable:$true] %s4922_s13 }
 0xb2f   :  { %v4400_v23 = vmax.f32 %v4377_v13, %v4393_v3  ;;  %v4399_v11 = vmax.f32 %v4376_v56, %v4392_v55  ;;  %v4425_v55 = vld [vmem:[%s9563_s14] sm:$0x3] }
 0xb30   :  { %4406 = vrot.lane.b32.xlu0 %v4398_v33, %s5694_s30 }
 0xb31   :  { %4408 = vrot.lane.b32.xlu1 %v4399_v11, %s5694_s30  ;;  %4410 = vrot.lane.b32.xlu2 %v4400_v23, %s5694_s30 }
 0xb38   :  { %4412 = vrot.lane.b32.xlu0 %v4401_v63, %s5694_s30 }
 0xb8b   :  { %v4411_v20 = vpop.permute.xlu2 %4410 }
 0xba2   :  { %v4407_v61 = vpop.permute.xlu0 %4406 }
 0xba3   :  { %v4409_v30 = vpop.permute.xlu1 %4408  ;;  %v9226_v2 = vsel %vm986_vm0, 0.0, %v4407_v61 }
 0xba4   :  { %v9229_v10 = vsel %vm986_vm0, %v4409_v30, %v4411_v20  ;;  %v9232_v26 = vsel %vm986_vm0, %v4407_v61, %v4409_v30  ;;  %v4435_v27 = vmul.f32 %v9221_v41, %v9226_v2  ;;  %v4449_v48 = vmul.f32 %v9226_v2, %v9226_v2 }
 0xba5   :  { %v4436_v45 = vmul.f32 %v9223_v35, %v9232_v26  ;;  %v4450_v18 = vmul.f32 %v9232_v26, %v9232_v26  ;;  %v4451_v6 = vmul.f32 %v9229_v10, %v9229_v10  ;;  %v4437_v7 = vmul.f32 %v9238_v32, %v9229_v10 }
 0xba6   :  { %v4453_v16 = vmul.f32 %v4449_v48, %v9221_v41  ;;  %v4440_v57 = vsel %vm4439_vm5, %v4435_v27, 0.0 }
 0xba7   :  { %v4441_v39 = vsel %vm4439_vm5, %v4436_v45, 0.0  ;;  %v4454_v54 = vmul.f32 %v4450_v18, %v9223_v35  ;;  %v4455_v5 = vmul.f32 %v4451_v6, %v9238_v32  ;;  %v4443_v42 = vsel %vm4439_vm5, %v4437_v7, 0.0 }
 0xba8   :  { %v4457_v4 = vsel %vm4439_vm5, %v4453_v16, 0.0  ;;  %v4442_v12 = vadd.f32 %v4441_v39, %v4440_v57  ;;  %v4517_v39 = vld [vmem:[%s9564_s15] sm:$0x3] }
 0xba9   :  { %v4458_v51 = vsel %vm4439_vm5, %v4454_v54, 0.0  ;;  %v4460_v29 = vsel %vm4439_vm5, %v4455_v5, 0.0 }
 0xbaa   :  { %v4413_v24 = vpop.permute.xlu0 %4412  ;;  %v4459_v62 = vadd.f32 %v4458_v51, %v4457_v4  ;;  %v4444_v0 = vadd.f32 %v4443_v42, %v4442_v12 }
 0xbab   :  { %v4416_v60 = vsel %vm986_vm0, %v4411_v20, %v4413_v24 }
 0xbac   :  { %v4423_v49 = vsel %vm4422_vm7, %v4416_v60, 0.0  ;;  %v4461_v47 = vadd.f32 %v4460_v29, %v4459_v62 }
 0xbad   :  { %v4438_v43 = vmul.f32 %v9254_v17, %v4423_v49  ;;  %v4452_v28 = vmul.f32 %v4423_v49, %v4423_v49 }
 0xbaf   :  { %v4445_v44 = vsel %vm4439_vm5, %v4438_v43, 0.0  ;;  %v4456_v46 = vmul.f32 %v4452_v28, %v9254_v17 }
 0xbb0   :  { %v4446_v38 = vadd.f32 %v4445_v44, %v4444_v0 }
 0xbb1   :  { %v4462_v58 = vsel %vm4439_vm5, %v4456_v46, 0.0 }
 0xbb2   :  { %4447 = vadd.xlane.f32.xlu1 %v4446_v38  ;;  %v4463_v9 = vadd.f32 %v4462_v58, %v4461_v47 }
 0xbb4   :  { %4464 = vadd.xlane.f32.xlu2 %v4463_v9 }
 0xbcb   :  { %4521 = vperm.xlu1 %4964, %v4518_v36  }
 0xc25   :  { %v4448_v50 = vpop.xlane.xlu1 %4447 }
 0xc27   :  { %v4465_v31 = vpop.xlane.xlu2 %4464 }
 0xc28   :  { %v4466_v34 = vsel %vm986_vm0, %v4448_v50, %v4465_v31 }
 0xc29   :  { %v4467_v25 = vmul.f32 0.004, %v4466_v34 }
 0xc2b   :  { %v4468_v8 = vmul.f32 %v4467_v25, %v4467_v25 }
 0xc2d   :  { %4470 = vrot.lane.b32.xlu0 %v4468_v8, %s5694_s30 }
 0xc9f   :  { %v4471_v21 = vpop.permute.xlu0 %4470 }
 0xca0   :  { %v4473_v37 = vsub.f32 %v4467_v25, %v4471_v21 }
 0xca2   :  { %v4483_v52 = vadd.f32 1e-05, %v4473_v37 }
 0xca4   :  { %5655 = vrsqrt.f32 %v4483_v52  ;;  %vm4490_vm15 = vweird.f32 %v4483_v52 }
 0xcaa   :  { %v5656_v56 = vpop.eup %5655 }
 0xcab   :  { %v4485_v13 = vmul.f32 %v5656_v56, %v4483_v52  ;;  %vm4491_vm14 = vweird.f32 %v5656_v56 }
 0xcac   :  { %vm4492_vm1 = vmor %vm4490_vm15, %vm4491_vm14 }
 0xcad   :  { %v4486_v22 = vmul.f32 %v5656_v56, %v4485_v13 }
 0xcaf   :  { %v4487_v15 = vmul.f32 0.5, %v4486_v22 }
 0xcb1   :  { %v4488_v59 = vsub.f32 1.5, %v4487_v15 }
 0xcb3   :  { %v4489_v19 = vmul.f32 %v5656_v56, %v4488_v59 }
 0xcb5   :  { %v4493_v40 = vsel %vm4492_vm1, %v5656_v56, %v4489_v19 }
 0xcb6   :  { %4495 = vrot.lane.b32.xlu0 %v4493_v40, %s5695_s5 }
 0xcbe   :  { %4476 = vperm.xlu0 %4963, %v4467_v25  }
 0xd28   :  { %v4496_v53 = vpop.permute.xlu0 %4495 }
 0xd29   :  { %v4498_v3 = vmul.f32 %v4496_v53, %v4424_v1 }
 0xd2b   :  { %4501 = vperm.xlu0 %4963, %v4498_v3  }
 0xd30   :  { %v4477_v33 = vpop.permute.xlu0 %4476 }
 0xd31   :  { %v4479_v11 = vsub.f32 %v9226_v2, %v4477_v33  ;;  %v4480_v63 = vsub.f32 %v9232_v26, %v4477_v33  ;;  %v4481_v14 = vsub.f32 %v9229_v10, %v4477_v33  ;;  %v4482_v61 = vsub.f32 %v4423_v49, %v4477_v33  ;;  %v4522_v10 = vpop.permute.xlu1 %4521 }
 0xd33   :  { %4510 = vperm.xlu0 %4963, %v4425_v55  }
 0xd9d   :  { %v4502_v23 = vpop.permute.xlu0 %4501 }
 0xd9e   :  { %v4504_v20 = vmul.f32 %v4502_v23, %v4479_v11  ;;  %v4505_v30 = vmul.f32 %v4502_v23, %v4480_v63  ;;  %v4506_v27 = vmul.f32 %v4502_v23, %v4481_v14  ;;  %v4507_v48 = vmul.f32 %v4502_v23, %v4482_v61 }
 0xda5   :  { %v4511_v45 = vpop.permute.xlu0 %4510 }
 0xda6   :  { %v4513_v18 = vadd.f32 %v4511_v45, %v4504_v20  ;;  %v4514_v16 = vadd.f32 %v4511_v45, %v4505_v30  ;;  %v4515_v6 = vadd.f32 %v4511_v45, %v4506_v27  ;;  %v4516_v57 = vadd.f32 %v4511_v45, %v4507_v48  ;;  %v4625_v20 = vld [vmem:[%s9567_s18] sm:$0x3]  ;;  %v4780_v45 = vld [vmem:[%s9568_s19 + $0x78] sm:$0xff] }
 0xda7   :  { %v4624_v30 = vld [vmem:[%s9566_s17] sm:$0x3]  ;;  %4833 = vmatpush.msra.mxu2 %v4780_v45  ;;  %v4767_v45 = vld [vmem:[%s9568_s19 + $0x10] sm:$0xff] }
 0xda8   :  { %4949 = vmatpush.msk.msrb.mxu3 %vm4439_vm5, %v4513_v18  ;;  %4951 = vmatpush.msk.msrb.mxu0 %vm4439_vm5, %v4514_v16  ;;  %v4796_v18 = vld [vmem:[%s9568_s19 + $0xf8] sm:$0xff]  ;;  %v4779_v16 = vld [vmem:[%s9568_s19 + $0x70] sm:$0xff] }
 0xda9   :  { %4955 = vmatpush.msk.msra.mxu1 %vm4439_vm5, %v4516_v57  ;;  %4950 = vmatmul.msk.f32.vlgmr.msrb.gmra.mxu3 %vm4524_vm2, %v4517_v39  ;;  %v4795_v57 = vld [vmem:[%s9568_s19 + $0xf0] sm:$0xff] }
 0xdaa   :  { %4952 = vmatmul.msk.f32.vlgmr.msrb.gmra.mxu0 %vm4524_vm2, %v4517_v39  ;;  %4953 = vmatpush.msk.msra.mxu3 %vm4439_vm5, %v4515_v6 }
 0xdab   :  { %4956 = vmatmul.msk.f32.vlgmr.msra.gmra.mxu1 %vm4524_vm2, %v4517_v39  ;;  %4853 = vmatpush.msra.mxu0 %v4796_v18  ;;  %v4783_v18 = vld [vmem:[%s9568_s19 + $0x90] sm:$0xff] }
 0xdac   :  { %4834 = vmatpush.msra.mxu2 %v4779_v16  ;;  %v4803_v16 = vld [vmem:[%s9568_s19 + $0x130] sm:$0xff] }
 0xdad   :  { %4854 = vmatpush.msra.mxu0 %v4795_v57  ;;  %v4766_v57 = vld [vmem:[%s9568_s19 + $0x8] sm:$0xff] }
 0xdb1   :  { %4954 = vmatmul.msk.f32.vlgmr.msra.gmra.mxu3 %vm4524_vm2, %v4517_v39 }
 0xe27   :  { %v4577_v2 = vpop.f32.mrf.mxu0 }
 0xe28   :  { %v4578_v26 = vadd.f32 %v4577_v2, %v4522_v10  ;;  %v4617_v54 = vpop.f32.mrf.mxu1 }
 0xe29   :  { %v4618_v51 = vadd.f32 %v4617_v54, %v4522_v10 }
 0xe2a   :  { %5657 = vtanh.f32 %v4578_v26 }
 0xe2c   :  { %v4557_v7 = vpop.f32.mrf.mxu3 }
 0xe2d   :  { %v4558_v4 = vadd.f32 %v4557_v7, %v4522_v10 }
 0xe2f   :  { %5659 = vtanh.f32 %v4558_v4 }
 0xe30   :  { %5661 = vtanh.f32 %v4618_v51  ;;  %v9286_v12 = vpop.eup %5657 }
 0xe31   :  { %v4640_v42 = vmul.f32 %v9286_v12, %v9286_v12  ;;  %v4627_v28 = vmul.f32 %v9286_v12, %v9223_v35 }
 0xe33   :  { %v4644_v29 = vmul.f32 %v4640_v42, %v9223_v35  ;;  %v4631_v9 = vsel %vm4439_vm5, %v4627_v28, 0.0 }
 0xe34   :  { %v4597_v24 = vpop.f32.mrf.mxu3 }
 0xe35   :  { %v9288_v5 = vpop.eup %5659  ;;  %v4598_v60 = vadd.f32 %v4597_v24, %v4522_v10  ;;  %v4648_v25 = vsel %vm4439_vm5, %v4644_v29, 0.0 }
 0xe36   :  { %v4639_v49 = vmul.f32 %v9288_v5, %v9288_v5  ;;  %v4626_v62 = vmul.f32 %v9288_v5, %v9221_v41  ;;  %v9296_v43 = vpop.eup %5661 }
 0xe37   :  { %5663 = vtanh.f32 %v4598_v60  ;;  %v4642_v46 = vmul.f32 %v9296_v43, %v9296_v43  ;;  %v4629_v47 = vmul.f32 %v9296_v43, %v9254_v17 }
 0xe38   :  { %v4643_v0 = vmul.f32 %v4639_v49, %v9221_v41  ;;  %v4630_v44 = vsel %vm4439_vm5, %v4626_v62, 0.0 }
 0xe39   :  { %v4632_v50 = vadd.f32 %v4631_v9, %v4630_v44  ;;  %v4646_v34 = vmul.f32 %v4642_v46, %v9254_v17  ;;  %v4635_v37 = vsel %vm4439_vm5, %v4629_v47, 0.0  ;;  %v4778_v47 = vld [vmem:[%s9568_s19 + $0x68] sm:$0xff]  ;;  %v4777_v9 = vld [vmem:[%s9568_s19 + $0x60] sm:$0xff] }
 0xe3a   :  { %v4647_v36 = vsel %vm4439_vm5, %v4643_v0, 0.0  ;;  %4835 = vmatpush.msra.mxu2 %v4778_v47 }
 0xe3b   :  { %v4649_v21 = vadd.f32 %v4648_v25, %v4647_v36  ;;  %v4652_v22 = vsel %vm4439_vm5, %v4646_v34, 0.0  ;;  %v4776_v36 = vld [vmem:[%s9568_s19 + $0x58] sm:$0xff]  ;;  %v4775_v34 = vld [vmem:[%s9568_s19 + $0x50] sm:$0xff] }
 0xe3c   :  { %4836 = vmatpush.msra.mxu2 %v4777_v9  ;;  %v4791_v25 = vld [vmem:[%s9568_s19 + $0xd0] sm:$0xff] }
 0xe3d   :  { %v9305_v38 = vpop.eup %5663 }
 0xe3e   :  { %v4628_v58 = vmul.f32 %v9305_v38, %v9238_v32  ;;  %v4641_v41 = vmul.f32 %v9305_v38, %v9305_v38  ;;  %4837 = vmatpush.msra.mxu2 %v4776_v36 }
 0xe40   :  { %v4633_v31 = vsel %vm4439_vm5, %v4628_v58, 0.0  ;;  %v4645_v35 = vmul.f32 %v4641_v41, %v9238_v32  ;;  %v4794_v58 = vld [vmem:[%s9568_s19 + $0xe8] sm:$0xff]  ;;  %v4793_v41 = vld [vmem:[%s9568_s19 + $0xe0] sm:$0xff]  ;;  %4838 = vmatpush.msra.mxu2 %v4775_v34 }
 0xe41   :  { %v4634_v8 = vadd.f32 %v4633_v31, %v4632_v50  ;;  %4855 = vmatpush.msra.mxu0 %v4794_v58  ;;  %v4792_v50 = vld [vmem:[%s9568_s19 + $0xd8] sm:$0xff] }
 0xe42   :  { %v4650_v52 = vsel %vm4439_vm5, %v4645_v35, 0.0  ;;  %v4812_v31 = vld [vmem:[%s9568_s19 + $0x178] sm:$0xff]  ;;  %v4811_v35 = vld [vmem:[%s9568_s19 + $0x170] sm:$0xff] }
 0xe43   :  { %v4636_v56 = vadd.f32 %v4635_v37, %v4634_v8  ;;  %v4651_v13 = vadd.f32 %v4650_v52, %v4649_v21  ;;  %4856 = vmatpush.msra.mxu0 %v4793_v41  ;;  %4873 = vmatpush.msrb.mxu3 %v4812_v31  ;;  %v4774_v8 = vld [vmem:[%s9568_s19 + $0x48] sm:$0xff]  ;;  %v4773_v52 = vld [vmem:[%s9568_s19 + $0x40] sm:$0xff] }
 0xe44   :  { %v4790_v21 = vld [vmem:[%s9568_s19 + $0xc8] sm:$0xff]  ;;  %4839 = vmatpush.msra.mxu2 %v4774_v8 }
 0xe45   :  { %4637 = vadd.xlane.f32.xlu2 %v4636_v56  ;;  %v4653_v15 = vadd.f32 %v4652_v22, %v4651_v13  ;;  %4857 = vmatpush.msra.mxu0 %v4792_v50  ;;  %v4810_v37 = vld [vmem:[%s9568_s19 + $0x168] sm:$0xff]  ;;  %v4789_v56 = vld [vmem:[%s9568_s19 + $0xc0] sm:$0xff]  ;;  %v4828_v22 = vld [vmem:[%s9568_s19 + $0x1f8] sm:$0xff] }
 0xe46   :  { %4874 = vmatpush.msrb.mxu3 %v4811_v35  ;;  %v4809_v13 = vld [vmem:[%s9568_s19 + $0x160] sm:$0xff]  ;;  %4840 = vmatpush.msra.mxu2 %v4773_v52 }
 0xe47   :  { %4654 = vadd.xlane.f32.xlu0 %v4653_v15  ;;  %4858 = vmatpush.msra.mxu0 %v4791_v25  ;;  %v4772_v15 = vld [vmem:[%s9568_s19 + $0x38] sm:$0xff] }
 0xe48   :  { %4875 = vmatpush.msrb.mxu3 %v4810_v37  ;;  %4893 = vmatpush.msrb.mxu1 %v4828_v22 }
 0xe49   :  { %4859 = vmatpush.msra.mxu0 %v4790_v21  ;;  %4841 = vmatpush.msra.mxu2 %v4772_v15 }
 0xe4a   :  { %4876 = vmatpush.msrb.mxu3 %v4809_v13 }
 0xe4b   :  { %4860 = vmatpush.msra.mxu0 %v4789_v56 }
 0xeb8   :  { %v4638_v59 = vpop.xlane.xlu2 %4637 }
 0xeba   :  { %v4655_v19 = vpop.xlane.xlu0 %4654 }
 0xebb   :  { %v4656_v32 = vsel %vm986_vm0, %v4638_v59, %v4655_v19  ;;  %v4788_v59 = vld [vmem:[%s9568_s19 + $0xb8] sm:$0xff]  ;;  %vm4740_vm0 = vcmask 23552  }
 0xebc   :  { %v4657_v17 = vmul.f32 0.004, %v4656_v32  ;;  %v4808_v19 = vld [vmem:[%s9568_s19 + $0x158] sm:$0xff]  ;;  %v4827_v32 = vld [vmem:[%s9568_s19 + $0x1f0] sm:$0xff]  ;;  %4861 = vmatpush.msra.mxu0 %v4788_v59 }
 0xebd   :  { %4877 = vmatpush.msrb.mxu3 %v4808_v19  ;;  %4894 = vmatpush.msrb.mxu1 %v4827_v32 }
 0xebe   :  { %v4658_v40 = vmul.f32 %v4657_v17, %v4657_v17 }
 0xec0   :  { %4660 = vrot.lane.b32.xlu2 %v4658_v40, %s5694_s30  ;;  %v4787_v40 = vld [vmem:[%s9568_s19 + $0xb0] sm:$0xff] }
 0xec1   :  { %4862 = vmatpush.msra.mxu0 %v4787_v40 }
 0xf1a   :  { %v4661_v1 = vpop.permute.xlu2 %4660 }
 0xf1b   :  { %v4663_v53 = vsub.f32 %v4657_v17, %v4661_v1  ;;  %v4807_v1 = vld [vmem:[%s9568_s19 + $0x150] sm:$0xff] }
 0xf1c   :  { %4878 = vmatpush.msrb.mxu3 %v4807_v1 }
 0xf1d   :  { %v4673_v3 = vadd.f32 1e-05, %v4663_v53  ;;  %v4826_v53 = vld [vmem:[%s9568_s19 + $0x1e8] sm:$0xff] }
 0xf1e   :  { %4895 = vmatpush.msrb.mxu1 %v4826_v53 }
 0xf1f   :  { %5665 = vrsqrt.f32 %v4673_v3  ;;  %vm4680_vm6 = vweird.f32 %v4673_v3 }
 0xf25   :  { %v5666_v55 = vpop.eup %5665 }
 0xf26   :  { %v4675_v33 = vmul.f32 %v5666_v55, %v4673_v3  ;;  %vm4681_vm3 = vweird.f32 %v5666_v55  ;;  %v4770_v3 = vld [vmem:[%s9568_s19 + $0x28] sm:$0xff] }
 0xf27   :  { %vm4682_vm8 = vmor %vm4680_vm6, %vm4681_vm3 }
 0xf28   :  { %v4676_v23 = vmul.f32 %v5666_v55, %v4675_v33  ;;  %v4806_v33 = vld [vmem:[%s9568_s19 + $0x148] sm:$0xff] }
 0xf29   :  { %4879 = vmatpush.msrb.mxu3 %v4806_v33 }
 0xf2a   :  { %v4677_v11 = vmul.f32 0.5, %v4676_v23  ;;  %v4825_v23 = vld [vmem:[%s9568_s19 + $0x1e0] sm:$0xff] }
 0xf2b   :  { %4896 = vmatpush.msrb.mxu1 %v4825_v23  ;;  %v5426_v23 = vld [vmem:[%s9569_s20] ss:$0 sm:$0xff] }
 0xf2c   :  { %v4678_v63 = vsub.f32 1.5, %v4677_v11  ;;  %v4769_v11 = vld [vmem:[%s9568_s19 + $0x20] sm:$0xff] }
 0xf2e   :  { %v4679_v14 = vmul.f32 %v5666_v55, %v4678_v63  ;;  %v4785_v63 = vld [vmem:[%s9568_s19 + $0xa0] sm:$0xff] }
 0xf30   :  { %v4683_v61 = vsel %vm4682_vm8, %v5666_v55, %v4679_v14  ;;  %v4786_v55 = vld [vmem:[%s9568_s19 + $0xa8] sm:$0xff]  ;;  %v4805_v14 = vld [vmem:[%s9568_s19 + $0x140] sm:$0xff] }
 0xf31   :  { %4685 = vrot.lane.b32.xlu1 %v4683_v61, %s5695_s5  ;;  %4863 = vmatpush.msra.mxu0 %v4786_v55  ;;  %v4824_v61 = vld [vmem:[%s9568_s19 + $0x1d8] sm:$0xff] }
 0xf32   :  { %4880 = vmatpush.msrb.mxu3 %v4805_v14  ;;  %4897 = vmatpush.msrb.mxu1 %v4824_v61 }
 0xf33   :  { %4864 = vmatpush.msra.mxu0 %v4785_v63 }
 0xf39   :  { %4666 = vperm.xlu1 %4964, %v4657_v17   ;;  %v4771_v17 = vld [vmem:[%s9568_s19 + $0x30] sm:$0xff] }
 0xf3a   :  { %4842 = vmatpush.msra.mxu2 %v4771_v17 }
 0xf3c   :  { %4843 = vmatpush.msra.mxu2 %v4770_v3 }
 0xf3e   :  { %4844 = vmatpush.msra.mxu2 %v4769_v11 }
 0xf41   :  { %4700 = vperm.xlu1 %4964, %v4625_v20   ;;  %v4768_v20 = vld [vmem:[%s9568_s19 + $0x18] sm:$0xff] }
 0xf42   :  { %4845 = vmatpush.msra.mxu2 %v4768_v20 }
 0xf44   :  { %4846 = vmatpush.msra.mxu2 %v4767_v45 }
 0xf46   :  { %4847 = vmatpush.msra.mxu2 %v4766_v57 }
 0xfa3   :  { %v4686_v27 = vpop.permute.xlu1 %4685 }
 0xfa4   :  { %v4688_v48 = vmul.f32 %v4686_v27, %v4624_v30  ;;  %v4784_v30 = vld [vmem:[%s9568_s19 + $0x98] sm:$0xff] }
 0xfa5   :  { %v4804_v27 = vld [vmem:[%s9568_s19 + $0x138] sm:$0xff]  ;;  %4865 = vmatpush.msra.mxu0 %v4784_v30 }
 0xfa6   :  { %4691 = vperm.xlu2 %4965, %v4688_v48   ;;  %v4823_v48 = vld [vmem:[%s9568_s19 + $0x1d0] sm:$0xff]  ;;  %4881 = vmatpush.msrb.mxu3 %v4804_v27 }
 0xfa7   :  { %4898 = vmatpush.msrb.mxu1 %v4823_v48  ;;  %4866 = vmatpush.msra.mxu0 %v4783_v18 }
 0xfa8   :  { %4882 = vmatpush.msrb.mxu3 %v4803_v16 }
 0xfab   :  { %v4667_v6 = vpop.permute.xlu1 %4666 }
 0xfac   :  { %v4669_v39 = vsub.f32 %v9288_v5, %v4667_v6  ;;  %v4670_v2 = vsub.f32 %v9286_v12, %v4667_v6  ;;  %v4671_v10 = vsub.f32 %v9305_v38, %v4667_v6  ;;  %v4672_v26 = vsub.f32 %v9296_v43, %v4667_v6  ;;  %v4822_v6 = vld [vmem:[%s9568_s19 + $0x1c8] sm:$0xff] }
 0xfad   :  { %4899 = vmatpush.msrb.mxu1 %v4822_v6 }
 0xfb3   :  { %v4701_v60 = vpop.permute.xlu1 %4700 }
0x1000   :  { %v4692_v54 = vpop.permute.xlu2 %4691 }
0x1001   :  { %v4694_v7 = vmul.f32 %v4692_v54, %v4669_v39  ;;  %v4695_v4 = vmul.f32 %v4692_v54, %v4670_v2  ;;  %v4696_v51 = vmul.f32 %v4692_v54, %v4671_v10  ;;  %v4697_v24 = vmul.f32 %v4692_v54, %v4672_v26  ;;  %v4782_v39 = vld [vmem:[%s9568_s19 + $0x88] sm:$0xff]  ;;  %v4821_v10 = vld [vmem:[%s9568_s19 + $0x1c0] sm:$0xff] }
0x1002   :  { %v4802_v2 = vld [vmem:[%s9568_s19 + $0x128] sm:$0xff]  ;;  %4867 = vmatpush.msra.mxu0 %v4782_v39  ;;  %v4765_v26 = vld [vmem:[%s9568_s19] sm:$0xff]  ;;  %4900 = vmatpush.msrb.mxu1 %v4821_v10 }
0x1003   :  { %v4703_v49 = vadd.f32 %v4701_v60, %v4694_v7  ;;  %v4704_v62 = vadd.f32 %v4701_v60, %v4695_v4  ;;  %v4705_v42 = vadd.f32 %v4701_v60, %v4696_v51  ;;  %v4706_v28 = vadd.f32 %v4701_v60, %v4697_v24  ;;  %v4781_v54 = vld [vmem:[%s9568_s19 + $0x80] sm:$0xff]  ;;  %4883 = vmatpush.msrb.mxu3 %v4802_v2  ;;  %v4820_v4 = vld [vmem:[%s9568_s19 + $0x1b8] sm:$0xff]  ;;  %v4819_v24 = vld [vmem:[%s9568_s19 + $0x1b0] sm:$0xff] }
0x1004   :  { %v4801_v7 = vld [vmem:[%s9568_s19 + $0x120] sm:$0xff]  ;;  %4848 = vmatpush.msra.mxu2 %v4765_v26  ;;  %4868 = vmatpush.msra.mxu0 %v4781_v54  ;;  %v4800_v51 = vld [vmem:[%s9568_s19 + $0x118] sm:$0xff]  ;;  %v4799_v60 = vld [vmem:[%s9568_s19 + $0x110] sm:$0xff] }
0x1005   :  { %4738 = vrot.lane.b32.xlu1 %v4706_v28, %s5697_s25  ;;  %v5406_v0 = vpack.i.bf16 %v4705_v42, %v4704_v62  ;;  %v5411_v5 = vpack.i.bf16 %v4704_v62, %v4703_v49  ;;  %v4721_v12 = vrot.slane %v4704_v62, 1  ;;  %v4722_v44 = vrot.slane %v4705_v42, 1  ;;  %4884 = vmatpush.msrb.mxu3 %v4801_v7  ;;  %v4798_v62 = vld [vmem:[%s9568_s19 + $0x108] sm:$0xff] }
0x1006   :  { %v4720_v43 = vrot.slane %v4703_v49, 1  ;;  %v4743_v38 = vrot.slane %v4706_v28, 1  ;;  %4901 = vmatpush.msrb.mxu1 %v4820_v4  ;;  %v4818_v49 = vld [vmem:[%s9568_s19 + $0x1a8] sm:$0xff]  ;;  %v4797_v28 = vld [vmem:[%s9568_s19 + $0x100] sm:$0xff] }
0x1007   :  { %5407 = vrot.lane.b32.xlu2 %v5406_v0, %s5697_s25  ;;  %5412 = vrot.lane.b32.xlu0 %v5411_v5, %s5695_s5  ;;  %v5416_v46 = vpack.i.bf16 %v4722_v44, %v4721_v12  ;;  %v4816_v0 = vld [vmem:[%s9568_s19 + $0x198] sm:$0xff] }
0x1008   :  { %v5421_v29 = vpack.i.bf16 %v4721_v12, %v4720_v43  ;;  %4885 = vmatpush.msrb.mxu3 %v4800_v51  ;;  %4902 = vmatpush.msrb.mxu1 %v4819_v24  ;;  %v4815_v12 = vld [vmem:[%s9568_s19 + $0x190] sm:$0xff]  ;;  %v4813_v43 = vld [vmem:[%s9568_s19 + $0x180] sm:$0xff] }
0x100a   :  { %4886 = vmatpush.msrb.mxu3 %v4799_v60  ;;  %4903 = vmatpush.msrb.mxu1 %v4818_v49 }
0x100c   :  { %4887 = vmatpush.msrb.mxu3 %v4798_v62 }
0x100d   :  { %5417 = vrot.lane.b32.xlu1 %v5416_v46, %s5697_s25 }
0x100e   :  { %4888 = vmatpush.msrb.mxu3 %v4797_v28 }
0x100f   :  { %4727 = vrot.lane.b32.xlu0 %v4722_v44, %s5695_s5  ;;  %5422 = vrot.lane.b32.xlu2 %v5421_v29, %s5695_s5  ;;  %v4814_v44 = vld [vmem:[%s9568_s19 + $0x188] sm:$0xff] }
0x1015   :  { %4748 = vrot.lane.b32.xlu1 %v4743_v38, %s5697_s25 }
0x1017   :  { %4714 = vrot.lane.b32.xlu2 %v4705_v42, %s5695_s5  ;;  %v4817_v42 = vld [vmem:[%s9568_s19 + $0x1a0] sm:$0xff]  ;;  %s5698_s5 = smov [#allocation4]  }
0x1018   :  { %4904 = vmatpush.msrb.mxu1 %v4817_v42  ;;  %s4920_s3 = sshll.u32 %s5698_s5, 4  ;;  %s4921_s3 = int_to_ptr.vmem [resolvable:$true] %s4920_s3 }
0x101a   :  { %4905 = vmatpush.msrb.mxu1 %v4816_v0 }
0x101c   :  { %4906 = vmatpush.msrb.mxu1 %v4815_v12 }
0x101e   :  { %4907 = vmatpush.msrb.mxu1 %v4814_v44 }
0x1020   :  { %4908 = vmatpush.msrb.mxu1 %v4813_v43 }
0x1061   :  { %v5408_v5 = vpop.permute.xlu2 %5407 }
0x1062   :  { %v5410_v29 = vunpack.i.h.bf16 %v5408_v5  ;;  %v5409_v38 = vunpack.i.l.bf16 %v5408_v5 }
0x1064   :  { %v4741_v58 = vsel %vm4740_vm0, %v5409_v38, %v5410_v29 }
0x1065   :  { %v4752_v35 = vrot.slane %v4741_v58, 7 }
0x1069   :  { %v5423_v46 = vpop.permute.xlu2 %5422 }
0x106a   :  { %v5425_v56 = vunpack.i.h.bf16 %v5423_v46  ;;  %v5424_v13 = vunpack.i.l.bf16 %v5423_v46 }
0x106c   :  { %v4729_v32 = vsel %vm2464_vm4, %v5424_v13, %v5425_v56 }
0x1071   :  { %v4715_v31 = vpop.permute.xlu2 %4714 }
0x1077   :  { %v4739_v47 = vpop.permute.xlu1 %4738 }
0x1078   :  { %v4742_v9 = vsel %vm4740_vm0, %v5410_v29, %v4739_v47 }
0x1079   :  { %v5413_v41 = vpop.permute.xlu0 %5412  ;;  %v4753_v34 = vrot.slane %v4742_v9, 7 }
0x107a   :  { %v5415_v36 = vunpack.i.h.bf16 %v5413_v41  ;;  %v5414_v50 = vunpack.i.l.bf16 %v5413_v41 }
0x107c   :  { %v4716_v25 = vsel %vm2464_vm4, %v5414_v50, %v5415_v36  ;;  %v4717_v8 = vsel %vm2464_vm4, %v5415_v36, %v4715_v31 }
0x107d   :  { %v4761_v21 = vsel %vm4760_vm9, %v4716_v25, %v4752_v35  ;;  %v4762_v37 = vsel %vm4760_vm9, %v4717_v8, %v4753_v34 }
0x107e   :  { %4849 = vmatmul.f32.vlgmr.msra.gmra.mxu2 %v4761_v21  ;;  %4869 = vmatmul.f32.vlgmr.msra.gmra.mxu0 %v4762_v37 }
0x107f   :  { %v5418_v52 = vpop.permute.xlu1 %5417 }
0x1080   :  { %v5420_v22 = vunpack.i.h.bf16 %v5418_v52  ;;  %v5419_v15 = vunpack.i.l.bf16 %v5418_v52 }
0x1081   :  { %v4728_v40 = vpop.permute.xlu0 %4727 }
0x1082   :  { %v4750_v59 = vsel %vm4740_vm0, %v5419_v15, %v5420_v22  ;;  %v4730_v55 = vsel %vm2464_vm4, %v5425_v56, %v4728_v40  ;;  %vm4913_vm4 = vcmask 320512  }
0x1083   :  { %v4754_v19 = vrot.slane %v4750_v59, 7 }
0x1085   :  { %v4763_v17 = vsel %vm4760_vm9, %v4729_v32, %v4754_v19 }
0x1086   :  { %4889 = vmatmul.f32.vlgmr.msrb.gmra.mxu3 %v4763_v17 }
0x1087   :  { %v4749_v1 = vpop.permute.xlu1 %4748 }
0x1088   :  { %v4751_v53 = vsel %vm4740_vm0, %v5420_v22, %v4749_v1 }
0x1089   :  { %v4755_v3 = vrot.slane %v4751_v53, 7 }
0x108b   :  { %v4764_v33 = vsel %vm4760_vm9, %v4730_v55, %v4755_v3 }
0x108c   :  { %4909 = vmatmul.f32.vlgmr.msrb.gmra.mxu1 %v4764_v33 }
0x10fb   :  { %v4870_v14 = vpop.f32.mrf.mxu0 }
0x1101   :  { %v4850_v11 = vpop.f32.mrf.mxu2 }
0x1102   :  { %v4851_v63 = vadd.f32 %v5426_v23, %v4850_v11 }
0x1104   :  { %v4871_v61 = vadd.f32 %v4870_v14, %v4851_v63 }
0x1109   :  { %v4890_v20 = vpop.f32.mrf.mxu3  ;;  %v4910_v27 = vpop.f32.mrf.mxu1 }
0x110a   :  { %v4891_v30 = vadd.f32 %v4890_v20, %v4871_v61 }
0x110c   :  { %v4911_v48 = vadd.f32 %v4910_v27, %v4891_v30 }
0x110e   :  { %4914 = vst.msk [vmem:[#allocation4] sm:$0x3] %vm4913_vm4, %v4911_v48 }
0x110f   :  { %4925 = dma.vmem_to_hbm [thread:$0]  %s4921_s3, 32, %s4923_s13, [#allocation5]  }
0x1110   :  { %5691 = dma.done.wait [#allocation5], 32  }
0x1111   :  { %5692 = vsyncadd [#allocation5], 4294967264 }
0x1112   :  { %4930 = vsyncpa [#allocation5], 1 }

</bundles_post_ra>
